<compile_context>
chip_gen: v7x
topology: tpu7x:2x2x1
jax: 0.10.0
libtpu: 0.0.40
codegen_flags: <defaults>
</compile_context>

<pallas_src>
import functools

import jax
import jax.numpy as jnp
import numpy as np
from jax import lax
from jax.experimental import pallas as pl
from jax.experimental.pallas import tpu as pltpu

EPS = 1e-5
DILS = (2, 4, 6)          # dilations of conv2 / conv3 / conv4 (padding == dilation)


# ---------------------------------------------------------------------------
# Fused Pallas kernel: 4 spatial branches + fuse 1x1 conv, one spatial tile
# ---------------------------------------------------------------------------
def _aspp_fused_kernel(xp_ref, w1_ref, w3_ref, ss_ref, wf_ref, fa_ref, o_ref,
                       *, TH, W, PAD, dils):
    """One (batch, row-block) tile of the full ASPP forward.

    xp_ref : (1, Hp, Wp, Cin)  bf16 padded NHWC input (full image, one batch)
    w1_ref : (Cin, Cd)         bf16 conv1 (1x1) weights
    w3_ref : (27, Cin, Cd)     bf16 per-tap weights for conv2/3/4 (9 taps each)
    ss_ref : (12, Cd)          f32  rows 3b..3b+2 = [bn_scale, bn_shift, alpha]
                                    for branch b in {conv1, conv2, conv3, conv4}
    wf_ref : (4, Cd, Cout)     bf16 fuse-weight blocks for the 4 spatial branches
    fa_ref : (1, 3, Cout)      f32  fuse [scale, shift(+GAP branch, per batch), alpha]
    o_ref  : (1, TH, W, Cout)  f32  output tile
    """
    i = pl.program_id(1)
    r0 = i * TH                       # first output row of this tile
    Cd = w1_ref.shape[-1]
    Cout = o_ref.shape[-1]
    M = TH * W

    def bn_prelu_bf16(acc, b):        # acc: (M, Cd) f32, b: static branch id 0..3
        scale = ss_ref[3 * b:3 * b + 1, :]
        shift = ss_ref[3 * b + 1:3 * b + 2, :]
        alpha = ss_ref[3 * b + 2:3 * b + 3, :]
        y = acc * scale + shift
        y = jnp.where(y >= 0, y, alpha * y)
        return y.astype(jnp.bfloat16)

    # ---- branch 1: 1x1 conv on the tile centre ----------------------------
    xc = xp_ref[0, pl.ds(PAD + r0, TH), pl.ds(PAD, W), :].reshape(M, -1)
    c1 = bn_prelu_bf16(
        jnp.dot(xc, w1_ref[...], preferred_element_type=jnp.float32), 0)
    fuse_acc = jnp.dot(c1, wf_ref[0], preferred_element_type=jnp.float32)

    # ---- branches 2..4: dilated 3x3 convs (9 per-tap channel matmuls) ------
    for bi, d in enumerate(dils):
        acc = jnp.zeros((M, Cd), jnp.float32)
        for ky in range(3):
            for kx in range(3):
                tap = xp_ref[0,
                             pl.ds(PAD + r0 + (ky - 1) * d, TH),
                             pl.ds(PAD + (kx - 1) * d, W), :].reshape(M, -1)
                acc = acc + jnp.dot(tap, w3_ref[9 * bi + 3 * ky + kx],
                                    preferred_element_type=jnp.float32)
        cb = bn_prelu_bf16(acc, bi + 1)
        fuse_acc = fuse_acc + jnp.dot(cb, wf_ref[bi + 1],
                                      preferred_element_type=jnp.float32)

    # ---- fuse 1x1 epilogue: BN (GAP branch folded into shift) + PReLU ------
    y = fuse_acc * fa_ref[0, 0:1, :] + fa_ref[0, 1:2, :]
    y = jnp.where(y >= 0, y, fa_ref[0, 2:3, :] * y)
    o_ref[...] = y.reshape(1, TH, W, Cout).astype(o_ref.dtype)


# ---------------------------------------------------------------------------
# Wrapper: padding, weight reshapes, BN folding, GAP fold, pallas_call setup
# ---------------------------------------------------------------------------
def _fold_bn(p, c):
    """Fold conv bias + eval-mode BN into [scale, shift] and append PReLU alpha."""
    scale = p["gamma"] / jnp.sqrt(p["var"] + EPS)
    shift = p["beta"] + scale * (p["b"] - p["mean"])
    alpha = jnp.broadcast_to(jnp.asarray(p["alpha"], jnp.float32), (c,))
    return jnp.stack([scale, shift, alpha], axis=0).astype(jnp.float32)   # (3, c)


def _pick_row_block(H, W, target_m=256):
    """Smallest divisor TH of H with TH*W >= target_m (MXU-sized M tile)."""
    for d in range(1, H + 1):
        if H % d == 0 and d * W >= target_m:
            return d
    return H


def aspp_forward(x_nchw, params):
    """Full _ASPP forward. Input/output are NCHW (PyTorch convention)."""
    x = jnp.transpose(x_nchw, (0, 2, 3, 1))        # -> NHWC, f32
    N, H, W, Cin = x.shape
    Cd = params["conv1"]["w"].shape[0]             # down_dim
    Cout = params["fuse"]["w"].shape[0]            # in_dim
    PAD = max(DILS)
    TH = _pick_row_block(H, W)                     # rows per grid step
    # NOTE: W is assumed to be a multiple of 8 (sublane) so the in-kernel
    # (TH, W, C) <-> (TH*W, C) flattens are pure vreg relabels.

    # Single bf16 padded copy of x shared by all branches.
    xp = jnp.pad(x, ((0, 0), (PAD, PAD), (PAD, PAD), (0, 0))).astype(jnp.bfloat16)
    Hp, Wp = H + 2 * PAD, W + 2 * PAD

    p1, p2, p3, p4, p5, pf = (params[k] for k in
                              ("conv1", "conv2", "conv3", "conv4", "conv5", "fuse"))

    # Branch weights (bf16 for the MXU) and folded BN/PReLU params (f32).
    w1 = p1["w"].reshape(Cd, Cin).T.astype(jnp.bfloat16)                    # (Cin, Cd)
    w3 = jnp.concatenate(
        [jnp.transpose(p["w"], (2, 3, 1, 0)).reshape(9, Cin, Cd)
         for p in (p2, p3, p4)], axis=0).astype(jnp.bfloat16)               # (27, Cin, Cd)
    ss = jnp.concatenate([_fold_bn(p, Cd) for p in (p1, p2, p3, p4)], axis=0)  # (12, Cd)

    # GAP branch (adaptive_avg_pool2d -> conv5 -> BN -> PReLU): spatially
    # constant, so compute it in plain JAX (negligible work, avoids an extra
    # full HBM pass) and fold its fuse contribution into a per-batch bias.
    pooled = jnp.mean(x, axis=(1, 2))                                       # (N, Cin)
    w5 = p5["w"].reshape(Cd, Cin).T
    z5 = jnp.dot(pooled.astype(jnp.bfloat16), w5.astype(jnp.bfloat16),
                 preferred_element_type=jnp.float32)                        # (N, Cd)
    sb5 = _fold_bn(p5, Cd)
    c5 = z5 * sb5[0] + sb5[1]
    c5 = jnp.where(c5 >= 0, c5, sb5[2] * c5)                                # (N, Cd)

    # Fuse 1x1 conv over concat([c1..c5]): split its weights into 5 channel
    # blocks; the c5 block becomes a per-batch additive term in the BN shift.
    wf_full = pf["w"].reshape(Cout, 5 * Cd).T.reshape(5, Cd, Cout)          # (5, Cd, Cout)
    wf = wf_full[:4].astype(jnp.bfloat16)                                   # (4, Cd, Cout)
    sbf = _fold_bn(pf, Cout)                                                # (3, Cout)
    gap_term = jnp.dot(c5.astype(jnp.bfloat16), wf_full[4].astype(jnp.bfloat16),
                       preferred_element_type=jnp.float32)                  # (N, Cout)
    fscale = jnp.broadcast_to(sbf[0], (N, Cout))
    fshift = sbf[1][None, :] + sbf[0][None, :] * gap_term                   # per batch
    falpha = jnp.broadcast_to(sbf[2], (N, Cout))
    fuse_aux = jnp.stack([fscale, fshift, falpha], axis=1)                  # (N, 3, Cout)

    kernel = functools.partial(_aspp_fused_kernel, TH=TH, W=W, PAD=PAD, dils=DILS)
    out_nhwc = pl.pallas_call(
        kernel,
        out_shape=jax.ShapeDtypeStruct((N, H, W, Cout), jnp.float32),
        grid=(N, H // TH),
        in_specs=[
            pl.BlockSpec((1, Hp, Wp, Cin), lambda n, i: (n, 0, 0, 0)),  # padded x (bf16)
            pl.BlockSpec((Cin, Cd), lambda n, i: (0, 0)),               # w1
            pl.BlockSpec((27, Cin, Cd), lambda n, i: (0, 0, 0)),        # w3 taps
            pl.BlockSpec((12, Cd), lambda n, i: (0, 0)),                # branch BN/PReLU
            pl.BlockSpec((4, Cd, Cout), lambda n, i: (0, 0, 0)),        # fuse weight blocks
            pl.BlockSpec((1, 3, Cout), lambda n, i: (n, 0, 0)),         # fuse scale/shift/alpha
        ],
        out_specs=pl.BlockSpec((1, TH, W, Cout), lambda n, i: (n, i, 0, 0)),
        compiler_params=pltpu.CompilerParams(
            dimension_semantics=("parallel", "parallel"),   # no cross-step accumulation
            vmem_limit_bytes=48 * 1024 * 1024),
    )(xp, w1, w3, ss, wf, fuse_aux)

    return jnp.transpose(out_nhwc, (0, 3, 1, 2))   # back to NCHW


# ---------------------------------------------------------------------------
# Deterministic synthetic parameter init (shapes per _ASPP.__init__)
# ---------------------------------------------------------------------------
def init_aspp_params(key, in_dim):
    down = in_dim // 2

    def conv_params(k, cout, cin, ksz):
        kw, kb, kg, kbe, km, kv = jax.random.split(k, 6)
        return dict(
            w=0.1 * jax.random.normal(kw, (cout, cin, ksz, ksz), jnp.float32),
            b=0.1 * jax.random.normal(kb, (cout,), jnp.float32),
            gamma=1.0 + 0.1 * jax.random.normal(kg, (cout,), jnp.float32),
            beta=0.1 * jax.random.normal(kbe, (cout,), jnp.float32),
            mean=0.1 * jax.random.normal(km, (cout,), jnp.float32),
            var=jnp.abs(1.0 + 0.1 * jax.random.normal(kv, (cout,), jnp.float32)),
            alpha=jnp.float32(0.25),   # nn.PReLU() default init
        )

    ks = jax.random.split(key, 6)
    return {
        "conv1": conv_params(ks[0], down, in_dim, 1),
        "conv2": conv_params(ks[1], down, in_dim, 3),
        "conv3": conv_params(ks[2], down, in_dim, 3),
        "conv4": conv_params(ks[3], down, in_dim, 3),
        "conv5": conv_params(ks[4], down, in_dim, 1),
        "fuse":  conv_params(ks[5], in_dim, 5 * down, 1),
    }


# ---------------------------------------------------------------------------
# Pure-JAX reference (mirrors the kernel's bf16 matmul inputs / f32 accumulate)
# ---------------------------------------------------------------------------
def _ref_conv_bn_prelu(x, p, dil, pad):
    y = lax.conv_general_dilated(
        x.astype(jnp.bfloat16), p["w"].astype(jnp.bfloat16),
        window_strides=(1, 1), padding=((pad, pad), (pad, pad)),
        rhs_dilation=(dil, dil), dimension_numbers=("NCHW", "OIHW", "NCHW"),
        preferred_element_type=jnp.float32)
    y = y + p["b"][None, :, None, None]
    scale = p["gamma"] / jnp.sqrt(p["var"] + EPS)
    y = (y - p["mean"][None, :, None, None]) * scale[None, :, None, None] \
        + p["beta"][None, :, None, None]
    return jnp.where(y >= 0, y, p["alpha"] * y)


def aspp_ref(x, params):
    c1 = _ref_conv_bn_prelu(x, params["conv1"], 1, 0)
    c2 = _ref_conv_bn_prelu(x, params["conv2"], 2, 2)
    c3 = _ref_conv_bn_prelu(x, params["conv3"], 4, 4)
    c4 = _ref_conv_bn_prelu(x, params["conv4"], 6, 6)
    pooled = jnp.mean(x, axis=(2, 3), keepdims=True)
    c5 = _ref_conv_bn_prelu(pooled, params["conv5"], 1, 0)
    c5 = jnp.broadcast_to(c5, c5.shape[:2] + x.shape[2:])
    cat = jnp.concatenate([c1, c2, c3, c4, c5], axis=1)
    return _ref_conv_bn_prelu(cat, params["fuse"], 1, 0)


# ---------------------------------------------------------------------------
if __name__ == "__main__":
    key = jax.random.PRNGKey(0)
    kx, kp = jax.random.split(key)

    in_dim, N, H, W = 8, 2, 16, 16
    x = jax.random.normal(kx, (N, in_dim, H, W), jnp.float32)
    params = init_aspp_params(kp, in_dim)

    out = jax.jit(lambda xx: aspp_forward(xx, params))(x)
    out = jax.block_until_ready(out)

    ref = aspp_ref(x, params)
    assert out.shape == (N, in_dim, H, W)
    np.testing.assert_allclose(np.asarray(out), np.asarray(ref),
                               rtol=1e-3, atol=1e-3)
    print("KERNEL_OK")
</pallas_src>

<mosaic_0001>
module attributes {stable_mosaic.version = 11 : i64} {
  func.func @_aspp_fused_kernel(%arg0: i32, %arg1: i32, %arg2: memref<1x28x28x8xbf16, #tpu.memory_space<vmem>>, %arg3: memref<8x4xbf16, #tpu.memory_space<vmem>>, %arg4: memref<27x8x4xbf16, #tpu.memory_space<vmem>>, %arg5: memref<12x4xf32, #tpu.memory_space<vmem>>, %arg6: memref<4x4x8xbf16, #tpu.memory_space<vmem>>, %arg7: memref<1x3x8xf32, #tpu.memory_space<vmem>>, %arg8: memref<1x16x16x8xf32, #tpu.memory_space<vmem>>) attributes {dimension_semantics = [#tpu.dimension_semantics<parallel>, #tpu.dimension_semantics<parallel>], iteration_bounds = array<i64: 2, 1>, scalar_prefetch = 0 : i64, scratch_operands = 0 : i64, tpu.core_type = #tpu.core_type<tc>, window_params = [{transform_indices = @transform_0, window_bounds = array<i64: 1, 28, 28, 8>}, {pipeline_mode = #tpu.pipeline_mode<synchronous>, transform_indices = @transform_1, window_bounds = array<i64: 8, 4>}, {pipeline_mode = #tpu.pipeline_mode<synchronous>, transform_indices = @transform_2, window_bounds = array<i64: 27, 8, 4>}, {pipeline_mode = #tpu.pipeline_mode<synchronous>, transform_indices = @transform_3, window_bounds = array<i64: 12, 4>}, {pipeline_mode = #tpu.pipeline_mode<synchronous>, transform_indices = @transform_4, window_bounds = array<i64: 4, 4, 8>}, {transform_indices = @transform_5, window_bounds = array<i64: 1, 3, 8>}, {transform_indices = @transform_6, window_bounds = array<i64: 1, 16, 16, 8>}]} {
    %c16_i32 = arith.constant 16 : i32
    %0 = arith.muli %arg1, %c16_i32 : i32
    %c6_i32 = arith.constant 6 : i32
    %1 = arith.addi %c6_i32, %0 : i32
    %c0 = arith.constant 0 : index
    %2 = arith.index_cast %1 : i32 to index
    %c6 = arith.constant 6 : index
    %c0_0 = arith.constant 0 : index
    %3 = vector.load %arg2[%c0, %2, %c6, %c0_0] : memref<1x28x28x8xbf16, #tpu.memory_space<vmem>>, vector<1x16x16x8xbf16>
    %4 = vector.shape_cast %3 : vector<1x16x16x8xbf16> to vector<16x16x8xbf16>
    %5 = vector.shape_cast %4 : vector<16x16x8xbf16> to vector<256x8xbf16>
    %c0_1 = arith.constant 0 : index
    %c0_2 = arith.constant 0 : index
    %6 = vector.load %arg3[%c0_1, %c0_2] : memref<8x4xbf16, #tpu.memory_space<vmem>>, vector<8x4xbf16>
    %cst = arith.constant dense<0.000000e+00> : vector<256x4xf32>
    %7 = tpu.matmul %5, %6, %cst {dimension_numbers = #tpu.dot_dimension_numbers<[1], [0], [0], [1], [0, 0, 1, 1], [], []>} : vector<256x8xbf16>, vector<8x4xbf16>, vector<256x4xf32> -> vector<256x4xf32>
    %c0_3 = arith.constant 0 : index
    %c0_4 = arith.constant 0 : index
    %8 = vector.load %arg5[%c0_3, %c0_4] : memref<12x4xf32, #tpu.memory_space<vmem>>, vector<1x4xf32>
    %c1 = arith.constant 1 : index
    %c0_5 = arith.constant 0 : index
    %9 = vector.load %arg5[%c1, %c0_5] : memref<12x4xf32, #tpu.memory_space<vmem>>, vector<1x4xf32>
    %c2 = arith.constant 2 : index
    %c0_6 = arith.constant 0 : index
    %10 = vector.load %arg5[%c2, %c0_6] : memref<12x4xf32, #tpu.memory_space<vmem>>, vector<1x4xf32>
    %11 = vector.broadcast %8 : vector<1x4xf32> to vector<256x4xf32>
    %12 = arith.mulf %7, %11 : vector<256x4xf32>
    %13 = vector.broadcast %9 : vector<1x4xf32> to vector<256x4xf32>
    %14 = arith.addf %12, %13 : vector<256x4xf32>
    %cst_7 = arith.constant 0.000000e+00 : f32
    %15 = vector.broadcast %cst_7 : f32 to vector<256x4xf32>
    %16 = arith.cmpf oge, %14, %15 : vector<256x4xf32>
    %17 = vector.broadcast %10 : vector<1x4xf32> to vector<256x4xf32>
    %18 = arith.mulf %17, %14 : vector<256x4xf32>
    %19 = arith.select %16, %14, %18 : vector<256x4xi1>, vector<256x4xf32>
    %20 = arith.truncf %19 : vector<256x4xf32> to vector<256x4xbf16>
    %c0_8 = arith.constant 0 : index
    %c0_9 = arith.constant 0 : index
    %c0_10 = arith.constant 0 : index
    %21 = vector.load %arg6[%c0_8, %c0_9, %c0_10] : memref<4x4x8xbf16, #tpu.memory_space<vmem>>, vector<1x4x8xbf16>
    %22 = vector.shape_cast %21 : vector<1x4x8xbf16> to vector<4x8xbf16>
    %cst_11 = arith.constant dense<0.000000e+00> : vector<256x8xf32>
    %23 = tpu.matmul %20, %22, %cst_11 {dimension_numbers = #tpu.dot_dimension_numbers<[1], [0], [0], [1], [0, 0, 1, 1], [], []>} : vector<256x4xbf16>, vector<4x8xbf16>, vector<256x8xf32> -> vector<256x8xf32>
    %cst_12 = arith.constant 0.000000e+00 : f32
    %24 = vector.broadcast %cst_12 : f32 to vector<256x4xf32>
    %c6_i32_13 = arith.constant 6 : i32
    %25 = arith.addi %c6_i32_13, %0 : i32
    %c-2_i32 = arith.constant -2 : i32
    %26 = arith.addi %25, %c-2_i32 : i32
    %c0_14 = arith.constant 0 : index
    %27 = arith.index_cast %26 : i32 to index
    %c4 = arith.constant 4 : index
    %c0_15 = arith.constant 0 : index
    %28 = vector.load %arg2[%c0_14, %27, %c4, %c0_15] : memref<1x28x28x8xbf16, #tpu.memory_space<vmem>>, vector<1x16x16x8xbf16>
    %29 = vector.shape_cast %28 : vector<1x16x16x8xbf16> to vector<16x16x8xbf16>
    %30 = vector.shape_cast %29 : vector<16x16x8xbf16> to vector<256x8xbf16>
    %c0_16 = arith.constant 0 : index
    %c0_17 = arith.constant 0 : index
    %c0_18 = arith.constant 0 : index
    %31 = vector.load %arg4[%c0_16, %c0_17, %c0_18] : memref<27x8x4xbf16, #tpu.memory_space<vmem>>, vector<1x8x4xbf16>
    %32 = vector.shape_cast %31 : vector<1x8x4xbf16> to vector<8x4xbf16>
    %cst_19 = arith.constant dense<0.000000e+00> : vector<256x4xf32>
    %33 = tpu.matmul %30, %32, %cst_19 {dimension_numbers = #tpu.dot_dimension_numbers<[1], [0], [0], [1], [0, 0, 1, 1], [], []>} : vector<256x8xbf16>, vector<8x4xbf16>, vector<256x4xf32> -> vector<256x4xf32>
    %34 = arith.addf %24, %33 : vector<256x4xf32>
    %c6_i32_20 = arith.constant 6 : i32
    %35 = arith.addi %c6_i32_20, %0 : i32
    %c-2_i32_21 = arith.constant -2 : i32
    %36 = arith.addi %35, %c-2_i32_21 : i32
    %c0_22 = arith.constant 0 : index
    %37 = arith.index_cast %36 : i32 to index
    %c6_23 = arith.constant 6 : index
    %c0_24 = arith.constant 0 : index
    %38 = vector.load %arg2[%c0_22, %37, %c6_23, %c0_24] : memref<1x28x28x8xbf16, #tpu.memory_space<vmem>>, vector<1x16x16x8xbf16>
    %39 = vector.shape_cast %38 : vector<1x16x16x8xbf16> to vector<16x16x8xbf16>
    %40 = vector.shape_cast %39 : vector<16x16x8xbf16> to vector<256x8xbf16>
    %c1_25 = arith.constant 1 : index
    %c0_26 = arith.constant 0 : index
    %c0_27 = arith.constant 0 : index
    %41 = vector.load %arg4[%c1_25, %c0_26, %c0_27] : memref<27x8x4xbf16, #tpu.memory_space<vmem>>, vector<1x8x4xbf16>
    %42 = vector.shape_cast %41 : vector<1x8x4xbf16> to vector<8x4xbf16>
    %cst_28 = arith.constant dense<0.000000e+00> : vector<256x4xf32>
    %43 = tpu.matmul %40, %42, %cst_28 {dimension_numbers = #tpu.dot_dimension_numbers<[1], [0], [0], [1], [0, 0, 1, 1], [], []>} : vector<256x8xbf16>, vector<8x4xbf16>, vector<256x4xf32> -> vector<256x4xf32>
    %44 = arith.addf %34, %43 : vector<256x4xf32>
    %c6_i32_29 = arith.constant 6 : i32
    %45 = arith.addi %c6_i32_29, %0 : i32
    %c-2_i32_30 = arith.constant -2 : i32
    %46 = arith.addi %45, %c-2_i32_30 : i32
    %c0_31 = arith.constant 0 : index
    %47 = arith.index_cast %46 : i32 to index
    %c8 = arith.constant 8 : index
    %c0_32 = arith.constant 0 : index
    %48 = vector.load %arg2[%c0_31, %47, %c8, %c0_32] : memref<1x28x28x8xbf16, #tpu.memory_space<vmem>>, vector<1x16x16x8xbf16>
    %49 = vector.shape_cast %48 : vector<1x16x16x8xbf16> to vector<16x16x8xbf16>
    %50 = vector.shape_cast %49 : vector<16x16x8xbf16> to vector<256x8xbf16>
    %c2_33 = arith.constant 2 : index
    %c0_34 = arith.constant 0 : index
    %c0_35 = arith.constant 0 : index
    %51 = vector.load %arg4[%c2_33, %c0_34, %c0_35] : memref<27x8x4xbf16, #tpu.memory_space<vmem>>, vector<1x8x4xbf16>
    %52 = vector.shape_cast %51 : vector<1x8x4xbf16> to vector<8x4xbf16>
    %cst_36 = arith.constant dense<0.000000e+00> : vector<256x4xf32>
    %53 = tpu.matmul %50, %52, %cst_36 {dimension_numbers = #tpu.dot_dimension_numbers<[1], [0], [0], [1], [0, 0, 1, 1], [], []>} : vector<256x8xbf16>, vector<8x4xbf16>, vector<256x4xf32> -> vector<256x4xf32>
    %54 = arith.addf %44, %53 : vector<256x4xf32>
    %c6_i32_37 = arith.constant 6 : i32
    %55 = arith.addi %c6_i32_37, %0 : i32
    %c0_i32 = arith.constant 0 : i32
    %56 = arith.addi %55, %c0_i32 : i32
    %c0_38 = arith.constant 0 : index
    %57 = arith.index_cast %56 : i32 to index
    %c4_39 = arith.constant 4 : index
    %c0_40 = arith.constant 0 : index
    %58 = vector.load %arg2[%c0_38, %57, %c4_39, %c0_40] : memref<1x28x28x8xbf16, #tpu.memory_space<vmem>>, vector<1x16x16x8xbf16>
    %59 = vector.shape_cast %58 : vector<1x16x16x8xbf16> to vector<16x16x8xbf16>
    %60 = vector.shape_cast %59 : vector<16x16x8xbf16> to vector<256x8xbf16>
    %c3 = arith.constant 3 : index
    %c0_41 = arith.constant 0 : index
    %c0_42 = arith.constant 0 : index
    %61 = vector.load %arg4[%c3, %c0_41, %c0_42] : memref<27x8x4xbf16, #tpu.memory_space<vmem>>, vector<1x8x4xbf16>
    %62 = vector.shape_cast %61 : vector<1x8x4xbf16> to vector<8x4xbf16>
    %cst_43 = arith.constant dense<0.000000e+00> : vector<256x4xf32>
    %63 = tpu.matmul %60, %62, %cst_43 {dimension_numbers = #tpu.dot_dimension_numbers<[1], [0], [0], [1], [0, 0, 1, 1], [], []>} : vector<256x8xbf16>, vector<8x4xbf16>, vector<256x4xf32> -> vector<256x4xf32>
    %64 = arith.addf %54, %63 : vector<256x4xf32>
    %c6_i32_44 = arith.constant 6 : i32
    %65 = arith.addi %c6_i32_44, %0 : i32
    %c0_i32_45 = arith.constant 0 : i32
    %66 = arith.addi %65, %c0_i32_45 : i32
    %c0_46 = arith.constant 0 : index
    %67 = arith.index_cast %66 : i32 to index
    %c6_47 = arith.constant 6 : index
    %c0_48 = arith.constant 0 : index
    %68 = vector.load %arg2[%c0_46, %67, %c6_47, %c0_48] : memref<1x28x28x8xbf16, #tpu.memory_space<vmem>>, vector<1x16x16x8xbf16>
    %69 = vector.shape_cast %68 : vector<1x16x16x8xbf16> to vector<16x16x8xbf16>
    %70 = vector.shape_cast %69 : vector<16x16x8xbf16> to vector<256x8xbf16>
    %c4_49 = arith.constant 4 : index
    %c0_50 = arith.constant 0 : index
    %c0_51 = arith.constant 0 : index
    %71 = vector.load %arg4[%c4_49, %c0_50, %c0_51] : memref<27x8x4xbf16, #tpu.memory_space<vmem>>, vector<1x8x4xbf16>
    %72 = vector.shape_cast %71 : vector<1x8x4xbf16> to vector<8x4xbf16>
    %cst_52 = arith.constant dense<0.000000e+00> : vector<256x4xf32>
    %73 = tpu.matmul %70, %72, %cst_52 {dimension_numbers = #tpu.dot_dimension_numbers<[1], [0], [0], [1], [0, 0, 1, 1], [], []>} : vector<256x8xbf16>, vector<8x4xbf16>, vector<256x4xf32> -> vector<256x4xf32>
    %74 = arith.addf %64, %73 : vector<256x4xf32>
    %c6_i32_53 = arith.constant 6 : i32
    %75 = arith.addi %c6_i32_53, %0 : i32
    %c0_i32_54 = arith.constant 0 : i32
    %76 = arith.addi %75, %c0_i32_54 : i32
    %c0_55 = arith.constant 0 : index
    %77 = arith.index_cast %76 : i32 to index
    %c8_56 = arith.constant 8 : index
    %c0_57 = arith.constant 0 : index
    %78 = vector.load %arg2[%c0_55, %77, %c8_56, %c0_57] : memref<1x28x28x8xbf16, #tpu.memory_space<vmem>>, vector<1x16x16x8xbf16>
    %79 = vector.shape_cast %78 : vector<1x16x16x8xbf16> to vector<16x16x8xbf16>
    %80 = vector.shape_cast %79 : vector<16x16x8xbf16> to vector<256x8xbf16>
    %c5 = arith.constant 5 : index
    %c0_58 = arith.constant 0 : index
    %c0_59 = arith.constant 0 : index
    %81 = vector.load %arg4[%c5, %c0_58, %c0_59] : memref<27x8x4xbf16, #tpu.memory_space<vmem>>, vector<1x8x4xbf16>
    %82 = vector.shape_cast %81 : vector<1x8x4xbf16> to vector<8x4xbf16>
    %cst_60 = arith.constant dense<0.000000e+00> : vector<256x4xf32>
    %83 = tpu.matmul %80, %82, %cst_60 {dimension_numbers = #tpu.dot_dimension_numbers<[1], [0], [0], [1], [0, 0, 1, 1], [], []>} : vector<256x8xbf16>, vector<8x4xbf16>, vector<256x4xf32> -> vector<256x4xf32>
    %84 = arith.addf %74, %83 : vector<256x4xf32>
    %c6_i32_61 = arith.constant 6 : i32
    %85 = arith.addi %c6_i32_61, %0 : i32
    %c2_i32 = arith.constant 2 : i32
    %86 = arith.addi %85, %c2_i32 : i32
    %c0_62 = arith.constant 0 : index
    %87 = arith.index_cast %86 : i32 to index
    %c4_63 = arith.constant 4 : index
    %c0_64 = arith.constant 0 : index
    %88 = vector.load %arg2[%c0_62, %87, %c4_63, %c0_64] : memref<1x28x28x8xbf16, #tpu.memory_space<vmem>>, vector<1x16x16x8xbf16>
    %89 = vector.shape_cast %88 : vector<1x16x16x8xbf16> to vector<16x16x8xbf16>
    %90 = vector.shape_cast %89 : vector<16x16x8xbf16> to vector<256x8xbf16>
    %c6_65 = arith.constant 6 : index
    %c0_66 = arith.constant 0 : index
    %c0_67 = arith.constant 0 : index
    %91 = vector.load %arg4[%c6_65, %c0_66, %c0_67] : memref<27x8x4xbf16, #tpu.memory_space<vmem>>, vector<1x8x4xbf16>
    %92 = vector.shape_cast %91 : vector<1x8x4xbf16> to vector<8x4xbf16>
    %cst_68 = arith.constant dense<0.000000e+00> : vector<256x4xf32>
    %93 = tpu.matmul %90, %92, %cst_68 {dimension_numbers = #tpu.dot_dimension_numbers<[1], [0], [0], [1], [0, 0, 1, 1], [], []>} : vector<256x8xbf16>, vector<8x4xbf16>, vector<256x4xf32> -> vector<256x4xf32>
    %94 = arith.addf %84, %93 : vector<256x4xf32>
    %c6_i32_69 = arith.constant 6 : i32
    %95 = arith.addi %c6_i32_69, %0 : i32
    %c2_i32_70 = arith.constant 2 : i32
    %96 = arith.addi %95, %c2_i32_70 : i32
    %c0_71 = arith.constant 0 : index
    %97 = arith.index_cast %96 : i32 to index
    %c6_72 = arith.constant 6 : index
    %c0_73 = arith.constant 0 : index
    %98 = vector.load %arg2[%c0_71, %97, %c6_72, %c0_73] : memref<1x28x28x8xbf16, #tpu.memory_space<vmem>>, vector<1x16x16x8xbf16>
    %99 = vector.shape_cast %98 : vector<1x16x16x8xbf16> to vector<16x16x8xbf16>
    %100 = vector.shape_cast %99 : vector<16x16x8xbf16> to vector<256x8xbf16>
    %c7 = arith.constant 7 : index
    %c0_74 = arith.constant 0 : index
    %c0_75 = arith.constant 0 : index
    %101 = vector.load %arg4[%c7, %c0_74, %c0_75] : memref<27x8x4xbf16, #tpu.memory_space<vmem>>, vector<1x8x4xbf16>
    %102 = vector.shape_cast %101 : vector<1x8x4xbf16> to vector<8x4xbf16>
    %cst_76 = arith.constant dense<0.000000e+00> : vector<256x4xf32>
    %103 = tpu.matmul %100, %102, %cst_76 {dimension_numbers = #tpu.dot_dimension_numbers<[1], [0], [0], [1], [0, 0, 1, 1], [], []>} : vector<256x8xbf16>, vector<8x4xbf16>, vector<256x4xf32> -> vector<256x4xf32>
    %104 = arith.addf %94, %103 : vector<256x4xf32>
    %c6_i32_77 = arith.constant 6 : i32
    %105 = arith.addi %c6_i32_77, %0 : i32
    %c2_i32_78 = arith.constant 2 : i32
    %106 = arith.addi %105, %c2_i32_78 : i32
    %c0_79 = arith.constant 0 : index
    %107 = arith.index_cast %106 : i32 to index
    %c8_80 = arith.constant 8 : index
    %c0_81 = arith.constant 0 : index
    %108 = vector.load %arg2[%c0_79, %107, %c8_80, %c0_81] : memref<1x28x28x8xbf16, #tpu.memory_space<vmem>>, vector<1x16x16x8xbf16>
    %109 = vector.shape_cast %108 : vector<1x16x16x8xbf16> to vector<16x16x8xbf16>
    %110 = vector.shape_cast %109 : vector<16x16x8xbf16> to vector<256x8xbf16>
    %c8_82 = arith.constant 8 : index
    %c0_83 = arith.constant 0 : index
    %c0_84 = arith.constant 0 : index
    %111 = vector.load %arg4[%c8_82, %c0_83, %c0_84] : memref<27x8x4xbf16, #tpu.memory_space<vmem>>, vector<1x8x4xbf16>
    %112 = vector.shape_cast %111 : vector<1x8x4xbf16> to vector<8x4xbf16>
    %cst_85 = arith.constant dense<0.000000e+00> : vector<256x4xf32>
    %113 = tpu.matmul %110, %112, %cst_85 {dimension_numbers = #tpu.dot_dimension_numbers<[1], [0], [0], [1], [0, 0, 1, 1], [], []>} : vector<256x8xbf16>, vector<8x4xbf16>, vector<256x4xf32> -> vector<256x4xf32>
    %114 = arith.addf %104, %113 : vector<256x4xf32>
    %c3_86 = arith.constant 3 : index
    %c0_87 = arith.constant 0 : index
    %115 = vector.load %arg5[%c3_86, %c0_87] : memref<12x4xf32, #tpu.memory_space<vmem>>, vector<1x4xf32>
    %c4_88 = arith.constant 4 : index
    %c0_89 = arith.constant 0 : index
    %116 = vector.load %arg5[%c4_88, %c0_89] : memref<12x4xf32, #tpu.memory_space<vmem>>, vector<1x4xf32>
    %c5_90 = arith.constant 5 : index
    %c0_91 = arith.constant 0 : index
    %117 = vector.load %arg5[%c5_90, %c0_91] : memref<12x4xf32, #tpu.memory_space<vmem>>, vector<1x4xf32>
    %118 = vector.broadcast %115 : vector<1x4xf32> to vector<256x4xf32>
    %119 = arith.mulf %114, %118 : vector<256x4xf32>
    %120 = vector.broadcast %116 : vector<1x4xf32> to vector<256x4xf32>
    %121 = arith.addf %119, %120 : vector<256x4xf32>
    %cst_92 = arith.constant 0.000000e+00 : f32
    %122 = vector.broadcast %cst_92 : f32 to vector<256x4xf32>
    %123 = arith.cmpf oge, %121, %122 : vector<256x4xf32>
    %124 = vector.broadcast %117 : vector<1x4xf32> to vector<256x4xf32>
    %125 = arith.mulf %124, %121 : vector<256x4xf32>
    %126 = arith.select %123, %121, %125 : vector<256x4xi1>, vector<256x4xf32>
    %127 = arith.truncf %126 : vector<256x4xf32> to vector<256x4xbf16>
    %c1_93 = arith.constant 1 : index
    %c0_94 = arith.constant 0 : index
    %c0_95 = arith.constant 0 : index
    %128 = vector.load %arg6[%c1_93, %c0_94, %c0_95] : memref<4x4x8xbf16, #tpu.memory_space<vmem>>, vector<1x4x8xbf16>
    %129 = vector.shape_cast %128 : vector<1x4x8xbf16> to vector<4x8xbf16>
    %cst_96 = arith.constant dense<0.000000e+00> : vector<256x8xf32>
    %130 = tpu.matmul %127, %129, %cst_96 {dimension_numbers = #tpu.dot_dimension_numbers<[1], [0], [0], [1], [0, 0, 1, 1], [], []>} : vector<256x4xbf16>, vector<4x8xbf16>, vector<256x8xf32> -> vector<256x8xf32>
    %131 = arith.addf %23, %130 : vector<256x8xf32>
    %cst_97 = arith.constant 0.000000e+00 : f32
    %132 = vector.broadcast %cst_97 : f32 to vector<256x4xf32>
    %c6_i32_98 = arith.constant 6 : i32
    %133 = arith.addi %c6_i32_98, %0 : i32
    %c-4_i32 = arith.constant -4 : i32
    %134 = arith.addi %133, %c-4_i32 : i32
    %c0_99 = arith.constant 0 : index
    %135 = arith.index_cast %134 : i32 to index
    %c2_100 = arith.constant 2 : index
    %c0_101 = arith.constant 0 : index
    %136 = vector.load %arg2[%c0_99, %135, %c2_100, %c0_101] : memref<1x28x28x8xbf16, #tpu.memory_space<vmem>>, vector<1x16x16x8xbf16>
    %137 = vector.shape_cast %136 : vector<1x16x16x8xbf16> to vector<16x16x8xbf16>
    %138 = vector.shape_cast %137 : vector<16x16x8xbf16> to vector<256x8xbf16>
    %c9 = arith.constant 9 : index
    %c0_102 = arith.constant 0 : index
    %c0_103 = arith.constant 0 : index
    %139 = vector.load %arg4[%c9, %c0_102, %c0_103] : memref<27x8x4xbf16, #tpu.memory_space<vmem>>, vector<1x8x4xbf16>
    %140 = vector.shape_cast %139 : vector<1x8x4xbf16> to vector<8x4xbf16>
    %cst_104 = arith.constant dense<0.000000e+00> : vector<256x4xf32>
    %141 = tpu.matmul %138, %140, %cst_104 {dimension_numbers = #tpu.dot_dimension_numbers<[1], [0], [0], [1], [0, 0, 1, 1], [], []>} : vector<256x8xbf16>, vector<8x4xbf16>, vector<256x4xf32> -> vector<256x4xf32>
    %142 = arith.addf %132, %141 : vector<256x4xf32>
    %c6_i32_105 = arith.constant 6 : i32
    %143 = arith.addi %c6_i32_105, %0 : i32
    %c-4_i32_106 = arith.constant -4 : i32
    %144 = arith.addi %143, %c-4_i32_106 : i32
    %c0_107 = arith.constant 0 : index
    %145 = arith.index_cast %144 : i32 to index
    %c6_108 = arith.constant 6 : index
    %c0_109 = arith.constant 0 : index
    %146 = vector.load %arg2[%c0_107, %145, %c6_108, %c0_109] : memref<1x28x28x8xbf16, #tpu.memory_space<vmem>>, vector<1x16x16x8xbf16>
    %147 = vector.shape_cast %146 : vector<1x16x16x8xbf16> to vector<16x16x8xbf16>
    %148 = vector.shape_cast %147 : vector<16x16x8xbf16> to vector<256x8xbf16>
    %c10 = arith.constant 10 : index
    %c0_110 = arith.constant 0 : index
    %c0_111 = arith.constant 0 : index
    %149 = vector.load %arg4[%c10, %c0_110, %c0_111] : memref<27x8x4xbf16, #tpu.memory_space<vmem>>, vector<1x8x4xbf16>
    %150 = vector.shape_cast %149 : vector<1x8x4xbf16> to vector<8x4xbf16>
    %cst_112 = arith.constant dense<0.000000e+00> : vector<256x4xf32>
    %151 = tpu.matmul %148, %150, %cst_112 {dimension_numbers = #tpu.dot_dimension_numbers<[1], [0], [0], [1], [0, 0, 1, 1], [], []>} : vector<256x8xbf16>, vector<8x4xbf16>, vector<256x4xf32> -> vector<256x4xf32>
    %152 = arith.addf %142, %151 : vector<256x4xf32>
    %c6_i32_113 = arith.constant 6 : i32
    %153 = arith.addi %c6_i32_113, %0 : i32
    %c-4_i32_114 = arith.constant -4 : i32
    %154 = arith.addi %153, %c-4_i32_114 : i32
    %c0_115 = arith.constant 0 : index
    %155 = arith.index_cast %154 : i32 to index
    %c10_116 = arith.constant 10 : index
    %c0_117 = arith.constant 0 : index
    %156 = vector.load %arg2[%c0_115, %155, %c10_116, %c0_117] : memref<1x28x28x8xbf16, #tpu.memory_space<vmem>>, vector<1x16x16x8xbf16>
    %157 = vector.shape_cast %156 : vector<1x16x16x8xbf16> to vector<16x16x8xbf16>
    %158 = vector.shape_cast %157 : vector<16x16x8xbf16> to vector<256x8xbf16>
    %c11 = arith.constant 11 : index
    %c0_118 = arith.constant 0 : index
    %c0_119 = arith.constant 0 : index
    %159 = vector.load %arg4[%c11, %c0_118, %c0_119] : memref<27x8x4xbf16, #tpu.memory_space<vmem>>, vector<1x8x4xbf16>
    %160 = vector.shape_cast %159 : vector<1x8x4xbf16> to vector<8x4xbf16>
    %cst_120 = arith.constant dense<0.000000e+00> : vector<256x4xf32>
    %161 = tpu.matmul %158, %160, %cst_120 {dimension_numbers = #tpu.dot_dimension_numbers<[1], [0], [0], [1], [0, 0, 1, 1], [], []>} : vector<256x8xbf16>, vector<8x4xbf16>, vector<256x4xf32> -> vector<256x4xf32>
    %162 = arith.addf %152, %161 : vector<256x4xf32>
    %c6_i32_121 = arith.constant 6 : i32
    %163 = arith.addi %c6_i32_121, %0 : i32
    %c0_i32_122 = arith.constant 0 : i32
    %164 = arith.addi %163, %c0_i32_122 : i32
    %c0_123 = arith.constant 0 : index
    %165 = arith.index_cast %164 : i32 to index
    %c2_124 = arith.constant 2 : index
    %c0_125 = arith.constant 0 : index
    %166 = vector.load %arg2[%c0_123, %165, %c2_124, %c0_125] : memref<1x28x28x8xbf16, #tpu.memory_space<vmem>>, vector<1x16x16x8xbf16>
    %167 = vector.shape_cast %166 : vector<1x16x16x8xbf16> to vector<16x16x8xbf16>
    %168 = vector.shape_cast %167 : vector<16x16x8xbf16> to vector<256x8xbf16>
    %c12 = arith.constant 12 : index
    %c0_126 = arith.constant 0 : index
    %c0_127 = arith.constant 0 : index
    %169 = vector.load %arg4[%c12, %c0_126, %c0_127] : memref<27x8x4xbf16, #tpu.memory_space<vmem>>, vector<1x8x4xbf16>
    %170 = vector.shape_cast %169 : vector<1x8x4xbf16> to vector<8x4xbf16>
    %cst_128 = arith.constant dense<0.000000e+00> : vector<256x4xf32>
    %171 = tpu.matmul %168, %170, %cst_128 {dimension_numbers = #tpu.dot_dimension_numbers<[1], [0], [0], [1], [0, 0, 1, 1], [], []>} : vector<256x8xbf16>, vector<8x4xbf16>, vector<256x4xf32> -> vector<256x4xf32>
    %172 = arith.addf %162, %171 : vector<256x4xf32>
    %c6_i32_129 = arith.constant 6 : i32
    %173 = arith.addi %c6_i32_129, %0 : i32
    %c0_i32_130 = arith.constant 0 : i32
    %174 = arith.addi %173, %c0_i32_130 : i32
    %c0_131 = arith.constant 0 : index
    %175 = arith.index_cast %174 : i32 to index
    %c6_132 = arith.constant 6 : index
    %c0_133 = arith.constant 0 : index
    %176 = vector.load %arg2[%c0_131, %175, %c6_132, %c0_133] : memref<1x28x28x8xbf16, #tpu.memory_space<vmem>>, vector<1x16x16x8xbf16>
    %177 = vector.shape_cast %176 : vector<1x16x16x8xbf16> to vector<16x16x8xbf16>
    %178 = vector.shape_cast %177 : vector<16x16x8xbf16> to vector<256x8xbf16>
    %c13 = arith.constant 13 : index
    %c0_134 = arith.constant 0 : index
    %c0_135 = arith.constant 0 : index
    %179 = vector.load %arg4[%c13, %c0_134, %c0_135] : memref<27x8x4xbf16, #tpu.memory_space<vmem>>, vector<1x8x4xbf16>
    %180 = vector.shape_cast %179 : vector<1x8x4xbf16> to vector<8x4xbf16>
    %cst_136 = arith.constant dense<0.000000e+00> : vector<256x4xf32>
    %181 = tpu.matmul %178, %180, %cst_136 {dimension_numbers = #tpu.dot_dimension_numbers<[1], [0], [0], [1], [0, 0, 1, 1], [], []>} : vector<256x8xbf16>, vector<8x4xbf16>, vector<256x4xf32> -> vector<256x4xf32>
    %182 = arith.addf %172, %181 : vector<256x4xf32>
    %c6_i32_137 = arith.constant 6 : i32
    %183 = arith.addi %c6_i32_137, %0 : i32
    %c0_i32_138 = arith.constant 0 : i32
    %184 = arith.addi %183, %c0_i32_138 : i32
    %c0_139 = arith.constant 0 : index
    %185 = arith.index_cast %184 : i32 to index
    %c10_140 = arith.constant 10 : index
    %c0_141 = arith.constant 0 : index
    %186 = vector.load %arg2[%c0_139, %185, %c10_140, %c0_141] : memref<1x28x28x8xbf16, #tpu.memory_space<vmem>>, vector<1x16x16x8xbf16>
    %187 = vector.shape_cast %186 : vector<1x16x16x8xbf16> to vector<16x16x8xbf16>
    %188 = vector.shape_cast %187 : vector<16x16x8xbf16> to vector<256x8xbf16>
    %c14 = arith.constant 14 : index
    %c0_142 = arith.constant 0 : index
    %c0_143 = arith.constant 0 : index
    %189 = vector.load %arg4[%c14, %c0_142, %c0_143] : memref<27x8x4xbf16, #tpu.memory_space<vmem>>, vector<1x8x4xbf16>
    %190 = vector.shape_cast %189 : vector<1x8x4xbf16> to vector<8x4xbf16>
    %cst_144 = arith.constant dense<0.000000e+00> : vector<256x4xf32>
    %191 = tpu.matmul %188, %190, %cst_144 {dimension_numbers = #tpu.dot_dimension_numbers<[1], [0], [0], [1], [0, 0, 1, 1], [], []>} : vector<256x8xbf16>, vector<8x4xbf16>, vector<256x4xf32> -> vector<256x4xf32>
    %192 = arith.addf %182, %191 : vector<256x4xf32>
    %c6_i32_145 = arith.constant 6 : i32
    %193 = arith.addi %c6_i32_145, %0 : i32
    %c4_i32 = arith.constant 4 : i32
    %194 = arith.addi %193, %c4_i32 : i32
    %c0_146 = arith.constant 0 : index
    %195 = arith.index_cast %194 : i32 to index
    %c2_147 = arith.constant 2 : index
    %c0_148 = arith.constant 0 : index
    %196 = vector.load %arg2[%c0_146, %195, %c2_147, %c0_148] : memref<1x28x28x8xbf16, #tpu.memory_space<vmem>>, vector<1x16x16x8xbf16>
    %197 = vector.shape_cast %196 : vector<1x16x16x8xbf16> to vector<16x16x8xbf16>
    %198 = vector.shape_cast %197 : vector<16x16x8xbf16> to vector<256x8xbf16>
    %c15 = arith.constant 15 : index
    %c0_149 = arith.constant 0 : index
    %c0_150 = arith.constant 0 : index
    %199 = vector.load %arg4[%c15, %c0_149, %c0_150] : memref<27x8x4xbf16, #tpu.memory_space<vmem>>, vector<1x8x4xbf16>
    %200 = vector.shape_cast %199 : vector<1x8x4xbf16> to vector<8x4xbf16>
    %cst_151 = arith.constant dense<0.000000e+00> : vector<256x4xf32>
    %201 = tpu.matmul %198, %200, %cst_151 {dimension_numbers = #tpu.dot_dimension_numbers<[1], [0], [0], [1], [0, 0, 1, 1], [], []>} : vector<256x8xbf16>, vector<8x4xbf16>, vector<256x4xf32> -> vector<256x4xf32>
    %202 = arith.addf %192, %201 : vector<256x4xf32>
    %c6_i32_152 = arith.constant 6 : i32
    %203 = arith.addi %c6_i32_152, %0 : i32
    %c4_i32_153 = arith.constant 4 : i32
    %204 = arith.addi %203, %c4_i32_153 : i32
    %c0_154 = arith.constant 0 : index
    %205 = arith.index_cast %204 : i32 to index
    %c6_155 = arith.constant 6 : index
    %c0_156 = arith.constant 0 : index
    %206 = vector.load %arg2[%c0_154, %205, %c6_155, %c0_156] : memref<1x28x28x8xbf16, #tpu.memory_space<vmem>>, vector<1x16x16x8xbf16>
    %207 = vector.shape_cast %206 : vector<1x16x16x8xbf16> to vector<16x16x8xbf16>
    %208 = vector.shape_cast %207 : vector<16x16x8xbf16> to vector<256x8xbf16>
    %c16 = arith.constant 16 : index
    %c0_157 = arith.constant 0 : index
    %c0_158 = arith.constant 0 : index
    %209 = vector.load %arg4[%c16, %c0_157, %c0_158] : memref<27x8x4xbf16, #tpu.memory_space<vmem>>, vector<1x8x4xbf16>
    %210 = vector.shape_cast %209 : vector<1x8x4xbf16> to vector<8x4xbf16>
    %cst_159 = arith.constant dense<0.000000e+00> : vector<256x4xf32>
    %211 = tpu.matmul %208, %210, %cst_159 {dimension_numbers = #tpu.dot_dimension_numbers<[1], [0], [0], [1], [0, 0, 1, 1], [], []>} : vector<256x8xbf16>, vector<8x4xbf16>, vector<256x4xf32> -> vector<256x4xf32>
    %212 = arith.addf %202, %211 : vector<256x4xf32>
    %c6_i32_160 = arith.constant 6 : i32
    %213 = arith.addi %c6_i32_160, %0 : i32
    %c4_i32_161 = arith.constant 4 : i32
    %214 = arith.addi %213, %c4_i32_161 : i32
    %c0_162 = arith.constant 0 : index
    %215 = arith.index_cast %214 : i32 to index
    %c10_163 = arith.constant 10 : index
    %c0_164 = arith.constant 0 : index
    %216 = vector.load %arg2[%c0_162, %215, %c10_163, %c0_164] : memref<1x28x28x8xbf16, #tpu.memory_space<vmem>>, vector<1x16x16x8xbf16>
    %217 = vector.shape_cast %216 : vector<1x16x16x8xbf16> to vector<16x16x8xbf16>
    %218 = vector.shape_cast %217 : vector<16x16x8xbf16> to vector<256x8xbf16>
    %c17 = arith.constant 17 : index
    %c0_165 = arith.constant 0 : index
    %c0_166 = arith.constant 0 : index
    %219 = vector.load %arg4[%c17, %c0_165, %c0_166] : memref<27x8x4xbf16, #tpu.memory_space<vmem>>, vector<1x8x4xbf16>
    %220 = vector.shape_cast %219 : vector<1x8x4xbf16> to vector<8x4xbf16>
    %cst_167 = arith.constant dense<0.000000e+00> : vector<256x4xf32>
    %221 = tpu.matmul %218, %220, %cst_167 {dimension_numbers = #tpu.dot_dimension_numbers<[1], [0], [0], [1], [0, 0, 1, 1], [], []>} : vector<256x8xbf16>, vector<8x4xbf16>, vector<256x4xf32> -> vector<256x4xf32>
    %222 = arith.addf %212, %221 : vector<256x4xf32>
    %c6_168 = arith.constant 6 : index
    %c0_169 = arith.constant 0 : index
    %223 = vector.load %arg5[%c6_168, %c0_169] : memref<12x4xf32, #tpu.memory_space<vmem>>, vector<1x4xf32>
    %c7_170 = arith.constant 7 : index
    %c0_171 = arith.constant 0 : index
    %224 = vector.load %arg5[%c7_170, %c0_171] : memref<12x4xf32, #tpu.memory_space<vmem>>, vector<1x4xf32>
    %c8_172 = arith.constant 8 : index
    %c0_173 = arith.constant 0 : index
    %225 = vector.load %arg5[%c8_172, %c0_173] : memref<12x4xf32, #tpu.memory_space<vmem>>, vector<1x4xf32>
    %226 = vector.broadcast %223 : vector<1x4xf32> to vector<256x4xf32>
    %227 = arith.mulf %222, %226 : vector<256x4xf32>
    %228 = vector.broadcast %224 : vector<1x4xf32> to vector<256x4xf32>
    %229 = arith.addf %227, %228 : vector<256x4xf32>
    %cst_174 = arith.constant 0.000000e+00 : f32
    %230 = vector.broadcast %cst_174 : f32 to vector<256x4xf32>
    %231 = arith.cmpf oge, %229, %230 : vector<256x4xf32>
    %232 = vector.broadcast %225 : vector<1x4xf32> to vector<256x4xf32>
    %233 = arith.mulf %232, %229 : vector<256x4xf32>
    %234 = arith.select %231, %229, %233 : vector<256x4xi1>, vector<256x4xf32>
    %235 = arith.truncf %234 : vector<256x4xf32> to vector<256x4xbf16>
    %c2_175 = arith.constant 2 : index
    %c0_176 = arith.constant 0 : index
    %c0_177 = arith.constant 0 : index
    %236 = vector.load %arg6[%c2_175, %c0_176, %c0_177] : memref<4x4x8xbf16, #tpu.memory_space<vmem>>, vector<1x4x8xbf16>
    %237 = vector.shape_cast %236 : vector<1x4x8xbf16> to vector<4x8xbf16>
    %cst_178 = arith.constant dense<0.000000e+00> : vector<256x8xf32>
    %238 = tpu.matmul %235, %237, %cst_178 {dimension_numbers = #tpu.dot_dimension_numbers<[1], [0], [0], [1], [0, 0, 1, 1], [], []>} : vector<256x4xbf16>, vector<4x8xbf16>, vector<256x8xf32> -> vector<256x8xf32>
    %239 = arith.addf %131, %238 : vector<256x8xf32>
    %cst_179 = arith.constant 0.000000e+00 : f32
    %240 = vector.broadcast %cst_179 : f32 to vector<256x4xf32>
    %c6_i32_180 = arith.constant 6 : i32
    %241 = arith.addi %c6_i32_180, %0 : i32
    %c-6_i32 = arith.constant -6 : i32
    %242 = arith.addi %241, %c-6_i32 : i32
    %c0_181 = arith.constant 0 : index
    %243 = arith.index_cast %242 : i32 to index
    %c0_182 = arith.constant 0 : index
    %c0_183 = arith.constant 0 : index
    %244 = vector.load %arg2[%c0_181, %243, %c0_182, %c0_183] : memref<1x28x28x8xbf16, #tpu.memory_space<vmem>>, vector<1x16x16x8xbf16>
    %245 = vector.shape_cast %244 : vector<1x16x16x8xbf16> to vector<16x16x8xbf16>
    %246 = vector.shape_cast %245 : vector<16x16x8xbf16> to vector<256x8xbf16>
    %c18 = arith.constant 18 : index
    %c0_184 = arith.constant 0 : index
    %c0_185 = arith.constant 0 : index
    %247 = vector.load %arg4[%c18, %c0_184, %c0_185] : memref<27x8x4xbf16, #tpu.memory_space<vmem>>, vector<1x8x4xbf16>
    %248 = vector.shape_cast %247 : vector<1x8x4xbf16> to vector<8x4xbf16>
    %cst_186 = arith.constant dense<0.000000e+00> : vector<256x4xf32>
    %249 = tpu.matmul %246, %248, %cst_186 {dimension_numbers = #tpu.dot_dimension_numbers<[1], [0], [0], [1], [0, 0, 1, 1], [], []>} : vector<256x8xbf16>, vector<8x4xbf16>, vector<256x4xf32> -> vector<256x4xf32>
    %250 = arith.addf %240, %249 : vector<256x4xf32>
    %c6_i32_187 = arith.constant 6 : i32
    %251 = arith.addi %c6_i32_187, %0 : i32
    %c-6_i32_188 = arith.constant -6 : i32
    %252 = arith.addi %251, %c-6_i32_188 : i32
    %c0_189 = arith.constant 0 : index
    %253 = arith.index_cast %252 : i32 to index
    %c6_190 = arith.constant 6 : index
    %c0_191 = arith.constant 0 : index
    %254 = vector.load %arg2[%c0_189, %253, %c6_190, %c0_191] : memref<1x28x28x8xbf16, #tpu.memory_space<vmem>>, vector<1x16x16x8xbf16>
    %255 = vector.shape_cast %254 : vector<1x16x16x8xbf16> to vector<16x16x8xbf16>
    %256 = vector.shape_cast %255 : vector<16x16x8xbf16> to vector<256x8xbf16>
    %c19 = arith.constant 19 : index
    %c0_192 = arith.constant 0 : index
    %c0_193 = arith.constant 0 : index
    %257 = vector.load %arg4[%c19, %c0_192, %c0_193] : memref<27x8x4xbf16, #tpu.memory_space<vmem>>, vector<1x8x4xbf16>
    %258 = vector.shape_cast %257 : vector<1x8x4xbf16> to vector<8x4xbf16>
    %cst_194 = arith.constant dense<0.000000e+00> : vector<256x4xf32>
    %259 = tpu.matmul %256, %258, %cst_194 {dimension_numbers = #tpu.dot_dimension_numbers<[1], [0], [0], [1], [0, 0, 1, 1], [], []>} : vector<256x8xbf16>, vector<8x4xbf16>, vector<256x4xf32> -> vector<256x4xf32>
    %260 = arith.addf %250, %259 : vector<256x4xf32>
    %c6_i32_195 = arith.constant 6 : i32
    %261 = arith.addi %c6_i32_195, %0 : i32
    %c-6_i32_196 = arith.constant -6 : i32
    %262 = arith.addi %261, %c-6_i32_196 : i32
    %c0_197 = arith.constant 0 : index
    %263 = arith.index_cast %262 : i32 to index
    %c12_198 = arith.constant 12 : index
    %c0_199 = arith.constant 0 : index
    %264 = vector.load %arg2[%c0_197, %263, %c12_198, %c0_199] : memref<1x28x28x8xbf16, #tpu.memory_space<vmem>>, vector<1x16x16x8xbf16>
    %265 = vector.shape_cast %264 : vector<1x16x16x8xbf16> to vector<16x16x8xbf16>
    %266 = vector.shape_cast %265 : vector<16x16x8xbf16> to vector<256x8xbf16>
    %c20 = arith.constant 20 : index
    %c0_200 = arith.constant 0 : index
    %c0_201 = arith.constant 0 : index
    %267 = vector.load %arg4[%c20, %c0_200, %c0_201] : memref<27x8x4xbf16, #tpu.memory_space<vmem>>, vector<1x8x4xbf16>
    %268 = vector.shape_cast %267 : vector<1x8x4xbf16> to vector<8x4xbf16>
    %cst_202 = arith.constant dense<0.000000e+00> : vector<256x4xf32>
    %269 = tpu.matmul %266, %268, %cst_202 {dimension_numbers = #tpu.dot_dimension_numbers<[1], [0], [0], [1], [0, 0, 1, 1], [], []>} : vector<256x8xbf16>, vector<8x4xbf16>, vector<256x4xf32> -> vector<256x4xf32>
    %270 = arith.addf %260, %269 : vector<256x4xf32>
    %c6_i32_203 = arith.constant 6 : i32
    %271 = arith.addi %c6_i32_203, %0 : i32
    %c0_i32_204 = arith.constant 0 : i32
    %272 = arith.addi %271, %c0_i32_204 : i32
    %c0_205 = arith.constant 0 : index
    %273 = arith.index_cast %272 : i32 to index
    %c0_206 = arith.constant 0 : index
    %c0_207 = arith.constant 0 : index
    %274 = vector.load %arg2[%c0_205, %273, %c0_206, %c0_207] : memref<1x28x28x8xbf16, #tpu.memory_space<vmem>>, vector<1x16x16x8xbf16>
    %275 = vector.shape_cast %274 : vector<1x16x16x8xbf16> to vector<16x16x8xbf16>
    %276 = vector.shape_cast %275 : vector<16x16x8xbf16> to vector<256x8xbf16>
    %c21 = arith.constant 21 : index
    %c0_208 = arith.constant 0 : index
    %c0_209 = arith.constant 0 : index
    %277 = vector.load %arg4[%c21, %c0_208, %c0_209] : memref<27x8x4xbf16, #tpu.memory_space<vmem>>, vector<1x8x4xbf16>
    %278 = vector.shape_cast %277 : vector<1x8x4xbf16> to vector<8x4xbf16>
    %cst_210 = arith.constant dense<0.000000e+00> : vector<256x4xf32>
    %279 = tpu.matmul %276, %278, %cst_210 {dimension_numbers = #tpu.dot_dimension_numbers<[1], [0], [0], [1], [0, 0, 1, 1], [], []>} : vector<256x8xbf16>, vector<8x4xbf16>, vector<256x4xf32> -> vector<256x4xf32>
    %280 = arith.addf %270, %279 : vector<256x4xf32>
    %c6_i32_211 = arith.constant 6 : i32
    %281 = arith.addi %c6_i32_211, %0 : i32
    %c0_i32_212 = arith.constant 0 : i32
    %282 = arith.addi %281, %c0_i32_212 : i32
    %c0_213 = arith.constant 0 : index
    %283 = arith.index_cast %282 : i32 to index
    %c6_214 = arith.constant 6 : index
    %c0_215 = arith.constant 0 : index
    %284 = vector.load %arg2[%c0_213, %283, %c6_214, %c0_215] : memref<1x28x28x8xbf16, #tpu.memory_space<vmem>>, vector<1x16x16x8xbf16>
    %285 = vector.shape_cast %284 : vector<1x16x16x8xbf16> to vector<16x16x8xbf16>
    %286 = vector.shape_cast %285 : vector<16x16x8xbf16> to vector<256x8xbf16>
    %c22 = arith.constant 22 : index
    %c0_216 = arith.constant 0 : index
    %c0_217 = arith.constant 0 : index
    %287 = vector.load %arg4[%c22, %c0_216, %c0_217] : memref<27x8x4xbf16, #tpu.memory_space<vmem>>, vector<1x8x4xbf16>
    %288 = vector.shape_cast %287 : vector<1x8x4xbf16> to vector<8x4xbf16>
    %cst_218 = arith.constant dense<0.000000e+00> : vector<256x4xf32>
    %289 = tpu.matmul %286, %288, %cst_218 {dimension_numbers = #tpu.dot_dimension_numbers<[1], [0], [0], [1], [0, 0, 1, 1], [], []>} : vector<256x8xbf16>, vector<8x4xbf16>, vector<256x4xf32> -> vector<256x4xf32>
    %290 = arith.addf %280, %289 : vector<256x4xf32>
    %c6_i32_219 = arith.constant 6 : i32
    %291 = arith.addi %c6_i32_219, %0 : i32
    %c0_i32_220 = arith.constant 0 : i32
    %292 = arith.addi %291, %c0_i32_220 : i32
    %c0_221 = arith.constant 0 : index
    %293 = arith.index_cast %292 : i32 to index
    %c12_222 = arith.constant 12 : index
    %c0_223 = arith.constant 0 : index
    %294 = vector.load %arg2[%c0_221, %293, %c12_222, %c0_223] : memref<1x28x28x8xbf16, #tpu.memory_space<vmem>>, vector<1x16x16x8xbf16>
    %295 = vector.shape_cast %294 : vector<1x16x16x8xbf16> to vector<16x16x8xbf16>
    %296 = vector.shape_cast %295 : vector<16x16x8xbf16> to vector<256x8xbf16>
    %c23 = arith.constant 23 : index
    %c0_224 = arith.constant 0 : index
    %c0_225 = arith.constant 0 : index
    %297 = vector.load %arg4[%c23, %c0_224, %c0_225] : memref<27x8x4xbf16, #tpu.memory_space<vmem>>, vector<1x8x4xbf16>
    %298 = vector.shape_cast %297 : vector<1x8x4xbf16> to vector<8x4xbf16>
    %cst_226 = arith.constant dense<0.000000e+00> : vector<256x4xf32>
    %299 = tpu.matmul %296, %298, %cst_226 {dimension_numbers = #tpu.dot_dimension_numbers<[1], [0], [0], [1], [0, 0, 1, 1], [], []>} : vector<256x8xbf16>, vector<8x4xbf16>, vector<256x4xf32> -> vector<256x4xf32>
    %300 = arith.addf %290, %299 : vector<256x4xf32>
    %c6_i32_227 = arith.constant 6 : i32
    %301 = arith.addi %c6_i32_227, %0 : i32
    %c6_i32_228 = arith.constant 6 : i32
    %302 = arith.addi %301, %c6_i32_228 : i32
    %c0_229 = arith.constant 0 : index
    %303 = arith.index_cast %302 : i32 to index
    %c0_230 = arith.constant 0 : index
    %c0_231 = arith.constant 0 : index
    %304 = vector.load %arg2[%c0_229, %303, %c0_230, %c0_231] : memref<1x28x28x8xbf16, #tpu.memory_space<vmem>>, vector<1x16x16x8xbf16>
    %305 = vector.shape_cast %304 : vector<1x16x16x8xbf16> to vector<16x16x8xbf16>
    %306 = vector.shape_cast %305 : vector<16x16x8xbf16> to vector<256x8xbf16>
    %c24 = arith.constant 24 : index
    %c0_232 = arith.constant 0 : index
    %c0_233 = arith.constant 0 : index
    %307 = vector.load %arg4[%c24, %c0_232, %c0_233] : memref<27x8x4xbf16, #tpu.memory_space<vmem>>, vector<1x8x4xbf16>
    %308 = vector.shape_cast %307 : vector<1x8x4xbf16> to vector<8x4xbf16>
    %cst_234 = arith.constant dense<0.000000e+00> : vector<256x4xf32>
    %309 = tpu.matmul %306, %308, %cst_234 {dimension_numbers = #tpu.dot_dimension_numbers<[1], [0], [0], [1], [0, 0, 1, 1], [], []>} : vector<256x8xbf16>, vector<8x4xbf16>, vector<256x4xf32> -> vector<256x4xf32>
    %310 = arith.addf %300, %309 : vector<256x4xf32>
    %c6_i32_235 = arith.constant 6 : i32
    %311 = arith.addi %c6_i32_235, %0 : i32
    %c6_i32_236 = arith.constant 6 : i32
    %312 = arith.addi %311, %c6_i32_236 : i32
    %c0_237 = arith.constant 0 : index
    %313 = arith.index_cast %312 : i32 to index
    %c6_238 = arith.constant 6 : index
    %c0_239 = arith.constant 0 : index
    %314 = vector.load %arg2[%c0_237, %313, %c6_238, %c0_239] : memref<1x28x28x8xbf16, #tpu.memory_space<vmem>>, vector<1x16x16x8xbf16>
    %315 = vector.shape_cast %314 : vector<1x16x16x8xbf16> to vector<16x16x8xbf16>
    %316 = vector.shape_cast %315 : vector<16x16x8xbf16> to vector<256x8xbf16>
    %c25 = arith.constant 25 : index
    %c0_240 = arith.constant 0 : index
    %c0_241 = arith.constant 0 : index
    %317 = vector.load %arg4[%c25, %c0_240, %c0_241] : memref<27x8x4xbf16, #tpu.memory_space<vmem>>, vector<1x8x4xbf16>
    %318 = vector.shape_cast %317 : vector<1x8x4xbf16> to vector<8x4xbf16>
    %cst_242 = arith.constant dense<0.000000e+00> : vector<256x4xf32>
    %319 = tpu.matmul %316, %318, %cst_242 {dimension_numbers = #tpu.dot_dimension_numbers<[1], [0], [0], [1], [0, 0, 1, 1], [], []>} : vector<256x8xbf16>, vector<8x4xbf16>, vector<256x4xf32> -> vector<256x4xf32>
    %320 = arith.addf %310, %319 : vector<256x4xf32>
    %c6_i32_243 = arith.constant 6 : i32
    %321 = arith.addi %c6_i32_243, %0 : i32
    %c6_i32_244 = arith.constant 6 : i32
    %322 = arith.addi %321, %c6_i32_244 : i32
    %c0_245 = arith.constant 0 : index
    %323 = arith.index_cast %322 : i32 to index
    %c12_246 = arith.constant 12 : index
    %c0_247 = arith.constant 0 : index
    %324 = vector.load %arg2[%c0_245, %323, %c12_246, %c0_247] : memref<1x28x28x8xbf16, #tpu.memory_space<vmem>>, vector<1x16x16x8xbf16>
    %325 = vector.shape_cast %324 : vector<1x16x16x8xbf16> to vector<16x16x8xbf16>
    %326 = vector.shape_cast %325 : vector<16x16x8xbf16> to vector<256x8xbf16>
    %c26 = arith.constant 26 : index
    %c0_248 = arith.constant 0 : index
    %c0_249 = arith.constant 0 : index
    %327 = vector.load %arg4[%c26, %c0_248, %c0_249] : memref<27x8x4xbf16, #tpu.memory_space<vmem>>, vector<1x8x4xbf16>
    %328 = vector.shape_cast %327 : vector<1x8x4xbf16> to vector<8x4xbf16>
    %cst_250 = arith.constant dense<0.000000e+00> : vector<256x4xf32>
    %329 = tpu.matmul %326, %328, %cst_250 {dimension_numbers = #tpu.dot_dimension_numbers<[1], [0], [0], [1], [0, 0, 1, 1], [], []>} : vector<256x8xbf16>, vector<8x4xbf16>, vector<256x4xf32> -> vector<256x4xf32>
    %330 = arith.addf %320, %329 : vector<256x4xf32>
    %c9_251 = arith.constant 9 : index
    %c0_252 = arith.constant 0 : index
    %331 = vector.load %arg5[%c9_251, %c0_252] : memref<12x4xf32, #tpu.memory_space<vmem>>, vector<1x4xf32>
    %c10_253 = arith.constant 10 : index
    %c0_254 = arith.constant 0 : index
    %332 = vector.load %arg5[%c10_253, %c0_254] : memref<12x4xf32, #tpu.memory_space<vmem>>, vector<1x4xf32>
    %c11_255 = arith.constant 11 : index
    %c0_256 = arith.constant 0 : index
    %333 = vector.load %arg5[%c11_255, %c0_256] : memref<12x4xf32, #tpu.memory_space<vmem>>, vector<1x4xf32>
    %334 = vector.broadcast %331 : vector<1x4xf32> to vector<256x4xf32>
    %335 = arith.mulf %330, %334 : vector<256x4xf32>
    %336 = vector.broadcast %332 : vector<1x4xf32> to vector<256x4xf32>
    %337 = arith.addf %335, %336 : vector<256x4xf32>
    %cst_257 = arith.constant 0.000000e+00 : f32
    %338 = vector.broadcast %cst_257 : f32 to vector<256x4xf32>
    %339 = arith.cmpf oge, %337, %338 : vector<256x4xf32>
    %340 = vector.broadcast %333 : vector<1x4xf32> to vector<256x4xf32>
    %341 = arith.mulf %340, %337 : vector<256x4xf32>
    %342 = arith.select %339, %337, %341 : vector<256x4xi1>, vector<256x4xf32>
    %343 = arith.truncf %342 : vector<256x4xf32> to vector<256x4xbf16>
    %c3_258 = arith.constant 3 : index
    %c0_259 = arith.constant 0 : index
    %c0_260 = arith.constant 0 : index
    %344 = vector.load %arg6[%c3_258, %c0_259, %c0_260] : memref<4x4x8xbf16, #tpu.memory_space<vmem>>, vector<1x4x8xbf16>
    %345 = vector.shape_cast %344 : vector<1x4x8xbf16> to vector<4x8xbf16>
    %cst_261 = arith.constant dense<0.000000e+00> : vector<256x8xf32>
    %346 = tpu.matmul %343, %345, %cst_261 {dimension_numbers = #tpu.dot_dimension_numbers<[1], [0], [0], [1], [0, 0, 1, 1], [], []>} : vector<256x4xbf16>, vector<4x8xbf16>, vector<256x8xf32> -> vector<256x8xf32>
    %347 = arith.addf %239, %346 : vector<256x8xf32>
    %c0_262 = arith.constant 0 : index
    %c0_263 = arith.constant 0 : index
    %c0_264 = arith.constant 0 : index
    %348 = vector.load %arg7[%c0_262, %c0_263, %c0_264] : memref<1x3x8xf32, #tpu.memory_space<vmem>>, vector<1x1x8xf32>
    %349 = vector.shape_cast %348 : vector<1x1x8xf32> to vector<1x8xf32>
    %350 = vector.broadcast %349 : vector<1x8xf32> to vector<256x8xf32>
    %351 = arith.mulf %347, %350 : vector<256x8xf32>
    %c0_265 = arith.constant 0 : index
    %c1_266 = arith.constant 1 : index
    %c0_267 = arith.constant 0 : index
    %352 = vector.load %arg7[%c0_265, %c1_266, %c0_267] : memref<1x3x8xf32, #tpu.memory_space<vmem>>, vector<1x1x8xf32>
    %353 = vector.shape_cast %352 : vector<1x1x8xf32> to vector<1x8xf32>
    %354 = vector.broadcast %353 : vector<1x8xf32> to vector<256x8xf32>
    %355 = arith.addf %351, %354 : vector<256x8xf32>
    %cst_268 = arith.constant 0.000000e+00 : f32
    %356 = vector.broadcast %cst_268 : f32 to vector<256x8xf32>
    %357 = arith.cmpf oge, %355, %356 : vector<256x8xf32>
    %c0_269 = arith.constant 0 : index
    %c2_270 = arith.constant 2 : index
    %c0_271 = arith.constant 0 : index
    %358 = vector.load %arg7[%c0_269, %c2_270, %c0_271] : memref<1x3x8xf32, #tpu.memory_space<vmem>>, vector<1x1x8xf32>
    %359 = vector.shape_cast %358 : vector<1x1x8xf32> to vector<1x8xf32>
    %360 = vector.broadcast %359 : vector<1x8xf32> to vector<256x8xf32>
    %361 = arith.mulf %360, %355 : vector<256x8xf32>
    %362 = arith.select %357, %355, %361 : vector<256x8xi1>, vector<256x8xf32>
    %363 = vector.shape_cast %362 : vector<256x8xf32> to vector<1x16x16x8xf32>
    %c0_272 = arith.constant 0 : index
    %c0_273 = arith.constant 0 : index
    %c0_274 = arith.constant 0 : index
    %c0_275 = arith.constant 0 : index
    %364 = vector.load %arg8[%c0_272, %c0_273, %c0_274, %c0_275] : memref<1x16x16x8xf32, #tpu.memory_space<vmem>>, vector<1x16x16x8xf32>
    tpu.vector_store %arg8[%c0_272, %c0_273, %c0_274, %c0_275], %363 {strides = array<i32>} : memref<1x16x16x8xf32, #tpu.memory_space<vmem>>, vector<1x16x16x8xf32>,
    return
  }
  func.func @transform_0(%arg0: i32, %arg1: i32) -> (i32, i32, i32, i32) {
    %c0_i32 = arith.constant 0 : i32
    %c0_i32_0 = arith.constant 0 : i32
    %c0_i32_1 = arith.constant 0 : i32
    %c0_i32_2 = arith.constant 0 : i32
    return %arg0, %c0_i32, %c0_i32_0, %c0_i32_1 : i32, i32, i32, i32
  }
  func.func @transform_1(%arg0: i32, %arg1: i32) -> (i32, i32) {
    %c0_i32 = arith.constant 0 : i32
    %c0_i32_0 = arith.constant 0 : i32
    %c0_i32_1 = arith.constant 0 : i32
    return %c0_i32, %c0_i32_0 : i32, i32
  }
  func.func @transform_2(%arg0: i32, %arg1: i32) -> (i32, i32, i32) {
    %c0_i32 = arith.constant 0 : i32
    %c0_i32_0 = arith.constant 0 : i32
    %c0_i32_1 = arith.constant 0 : i32
    %c0_i32_2 = arith.constant 0 : i32
    return %c0_i32, %c0_i32_0, %c0_i32_1 : i32, i32, i32
  }
  func.func @transform_3(%arg0: i32, %arg1: i32) -> (i32, i32) {
    %c0_i32 = arith.constant 0 : i32
    %c0_i32_0 = arith.constant 0 : i32
    %c0_i32_1 = arith.constant 0 : i32
    return %c0_i32, %c0_i32_0 : i32, i32
  }
  func.func @transform_4(%arg0: i32, %arg1: i32) -> (i32, i32, i32) {
    %c0_i32 = arith.constant 0 : i32
    %c0_i32_0 = arith.constant 0 : i32
    %c0_i32_1 = arith.constant 0 : i32
    %c0_i32_2 = arith.constant 0 : i32
    return %c0_i32, %c0_i32_0, %c0_i32_1 : i32, i32, i32
  }
  func.func @transform_5(%arg0: i32, %arg1: i32) -> (i32, i32, i32) {
    %c0_i32 = arith.constant 0 : i32
    %c0_i32_0 = arith.constant 0 : i32
    %c0_i32_1 = arith.constant 0 : i32
    return %arg0, %c0_i32, %c0_i32_0 : i32, i32, i32
  }
  func.func @transform_6(%arg0: i32, %arg1: i32) -> (i32, i32, i32, i32) {
    %c0_i32 = arith.constant 0 : i32
    %c0_i32_0 = arith.constant 0 : i32
    %c0_i32_1 = arith.constant 0 : i32
    return %arg0, %arg1, %c0_i32, %c0_i32_0 : i32, i32, i32, i32
  }
}

</mosaic_0001>

<bundles_post_ra>
// kernel: _lambda_.1
= control target key start
LH: loop header
LB: loop body
LE: loop exit
PB: predicated region body
PF: predicated region fallthrough
CT: control target
= control target key end

     0   :  { %s18912_s21 = smov 0   ;;  %s18914_s22 = smov 0   ;;  %s23897_s0 = inlined_call_operand.vmem [shape: bf16[2,28,28,8], index: 0, kind: input, shape index: {}]   ;;  %s23898_s1 = inlined_call_operand.vmem [shape: bf16[8,4], index: 1, kind: input, shape index: {}]   ;;  %s23899_s2 = inlined_call_operand.vmem [shape: bf16[27,8,4], index: 2, kind: input, shape index: {}]   ;;  %s23900_s3 = inlined_call_operand.vmem [shape: f32[12,4], index: 3, kind: input, shape index: {}]   ;;  %s23901_s4 = inlined_call_operand.vmem [shape: bf16[4,4,8], index: 4, kind: input, shape index: {}]   ;;  %s23902_s5 = inlined_call_operand.vmem [shape: f32[2,3,8], index: 5, kind: input, shape index: {}]   ;;  %s23903_s6 = inlined_call_operand.vmem [shape: f32[2,16,16,8], index: 6, kind: output, shape index: {}]  }
   0x1   :  { %s18916_s23 = smov 0  }
   0x2 LB: > { %s28_s24 = sadd.s32 1, %s18871_s22  ;;  %p14057_p0 = scmp.ge.s32.totalorder %s18875_s23, 1  ;;  %s18875_s23 = sphi %s18916_s23, %s16_s23   ;;  %s18871_s22 = sphi %s18914_s22, %s24167_s22   ;;  %s18867_s21 = sphi %s18912_s21, %s24166_s21  }
   0x3   : > { %p30_p1 = scmp.ge.s32.totalorder %s28_s24, 2  ;;  %p235_p2 = scmp.lt.s32.totalorder %s18875_s23, 3 }
   0x5   : > { %s24169_s24 = smov (%p30_p1, %s28_s24), 0  ;;  %p236_p3 = pnand %p14057_p0, %p235_p2 }
   0x7   : > { %239 = sbr.rel (%p236_p3) target bundleno = 1843 (0x733), region = 44 }
   0xe   : > { %vm609_vm0 = vcmask 1043456   ;;  %v14354_v0 = vld [vmem:[%s23899_s2 + $0x8] sm:$0xf]  ;;  %p274_p4 = scmp.lt.s32.totalorder %s18867_s21, 1  ;;  %v14435_v2 = vld [vmem:[%s23899_s2 + $0xc] sm:$0xf] }
   0xf   : > { %18640 = vmatprep.subr.msk.bf16.mxu1 %vm609_vm0, %v14354_v0  ;;  %v2011_v1 = vsel %vm609_vm0, %v14354_v0, 0  ;;  %vm560_vm1 = vcmask 64512   ;;  %v2481_v9 = vsel %vm609_vm0, %v14435_v2, 0  ;;  %v14468_v12 = vld [vmem:[%s23899_s2 + $0x10] sm:$0xf]  ;;  %vm396_vm2 = vcmask 1040384  }
  0x10   : > { %16788 = vmatpush3.bf16.msra.mxu1 %v2011_v1  ;;  %s24171_s21 = smov (!%p274_p4, %s18867_s21), 1  ;;  %vm397_vm3 = vcmask 1044484   ;;  %vm1066_vm4 = vcmask 1041408   ;;  %vm1067_vm5 = vcmask 1045508   ;;  %v19023_v52 = vsel %vm609_vm0, %v14468_v12, 0 }
  0x11   : > { %18641 = vmatprep.subr.msk.bf16.mxu1 %vm609_vm0, %v14435_v2  ;;  %s18669_s29 = smul.u32 448, %s24171_s21  ;;  %vm19038_vm6 = vmor %vm396_vm2, %vm397_vm3  ;;  %s14059_s16 = sshll.u32 %s24171_s21, 2 }
  0x12   : > { %vm19079_vm7 = vmor %vm1066_vm4, %vm1067_vm5  ;;  %s282_s19 = scalar_lea.vmem %s23902_s5, %s14059_s16  ;;  %s16140_s20 = sshll.u32 %s24171_s21, 8 }
  0x13   : > { %s18945_s8 = scalar_lea.vmem %s23897_s0, %s18669_s29  ;;  %s23732_s27 = scalar_lea.vmem %s23903_s6, %s16140_s20 }
  0x14   : > { %v18948_v3 = vld [vmem:[%s18945_s8 + $0x44] sm:$0xf]  ;;  %v14338_v4 = vld [vmem:[%s18945_s8 + $0x48] sm:$0xf]  ;;  %v18953_v6 = vld [vmem:[%s18945_s8 + $0x54] sm:$0xf] }
  0x15   : > { %v14355_v5 = vcombine.low %v18948_v3, %v14338_v4  ;;  %23980 = vst [vmem:[#allocation2_spill] sm:$0xff] %v18953_v6  ;;  %v14339_v7 = vld [vmem:[%s18945_s8 + $0x58] sm:$0xf]  ;;  %v18960_v10 = vld [vmem:[%s18945_s8 + $0x64] sm:$0xf] }
  0x16   : > { %v14356_v8 = vcombine.low %v18953_v6, %v14339_v7  ;;  %23981 = vst [vmem:[#allocation3_spill] sm:$0xff] %v18960_v10  ;;  %v14340_v11 = vld [vmem:[%s18945_s8 + $0x68] sm:$0xf]  ;;  %v18969_v14 = vld [vmem:[%s18945_s8 + $0x74] sm:$0xf] }
  0x17   : > { %16789 = vmatprep.mubr.msk.bf16.mxu1 %vm560_vm1, %v14355_v5  ;;  %v14357_v13 = vcombine.low %v18960_v10, %v14340_v11  ;;  %23982 = vst [vmem:[#allocation4_spill] sm:$0xff] %v18969_v14  ;;  %v14341_v15 = vld [vmem:[%s18945_s8 + $0x78] sm:$0xf]  ;;  %v18974_v16 = vld [vmem:[%s18945_s8 + $0x84] sm:$0xf] }
  0x18   : > { %16790 = vmatmul.mubr.msk.bf16.vlgmr.msra.gmra.mrb[0].mxu1 %vm560_vm1, %v14356_v8  ;;  %23983 = vst [vmem:[#allocation5_spill] sm:$0xff] %v18974_v16  ;;  %v14342_v17 = vld [vmem:[%s18945_s8 + $0x88] sm:$0xf]  ;;  %v14358_v18 = vcombine.low %v18969_v14, %v14341_v15  ;;  %v14177_v20 = vld [vmem:[%s18945_s8 + $0x94] sm:$0xf] }
  0x19   : > { %16822 = vmatpush3.bf16.msra.mxu1 %v2481_v9  ;;  %16793 = vmatprep.mubr.msk.bf16.mxu1 %vm560_vm1, %v14357_v13  ;;  %v14359_v19 = vcombine.low %v18974_v16, %v14342_v17  ;;  %v14343_v21 = vld [vmem:[%s18945_s8 + $0x98] sm:$0xf]  ;;  %v14180_v22 = vld [vmem:[%s18945_s8 + $0xa4] sm:$0xf]  ;;  %v14344_v23 = vld [vmem:[%s18945_s8 + $0xa8] sm:$0xf] }
  0x1a   : > { %18642 = vmatprep.subr.msk.bf16.mxu1 %vm609_vm0, %v14468_v12  ;;  %v14360_v24 = vcombine.low %v14177_v20, %v14343_v21  ;;  %v14361_v25 = vcombine.low %v14180_v22, %v14344_v23  ;;  %v14183_v26 = vld [vmem:[%s18945_s8 + $0xb4] sm:$0xf]  ;;  %v14345_v27 = vld [vmem:[%s18945_s8 + $0xb8] sm:$0xf]  ;;  %v14186_v28 = vld [vmem:[%s18945_s8 + $0xc4] sm:$0xf] }
  0x1b   : > { %v14346_v29 = vld [vmem:[%s18945_s8 + $0xc8] sm:$0xf]  ;;  %v14362_v30 = vcombine.low %v14183_v26, %v14345_v27  ;;  %v14189_v32 = vld [vmem:[%s18945_s8 + $0xd4] sm:$0xf]  ;;  %v14347_v33 = vld [vmem:[%s18945_s8 + $0xd8] sm:$0xf] }
  0x1c   : > { %v14363_v31 = vcombine.low %v14186_v28, %v14346_v29  ;;  %v14192_v34 = vld [vmem:[%s18945_s8 + $0xe4] sm:$0xf]  ;;  %v14348_v35 = vld [vmem:[%s18945_s8 + $0xe8] sm:$0xf]  ;;  %v14364_v36 = vcombine.low %v14189_v32, %v14347_v33  ;;  %v14195_v38 = vld [vmem:[%s18945_s8 + $0xf4] sm:$0xf] }
  0x1d   : > { %v14365_v37 = vcombine.low %v14192_v34, %v14348_v35  ;;  %v14349_v39 = vld [vmem:[%s18945_s8 + $0xf8] sm:$0xf]  ;;  %v14198_v40 = vld [vmem:[%s18945_s8 + $0x104] sm:$0xf]  ;;  %v14350_v41 = vld [vmem:[%s18945_s8 + $0x108] sm:$0xf] }
  0x1e   : > { %v19005_v42 = vld [vmem:[%s18945_s8 + $0x64] sm:$0xf]  ;;  %v14366_v43 = vcombine.low %v14195_v38, %v14349_v39  ;;  %v14367_v44 = vcombine.low %v14198_v40, %v14350_v41  ;;  %v19008_v45 = vld [vmem:[%s18945_s8 + $0x60] sm:$0xc]  ;;  %v14388_v46 = vld [vmem:[%s18945_s8 + $0x68] sm:$0x3] }
  0x1f   : > { %v2272_v47 = vrot.slane %v19005_v42, 6  ;;  %v19013_v48 = vld [vmem:[%s18945_s8 + $0x74] sm:$0xf]  ;;  %v19017_v50 = vld [vmem:[%s18945_s8 + $0x70] sm:$0xc]  ;;  %v401_v53 = vrot.slane %v19005_v42, 7 }
  0x20   : > { %16794 = vmatmul.mubr.msk.bf16.gmra.mrb[4].mxu1 %vm560_vm1, %v14358_v18  ;;  %v14201_v49 = vld [vmem:[%s18945_s8 + $0x114] sm:$0xf]  ;;  %v19020_v51 = vld [vmem:[%s18945_s8 + $0x78] sm:$0x3]  ;;  %v14204_v55 = vld [vmem:[%s18945_s8 + $0x124] sm:$0xf] }
  0x21   : > { %16797 = vmatprep.mubr.msk.bf16.mxu1 %vm560_vm1, %v14359_v19  ;;  %v14351_v54 = vld [vmem:[%s18945_s8 + $0x118] sm:$0xf]  ;;  %v14352_v56 = vld [vmem:[%s18945_s8 + $0x128] sm:$0xf]  ;;  %v14419_v57 = vrot.slane %v19008_v45, 10  ;;  %v2275_v58 = vrot.slane %v14388_v46, 6 }
  0x22   : > { %v19033_v59 = vld [vmem:[%s18945_s8 + $0x84] sm:$0xf]  ;;  %v14062_v60 = vld [vmem:[%s18945_s8 + $0x60] sm:$0x8]  ;;  %v2274_v62 = vrot.slane %v2272_v47, 4  ;;  %v14420_v63 = vrot.slane %v19017_v50, 10  ;;  %v14368_v9 = vcombine.low %v14201_v49, %v14351_v54  ;;  %v14369_v17 = vcombine.low %v14204_v55, %v14352_v56 }
  0x23   : > { %v2279_v0 = vrot.slane %v19013_v48, 6  ;;  %v2282_v1 = vrot.slane %v19020_v51, 6  ;;  %v14064_v2 = vld [vmem:[%s18945_s8 + $0x68] sm:$0x7]  ;;  %v19047_v4 = vld [vmem:[%s18945_s8 + $0x80] sm:$0xc]  ;;  %v2273_v41 = vsel %vm19079_vm7, %v14419_v57, %v2272_v47 }
  0x24   : > { %v19050_v5 = vld [vmem:[%s18945_s8 + $0x88] sm:$0x3]  ;;  %v14110_v7 = vrot.slane %v14062_v60, 11  ;;  %v403_v8 = vrot.slane %v401_v53, 4  ;;  %v2286_v11 = vrot.slane %v19033_v59, 6  ;;  %v404_v15 = vrot.slane %v14064_v2, 7 }
  0x25   : > { %v19054_v12 = vld [vmem:[%s18945_s8 + $0x94] sm:$0xf]  ;;  %v19057_v13 = vld [vmem:[%s18945_s8 + $0xa4] sm:$0xf]  ;;  %v19060_v18 = vld [vmem:[%s18945_s8 + $0x90] sm:$0xc]  ;;  %v2276_v42 = vsel %vm19079_vm7, %v2274_v62, %v2275_v58 }
  0x26   : > { %v19063_v19 = vld [vmem:[%s18945_s8 + $0x98] sm:$0x3]  ;;  %v19066_v20 = vld [vmem:[%s18945_s8 + $0xb4] sm:$0xf]  ;;  %v402_v21 = vsel %vm19038_vm6, %v14110_v7, %v401_v53  ;;  %v2281_v23 = vrot.slane %v2279_v0, 4  ;;  %v405_v26 = vsel %vm19038_vm6, %v403_v8, %v404_v15  ;;  %v2293_v28 = vrot.slane %v19054_v12, 6 }
  0x27   : > { %v14207_v22 = vld [vmem:[%s18945_s8 + $0x134] sm:$0xf]  ;;  %v19085_v29 = vld [vmem:[%s18945_s8 + $0xa0] sm:$0xc]  ;;  %v19091_v32 = vcombine.low %v402_v21, %v405_v26  ;;  %v14353_v33 = vld [vmem:[%s18945_s8 + $0x138] sm:$0xf]  ;;  %v14436_v2 = vcombine.low %v2273_v41, %v2276_v42 }
  0x28   : > { %16798 = vmatmul.mubr.msk.bf16.gmra.mrb[8].mxu1 %vm560_vm1, %v14360_v24  ;;  %v14421_v24 = vrot.slane %v19047_v4, 10  ;;  %v2288_v34 = vrot.slane %v2286_v11, 4  ;;  %v14422_v35 = vrot.slane %v19060_v18, 10  ;;  %v19100_v38 = vld [vmem:[%s18945_s8 + $0xb0] sm:$0xc]  ;;  %v14370_v49 = vcombine.low %v14207_v22, %v14353_v33 }
  0x29   : > { %16801 = vmatprep.mubr.msk.bf16.mxu1 %vm560_vm1, %v14361_v25  ;;  %v2289_v25 = vrot.slane %v19050_v5, 6  ;;  %23988 = vst [vmem:[#allocation6_spill] sm:$0xff] %v19091_v32  ;;  %v19103_v39 = vld [vmem:[%s18945_s8 + $0xb8] sm:$0x3]  ;;  %v19106_v40 = vld [vmem:[%s18945_s8 + $0xc4] sm:$0xf]  ;;  %16687 = vmatprep.mubr.msk.bf16.mxu0 %vm560_vm1, %v19091_v32  ;;  %v2280_v22 = vsel %vm19079_vm7, %v14420_v63, %v2279_v0  ;;  %v2283_v26 = vsel %vm19079_vm7, %v2281_v23, %v2282_v1 }
  0x2a   : > { %v19117_v45 = vld [vmem:[%s18945_s8 + $0xd4] sm:$0xf]  ;;  %v19120_v46 = vld [vmem:[%s18945_s8 + $0xe4] sm:$0xf]  ;;  %v2295_v53 = vrot.slane %v2293_v28, 4  ;;  %v23906_v62 = vrot.slane %v19106_v40, 6  ;;  %v2287_v33 = vsel %vm19079_vm7, %v14421_v24, %v2286_v11 }
  0x2b   : > { %v19129_v54 = vld [vmem:[%s18945_s8 + $0xc0] sm:$0xc]  ;;  %v19132_v55 = vld [vmem:[%s18945_s8 + $0xf4] sm:$0xf]  ;;  %v19141_v60 = vld [vmem:[%s18945_s8 + $0xc8] sm:$0x3]  ;;  %v2290_v41 = vsel %vm19079_vm7, %v2288_v34, %v2289_v25 }
  0x2c   : > { %v19145_v4 = vld [vmem:[%s18945_s8 + $0xd0] sm:$0xc]  ;;  %v19148_v5 = vld [vmem:[%s18945_s8 + $0xd8] sm:$0x3]  ;;  %v23905_v7 = vrot.slane %v19117_v45, 6  ;;  %v23904_v8 = vrot.slane %v19120_v46, 6  ;;  %v14438_v58 = vcombine.low %v2287_v33, %v2290_v41 }
  0x2d   : > { %v19154_v15 = vld [vmem:[%s18945_s8 + $0xe0] sm:$0xc]  ;;  %v23907_v21 = vrot.slane %v19132_v55, 6  ;;  %v19175_v42 = vld [vmem:[%s18945_s8 + $0xf0] sm:$0xc]  ;;  %v19186_v51 = vrot.slane %v23906_v62, 4 }
  0x2e   : > { %v19181_v50 = vld [vmem:[%s18945_s8 + $0x104] sm:$0xf]  ;;  %v19194_v11 = vrot.slane %v23905_v7, 4  ;;  %v19199_v24 = vrot.slane %v23904_v8, 4  ;;  %v19203_v34 = vld [vmem:[%s18945_s8 + $0x100] sm:$0xc] }
  0x2f   : > { %v19212_v23 = vld [vmem:[%s18945_s8 + $0x108] sm:$0x3]  ;;  %v23909_v8 = vrot.slane %v19181_v50, 6  ;;  %v19216_v0 = vld [vmem:[%s18945_s8 + $0x114] sm:$0xf]  ;;  %v408_v1 = vrot.slane %v19013_v48, 7 }
  0x30   : > { %16802 = vmatmul.mubr.msk.bf16.gmra.mrb[12].mxu1 %vm560_vm1, %v14362_v30  ;;  %v19088_v30 = vld [vmem:[%s18945_s8 + $0xa8] sm:$0x3]  ;;  %v19219_v25 = vld [vmem:[%s18945_s8 + $0x110] sm:$0xc]  ;;  %v19222_v7 = vld [vmem:[%s18945_s8 + $0x118] sm:$0x3] }
  0x31   : > { %16805 = vmatprep.mubr.msk.bf16.mxu1 %vm560_vm1, %v14363_v31  ;;  %v23910_v31 = vrot.slane %v19057_v13, 6  ;;  %v19226_v62 = vld [vmem:[%s18945_s8 + $0x124] sm:$0xf]  ;;  %v19233_v56 = vld [vmem:[%s23899_s2 + $0x14] sm:$0xf]  ;;  %v415_v33 = vrot.slane %v19033_v59, 7 }
  0x32   : > { %23989 = vst [vmem:[#allocation7_spill] sm:$0xff] %v19233_v56  ;;  %v19254_v41 = vld [vmem:[%s18945_s8 + $0x90] sm:$0x8]  ;;  %v511_v18 = vld [vmem:[%s23898_s1] sm:$0xf]  ;;  %v23990_v59 = vrot.slane %v19057_v13, 6 }
  0x33   : > { %v19126_v47 = vrot.slane %v23910_v31, 4  ;;  %18637 = vmatprep.subr.msk.bf16.mxu0 %vm609_vm0, %v511_v18  ;;  %v14074_v31 = vld [vmem:[%s18945_s8 + $0xa0] sm:$0x8]  ;;  %v14113_v16 = vrot.slane %v19254_v41, 11  ;;  %v19290_v41 = vld [vmem:[%s18945_s8 + $0xb0] sm:$0x8] }
  0x34   : > { %v14082_v10 = vld [vmem:[%s18945_s8 + $0xc8] sm:$0x7]  ;;  %v19304_v6 = vld [vmem:[%s18945_s8 + $0xd0] sm:$0x8]  ;;  %v15448_v61 = vld [vmem:[%s18945_s8 + $0xb4] sm:$0xe] }
  0x35   : > { %v18837_v27 = vld [vmem:[%s18945_s8 + $0x68] sm:$0xf] }
  0x38   : > { %16806 = vmatmul.mubr.msk.bf16.gmra.mrb[16].mxu1 %vm560_vm1, %v14364_v36  ;;  %v2296_v36 = vrot.slane %v19063_v19, 6 }
  0x39   : > { %16809 = vmatprep.mubr.msk.bf16.mxu1 %vm560_vm1, %v14365_v37  ;;  %v23908_v37 = vrot.slane %v19066_v20, 6 }
  0x3a   : > { %v2297_v48 = vsel %vm19079_vm7, %v2295_v53, %v2296_v36  ;;  %v19263_v36 = vld [vmem:[%s18945_s8 + $0x98] sm:$0x7]  ;;  %v422_v53 = vrot.slane %v19054_v12, 7 }
  0x3b   : > { %v19137_v57 = vrot.slane %v23908_v37, 4  ;;  %v14067_v37 = vld [vmem:[%s18945_s8 + $0x78] sm:$0x7] }
  0x3c   : > { %v424_v14 = vrot.slane %v422_v53, 4 }
  0x40   : > { %16810 = vmatmul.mubr.msk.bf16.gmra.mrb[20].mxu1 %vm560_vm1, %v14366_v43  ;;  %v14070_v43 = vld [vmem:[%s18945_s8 + $0x88] sm:$0x7] }
  0x41   : > { %16813 = vmatprep.mubr.msk.bf16.mxu1 %vm560_vm1, %v14367_v44  ;;  %v14068_v44 = vld [vmem:[%s18945_s8 + $0x80] sm:$0x8] }
  0x42   : > { %v14112_v12 = vrot.slane %v14068_v44, 11  ;;  %v425_v44 = vrot.slane %v19263_v36, 7 }
  0x48   : > { %16814 = vmatmul.mubr.msk.bf16.gmra.mrb[24].mxu1 %vm560_vm1, %v14368_v9  ;;  %v19178_v9 = vld [vmem:[%s18945_s8 + $0xf8] sm:$0x3] }
  0x49   : > { %16817 = vmatprep.mubr.msk.bf16.mxu1 %vm560_vm1, %v14369_v17  ;;  %v19157_v17 = vld [vmem:[%s18945_s8 + $0xe8] sm:$0x3] }
  0x50   : > { %16818 = vmatmul.mubr.msk.bf16.gmra.mrb[28].mxu1 %vm560_vm1, %v14370_v49  ;;  %v14437_v49 = vcombine.low %v2280_v22, %v2283_v26  ;;  %v2294_v22 = vsel %vm19079_vm7, %v14422_v35, %v2293_v28  ;;  %v19250_v26 = vrot.slane %v23909_v8, 4  ;;  %v410_v8 = vrot.slane %v408_v1, 4 }
  0x51   : > { %16823 = vmatprep.mubr.msk.bf16.mxu1 %vm560_vm1, %v14436_v2  ;;  %v19208_v2 = vrot.slane %v23907_v21, 4  ;;  %v14065_v21 = vld [vmem:[%s18945_s8 + $0x70] sm:$0x8]  ;;  %v411_v28 = vrot.slane %v14067_v37, 7  ;;  %v418_v35 = vrot.slane %v14070_v43, 7  ;;  %v417_v43 = vrot.slane %v415_v33, 4 }
  0x52   : > { %v14111_v63 = vrot.slane %v14065_v21, 11  ;;  %v23991_v21 = vrot.slane %v19085_v29, 10  ;;  %v19293_v29 = vld [vmem:[%s18945_s8 + $0xb8] sm:$0x7]  ;;  %v14439_v19 = vcombine.low %v2294_v22, %v2297_v48  ;;  %v416_v22 = vsel %vm19038_vm6, %v14112_v12, %v415_v33 }
  0x53   : > { %v439_v33 = vrot.slane %v19293_v29, 7  ;;  %v23999_v29 = vrot.slane %v19129_v54, 10  ;;  %v426_v54 = vsel %vm19038_vm6, %v424_v14, %v425_v44  ;;  %v450_v14 = vrot.slane %v19117_v45, 7 }
  0x54   : > { %v2301_v37 = vsel %vm19079_vm7, %v23991_v21, %v23990_v59  ;;  %v14114_v59 = vrot.slane %v14074_v31, 11  ;;  %v14080_v21 = vld [vmem:[%s18945_s8 + $0xc0] sm:$0x8]  ;;  %v419_v31 = vsel %vm19038_vm6, %v417_v43, %v418_v35  ;;  %v446_v43 = vrot.slane %v14082_v10, 7 }
  0x58   : > { %16824 = vmatmul.mubr.msk.bf16.vlgmr.msra.gmra.mrb[0].mxu1 %vm560_vm1, %v14437_v49  ;;  %v14076_v49 = vld [vmem:[%s18945_s8 + $0xa8] sm:$0x7] }
  0x59   : > { %16856 = vmatpush3.bf16.msra.mxu1 %v19023_v52  ;;  %16827 = vmatprep.mubr.msk.bf16.mxu1 %vm560_vm1, %v14438_v58  ;;  %v23992_v52 = vrot.slane %v19088_v30, 6  ;;  %v409_v30 = vsel %vm19038_vm6, %v14111_v63, %v408_v1  ;;  %v432_v48 = vrot.slane %v14076_v49, 7  ;;  %v611_v63 = vsel %vm609_vm0, %v511_v18, 0 }
  0x5a   : > { %18643 = vmatprep.subr.msk.bf16.mxu1 %vm609_vm0, %v19233_v56  ;;  %v436_v56 = vrot.slane %v19066_v20, 7  ;;  %v23993_v1 = vrot.slane %v19066_v20, 6  ;;  %16686 = vmatpush3.bf16.msra.mxu0 %v611_v63  ;;  %v14116_v18 = vrot.slane %v14080_v21, 11  ;;  %v443_v20 = vrot.slane %v19106_v40, 7 }
  0x5b   : > { %v2304_v58 = vsel %vm19079_vm7, %v19126_v47, %v23992_v52  ;;  %v412_v47 = vsel %vm19038_vm6, %v410_v8, %v411_v28  ;;  %v429_v52 = vrot.slane %v19057_v13, 7  ;;  %v23994_v8 = vrot.slane %v19100_v38, 10 }
  0x5c   : > { %v14440_v36 = vcombine.low %v2301_v37, %v2304_v58  ;;  %v19317_v28 = vcombine.low %v409_v30, %v412_v47  ;;  %v14115_v37 = vrot.slane %v19290_v41, 11  ;;  %v438_v12 = vrot.slane %v436_v56, 4 }
  0x5d   : > { %v2308_v13 = vsel %vm19079_vm7, %v23994_v8, %v23993_v1  ;;  %v431_v35 = vrot.slane %v429_v52, 4  ;;  %v23996_v38 = vrot.slane %v19103_v39, 6  ;;  %v19329_v58 = vcombine.low %v416_v22, %v419_v31  ;;  %v14086_v1 = vld [vmem:[%s18945_s8 + $0xe0] sm:$0x8] }
  0x5e   : > { %23995 = vst [vmem:[#allocation8_spill] sm:$0xff] %v19317_v28  ;;  %v14117_v41 = vrot.slane %v19304_v6, 11  ;;  %v24000_v30 = vrot.slane %v19141_v60, 6  ;;  %16688 = vmatmul.mubr.msk.bf16.vlgmr.msra.gmra.mrb[0].mxu0 %vm560_vm1, %v19317_v28  ;;  %v430_v60 = vsel %vm19038_vm6, %v14114_v59, %v429_v52  ;;  %v24001_v47 = vrot.slane %v19117_v45, 6 }
  0x5f   : > { %v2311_v49 = vsel %vm19079_vm7, %v19137_v57, %v23996_v38  ;;  %23997 = vst [vmem:[#allocation9_spill] sm:$0xff] %v19329_v58  ;;  %v14085_v57 = vld [vmem:[%s18945_s8 + $0xd8] sm:$0x7]  ;;  %16691 = vmatprep.mubr.msk.bf16.mxu0 %vm560_vm1, %v19329_v58  ;;  %v24004_v59 = vrot.slane %v19148_v5, 6  ;;  %v457_v31 = vrot.slane %v19120_v46, 7  ;;  %v24007_v45 = vrot.slane %v19154_v15, 10 }
  0x60   : > { %16828 = vmatmul.mubr.msk.bf16.gmra.mrb[4].mxu1 %vm560_vm1, %v14439_v19  ;;  %v23998_v19 = vrot.slane %v19106_v40, 6  ;;  %v2318_v39 = vsel %vm19079_vm7, %v19186_v51, %v24000_v30  ;;  %v14441_v6 = vcombine.low %v2308_v13, %v2311_v49  ;;  %v423_v40 = vsel %vm19038_vm6, %v14113_v16, %v422_v53 }
  0x61   : > { %16831 = vmatprep.mubr.msk.bf16.mxu1 %vm560_vm1, %v14440_v36  ;;  %v433_v51 = vsel %vm19038_vm6, %v431_v35, %v432_v48  ;;  %v24002_v36 = vrot.slane %v19145_v4, 10  ;;  %v19363_v53 = vcombine.low %v423_v40, %v426_v54  ;;  %v453_v44 = vrot.slane %v14085_v57, 7 }
  0x62   : > { %v2315_v21 = vsel %vm19079_vm7, %v23999_v29, %v23998_v19  ;;  %v2325_v52 = vsel %vm19079_vm7, %v19194_v11, %v24004_v59  ;;  %v19372_v22 = vcombine.low %v430_v60, %v433_v51  ;;  %v445_v4 = vrot.slane %v443_v20, 4  ;;  %v14411_v29 = vld [vmem:[%s18945_s8 + $0x120] sm:$0xc] }
  0x63   : > { %v14442_v10 = vcombine.low %v2315_v21, %v2318_v39  ;;  %v2322_v16 = vsel %vm19079_vm7, %v24002_v36, %v24001_v47  ;;  %24003 = vst [vmem:[#allocation10_spill] sm:$0xff] %v19363_v53  ;;  %v24006_v48 = vrot.slane %v19120_v46, 6  ;;  %v24008_v5 = vrot.slane %v19157_v17, 6  ;;  %v14088_v46 = vld [vmem:[%s18945_s8 + $0xe8] sm:$0x7] }
  0x64   : > { %24005 = vst [vmem:[#allocation11_spill] sm:$0xff] %v19372_v22  ;;  %v14443_v8 = vcombine.low %v2322_v16, %v2325_v52  ;;  %v437_v13 = vsel %vm19038_vm6, %v14115_v37, %v436_v56  ;;  %v440_v17 = vsel %vm19038_vm6, %v438_v12, %v439_v33  ;;  %v447_v35 = vsel %vm19038_vm6, %v445_v4, %v446_v43  ;;  %v14412_v21 = vld [vmem:[%s18945_s8 + $0x128] sm:$0x3] }
  0x65   : > { %v2329_v63 = vsel %vm19079_vm7, %v24007_v45, %v24006_v48  ;;  %v2332_v11 = vsel %vm19079_vm7, %v19199_v24, %v24008_v5  ;;  %v444_v24 = vsel %vm19038_vm6, %v14116_v18, %v443_v20  ;;  %v24009_v38 = vrot.slane %v19132_v55, 6  ;;  %v14089_v48 = vld [vmem:[%s18945_s8 + $0xf0] sm:$0x8]  ;;  %v14091_v45 = vld [vmem:[%s18945_s8 + $0xf8] sm:$0x7] }
  0x66   : > { %16692 = vmatmul.mubr.msk.bf16.gmra.mrb[4].mxu0 %vm560_vm1, %v19363_v53  ;;  %v14444_v15 = vcombine.low %v2329_v63, %v2332_v11  ;;  %v24010_v49 = vrot.slane %v19175_v42, 10  ;;  %v24011_v56 = vrot.slane %v19178_v9, 6  ;;  %v19414_v33 = vcombine.low %v437_v13, %v440_v17  ;;  %v19418_v42 = vld [vmem:[%s18945_s8 + $0x134] sm:$0xf]  ;;  %v19461_v63 = vld [vmem:[%s18945_s8 + $0x144] sm:$0xf] }
  0x67   : > { %16695 = vmatprep.mubr.msk.bf16.mxu0 %vm560_vm1, %v19372_v22  ;;  %v452_v12 = vrot.slane %v450_v14, 4  ;;  %v14118_v18 = vrot.slane %v14086_v1, 11  ;;  %v19420_v20 = vcombine.low %v444_v24, %v447_v35  ;;  %v459_v43 = vrot.slane %v457_v31, 4  ;;  %v14092_v5 = vld [vmem:[%s18945_s8 + $0x100] sm:$0x8] }
  0x68   : > { %16832 = vmatmul.mubr.msk.bf16.gmra.mrb[8].mxu1 %vm560_vm1, %v14441_v6  ;;  %v2336_v19 = vsel %vm19079_vm7, %v24010_v49, %v24009_v38  ;;  %v2339_v37 = vsel %vm19079_vm7, %v19208_v2, %v24011_v56  ;;  %24012 = vst [vmem:[#allocation12_spill] sm:$0xff] %v19414_v33  ;;  %v460_v30 = vrot.slane %v14088_v46, 7  ;;  %v24014_v39 = vrot.slane %v19181_v50, 6  ;;  %v14413_v46 = vld [vmem:[%s18945_s8 + $0x130] sm:$0xc] }
  0x69   : > { %16835 = vmatprep.mubr.msk.bf16.mxu1 %vm560_vm1, %v14442_v10  ;;  %24013 = vst [vmem:[#allocation13_spill] sm:$0xff] %v19420_v20  ;;  %v24015_v9 = vrot.slane %v19203_v34, 10  ;;  %v24016_v2 = vrot.slane %v19212_v23, 6  ;;  %v14445_v10 = vcombine.low %v2336_v19, %v2339_v37  ;;  %v24017_v34 = vrot.slane %v19216_v0, 6  ;;  %v14415_v17 = vld [vmem:[%s18945_s8 + $0x140] sm:$0xc] }
  0x6a   : > { %v14431_v54 = vrot.slane %v14411_v29, 10  ;;  %v24018_v23 = vrot.slane %v19226_v62, 6  ;;  %v2359_v51 = vrot.slane %v14412_v21, 6  ;;  %v451_v47 = vsel %vm19038_vm6, %v14117_v41, %v450_v14  ;;  %v14416_v49 = vld [vmem:[%s18945_s8 + $0x148] sm:$0x3] }
  0x6b   : > { %v2343_v57 = vsel %vm19079_vm7, %v24015_v9, %v24014_v39  ;;  %v2346_v6 = vsel %vm19079_vm7, %v19250_v26, %v24016_v2  ;;  %v2351_v40 = vrot.slane %v24017_v34, 4  ;;  %v454_v36 = vsel %vm19038_vm6, %v452_v12, %v453_v44 }
  0x6c   : > { %v2358_v60 = vrot.slane %v24018_v23, 4  ;;  %v14446_v26 = vcombine.low %v2343_v57, %v2346_v6  ;;  %v464_v16 = vrot.slane %v19132_v55, 7  ;;  %v2363_v59 = vrot.slane %v19418_v42, 6  ;;  %v19491_v57 = vld [vmem:[%s18945_s8 + $0x154] sm:$0xf] }
  0x6d   : > { %v458_v52 = vsel %vm19038_vm6, %v14118_v18, %v457_v31  ;;  %v461_v4 = vsel %vm19038_vm6, %v459_v43, %v460_v30  ;;  %v471_v41 = vrot.slane %v19181_v50, 7  ;;  %v24019_v14 = vmov %v24017_v34  ;;  %v14094_v31 = vld [vmem:[%s18945_s8 + $0x108] sm:$0x7] }
  0x6e   : > { %16696 = vmatmul.mubr.msk.bf16.gmra.mrb[8].mxu0 %vm560_vm1, %v19414_v33  ;;  %v24020_v44 = vrot.slane %v19219_v25, 10  ;;  %v24021_v11 = vrot.slane %v19222_v7, 6  ;;  %v24022_v50 = vmov %v24018_v23  ;;  %v19478_v13 = vcombine.low %v451_v47, %v454_v36  ;;  %v14095_v23 = vld [vmem:[%s18945_s8 + $0x110] sm:$0x8]  ;;  %v14098_v47 = vld [vmem:[%s18945_s8 + $0x120] sm:$0x8] }
  0x6f   : > { %16699 = vmatprep.mubr.msk.bf16.mxu0 %vm560_vm1, %v19420_v20  ;;  %v2357_v25 = vsel %vm19079_vm7, %v14431_v54, %v24022_v50  ;;  %v19482_v24 = vcombine.low %v458_v52, %v461_v4  ;;  %v14119_v7 = vrot.slane %v14089_v48, 11  ;;  %v466_v35 = vrot.slane %v464_v16, 4  ;;  %v14100_v36 = vld [vmem:[%s18945_s8 + $0x128] sm:$0x7]  ;;  %v14417_v52 = vld [vmem:[%s18945_s8 + $0x150] sm:$0xc] }
  0x70   : > { %16836 = vmatmul.mubr.msk.bf16.gmra.mrb[12].mxu1 %vm560_vm1, %v14443_v8  ;;  %v2350_v55 = vsel %vm19079_vm7, %v24020_v44, %v24019_v14  ;;  %v2353_v1 = vsel %vm19079_vm7, %v2351_v40, %v24021_v11  ;;  %v2360_v8 = vsel %vm19079_vm7, %v2358_v60, %v2359_v51  ;;  %24023 = vst [vmem:[#allocation14_spill] sm:$0xff] %v19478_v13  ;;  %v467_v38 = vrot.slane %v14091_v45, 7  ;;  %v14097_v60 = vld [vmem:[%s18945_s8 + $0x118] sm:$0x7] }
  0x71   : > { %16839 = vmatprep.mubr.msk.bf16.mxu1 %vm560_vm1, %v14444_v15  ;;  %v14414_v15 = vld [vmem:[%s18945_s8 + $0x138] sm:$0x3]  ;;  %24024 = vst [vmem:[#allocation15_spill] sm:$0xff] %v19482_v24  ;;  %v2370_v19 = vrot.slane %v19461_v63, 6  ;;  %v14120_v29 = vrot.slane %v14092_v5, 11  ;;  %v473_v21 = vrot.slane %v471_v41, 4  ;;  %v14447_v18 = vcombine.low %v2350_v55, %v2353_v1 }
  0x72   : > { %v474_v56 = vrot.slane %v14094_v31, 7  ;;  %v14432_v37 = vrot.slane %v14413_v46, 10  ;;  %v2366_v12 = vrot.slane %v14414_v15, 6  ;;  %v14448_v43 = vcombine.low %v2357_v25, %v2360_v8 }
  0x73   : > { %v2365_v30 = vrot.slane %v2363_v59, 4  ;;  %v14433_v39 = vrot.slane %v14415_v17, 10  ;;  %v2373_v9 = vrot.slane %v14416_v49, 6  ;;  %v465_v2 = vsel %vm19038_vm6, %v14119_v7, %v464_v16  ;;  %v14103_v49 = vld [vmem:[%s18945_s8 + $0x138] sm:$0x7] }
  0x74   : > { %v468_v6 = vsel %vm19038_vm6, %v466_v35, %v467_v38  ;;  %v2372_v34 = vrot.slane %v2370_v19, 4  ;;  %v472_v40 = vsel %vm19038_vm6, %v14120_v29, %v471_v41  ;;  %v475_v54 = vsel %vm19038_vm6, %v473_v21, %v474_v56  ;;  %v14101_v38 = vld [vmem:[%s18945_s8 + $0x130] sm:$0x8]  ;;  %v14104_v29 = vld [vmem:[%s18945_s8 + $0x140] sm:$0x8] }
  0x75   : > { %v485_v51 = vrot.slane %v19226_v62, 7  ;;  %v2371_v16 = vsel %vm19079_vm7, %v14433_v39, %v2370_v19  ;;  %v2377_v4 = vrot.slane %v19491_v57, 6  ;;  %v19516_v48 = vcombine.low %v465_v2, %v468_v6  ;;  %v14418_v62 = vld [vmem:[%s18945_s8 + $0x158] sm:$0x3]  ;;  %v14106_v21 = vld [vmem:[%s18945_s8 + $0x148] sm:$0x7] }
  0x76   : > { %16700 = vmatmul.mubr.msk.bf16.gmra.mrb[12].mxu0 %vm560_vm1, %v19478_v13  ;;  %v19520_v45 = vcombine.low %v472_v40, %v475_v54  ;;  %v481_v14 = vrot.slane %v14097_v60, 7  ;;  %v2374_v44 = vsel %vm19079_vm7, %v2372_v34, %v2373_v9  ;;  %v14122_v55 = vrot.slane %v14098_v47, 11  ;;  %v14225_v47 = vld [vmem:[%s18945_s8 + $0x40] sm:$0x8] }
  0x77   : > { %16703 = vmatprep.mubr.msk.bf16.mxu0 %vm560_vm1, %v19482_v24  ;;  %24025 = vst [vmem:[#allocation16_spill] sm:$0xff] %v19516_v48  ;;  %v487_v5 = vrot.slane %v485_v51, 4  ;;  %v488_v31 = vrot.slane %v14100_v36, 7  ;;  %v14434_v1 = vrot.slane %v14417_v52, 10  ;;  %v2379_v50 = vrot.slane %v2377_v4, 4 }
  0x78   : > { %16840 = vmatmul.mubr.msk.bf16.gmra.mrb[16].mxu1 %vm560_vm1, %v14445_v10  ;;  %v478_v10 = vrot.slane %v19216_v0, 7  ;;  %v2367_v0 = vsel %vm19079_vm7, %v2365_v30, %v2366_v12  ;;  %24026 = vst [vmem:[#allocation17_spill] sm:$0xff] %v19520_v45  ;;  %v2380_v25 = vrot.slane %v14418_v62, 6  ;;  %v14450_v8 = vcombine.low %v2371_v16, %v2374_v44  ;;  %v14226_v36 = vld [vmem:[%s18945_s8 + $0x48] sm:$0x7] }
  0x79   : > { %16843 = vmatprep.mubr.msk.bf16.mxu1 %vm560_vm1, %v14446_v26  ;;  %v2364_v26 = vsel %vm19079_vm7, %v14432_v37, %v2363_v59  ;;  %v14121_v59 = vrot.slane %v14095_v23, 11  ;;  %v492_v17 = vrot.slane %v19418_v42, 7  ;;  %v486_v7 = vsel %vm19038_vm6, %v14122_v55, %v485_v51  ;;  %v14107_v23 = vld [vmem:[%s18945_s8 + $0x150] sm:$0x8] }
  0x7a   : > { %v480_v41 = vrot.slane %v478_v10, 4  ;;  %v14449_v11 = vcombine.low %v2364_v26, %v2367_v0  ;;  %v489_v35 = vsel %vm19038_vm6, %v487_v5, %v488_v31  ;;  %v499_v19 = vrot.slane %v19461_v63, 7  ;;  %v24031_v5 = vld [vmem:[#allocation2_spill] sm:$0xff] }
  0x7b   : > { %v479_v46 = vsel %vm19038_vm6, %v14121_v59, %v478_v10  ;;  %v2378_v56 = vsel %vm19079_vm7, %v14434_v1, %v2377_v4  ;;  %v2381_v37 = vsel %vm19079_vm7, %v2379_v50, %v2380_v25  ;;  %v494_v30 = vrot.slane %v492_v17, 4  ;;  %v14273_v4 = vld [vmem:[%s23899_s2 + $0x4] sm:$0xf]  ;;  %v24032_v1 = vld [vmem:[#allocation3_spill] sm:$0xff] }
  0x7c   : > { %v482_v15 = vsel %vm19038_vm6, %v480_v41, %v481_v14  ;;  %v495_v39 = vrot.slane %v14103_v49, 7  ;;  %v14124_v9 = vrot.slane %v14104_v29, 11  ;;  %v501_v2 = vrot.slane %v499_v19, 4  ;;  %18638 = vmatprep.subr.msk.bf16.mxu0 %vm609_vm0, %v14273_v4  ;;  %v14230_v49 = vld [vmem:[%s18945_s8 + $0x68] sm:$0x7] }
  0x7d   : > { %v19547_v12 = vcombine.low %v479_v46, %v482_v15  ;;  %v502_v6 = vrot.slane %v14106_v21, 7  ;;  %v1248_v10 = vrot.slane %v18948_v3, 7  ;;  %v14451_v34 = vcombine.low %v2378_v56, %v2381_v37  ;;  %v14109_v3 = vld [vmem:[%s18945_s8 + $0x158] sm:$0x7] }
  0x7e   : > { %16704 = vmatmul.mubr.msk.bf16.gmra.mrb[16].mxu0 %vm560_vm1, %v19516_v48  ;;  %v496_v54 = vsel %vm19038_vm6, %v494_v30, %v495_v39  ;;  %v506_v60 = vrot.slane %v19491_v57, 7  ;;  %v500_v51 = vsel %vm19038_vm6, %v14124_v9, %v499_v19  ;;  %v14125_v52 = vrot.slane %v14107_v23, 11  ;;  %v14228_v46 = vld [vmem:[%s18945_s8 + $0x58] sm:$0x7] }
  0x7f   : > { %16707 = vmatprep.mubr.msk.bf16.mxu0 %vm560_vm1, %v19520_v45  ;;  %24027 = vst [vmem:[#allocation18_spill] sm:$0xff] %v19547_v12  ;;  %v503_v26 = vsel %vm19038_vm6, %v501_v2, %v502_v6  ;;  %v1250_v0 = vrot.slane %v1248_v10, 4  ;;  %v14257_v62 = vrot.slane %v14225_v47, 11  ;;  %v1251_v59 = vrot.slane %v14226_v36, 7  ;;  %v19605_v21 = vld [vmem:[%s23899_s2 + $0x18] sm:$0xf] }
  0x80   : > { %16844 = vmatmul.mubr.msk.bf16.gmra.mrb[20].mxu1 %vm560_vm1, %v14447_v18  ;;  %v19550_v18 = vcombine.low %v486_v7, %v489_v35  ;;  %v19578_v41 = vcombine.low %v500_v51, %v503_v26  ;;  %v508_v14 = vrot.slane %v506_v60, 4  ;;  %v509_v44 = vrot.slane %v14109_v3, 7  ;;  %v24033_v7 = vld [vmem:[#allocation7_spill] sm:$0xff]  ;;  %v24035_v6 = vld [vmem:[#allocation4_spill] sm:$0xff]  ;;  %v14232_v26 = vld [vmem:[%s18945_s8 + $0x78] sm:$0x7] }
  0x81   : > { %16847 = vmatprep.mubr.msk.bf16.mxu1 %vm560_vm1, %v14448_v43  ;;  %v14123_v43 = vrot.slane %v14101_v38, 11  ;;  %v1457_v55 = vsel %vm609_vm0, %v14273_v4, 0  ;;  %v1255_v31 = vrot.slane %v24031_v5, 7  ;;  %v1262_v50 = vrot.slane %v24032_v1, 7  ;;  %v14229_v38 = vld [vmem:[%s18945_s8 + $0x60] sm:$0x8] }
  0x82   : > { %24028 = vst [vmem:[#allocation19_spill] sm:$0xff] %v19550_v18  ;;  %24030 = vst [vmem:[#allocation21_spill] sm:$0xff] %v19578_v41  ;;  %16720 = vmatpush3.bf16.msra.mxu0 %v1457_v55  ;;  %v1249_v25 = vsel %vm19038_vm6, %v14257_v62, %v1248_v10  ;;  %v507_v15 = vsel %vm19038_vm6, %v14125_v52, %v506_v60  ;;  %v3005_v35 = vsel %vm609_vm0, %v24033_v7, 0  ;;  %v1258_v37 = vrot.slane %v14228_v46, 7  ;;  %v14231_v51 = vld [vmem:[%s18945_s8 + $0x70] sm:$0x8] }
  0x83   : > { %v493_v40 = vsel %vm19038_vm6, %v14123_v43, %v492_v17  ;;  %v510_v17 = vsel %vm19038_vm6, %v508_v14, %v509_v44  ;;  %v1257_v29 = vrot.slane %v1255_v31, 4  ;;  %v14259_v30 = vrot.slane %v14229_v38, 11  ;;  %v14233_v47 = vld [vmem:[%s18945_s8 + $0x80] sm:$0x8]  ;;  %v14234_v36 = vld [vmem:[%s18945_s8 + $0x88] sm:$0x7] }
  0x84   : > { %v19571_v16 = vcombine.low %v493_v40, %v496_v54  ;;  %v19609_v43 = vcombine.low %v507_v15, %v510_v17  ;;  %v1264_v39 = vrot.slane %v1262_v50, 4  ;;  %v1265_v9 = vrot.slane %v14230_v49, 7  ;;  %v24036_v40 = vld [vmem:[#allocation5_spill] sm:$0xff]  ;;  %v19638_v55 = vld [vmem:[%s18945_s8 + $0x94] sm:$0xf] }
  0x85   : > { %v1269_v10 = vrot.slane %v24035_v6, 7  ;;  %v1276_v54 = vrot.slane %v24036_v40, 7  ;;  %v1263_v23 = vsel %vm19038_vm6, %v14259_v30, %v1262_v50  ;;  %v14260_v52 = vrot.slane %v14231_v51, 11  ;;  %v19647_v1 = vld [vmem:[%s18945_s8 + $0xa4] sm:$0xf] }
  0x86   : > { %16708 = vmatmul.mubr.msk.bf16.gmra.mrb[20].mxu0 %vm560_vm1, %v19547_v12  ;;  %24029 = vst [vmem:[#allocation20_spill] sm:$0xff] %v19571_v16  ;;  %24034 = vst [vmem:[#allocation2_spill] sm:$0xff] %v19609_v43  ;;  %v1266_v60 = vsel %vm19038_vm6, %v1264_v39, %v1265_v9  ;;  %v1272_v62 = vrot.slane %v14232_v26, 7  ;;  %v1279_v44 = vrot.slane %v14234_v36, 7  ;;  %v1283_v5 = vrot.slane %v19638_v55, 7 }
  0x87   : > { %16711 = vmatprep.mubr.msk.bf16.mxu0 %vm560_vm1, %v19550_v18  ;;  %v1271_v4 = vrot.slane %v1269_v10, 4  ;;  %v1278_v14 = vrot.slane %v1276_v54, 4  ;;  %v1290_v50 = vrot.slane %v19647_v1, 7  ;;  %v14235_v46 = vld [vmem:[%s18945_s8 + $0x90] sm:$0x8] }
  0x88   : > { %16848 = vmatmul.mubr.msk.bf16.gmra.mrb[24].mxu1 %vm560_vm1, %v14449_v11  ;;  %v14227_v11 = vld [vmem:[%s18945_s8 + $0x50] sm:$0x8]  ;;  %v14236_v15 = vld [vmem:[%s18945_s8 + $0x98] sm:$0x7]  ;;  %v14237_v7 = vld [vmem:[%s18945_s8 + $0xa0] sm:$0x8] }
  0x89   : > { %16851 = vmatprep.mubr.msk.bf16.mxu1 %vm560_vm1, %v14450_v8  ;;  %v1252_v8 = vsel %vm19038_vm6, %v1250_v0, %v1251_v59  ;;  %v14258_v19 = vrot.slane %v14227_v11, 11  ;;  %v14276_v0 = vcombine.low %v1263_v23, %v1266_v60  ;;  %v14261_v59 = vrot.slane %v14233_v47, 11  ;;  %v19664_v39 = vld [vmem:[%s18945_s8 + $0xb4] sm:$0xf]  ;;  %v14239_v23 = vld [vmem:[%s18945_s8 + $0xb0] sm:$0x8] }
  0x8a   : > { %v14274_v56 = vcombine.low %v1249_v25, %v1252_v8  ;;  %v1273_v11 = vsel %vm19038_vm6, %v1271_v4, %v1272_v62  ;;  %v1280_v8 = vsel %vm19038_vm6, %v1278_v14, %v1279_v44  ;;  %v14262_v49 = vrot.slane %v14235_v46, 11  ;;  %v14240_v60 = vld [vmem:[%s18945_s8 + $0xb8] sm:$0x7]  ;;  %v14241_v26 = vld [vmem:[%s18945_s8 + $0xc0] sm:$0x8] }
  0x8b   : > { %v1256_v2 = vsel %vm19038_vm6, %v14258_v19, %v1255_v31  ;;  %v1270_v31 = vsel %vm19038_vm6, %v14260_v52, %v1269_v10  ;;  %v1277_v25 = vsel %vm19038_vm6, %v14261_v59, %v1276_v54  ;;  %v1285_v19 = vrot.slane %v1283_v5, 4  ;;  %v19673_v10 = vld [vmem:[%s18945_s8 + $0xc4] sm:$0xf]  ;;  %v19690_v14 = vld [vmem:[%s18945_s8 + $0xd4] sm:$0xf] }
  0x8c   : > { %v14277_v17 = vcombine.low %v1270_v31, %v1273_v11  ;;  %v14278_v38 = vcombine.low %v1277_v25, %v1280_v8  ;;  %v1297_v9 = vrot.slane %v19664_v39, 7  ;;  %v14264_v36 = vrot.slane %v14239_v23, 11  ;;  %v19699_v11 = vld [vmem:[%s18945_s8 + $0xe4] sm:$0xf]  ;;  %v14243_v46 = vld [vmem:[%s18945_s8 + $0xd0] sm:$0x8] }
  0x8d   : > { %v1300_v52 = vrot.slane %v14240_v60, 7  ;;  %v14265_v4 = vrot.slane %v14241_v26, 11  ;;  %v1311_v44 = vrot.slane %v19690_v14, 7  ;;  %v14248_v26 = vld [vmem:[%s18945_s8 + $0xf8] sm:$0x7] }
  0x8e   : > { %16712 = vmatmul.mubr.msk.bf16.gmra.mrb[24].mxu0 %vm560_vm1, %v19571_v16 }
  0x8f   : > { %16715 = vmatprep.mubr.msk.bf16.mxu0 %vm560_vm1, %v19578_v41 }
  0x90   : > { %16852 = vmatmul.mubr.msk.bf16.gmra.mrb[28].mxu1 %vm560_vm1, %v14451_v34  ;;  %v1259_v34 = vsel %vm19038_vm6, %v1257_v29, %v1258_v37  ;;  %v1286_v29 = vrot.slane %v14236_v15, 7  ;;  %v1292_v37 = vrot.slane %v1290_v50, 4  ;;  %v14244_v15 = vld [vmem:[%s18945_s8 + $0xd8] sm:$0x7] }
  0x91   : > { %16857 = vmatprep.mubr.msk.bf16.mxu1 %vm560_vm1, %v19091_v32  ;;  %v14275_v3 = vcombine.low %v1256_v2, %v1259_v34  ;;  %v1284_v2 = vsel %vm19038_vm6, %v14262_v49, %v1283_v5  ;;  %v1304_v34 = vrot.slane %v19673_v10, 7  ;;  %v1298_v5 = vsel %vm19038_vm6, %v14264_v36, %v1297_v9  ;;  %v14250_v36 = vld [vmem:[%s18945_s8 + $0x108] sm:$0x7] }
  0x92   : > { %v1287_v6 = vsel %vm19038_vm6, %v1285_v19, %v1286_v29  ;;  %v14266_v49 = vrot.slane %v14243_v46, 11  ;;  %v1313_v19 = vrot.slane %v1311_v44, 4  ;;  %v1314_v29 = vrot.slane %v14244_v15, 7  ;;  %v19751_v46 = vld [vmem:[%s18945_s8 + $0x124] sm:$0xf] }
  0x93   : > { %v14279_v51 = vcombine.low %v1284_v2, %v1287_v6  ;;  %v1306_v62 = vrot.slane %v1304_v34, 4  ;;  %v1305_v25 = vsel %vm19038_vm6, %v14265_v4, %v1304_v34  ;;  %v1346_v15 = vrot.slane %v19751_v46, 7 }
  0x94   : > { %v1312_v6 = vsel %vm19038_vm6, %v14266_v49, %v1311_v44  ;;  %v1315_v34 = vsel %vm19038_vm6, %v1313_v19, %v1314_v29  ;;  %v14253_v19 = vld [vmem:[%s18945_s8 + $0x120] sm:$0x8]  ;;  %v14254_v29 = vld [vmem:[%s18945_s8 + $0x128] sm:$0x7] }
  0x96   : > { %16716 = vmatmul.mubr.msk.bf16.gmra.mrb[28].mxu0 %vm560_vm1, %v19609_v43 }
  0x97   : > { %16721 = vmatprep.mubr.msk.bf16.mxu0 %vm560_vm1, %v14274_v56  ;;  %v14263_v56 = vrot.slane %v14237_v7, 11  ;;  %v14245_v7 = vld [vmem:[%s18945_s8 + $0xe0] sm:$0x8] }
  0x98   : > { %16858 = vmatmul.mubr.msk.bf16.vlgmr.msra.gmra.mrb[0].mxu1 %vm560_vm1, %v19317_v28 }
  0x99   : > { %16890 = vmatpush3.bf16.msra.mxu1 %v3005_v35  ;;  %16861 = vmatprep.mubr.msk.bf16.mxu1 %vm560_vm1, %v19329_v58  ;;  %v14238_v35 = vld [vmem:[%s18945_s8 + $0xa8] sm:$0x7]  ;;  %v1291_v40 = vsel %vm19038_vm6, %v14263_v56, %v1290_v50  ;;  %v1318_v50 = vrot.slane %v19699_v11, 7  ;;  %v14267_v56 = vrot.slane %v14245_v7, 11 }
  0x9a   : > { %18644 = vmatprep.subr.msk.bf16.mxu1 %vm609_vm0, %v19605_v21  ;;  %v1293_v30 = vrot.slane %v14238_v35, 7  ;;  %v14246_v35 = vld [vmem:[%s18945_s8 + $0xe8] sm:$0x7] }
  0x9b   : > { %v1319_v23 = vsel %vm19038_vm6, %v14267_v56, %v1318_v50 }
  0x9c   : > { %v1294_v54 = vsel %vm19038_vm6, %v1292_v37, %v1293_v30  ;;  %v1320_v37 = vrot.slane %v1318_v50, 4  ;;  %v1321_v30 = vrot.slane %v14246_v35, 7  ;;  %v14251_v35 = vld [vmem:[%s18945_s8 + $0x110] sm:$0x8] }
  0x9d   : > { %v14280_v47 = vcombine.low %v1291_v40, %v1294_v54  ;;  %v19725_v40 = vld [vmem:[%s18945_s8 + $0x104] sm:$0xf] }
  0x9e   : > { %16722 = vmatmul.mubr.msk.bf16.vlgmr.msra.gmra.mrb[32].mxu0 %vm560_vm1, %v14275_v3  ;;  %v14242_v3 = vld [vmem:[%s18945_s8 + $0xc8] sm:$0x7]  ;;  %v1332_v54 = vrot.slane %v19725_v40, 7  ;;  %v1322_v60 = vsel %vm19038_vm6, %v1320_v37, %v1321_v30  ;;  %v14270_v37 = vrot.slane %v14251_v35, 11 }
  0x9f   : > { %16725 = vmatprep.mubr.msk.bf16.mxu0 %vm560_vm1, %v14276_v0  ;;  %v1299_v0 = vrot.slane %v1297_v9, 4  ;;  %v1307_v59 = vrot.slane %v14242_v3, 7  ;;  %v19716_v9 = vld [vmem:[%s18945_s8 + $0xf4] sm:$0xf]  ;;  %v14283_v3 = vcombine.low %v1312_v6, %v1315_v34  ;;  %v14271_v6 = vrot.slane %v14253_v19, 11 }
  0xa0   : > { %16862 = vmatmul.mubr.msk.bf16.gmra.mrb[4].mxu1 %vm560_vm1, %v19363_v53  ;;  %v1325_v2 = vrot.slane %v19716_v9, 7  ;;  %v1334_v44 = vrot.slane %v1332_v54, 4  ;;  %v1348_v34 = vrot.slane %v1346_v15, 4 }
  0xa1   : > { %16865 = vmatprep.mubr.msk.bf16.mxu1 %vm560_vm1, %v19372_v22  ;;  %v1301_v31 = vsel %vm19038_vm6, %v1299_v0, %v1300_v52  ;;  %v1308_v8 = vsel %vm19038_vm6, %v1306_v62, %v1307_v59  ;;  %v14284_v0 = vcombine.low %v1319_v23, %v1322_v60  ;;  %v1328_v62 = vrot.slane %v14248_v26, 7  ;;  %v14485_v23 = vld [vmem:[%s18945_s8 + $0x68] sm:$0xf]  ;;  %v19769_v60 = vld [vmem:[%s18945_s8 + $0x134] sm:$0xf] }
  0xa2   : > { %v1327_v4 = vrot.slane %v1325_v2, 4 }
  0xa6   : > { %16726 = vmatmul.mubr.msk.bf16.gmra.mrb[36].mxu0 %vm560_vm1, %v14277_v17  ;;  %v14281_v17 = vcombine.low %v1298_v5, %v1301_v31  ;;  %v1335_v5 = vrot.slane %v14250_v36, 7  ;;  %v19742_v31 = vld [vmem:[%s18945_s8 + $0x114] sm:$0xf] }
  0xa7   : > { %16729 = vmatprep.mubr.msk.bf16.mxu0 %vm560_vm1, %v14278_v38  ;;  %v14282_v38 = vcombine.low %v1305_v25, %v1308_v8  ;;  %v1339_v50 = vrot.slane %v19742_v31, 7  ;;  %v1329_v8 = vsel %vm19038_vm6, %v1327_v4, %v1328_v62  ;;  %v14255_v4 = vld [vmem:[%s18945_s8 + $0x130] sm:$0x8]  ;;  %v14256_v62 = vld [vmem:[%s18945_s8 + $0x138] sm:$0x7] }
  0xa8   : > { %16866 = vmatmul.mubr.msk.bf16.gmra.mrb[8].mxu1 %vm560_vm1, %v19414_v33  ;;  %v1336_v7 = vsel %vm19038_vm6, %v1334_v44, %v1335_v5  ;;  %v1356_v35 = vrot.slane %v14256_v62, 7  ;;  %v18806_v62 = vld [vmem:[%s18945_s8 + $0x84] sm:$0xf] }
  0xa9   : > { %16869 = vmatprep.mubr.msk.bf16.mxu1 %vm560_vm1, %v19420_v20  ;;  %v1341_v30 = vrot.slane %v1339_v50, 4  ;;  %v1340_v26 = vsel %vm19038_vm6, %v14270_v37, %v1339_v50  ;;  %v14163_v50 = vld [vmem:[%s18945_s8 + $0x48] sm:$0x3] }
  0xaa   : > { %v1074_v19 = vrot.slane %v14163_v50, 6  ;;  %v14487_v37 = vld [vmem:[%s18945_s8 + $0x88] sm:$0xf] }
  0xae   : > { %16730 = vmatmul.mubr.msk.bf16.gmra.mrb[40].mxu0 %vm560_vm1, %v14279_v51  ;;  %v14247_v51 = vld [vmem:[%s18945_s8 + $0xf0] sm:$0x8] }
  0xaf   : > { %16733 = vmatprep.mubr.msk.bf16.mxu0 %vm560_vm1, %v14280_v47  ;;  %v14249_v47 = vld [vmem:[%s18945_s8 + $0x100] sm:$0x8]  ;;  %v14268_v52 = vrot.slane %v14247_v51, 11  ;;  %v1353_v51 = vrot.slane %v19769_v60, 7 }
  0xb0   : > { %16870 = vmatmul.mubr.msk.bf16.gmra.mrb[12].mxu1 %vm560_vm1, %v19478_v13  ;;  %v14269_v59 = vrot.slane %v14249_v47, 11  ;;  %v18801_v47 = vld [vmem:[%s18945_s8 + $0x44] sm:$0xf] }
  0xb1   : > { %16873 = vmatprep.mubr.msk.bf16.mxu1 %vm560_vm1, %v19482_v24  ;;  %v1326_v25 = vsel %vm19038_vm6, %v14268_v52, %v1325_v2  ;;  %v1071_v36 = vrot.slane %v18801_v47, 6  ;;  %v14661_v24 = vld [vmem:[%s18945_s8 + $0x170] sm:$0x8] }
  0xb2   : > { %v14285_v49 = vcombine.low %v1326_v25, %v1329_v8  ;;  %v14161_v25 = vld [vmem:[%s18945_s8 + $0x40] sm:$0xc] }
  0xb6   : > { %16734 = vmatmul.mubr.msk.bf16.gmra.mrb[44].mxu0 %vm560_vm1, %v14281_v17  ;;  %v1333_v17 = vsel %vm19038_vm6, %v14269_v59, %v1332_v54  ;;  %v1349_v54 = vrot.slane %v14254_v29, 7  ;;  %v18802_v59 = vld [vmem:[%s18945_s8 + $0x64] sm:$0xf]  ;;  %v14486_v29 = vld [vmem:[%s18945_s8 + $0x78] sm:$0xf] }
  0xb7   : > { %16737 = vmatprep.mubr.msk.bf16.mxu0 %vm560_vm1, %v14282_v38  ;;  %v14252_v38 = vld [vmem:[%s18945_s8 + $0x118] sm:$0x7]  ;;  %v14286_v56 = vcombine.low %v1333_v17, %v1336_v7  ;;  %v14502_v44 = vcombine.low %v18802_v59, %v14485_v23  ;;  %v14272_v17 = vrot.slane %v14255_v4, 11  ;;  %v1355_v7 = vrot.slane %v1353_v51, 4  ;;  %v18804_v23 = vld [vmem:[%s18945_s8 + $0x64] sm:$0xf] }
  0xb8   : > { %16874 = vmatmul.mubr.msk.bf16.gmra.mrb[16].mxu1 %vm560_vm1, %v19516_v48  ;;  %v1342_v2 = vrot.slane %v14252_v38, 7  ;;  %v1350_v52 = vsel %vm19038_vm6, %v1348_v34, %v1349_v54  ;;  %v1073_v38 = vrot.slane %v1071_v36, 4  ;;  %v14164_v54 = vld [vmem:[%s18945_s8 + $0x50] sm:$0xc]  ;;  %v14166_v4 = vld [vmem:[%s18945_s8 + $0x58] sm:$0x3]  ;;  %v14504_v59 = vcombine.low %v18806_v62, %v14487_v37 }
  0xb9   : > { %16877 = vmatprep.mubr.msk.bf16.mxu1 %vm560_vm1, %v19520_v45  ;;  %v1357_v34 = vsel %vm19038_vm6, %v1355_v7, %v1356_v35  ;;  %v14210_v50 = vrot.slane %v14164_v54, 10  ;;  %v1081_v7 = vrot.slane %v14166_v4, 6  ;;  %v14173_v62 = vld [vmem:[%s18945_s8 + $0x80] sm:$0xc] }
  0xbe   : > { %16738 = vmatmul.mubr.msk.bf16.gmra.mrb[48].mxu0 %vm560_vm1, %v14283_v3  ;;  %v1343_v3 = vsel %vm19038_vm6, %v1341_v30, %v1342_v2  ;;  %v18803_v30 = vld [vmem:[%s18945_s8 + $0x54] sm:$0xf] }
  0xbf   : > { %16741 = vmatprep.mubr.msk.bf16.mxu0 %vm560_vm1, %v14284_v0  ;;  %v1347_v0 = vsel %vm19038_vm6, %v14271_v6, %v1346_v15  ;;  %v14287_v5 = vcombine.low %v1340_v26, %v1343_v3  ;;  %v1181_v15 = vld [vmem:[%s23899_s2] sm:$0xf]  ;;  %v1078_v2 = vrot.slane %v18803_v30, 6  ;;  %v1354_v6 = vsel %vm19038_vm6, %v14272_v17, %v1353_v51  ;;  %v18805_v3 = vld [vmem:[%s18945_s8 + $0x74] sm:$0xf] }
  0xc0   : > { %16878 = vmatmul.mubr.msk.bf16.gmra.mrb[20].mxu1 %vm560_vm1, %v19547_v12  ;;  %v14288_v8 = vcombine.low %v1347_v0, %v1350_v52  ;;  %18639 = vmatprep.subr.msk.bf16.mxu0 %vm609_vm0, %v1181_v15  ;;  %v1085_v26 = vrot.slane %v18804_v23, 6  ;;  %v14503_v47 = vcombine.low %v18805_v3, %v14486_v29  ;;  %v1075_v52 = vsel %vm19079_vm7, %v1073_v38, %v1074_v19  ;;  %v18807_v29 = vld [vmem:[%s18945_s8 + $0x74] sm:$0xf]  ;;  %v18808_v30 = vld [vmem:[%s18945_s8 + $0x84] sm:$0xf] }
  0xc1   : > { %16881 = vmatprep.mubr.msk.bf16.mxu1 %vm560_vm1, %v19550_v18  ;;  %v3511_v51 = vsel %vm609_vm0, %v19605_v21, 0  ;;  %v1079_v19 = vsel %vm19079_vm7, %v14210_v50, %v1078_v2 }
  0xc2   : > { %v1087_v21 = vrot.slane %v1085_v26, 4 }
  0xc6   : > { %16742 = vmatmul.mubr.msk.bf16.gmra.mrb[52].mxu0 %vm560_vm1, %v14285_v49  ;;  %v14209_v49 = vrot.slane %v14161_v25, 10  ;;  %v14169_v25 = vld [vmem:[%s18945_s8 + $0x68] sm:$0x3] }
  0xc7   : > { %16745 = vmatprep.mubr.msk.bf16.mxu0 %vm560_vm1, %v14286_v56  ;;  %v1717_v56 = vsel %vm609_vm0, %v1181_v15, 0  ;;  %v1088_v38 = vrot.slane %v14169_v25, 6  ;;  %v14488_v15 = vld [vmem:[%s18945_s8 + $0x98] sm:$0xf] }
  0xc8   : > { %16882 = vmatmul.mubr.msk.bf16.gmra.mrb[24].mxu1 %vm560_vm1, %v19571_v16  ;;  %16754 = vmatpush3.bf16.msra.mxu0 %v1717_v56  ;;  %v1072_v0 = vsel %vm19079_vm7, %v14209_v49, %v1071_v36  ;;  %v19820_v36 = vld [vmem:[%s23899_s2 + $0x1c] sm:$0xf]  ;;  %v14489_v49 = vld [vmem:[%s18945_s8 + $0xa8] sm:$0xf]  ;;  %v1092_v56 = vrot.slane %v18807_v29, 6 }
  0xc9   : > { %16885 = vmatprep.mubr.msk.bf16.mxu1 %vm560_vm1, %v19578_v41  ;;  %v14306_v17 = vcombine.low %v1072_v0, %v1075_v52  ;;  %v1089_v3 = vsel %vm19079_vm7, %v1087_v21, %v1088_v38  ;;  %v18810_v0 = vld [vmem:[%s18945_s8 + $0xa4] sm:$0xf] }
  0xca   : > { %v14506_v52 = vcombine.low %v18810_v0, %v14489_v49  ;;  %v18811_v49 = vld [vmem:[%s18945_s8 + $0xb4] sm:$0xf] }
  0xce   : > { %16746 = vmatmul.mubr.msk.bf16.gmra.mrb[56].mxu0 %vm560_vm1, %v14287_v5  ;;  %v14167_v5 = vld [vmem:[%s18945_s8 + $0x60] sm:$0xc] }
  0xcf   : > { %16749 = vmatprep.mubr.msk.bf16.mxu0 %vm560_vm1, %v14288_v8  ;;  %v1080_v8 = vrot.slane %v1078_v2, 4  ;;  %v14211_v35 = vrot.slane %v14167_v5, 10  ;;  %v14170_v2 = vld [vmem:[%s18945_s8 + $0x70] sm:$0xc]  ;;  %v1094_v5 = vrot.slane %v1092_v56, 4 }
  0xd0   : > { %16886 = vmatmul.mubr.msk.bf16.gmra.mrb[28].mxu1 %vm560_vm1, %v19609_v43 }
  0xd1   : > { %16891 = vmatprep.mubr.msk.bf16.mxu1 %vm560_vm1, %v14502_v44  ;;  %v14289_v44 = vcombine.low %v1354_v6, %v1357_v34  ;;  %v1082_v37 = vsel %vm19079_vm7, %v1080_v8, %v1081_v7  ;;  %v1099_v6 = vrot.slane %v18808_v30, 6  ;;  %v18809_v34 = vld [vmem:[%s18945_s8 + $0x94] sm:$0xf]  ;;  %v1086_v23 = vsel %vm19079_vm7, %v14211_v35, %v1085_v26  ;;  %v14491_v7 = vld [vmem:[%s18945_s8 + $0xc8] sm:$0xf] }
  0xd2   : > { %v14505_v54 = vcombine.low %v18809_v34, %v14488_v15  ;;  %v14307_v4 = vcombine.low %v1079_v19, %v1082_v37  ;;  %v14213_v26 = vrot.slane %v14173_v62, 10  ;;  %v1106_v35 = vrot.slane %v19638_v55, 6  ;;  %v14176_v30 = vld [vmem:[%s18945_s8 + $0x90] sm:$0xc]  ;;  %v14178_v55 = vld [vmem:[%s18945_s8 + $0x98] sm:$0x3] }
  0xd3   : > { %v1101_v50 = vrot.slane %v1099_v6, 4  ;;  %v1113_v15 = vrot.slane %v19647_v1, 6  ;;  %v18812_v34 = vld [vmem:[%s18945_s8 + $0xc4] sm:$0xf]  ;;  %v1109_v0 = vrot.slane %v14178_v55, 6 }
  0xd4   : > { %v1100_v29 = vsel %vm19079_vm7, %v14213_v26, %v1099_v6  ;;  %v1108_v1 = vrot.slane %v1106_v35, 4  ;;  %v14492_v62 = vld [vmem:[%s18945_s8 + $0xd8] sm:$0xf]  ;;  %v18813_v26 = vld [vmem:[%s18945_s8 + $0xd4] sm:$0xf] }
  0xd6   : > { %16750 = vmatmul.mubr.msk.bf16.gmra.mrb[60].mxu0 %vm560_vm1, %v14289_v44  ;;  %v14212_v44 = vrot.slane %v14170_v2, 10 }
  0xd7   : > { %16755 = vmatprep.mubr.msk.bf16.mxu0 %vm560_vm1, %v14306_v17  ;;  %v14490_v17 = vld [vmem:[%s18945_s8 + $0xb8] sm:$0xf] }
  0xd8   : > { %16892 = vmatmul.mubr.msk.bf16.vlgmr.msra.gmra.mrb[0].mxu1 %vm560_vm1, %v14503_v47  ;;  %v14172_v47 = vld [vmem:[%s18945_s8 + $0x78] sm:$0x3]  ;;  %v1093_v21 = vsel %vm19079_vm7, %v14212_v44, %v1092_v56  ;;  %v14507_v19 = vcombine.low %v18811_v49, %v14490_v17  ;;  %v14185_v49 = vld [vmem:[%s18945_s8 + $0xc0] sm:$0xc] }
  0xd9   : > { %16924 = vmatpush3.bf16.msra.mxu1 %v3511_v51  ;;  %16895 = vmatprep.mubr.msk.bf16.mxu1 %vm560_vm1, %v14504_v59  ;;  %v14175_v59 = vld [vmem:[%s18945_s8 + $0x88] sm:$0x3]  ;;  %v14308_v51 = vcombine.low %v1086_v23, %v1089_v3  ;;  %v1095_v25 = vrot.slane %v14172_v47, 6  ;;  %v14179_v23 = vld [vmem:[%s18945_s8 + $0xa0] sm:$0xc]  ;;  %v14214_v47 = vrot.slane %v14176_v30, 10 }
  0xda   : > { %18645 = vmatprep.subr.msk.bf16.mxu1 %vm609_vm0, %v19820_v36  ;;  %v1102_v8 = vrot.slane %v14175_v59, 6  ;;  %v14181_v3 = vld [vmem:[%s18945_s8 + $0xa8] sm:$0x3]  ;;  %v14215_v6 = vrot.slane %v14179_v23, 10  ;;  %v1134_v23 = vrot.slane %v19690_v14, 6 }
  0xdb   : > { %v1096_v38 = vsel %vm19079_vm7, %v1094_v5, %v1095_v25  ;;  %v14493_v59 = vld [vmem:[%s18945_s8 + $0xe8] sm:$0xf]  ;;  %v1107_v44 = vsel %vm19079_vm7, %v14214_v47, %v1106_v35  ;;  %v1110_v5 = vsel %vm19079_vm7, %v1108_v1, %v1109_v0  ;;  %v1127_v25 = vrot.slane %v19673_v10, 6  ;;  %v18815_v1 = vld [vmem:[%s18945_s8 + $0xf4] sm:$0xf] }
  0xdc   : > { %v1103_v37 = vsel %vm19079_vm7, %v1101_v50, %v1102_v8  ;;  %v14309_v56 = vcombine.low %v1093_v21, %v1096_v38  ;;  %v14509_v50 = vcombine.low %v18813_v26, %v14492_v62  ;;  %v1114_v8 = vsel %vm19079_vm7, %v14215_v6, %v1113_v15  ;;  %v18814_v21 = vld [vmem:[%s18945_s8 + $0xe4] sm:$0xf]  ;;  %v14190_v14 = vld [vmem:[%s18945_s8 + $0xd8] sm:$0x3] }
  0xdd   : > { %v14310_v2 = vcombine.low %v1100_v29, %v1103_v37  ;;  %v14510_v38 = vcombine.low %v18814_v21, %v14493_v59  ;;  %v14311_v35 = vcombine.low %v1107_v44, %v1110_v5  ;;  %v1129_v55 = vrot.slane %v1127_v25, 4  ;;  %v18816_v62 = vld [vmem:[%s18945_s8 + $0x104] sm:$0xf]  ;;  %v14191_v44 = vld [vmem:[%s18945_s8 + $0xe0] sm:$0xc] }
  0xde   : > { %16756 = vmatmul.mubr.msk.bf16.vlgmr.msra.gmra.mrb[32].mxu0 %vm560_vm1, %v14307_v4  ;;  %v1116_v4 = vrot.slane %v14181_v3, 6  ;;  %v1141_v47 = vrot.slane %v19699_v11, 6  ;;  %v14193_v5 = vld [vmem:[%s18945_s8 + $0xe8] sm:$0x3]  ;;  %v1136_v11 = vrot.slane %v1134_v23, 4 }
  0xdf   : > { %16759 = vmatprep.mubr.msk.bf16.mxu0 %vm560_vm1, %v14308_v51  ;;  %v1120_v51 = vrot.slane %v19664_v39, 6  ;;  %v14184_v39 = vld [vmem:[%s18945_s8 + $0xb8] sm:$0x3]  ;;  %v14497_v21 = vld [vmem:[%s18945_s8 + $0x128] sm:$0xf] }
  0xe0   : > { %16896 = vmatmul.mubr.msk.bf16.gmra.mrb[4].mxu1 %vm560_vm1, %v14505_v54  ;;  %v14508_v54 = vcombine.low %v18812_v34, %v14491_v7  ;;  %v14182_v7 = vld [vmem:[%s18945_s8 + $0xb0] sm:$0xc]  ;;  %v1123_v30 = vrot.slane %v14184_v39, 6  ;;  %v14496_v39 = vld [vmem:[%s18945_s8 + $0x118] sm:$0xf] }
  0xe1   : > { %16899 = vmatprep.mubr.msk.bf16.mxu1 %vm560_vm1, %v14506_v52  ;;  %v1115_v52 = vrot.slane %v1113_v15, 4  ;;  %v14216_v37 = vrot.slane %v14182_v7, 10  ;;  %v1122_v10 = vrot.slane %v1120_v51, 4  ;;  %v14217_v15 = vrot.slane %v14185_v49, 10 }
  0xe2   : > { %v1144_v7 = vrot.slane %v14193_v5, 6 }
  0xe3   : > { %v1117_v17 = vsel %vm19079_vm7, %v1115_v52, %v1116_v4  ;;  %v1121_v3 = vsel %vm19079_vm7, %v14216_v37, %v1120_v51  ;;  %v1128_v6 = vsel %vm19079_vm7, %v14217_v15, %v1127_v25  ;;  %v14188_v4 = vld [vmem:[%s18945_s8 + $0xd0] sm:$0xc]  ;;  %v14219_v25 = vrot.slane %v14191_v44, 10  ;;  %v14196_v15 = vld [vmem:[%s18945_s8 + $0xf8] sm:$0x3] }
  0xe4   : > { %v14312_v29 = vcombine.low %v1114_v8, %v1117_v17  ;;  %v1137_v8 = vrot.slane %v14190_v14, 6  ;;  %v1143_v17 = vrot.slane %v1141_v47, 4  ;;  %v1162_v44 = vrot.slane %v19742_v31, 6 }
  0xe6   : > { %16760 = vmatmul.mubr.msk.bf16.gmra.mrb[36].mxu0 %vm560_vm1, %v14309_v56  ;;  %v14495_v56 = vld [vmem:[%s18945_s8 + $0x108] sm:$0xf]  ;;  %v1138_v49 = vsel %vm19079_vm7, %v1136_v11, %v1137_v8 }
  0xe7   : > { %16763 = vmatprep.mubr.msk.bf16.mxu0 %vm560_vm1, %v14310_v2  ;;  %v1124_v2 = vsel %vm19079_vm7, %v1122_v10, %v1123_v30  ;;  %v14512_v59 = vcombine.low %v18816_v62, %v14495_v56  ;;  %v1142_v10 = vsel %vm19079_vm7, %v14219_v25, %v1141_v47  ;;  %v1145_v30 = vsel %vm19079_vm7, %v1143_v17, %v1144_v7  ;;  %v14499_v62 = vld [vmem:[%s18945_s8 + $0x148] sm:$0xf]  ;;  %v14200_v25 = vld [vmem:[%s18945_s8 + $0x110] sm:$0xc]  ;;  %v14202_v17 = vld [vmem:[%s18945_s8 + $0x118] sm:$0x3] }
  0xe8   : > { %16900 = vmatmul.mubr.msk.bf16.gmra.mrb[8].mxu1 %vm560_vm1, %v14507_v19  ;;  %v14187_v19 = vld [vmem:[%s18945_s8 + $0xc8] sm:$0x3]  ;;  %v14313_v51 = vcombine.low %v1121_v3, %v1124_v2  ;;  %v14316_v3 = vcombine.low %v1142_v10, %v1145_v30  ;;  %v1151_v47 = vrot.slane %v14196_v15, 6  ;;  %v14516_v7 = vcombine.low %v19461_v63, %v14499_v62  ;;  %v14206_v62 = vld [vmem:[%s18945_s8 + $0x130] sm:$0xc] }
  0xe9   : > { %16903 = vmatprep.mubr.msk.bf16.mxu1 %vm560_vm1, %v14508_v54  ;;  %v1130_v34 = vrot.slane %v14187_v19, 6  ;;  %v14494_v54 = vld [vmem:[%s18945_s8 + $0xf8] sm:$0xf]  ;;  %v1155_v19 = vrot.slane %v19725_v40, 6  ;;  %v14197_v40 = vld [vmem:[%s18945_s8 + $0x100] sm:$0xc] }
  0xea   : > { %v14511_v0 = vcombine.low %v18815_v1, %v14494_v54  ;;  %v19933_v54 = vld [vmem:[%s18945_s8 + $0x84] sm:$0xf]  ;;  %v1164_v10 = vrot.slane %v1162_v44, 4  ;;  %v1165_v30 = vrot.slane %v14202_v17, 6 }
  0xeb   : > { %v1131_v52 = vsel %vm19079_vm7, %v1129_v55, %v1130_v34  ;;  %v18818_v55 = vld [vmem:[%s18945_s8 + $0x124] sm:$0xf]  ;;  %v3302_v14 = vrot.slane %v19933_v54, 6 }
  0xec   : > { %v14314_v26 = vcombine.low %v1128_v6, %v1131_v52  ;;  %v14514_v34 = vcombine.low %v18818_v55, %v14497_v21  ;;  %v1157_v6 = vrot.slane %v1155_v19, 4  ;;  %v14500_v55 = vld [vmem:[%s18945_s8 + $0x158] sm:$0xf]  ;;  %v19999_v17 = vld [vmem:[%s18945_s8 + $0xc4] sm:$0xf] }
  0xed   : > { %v3304_v21 = vrot.slane %v3302_v14, 4 }
  0xee   : > { %16764 = vmatmul.mubr.msk.bf16.gmra.mrb[40].mxu0 %vm560_vm1, %v14311_v35 }
  0xef   : > { %16767 = vmatprep.mubr.msk.bf16.mxu0 %vm560_vm1, %v14312_v29  ;;  %v18817_v29 = vld [vmem:[%s18945_s8 + $0x114] sm:$0xf] }
  0xf0   : > { %16904 = vmatmul.mubr.msk.bf16.gmra.mrb[12].mxu1 %vm560_vm1, %v14509_v50  ;;  %v14218_v50 = vrot.slane %v14188_v4, 10  ;;  %v14513_v37 = vcombine.low %v18817_v29, %v14496_v39  ;;  %v14498_v4 = vld [vmem:[%s18945_s8 + $0x138] sm:$0xf]  ;;  %v19966_v29 = vld [vmem:[%s18945_s8 + $0xa4] sm:$0xf] }
  0xf1   : > { %16907 = vmatprep.mubr.msk.bf16.mxu1 %vm560_vm1, %v14510_v38  ;;  %v1148_v38 = vrot.slane %v19716_v9, 6  ;;  %v14194_v9 = vld [vmem:[%s18945_s8 + $0xf0] sm:$0xc]  ;;  %v14515_v11 = vcombine.low %v19418_v42, %v14498_v4  ;;  %v14205_v42 = vld [vmem:[%s18945_s8 + $0x128] sm:$0x3]  ;;  %v14517_v4 = vcombine.low %v19491_v57, %v14500_v55 }
  0xf2   : > { %v1135_v35 = vsel %vm19079_vm7, %v14218_v50, %v1134_v23  ;;  %v14199_v23 = vld [vmem:[%s18945_s8 + $0x108] sm:$0x3]  ;;  %v14220_v2 = vrot.slane %v14194_v9, 10  ;;  %v1169_v50 = vrot.slane %v19751_v46, 6  ;;  %v14203_v46 = vld [vmem:[%s18945_s8 + $0x120] sm:$0xc] }
  0xf3   : > { %v14315_v56 = vcombine.low %v1135_v35, %v1138_v49  ;;  %v1150_v1 = vrot.slane %v1148_v38, 4  ;;  %v1158_v52 = vrot.slane %v14199_v23, 6  ;;  %v19961_v35 = vld [vmem:[%s18945_s8 + $0x94] sm:$0xf]  ;;  %v14223_v63 = vrot.slane %v14203_v46, 10 }
  0xf4   : > { %v1149_v5 = vsel %vm19079_vm7, %v14220_v2, %v1148_v38  ;;  %v1171_v9 = vrot.slane %v1169_v50, 4  ;;  %v1172_v15 = vrot.slane %v14205_v42, 6  ;;  %v14537_v23 = vld [vmem:[%s18945_s8 + $0x90] sm:$0xc]  ;;  %v3316_v2 = vrot.slane %v19966_v29, 6 }
  0xf5   : > { %v1159_v31 = vsel %vm19079_vm7, %v1157_v6, %v1158_v52  ;;  %v1166_v52 = vsel %vm19079_vm7, %v1164_v10, %v1165_v30  ;;  %v14545_v10 = vld [vmem:[%s18945_s8 + $0xb8] sm:$0x3]  ;;  %v3330_v30 = vrot.slane %v19999_v17, 6 }
  0xf6   : > { %16768 = vmatmul.mubr.msk.bf16.gmra.mrb[44].mxu0 %vm560_vm1, %v14313_v51  ;;  %v14536_v51 = vld [vmem:[%s18945_s8 + $0x88] sm:$0x3] }
  0xf7   : > { %16771 = vmatprep.mubr.msk.bf16.mxu0 %vm560_vm1, %v14314_v26  ;;  %v1152_v26 = vsel %vm19079_vm7, %v1150_v1, %v1151_v47  ;;  %v3305_v38 = vrot.slane %v14536_v51, 6  ;;  %v1176_v1 = vrot.slane %v19769_v60, 6  ;;  %v14540_v47 = vld [vmem:[%s18945_s8 + $0xa0] sm:$0xc]  ;;  %v1173_v60 = vsel %vm19079_vm7, %v1171_v9, %v1172_v15  ;;  %v14548_v9 = vld [vmem:[%s18945_s8 + $0xc8] sm:$0x3] }
  0xf8   : > { %16908 = vmatmul.mubr.msk.bf16.gmra.mrb[16].mxu1 %vm560_vm1, %v14511_v0  ;;  %v14221_v0 = vrot.slane %v14197_v40, 10  ;;  %v14317_v49 = vcombine.low %v1149_v5, %v1152_v26  ;;  %v14583_v5 = vrot.slane %v14537_v23, 10 }
  0xf9   : > { %16911 = vmatprep.mubr.msk.bf16.mxu1 %vm560_vm1, %v14512_v59  ;;  %v14534_v59 = vld [vmem:[%s18945_s8 + $0x80] sm:$0xc]  ;;  %v3306_v40 = vsel %vm19079_vm7, %v3304_v21, %v3305_v38 }
  0xfa   : > { %v1156_v8 = vsel %vm19079_vm7, %v14221_v0, %v1155_v19  ;;  %v14582_v39 = vrot.slane %v14534_v59, 10  ;;  %v14542_v0 = vld [vmem:[%s18945_s8 + $0xa8] sm:$0x3]  ;;  %v14208_v59 = vld [vmem:[%s18945_s8 + $0x138] sm:$0x3] }
  0xfb   : > { %v14318_v19 = vcombine.low %v1156_v8, %v1159_v31  ;;  %v14584_v8 = vrot.slane %v14540_v47, 10  ;;  %v3319_v31 = vrot.slane %v14542_v0, 6  ;;  %v1179_v21 = vrot.slane %v14208_v59, 6 }
  0xfc   : > { %v3332_v0 = vrot.slane %v3330_v30, 4 }
  0xfd   : > { %v3317_v42 = vsel %vm19079_vm7, %v14584_v8, %v3316_v2  ;;  %v14552_v8 = vld [vmem:[%s18945_s8 + $0xe0] sm:$0xc] }
  0xfe   : > { %16772 = vmatmul.mubr.msk.bf16.gmra.mrb[48].mxu0 %vm560_vm1, %v14315_v56  ;;  %v3303_v56 = vsel %vm19079_vm7, %v14582_v39, %v3302_v14  ;;  %v1170_v14 = vsel %vm19079_vm7, %v14223_v63, %v1169_v50  ;;  %v1178_v39 = vrot.slane %v1176_v1, 4  ;;  %v14546_v63 = vld [vmem:[%s18945_s8 + $0xc0] sm:$0xc] }
  0xff   : > { %16775 = vmatprep.mubr.msk.bf16.mxu0 %vm560_vm1, %v14316_v3  ;;  %v14539_v3 = vld [vmem:[%s18945_s8 + $0x98] sm:$0x3]  ;;  %v14599_v51 = vcombine.low %v3303_v56, %v3306_v40  ;;  %v14320_v50 = vcombine.low %v1170_v14, %v1173_v60  ;;  %v3981_v56 = vsel %vm609_vm0, %v19820_v36, 0  ;;  %v14586_v47 = vrot.slane %v14546_v63, 10  ;;  %v20034_v36 = vld [vmem:[%s23899_s2 + $0x20] sm:$0xf] }
 0x100   : > { %16912 = vmatmul.mubr.msk.bf16.gmra.mrb[20].mxu1 %vm560_vm1, %v14513_v37  ;;  %v14222_v37 = vrot.slane %v14200_v25, 10  ;;  %v19996_v25 = vld [vmem:[%s18945_s8 + $0xb4] sm:$0xf]  ;;  %v1180_v55 = vsel %vm19079_vm7, %v1178_v39, %v1179_v21  ;;  %v14588_v21 = vrot.slane %v14552_v8, 10  ;;  %v14563_v8 = vld [vmem:[%s18945_s8 + $0x118] sm:$0x3] }
 0x101   : > { %16915 = vmatprep.mubr.msk.bf16.mxu1 %vm560_vm1, %v14514_v34  ;;  %v3309_v34 = vrot.slane %v19961_v35, 6  ;;  %v3323_v46 = vrot.slane %v19996_v25, 6  ;;  %v3331_v59 = vsel %vm19079_vm7, %v14586_v47, %v3330_v30 }
 0x102   : > { %v1163_v6 = vsel %vm19079_vm7, %v14222_v37, %v1162_v44  ;;  %v3318_v44 = vrot.slane %v3316_v2, 4  ;;  %v14543_v37 = vld [vmem:[%s18945_s8 + $0xb0] sm:$0xc]  ;;  %v3326_v2 = vrot.slane %v14545_v10, 6 }
 0x103   : > { %v3311_v26 = vrot.slane %v3309_v34, 4  ;;  %v14319_v57 = vcombine.low %v1163_v6, %v1166_v52  ;;  %v3310_v38 = vsel %vm19079_vm7, %v14583_v5, %v3309_v34  ;;  %v14585_v23 = vrot.slane %v14543_v37, 10  ;;  %v20026_v52 = vld [vmem:[%s18945_s8 + $0xd4] sm:$0xf]  ;;  %v14549_v5 = vld [vmem:[%s18945_s8 + $0xd0] sm:$0xc] }
 0x104   : > { %v3333_v6 = vrot.slane %v14548_v9, 6  ;;  %v14555_v9 = vld [vmem:[%s18945_s8 + $0xf0] sm:$0xc] }
 0x105   : > { %v3324_v14 = vsel %vm19079_vm7, %v14585_v23, %v3323_v46 }
 0x106   : > { %16776 = vmatmul.mubr.msk.bf16.gmra.mrb[52].mxu0 %vm560_vm1, %v14317_v49 }
 0x107   : > { %16779 = vmatprep.mubr.msk.bf16.mxu0 %vm560_vm1, %v14318_v19  ;;  %v3320_v19 = vsel %vm19079_vm7, %v3318_v44, %v3319_v31  ;;  %v14554_v44 = vld [vmem:[%s18945_s8 + $0xe8] sm:$0x3] }
 0x108   : > { %16916 = vmatmul.mubr.msk.bf16.gmra.mrb[24].mxu1 %vm560_vm1, %v14515_v11  ;;  %v3312_v11 = vrot.slane %v14539_v3, 6  ;;  %v14601_v40 = vcombine.low %v3317_v42, %v3320_v19  ;;  %v3325_v3 = vrot.slane %v3323_v46, 4  ;;  %v20056_v46 = vld [vmem:[%s18945_s8 + $0xf4] sm:$0xf]  ;;  %v20059_v42 = vld [vmem:[%s18945_s8 + $0x104] sm:$0xf] }
 0x109   : > { %16919 = vmatprep.mubr.msk.bf16.mxu1 %vm560_vm1, %v14516_v7  ;;  %v14224_v7 = vrot.slane %v14206_v62, 10  ;;  %v3337_v62 = vrot.slane %v20026_v52, 6  ;;  %v3351_v10 = vrot.slane %v20056_v46, 6 }
 0x10a   : > { %v3313_v49 = vsel %vm19079_vm7, %v3311_v26, %v3312_v11  ;;  %v3327_v60 = vsel %vm19079_vm7, %v3325_v3, %v3326_v2  ;;  %v14551_v26 = vld [vmem:[%s18945_s8 + $0xd8] sm:$0x3]  ;;  %v14589_v3 = vrot.slane %v14555_v9, 10 }
 0x10b   : > { %v1177_v15 = vsel %vm19079_vm7, %v14224_v7, %v1176_v1  ;;  %v14600_v34 = vcombine.low %v3310_v38, %v3313_v49  ;;  %v20029_v1 = vld [vmem:[%s18945_s8 + $0xe4] sm:$0xf]  ;;  %v14602_v31 = vcombine.low %v3324_v14, %v3327_v60  ;;  %v3339_v7 = vrot.slane %v3337_v62, 4  ;;  %v20078_v14 = vld [vmem:[%s18945_s8 + $0x114] sm:$0xf] }
 0x10c   : > { %v3344_v11 = vrot.slane %v20029_v1, 6  ;;  %v3340_v39 = vrot.slane %v14551_v26, 6  ;;  %v3347_v49 = vrot.slane %v14554_v44, 6  ;;  %v3353_v2 = vrot.slane %v3351_v10, 4  ;;  %v20081_v60 = vld [vmem:[%s18945_s8 + $0x124] sm:$0xf] }
 0x10d   : > { %v3372_v44 = vrot.slane %v20081_v60, 6 }
 0x10e   : > { %16780 = vmatmul.mubr.msk.bf16.gmra.mrb[56].mxu0 %vm560_vm1, %v14319_v57  ;;  %v3346_v38 = vrot.slane %v3344_v11, 4  ;;  %v3341_v37 = vsel %vm19079_vm7, %v3339_v7, %v3340_v39  ;;  %v3345_v30 = vsel %vm19079_vm7, %v14588_v21, %v3344_v11  ;;  %v14561_v11 = vld [vmem:[%s18945_s8 + $0x110] sm:$0xc] }
 0x10f   : > { %16783 = vmatprep.mubr.msk.bf16.mxu0 %vm560_vm1, %v14320_v50  ;;  %v14587_v50 = vrot.slane %v14549_v5, 10  ;;  %v14591_v39 = vrot.slane %v14561_v11, 10  ;;  %v20125_v11 = vld [vmem:[%s18945_s8 + $0x164] sm:$0xf] }
 0x110   : > { %16920 = vmatmul.mubr.msk.bf16.gmra.mrb[28].mxu1 %vm560_vm1, %v14517_v4  ;;  %v14321_v4 = vcombine.low %v1177_v15, %v1180_v55  ;;  %v3348_v63 = vsel %vm19079_vm7, %v3346_v38, %v3347_v49  ;;  %v14557_v15 = vld [vmem:[%s18945_s8 + $0xf8] sm:$0x3]  ;;  %v3358_v55 = vrot.slane %v20059_v42, 6  ;;  %v3368_v38 = vrot.slane %v14563_v8, 6 }
 0x111   : > { %16925 = vmatprep.mubr.msk.bf16.mxu1 %vm560_vm1, %v14599_v51  ;;  %v3334_v51 = vsel %vm19079_vm7, %v3332_v0, %v3333_v6  ;;  %v3338_v19 = vsel %vm19079_vm7, %v14587_v50, %v3337_v62  ;;  %v14605_v23 = vcombine.low %v3345_v30, %v3348_v63  ;;  %v3354_v47 = vrot.slane %v14557_v15, 6  ;;  %v20103_v30 = vld [vmem:[%s18945_s8 + $0x144] sm:$0xf] }
 0x112   : > { %v14603_v57 = vcombine.low %v3331_v59, %v3334_v51  ;;  %v3360_v6 = vrot.slane %v3358_v55, 4  ;;  %v3352_v62 = vsel %vm19079_vm7, %v14589_v3, %v3351_v10  ;;  %v3365_v51 = vrot.slane %v20078_v14, 6  ;;  %v20100_v10 = vld [vmem:[%s18945_s8 + $0x134] sm:$0xf]  ;;  %v14570_v3 = vld [vmem:[%s18945_s8 + $0x140] sm:$0xc] }
 0x113   : > { %v3355_v59 = vsel %vm19079_vm7, %v3353_v2, %v3354_v47  ;;  %v3379_v15 = vrot.slane %v20100_v10, 6  ;;  %v14572_v2 = vld [vmem:[%s18945_s8 + $0x148] sm:$0x3] }
 0x114   : > { %v14606_v50 = vcombine.low %v3352_v62, %v3355_v59  ;;  %v3367_v21 = vrot.slane %v3365_v51, 4  ;;  %v3366_v63 = vsel %vm19079_vm7, %v14591_v39, %v3365_v51  ;;  %v14594_v59 = vrot.slane %v14570_v3, 10  ;;  %v14575_v39 = vld [vmem:[%s18945_s8 + $0x158] sm:$0x3] }
 0x116   : > { %16784 = vmatmul.mubr.msk.bf16.gmra.mrb[60].mxu0 %vm560_vm1, %v14321_v4  ;;  %v3369_v9 = vsel %vm19079_vm7, %v3367_v21, %v3368_v38  ;;  %v3400_v21 = vrot.slane %v20125_v11, 6  ;;  %v14576_v38 = vld [vmem:[%s18945_s8 + $0x160] sm:$0xc] }
 0x117   : > { %v14608_v47 = vcombine.low %v3366_v63, %v3369_v9 }
 0x118   : > { %16926 = vmatmul.mubr.msk.bf16.vlgmr.msra.gmra.mrb[0].mxu1 %vm560_vm1, %v14600_v34  ;;  %v14558_v34 = vld [vmem:[%s18945_s8 + $0x100] sm:$0xc] }
 0x119   : > { %16958 = vmatpush3.bf16.msra.mxu1 %v3981_v56  ;;  %16929 = vmatprep.mubr.msk.bf16.mxu1 %vm560_vm1, %v14601_v40  ;;  %v14560_v56 = vld [vmem:[%s18945_s8 + $0x108] sm:$0x3]  ;;  %v14604_v40 = vcombine.low %v3338_v19, %v3341_v37  ;;  %v14590_v0 = vrot.slane %v14558_v34, 10  ;;  %v3374_v19 = vrot.slane %v3372_v44, 4 }
 0x11a   : > { %18646 = vmatprep.subr.msk.bf16.mxu1 %vm609_vm0, %v20034_v36  ;;  %v3361_v4 = vrot.slane %v14560_v56, 6  ;;  %v14567_v56 = vld [vmem:[%s18945_s8 + $0x130] sm:$0xc] }
 0x11b   : > { %v3359_v5 = vsel %vm19079_vm7, %v14590_v0, %v3358_v55 }
 0x11c   : > { %v3362_v26 = vsel %vm19079_vm7, %v3360_v6, %v3361_v4  ;;  %v14593_v6 = vrot.slane %v14567_v56, 10  ;;  %v3381_v4 = vrot.slane %v3379_v15, 4 }
 0x11d   : > { %v14607_v7 = vcombine.low %v3359_v5, %v3362_v26  ;;  %v3389_v5 = vrot.slane %v14572_v2, 6  ;;  %v20122_v26 = vld [vmem:[%s18945_s8 + $0x154] sm:$0xf] }
 0x11e   : > { %v3380_v8 = vsel %vm19079_vm7, %v14593_v6, %v3379_v15  ;;  %v3396_v15 = vrot.slane %v14575_v39, 6  ;;  %v14579_v6 = vld [vmem:[%s18945_s8 + $0x170] sm:$0xc] }
 0x120   : > { %16930 = vmatmul.mubr.msk.bf16.gmra.mrb[4].mxu1 %vm560_vm1, %v14602_v31  ;;  %v14564_v31 = vld [vmem:[%s18945_s8 + $0x120] sm:$0xc] }
 0x121   : > { %16933 = vmatprep.mubr.msk.bf16.mxu1 %vm560_vm1, %v14603_v57  ;;  %v14566_v57 = vld [vmem:[%s18945_s8 + $0x128] sm:$0x3]  ;;  %v14592_v49 = vrot.slane %v14564_v31, 10  ;;  %v3393_v31 = vrot.slane %v20122_v26, 6 }
 0x122   : > { %v3375_v37 = vrot.slane %v14566_v57, 6 }
 0x123   : > { %v3373_v55 = vsel %vm19079_vm7, %v14592_v49, %v3372_v44  ;;  %v14578_v49 = vld [vmem:[%s18945_s8 + $0x168] sm:$0x3]  ;;  %v3395_v9 = vrot.slane %v3393_v31, 4 }
 0x124   : > { %v3376_v34 = vsel %vm19079_vm7, %v3374_v19, %v3375_v37  ;;  %v3403_v56 = vrot.slane %v14578_v49, 6  ;;  %v3779_v49 = vrot.slane %v19961_v35, 7 }
 0x125   : > { %v14609_v0 = vcombine.low %v3373_v55, %v3376_v34  ;;  %v14596_v55 = vrot.slane %v14576_v38, 10  ;;  %v3402_v34 = vrot.slane %v3400_v21, 4  ;;  %v3397_v3 = vsel %vm19079_vm7, %v3395_v9, %v3396_v15  ;;  %v14634_v9 = vld [vmem:[%s18945_s8 + $0x98] sm:$0x7] }
 0x126   : > { %v3786_v15 = vrot.slane %v19966_v29, 7 }
 0x128   : > { %16934 = vmatmul.mubr.msk.bf16.gmra.mrb[8].mxu1 %vm560_vm1, %v14604_v40  ;;  %v14569_v40 = vld [vmem:[%s18945_s8 + $0x138] sm:$0x3] }
 0x129   : > { %16937 = vmatprep.mubr.msk.bf16.mxu1 %vm560_vm1, %v14605_v23  ;;  %v3386_v23 = vrot.slane %v20103_v30, 6  ;;  %v3382_v62 = vrot.slane %v14569_v40, 6  ;;  %v20144_v40 = vld [vmem:[%s18945_s8 + $0x174] sm:$0xf] }
 0x12a   : > { %v3407_v2 = vrot.slane %v20144_v40, 6 }
 0x12b   : > { %v3388_v51 = vrot.slane %v3386_v23, 4  ;;  %v3383_v44 = vsel %vm19079_vm7, %v3381_v4, %v3382_v62  ;;  %v3387_v57 = vsel %vm19079_vm7, %v14594_v59, %v3386_v23  ;;  %v14581_v4 = vld [vmem:[%s18945_s8 + $0x178] sm:$0x3]  ;;  %v3772_v62 = vrot.slane %v19933_v54, 7  ;;  %v14631_v59 = vld [vmem:[%s18945_s8 + $0x80] sm:$0x8] }
 0x12c   : > { %v14610_v19 = vcombine.low %v3380_v8, %v3383_v44  ;;  %v14597_v44 = vrot.slane %v14579_v6, 10  ;;  %v3788_v6 = vrot.slane %v3786_v15, 4 }
 0x130   : > { %16938 = vmatmul.mubr.msk.bf16.gmra.mrb[12].mxu1 %vm560_vm1, %v14606_v50  ;;  %v3390_v50 = vsel %vm19079_vm7, %v3388_v51, %v3389_v5  ;;  %v14632_v51 = vld [vmem:[%s18945_s8 + $0x88] sm:$0x7] }
 0x131   : > { %16941 = vmatprep.mubr.msk.bf16.mxu1 %vm560_vm1, %v14607_v7  ;;  %v14573_v7 = vld [vmem:[%s18945_s8 + $0x150] sm:$0xc]  ;;  %v14611_v37 = vcombine.low %v3387_v57, %v3390_v50  ;;  %v3410_v57 = vrot.slane %v14581_v4, 6  ;;  %v14663_v50 = vrot.slane %v14631_v59, 11  ;;  %v3775_v39 = vrot.slane %v14632_v51, 7 }
 0x132   : > { %v14595_v63 = vrot.slane %v14573_v7, 10  ;;  %v3774_v7 = vrot.slane %v3772_v62, 4  ;;  %v3793_v51 = vrot.slane %v19996_v25, 7 }
 0x134   : > { %v3394_v23 = vsel %vm19079_vm7, %v14595_v63, %v3393_v31  ;;  %v3409_v31 = vrot.slane %v3407_v2, 4  ;;  %v14633_v63 = vld [vmem:[%s18945_s8 + $0x90] sm:$0x8] }
 0x135   : > { %v14612_v5 = vcombine.low %v3394_v23, %v3397_v3  ;;  %v14664_v3 = vrot.slane %v14633_v63, 11 }
 0x136   : > { %v3411_v38 = vsel %vm19079_vm7, %v3409_v31, %v3410_v57  ;;  %v14638_v31 = vld [vmem:[%s18945_s8 + $0xb8] sm:$0x7]  ;;  %v3800_v57 = vrot.slane %v19999_v17, 7 }
 0x138   : > { %16942 = vmatmul.mubr.msk.bf16.gmra.mrb[16].mxu1 %vm560_vm1, %v14608_v47  ;;  %v3401_v47 = vsel %vm19079_vm7, %v14596_v55, %v3400_v21  ;;  %v3408_v21 = vsel %vm19079_vm7, %v14597_v44, %v3407_v2  ;;  %v14635_v55 = vld [vmem:[%s18945_s8 + $0xa0] sm:$0x8]  ;;  %v3781_v2 = vrot.slane %v3779_v49, 4  ;;  %v14637_v44 = vld [vmem:[%s18945_s8 + $0xb0] sm:$0x8] }
 0x139   : > { %16945 = vmatprep.mubr.msk.bf16.mxu1 %vm560_vm1, %v14609_v0  ;;  %v3404_v0 = vsel %vm19079_vm7, %v3402_v34, %v3403_v56  ;;  %v14636_v34 = vld [vmem:[%s18945_s8 + $0xa8] sm:$0x7]  ;;  %v14614_v56 = vcombine.low %v3408_v21, %v3411_v38  ;;  %v14666_v38 = vrot.slane %v14637_v44, 11 }
 0x13a   : > { %v14613_v8 = vcombine.low %v3401_v47, %v3404_v0  ;;  %v3782_v47 = vrot.slane %v14634_v9, 7  ;;  %v14665_v0 = vrot.slane %v14635_v55, 11  ;;  %v3789_v4 = vrot.slane %v14636_v34, 7  ;;  %v20199_v55 = vld [vmem:[%s23899_s2 + $0x4c] sm:$0xf] }
 0x13b   : > { %v3802_v9 = vrot.slane %v3800_v57, 4  ;;  %v3794_v34 = vsel %vm19038_vm6, %v14666_v38, %v3793_v51  ;;  %v14645_v38 = vld [vmem:[%s18945_s8 + $0xf0] sm:$0x8] }
 0x13c   : > { %v3783_v59 = vsel %vm19038_vm6, %v3781_v2, %v3782_v47  ;;  %v14641_v2 = vld [vmem:[%s18945_s8 + $0xd0] sm:$0x8]  ;;  %v14642_v47 = vld [vmem:[%s18945_s8 + $0xd8] sm:$0x7] }
 0x140   : > { %16946 = vmatmul.mubr.msk.bf16.gmra.mrb[20].mxu1 %vm560_vm1, %v14610_v19  ;;  %v3773_v19 = vsel %vm19038_vm6, %v14663_v50, %v3772_v62  ;;  %v3780_v62 = vsel %vm19038_vm6, %v14664_v3, %v3779_v49  ;;  %v14639_v50 = vld [vmem:[%s18945_s8 + $0xc0] sm:$0x8]  ;;  %v3795_v49 = vrot.slane %v3793_v51, 4 }
 0x141   : > { %16949 = vmatprep.mubr.msk.bf16.mxu1 %vm560_vm1, %v14611_v37  ;;  %v3776_v37 = vsel %vm19038_vm6, %v3774_v7, %v3775_v39  ;;  %v14640_v7 = vld [vmem:[%s18945_s8 + $0xc8] sm:$0x7]  ;;  %v14681_v39 = vcombine.low %v3780_v62, %v3783_v59  ;;  %v14667_v63 = vrot.slane %v14639_v50, 11  ;;  %v20224_v50 = vld [vmem:[%s23900_s3] ss:$0 sm:$0xff] }
 0x142   : > { %v14680_v23 = vcombine.low %v3773_v19, %v3776_v37  ;;  %v3796_v19 = vrot.slane %v14638_v31, 7  ;;  %v4307_v37 = vsel %vm609_vm0, %v20034_v36, 0 }
 0x144   : > { %v3797_v36 = vsel %vm19038_vm6, %v3795_v49, %v3796_v19  ;;  %v14646_v49 = vld [vmem:[%s18945_s8 + $0xf8] sm:$0x7] }
 0x145   : > { %v14683_v62 = vcombine.low %v3794_v34, %v3797_v36  ;;  %v20249_v34 = vld [vmem:[%s23900_s3 + $0x2] ss:$0 sm:$0xff] }
 0x148   : > { %16950 = vmatmul.mubr.msk.bf16.gmra.mrb[24].mxu1 %vm560_vm1, %v14612_v5  ;;  %v3787_v5 = vsel %vm19038_vm6, %v14665_v0, %v3786_v15  ;;  %v3803_v15 = vrot.slane %v14640_v7, 7  ;;  %v3814_v0 = vrot.slane %v20029_v1, 7  ;;  %v16689_v1 = vpop.f32.mrb[0].mxu0  ;;  %v20229_v7 = vld [vmem:[%s23900_s3 + $0x1] ss:$0 sm:$0xff] }
 0x149   : > { %16953 = vmatprep.mubr.msk.bf16.mxu1 %vm560_vm1, %v14613_v8  ;;  %v3790_v8 = vsel %vm19038_vm6, %v3788_v6, %v3789_v4  ;;  %v14643_v6 = vld [vmem:[%s18945_s8 + $0xe0] sm:$0x8]  ;;  %v14644_v4 = vld [vmem:[%s18945_s8 + $0xe8] sm:$0x7]  ;;  %v783_v19 = vmul.f32 %v16689_v1, %v20224_v50 }
 0x14a   : > { %v14682_v21 = vcombine.low %v3787_v5, %v3790_v8  ;;  %v3804_v3 = vsel %vm19038_vm6, %v3802_v9, %v3803_v15  ;;  %v3810_v5 = vrot.slane %v14642_v47, 7  ;;  %v14669_v8 = vrot.slane %v14643_v6, 11 }
 0x14b   : > { %v3816_v44 = vrot.slane %v3814_v0, 4  ;;  %v3817_v31 = vrot.slane %v14644_v4, 7  ;;  %v3828_v15 = vrot.slane %v20059_v42, 7  ;;  %v3824_v4 = vrot.slane %v14646_v49, 7 }
 0x14d   : > { %v3818_v9 = vsel %vm19038_vm6, %v3816_v44, %v3817_v31  ;;  %v14649_v44 = vld [vmem:[%s18945_s8 + $0x110] sm:$0x8] }
 0x150   : > { %16954 = vmatmul.mubr.msk.bf16.gmra.mrb[28].mxu1 %vm560_vm1, %v14614_v56  ;;  %v3807_v56 = vrot.slane %v20026_v52, 7  ;;  %v14668_v52 = vrot.slane %v14641_v2, 11 }
 0x151   : > { %16959 = vmatprep.mubr.msk.bf16.mxu1 %vm560_vm1, %v14680_v23  ;;  %v3801_v23 = vsel %vm19038_vm6, %v14667_v63, %v3800_v57  ;;  %v3821_v57 = vrot.slane %v20056_v46, 7  ;;  %v3815_v63 = vsel %vm19038_vm6, %v14669_v8, %v3814_v0  ;;  %v14670_v0 = vrot.slane %v14645_v38, 11 }
 0x152   : > { %v14684_v59 = vcombine.low %v3801_v23, %v3804_v3  ;;  %v3809_v51 = vrot.slane %v3807_v56, 4  ;;  %v14648_v23 = vld [vmem:[%s18945_s8 + $0x108] sm:$0x7]  ;;  %v819_v3 = vadd.f32 %v20229_v7, %v783_v19  ;;  %v14650_v19 = vld [vmem:[%s18945_s8 + $0x118] sm:$0x7] }
 0x153   : > { %v3823_v6 = vrot.slane %v3821_v57, 4  ;;  %v3831_v8 = vrot.slane %v14648_v23, 7  ;;  %v3822_v38 = vsel %vm19038_vm6, %v14670_v0, %v3821_v57  ;;  %v3842_v57 = vrot.slane %v20081_v60, 7  ;;  %v14652_v0 = vld [vmem:[%s18945_s8 + $0x128] sm:$0x7] }
 0x154   : > { %vm851_vm8 = vcmp.ge.f32.partialorder %v819_v3, 0.0 }
 0x155   : > { %v3825_v49 = vsel %vm19038_vm6, %v3823_v6, %v3824_v4  ;;  %v3849_v6 = vrot.slane %v20100_v10, 7 }
 0x157   : > { %v3851_v16 = vrot.slane %v3849_v6, 4 }
 0x158   : > { %16960 = vmatmul.mubr.msk.bf16.vlgmr.msra.gmra.mrb[0].mxu1 %vm560_vm1, %v14681_v39  ;;  %v3808_v39 = vsel %vm19038_vm6, %v14668_v52, %v3807_v56  ;;  %v14647_v56 = vld [vmem:[%s18945_s8 + $0x100] sm:$0x8] }
 0x159   : > { %16992 = vmatpush3.bf16.msra.mxu1 %v4307_v37  ;;  %16963 = vmatprep.mubr.msk.bf16.mxu1 %vm560_vm1, %v14682_v21  ;;  %v3811_v21 = vsel %vm19038_vm6, %v3809_v51, %v3810_v5  ;;  %v20239_v37 = vpop.f32.mrb[1].mxu0  ;;  %v14671_v51 = vrot.slane %v14647_v56, 11  ;;  %v3830_v5 = vrot.slane %v3828_v15, 4 }
 0x15a   : > { %18659 = vmatprep.subr.msk.bf16.mxu1 %vm609_vm0, %v20199_v55  ;;  %v16690_v36 = vpop.f32.mrb[2].mxu0  ;;  %v14685_v47 = vcombine.low %v3808_v39, %v3811_v21  ;;  %v3835_v39 = vrot.slane %v20078_v14, 7 }
 0x15b   : > { %v784_v2 = vmul.f32 %v16690_v36, %v20224_v50  ;;  %v20263_v21 = vpop.f32.mrb[3].mxu0  ;;  %v3829_v56 = vsel %vm19038_vm6, %v14671_v51, %v3828_v15  ;;  %v3832_v23 = vsel %vm19038_vm6, %v3830_v5, %v3831_v8  ;;  %v3838_v15 = vrot.slane %v14650_v19, 7  ;;  %v14654_v51 = vld [vmem:[%s18945_s8 + $0x138] sm:$0x7]  ;;  %v14655_v8 = vld [vmem:[%s18945_s8 + $0x140] sm:$0x8] }
 0x15c   : > { %v20273_v36 = vpop.f32.mrb[4].mxu0  ;;  %v14688_v5 = vcombine.low %v3829_v56, %v3832_v23  ;;  %v3852_v18 = vrot.slane %v14654_v51, 7  ;;  %v14675_v19 = vrot.slane %v14655_v8, 11  ;;  %v3856_v56 = vrot.slane %v20103_v30, 7  ;;  %v14660_v51 = vld [vmem:[%s18945_s8 + $0x168] sm:$0x7] }
 0x15d   : > { %v820_v52 = vadd.f32 %v20229_v7, %v784_v2  ;;  %v20282_v2 = vpop.f32.mrb[5].mxu0  ;;  %v3863_v23 = vrot.slane %v20122_v26, 7  ;;  %v3877_v8 = vrot.slane %v20144_v40, 7  ;;  %v3873_v28 = vrot.slane %v14660_v51, 7 }
 0x15e   : > { %v20287_v4 = vpop.f32.mrb[6].mxu0  ;;  %v3858_v20 = vrot.slane %v3856_v56, 4 }
 0x15f   : > { %vm852_vm9 = vcmp.ge.f32.partialorder %v820_v52, 0.0  ;;  %v888_v1 = vmul.f32 %v20249_v34, %v820_v52  ;;  %v3865_v22 = vrot.slane %v3863_v23, 4 }
 0x160   : > { %16964 = vmatmul.mubr.msk.bf16.gmra.mrb[4].mxu1 %vm560_vm1, %v14683_v62  ;;  %v14686_v62 = vcombine.low %v3815_v63, %v3818_v9  ;;  %v14672_v63 = vrot.slane %v14649_v44, 11 }
 0x161   : > { %16967 = vmatprep.mubr.msk.bf16.mxu1 %vm560_vm1, %v14684_v59  ;;  %v887_v59 = vmul.f32 %v20249_v34, %v819_v3  ;;  %v20271_v9 = vsel %vm852_vm9, %v820_v52, %v888_v1  ;;  %v14653_v52 = vld [vmem:[%s18945_s8 + $0x130] sm:$0x8]  ;;  %v3844_v1 = vrot.slane %v3842_v57, 4 }
 0x162   : > { %24038 = vst [vmem:[#allocation7_spill] sm:$0xff] %v20271_v9  ;;  %v3836_v43 = vsel %vm19038_vm6, %v14672_v63, %v3835_v39  ;;  %v14674_v41 = vrot.slane %v14653_v52, 11  ;;  %v14658_v63 = vld [vmem:[%s18945_s8 + $0x158] sm:$0x7] }
 0x163   : > { %v20258_v31 = vsel %vm851_vm8, %v819_v3, %v887_v59  ;;  %v3837_v59 = vrot.slane %v3835_v39, 4  ;;  %v3845_v3 = vrot.slane %v14652_v0, 7  ;;  %v14657_v39 = vld [vmem:[%s18945_s8 + $0x150] sm:$0x8]  ;;  %v3870_v0 = vrot.slane %v20125_v11, 7 }
 0x164   : > { %24037 = vst [vmem:[#allocation3_spill] sm:$0xff] %v20258_v31  ;;  %v14676_v33 = vrot.slane %v14657_v39, 11  ;;  %v3866_v53 = vrot.slane %v14658_v63, 7  ;;  %v3850_v31 = vsel %vm19038_vm6, %v14674_v41, %v3849_v6  ;;  %v20356_v41 = vld [vmem:[%s18945_s8 + $0x88] sm:$0xf] }
 0x166   : > { %v20330_v39 = vsel %vm19038_vm6, %v3865_v22, %v3866_v53  ;;  %v782_v53 = vmul.f32 %v20224_v50, %v20263_v21  ;;  %v787_v22 = vmul.f32 %v20273_v36, %v20224_v50  ;;  %v20361_v36 = vld [vmem:[%s18945_s8 + $0x98] sm:$0xf] }
 0x168   : > { %16968 = vmatmul.mubr.msk.bf16.gmra.mrb[8].mxu1 %vm560_vm1, %v14685_v47  ;;  %v14651_v47 = vld [vmem:[%s18945_s8 + $0x120] sm:$0x8] }
 0x169   : > { %16971 = vmatprep.mubr.msk.bf16.mxu1 %vm560_vm1, %v14686_v62  ;;  %v14687_v62 = vcombine.low %v3822_v38, %v3825_v49  ;;  %v14673_v44 = vrot.slane %v14651_v47, 11  ;;  %v3839_v38 = vsel %vm19038_vm6, %v3837_v59, %v3838_v15  ;;  %v14656_v49 = vld [vmem:[%s18945_s8 + $0x148] sm:$0x7]  ;;  %v666_v47 = vpop.f32.mrb[7].mxu0  ;;  %v3846_v59 = vsel %vm19038_vm6, %v3844_v1, %v3845_v3  ;;  %v14659_v15 = vld [vmem:[%s18945_s8 + $0x160] sm:$0x8] }
 0x16a   : > { %v16697_v52 = vpop.f32.mrb[8].mxu0  ;;  %v14689_v45 = vcombine.low %v3836_v43, %v3839_v38  ;;  %v3859_v48 = vrot.slane %v14656_v49, 7  ;;  %v14678_v3 = vrot.slane %v14661_v24, 11  ;;  %v3879_v1 = vrot.slane %v3877_v8, 4 }
 0x16b   : > { %v679_v12 = vpop.f32.mrb[9].mxu0  ;;  %v3853_v43 = vsel %vm19038_vm6, %v3851_v16, %v3852_v18  ;;  %v3857_v38 = vsel %vm19038_vm6, %v14675_v19, %v3856_v56  ;;  %v20326_v24 = vsel %vm19038_vm6, %v14676_v33, %v3863_v23  ;;  %v781_v18 = vmul.f32 %v20224_v50, %v20239_v37  ;;  %v20364_v19 = vld [vmem:[%s18945_s8 + $0xa8] sm:$0xf] }
 0x16c   : > { %v20313_v13 = vpop.f32.mrb[10].mxu0  ;;  %v3860_v49 = vsel %vm19038_vm6, %v3858_v20, %v3859_v48  ;;  %v14691_v21 = vcombine.low %v3850_v31, %v3853_v43  ;;  %v788_v56 = vmul.f32 %v20287_v4, %v20224_v50  ;;  %v786_v23 = vmul.f32 %v20224_v50, %v666_v47  ;;  %v20377_v31 = vld [vmem:[%s18945_s8 + $0xc8] sm:$0xf] }
 0x16d   : > { %v682_v16 = vpop.f32.mrb[11].mxu0  ;;  %v14692_v6 = vcombine.low %v3857_v38, %v3860_v49  ;;  %v818_v47 = vadd.f32 %v20229_v7, %v782_v53  ;;  %v789_v51 = vmul.f32 %v20224_v50, %v679_v12  ;;  %v20402_v43 = vsel %vm609_vm0, %v20199_v55, 0 }
 0x16e   : > { %v16701_v20 = vpop.f32.mrb[12].mxu0  ;;  %v822_v12 = vadd.f32 %v20229_v7, %v786_v23  ;;  %v792_v53 = vmul.f32 %v20313_v13, %v20224_v50 }
 0x16f   : > { %v695_v37 = vpop.f32.mrb[13].mxu0  ;;  %vm850_vm11 = vcmp.ge.f32.partialorder %v818_v47, 0.0 }
 0x170   : > { %16972 = vmatmul.mubr.msk.bf16.gmra.mrb[12].mxu1 %vm560_vm1, %v14687_v62  ;;  %v3843_v62 = vsel %vm19038_vm6, %v14673_v44, %v3842_v57  ;;  %v14677_v57 = vrot.slane %v14659_v15, 11  ;;  %v3872_v44 = vrot.slane %v3870_v0, 4  ;;  %v16702_v63 = vpop.f32.mrb[14].mxu0  ;;  %v823_v15 = vadd.f32 %v20229_v7, %v787_v22 }
 0x171   : > { %16975 = vmatprep.mubr.msk.bf16.mxu1 %vm560_vm1, %v14688_v5  ;;  %v14662_v5 = vld [vmem:[%s18945_s8 + $0x178] sm:$0x7]  ;;  %v14690_v58 = vcombine.low %v3843_v62, %v3846_v59  ;;  %v817_v62 = vadd.f32 %v20229_v7, %v781_v18  ;;  %v791_v59 = vmul.f32 %v16697_v52, %v20224_v50  ;;  %v825_v18 = vadd.f32 %v20229_v7, %v789_v51 }
 0x172   : > { %v3880_v32 = vrot.slane %v14662_v5, 7  ;;  %v20341_v33 = vsel %vm19038_vm6, %v3872_v44, %v3873_v28  ;;  %v785_v28 = vmul.f32 %v20224_v50, %v20282_v2  ;;  %v20374_v2 = vld [vmem:[%s18945_s8 + $0xb8] sm:$0xf]  ;;  %vm855_vm12 = vcmp.ge.f32.partialorder %v823_v15, 0.0 }
 0x173   : > { %vm849_vm10 = vcmp.ge.f32.partialorder %v817_v62, 0.0  ;;  %v885_v38 = vmul.f32 %v20249_v34, %v817_v62  ;;  %v827_v49 = vadd.f32 %v20229_v7, %v791_v59  ;;  %vm854_vm15 = vcmp.ge.f32.partialorder %v822_v12, 0.0 }
 0x174   : > { %v20353_v48 = vsel %vm19038_vm6, %v3879_v1, %v3880_v32  ;;  %v14693_v32 = vcombine.low %v20326_v24, %v20330_v39  ;;  %v821_v52 = vadd.f32 %v20229_v7, %v785_v28  ;;  %v824_v1 = vadd.f32 %v20229_v7, %v788_v56  ;;  %v698_v24 = vpop.f32.mrb[15].mxu0 }
 0x175   : > { %v886_v39 = vmul.f32 %v20249_v34, %v818_v47  ;;  %v890_v56 = vmul.f32 %v20249_v34, %v822_v12  ;;  %v895_v23 = vmul.f32 %v20249_v34, %v827_v49  ;;  %v795_v59 = vmul.f32 %v16701_v20, %v20224_v50 }
 0x176   : > { %vm853_vm13 = vcmp.ge.f32.partialorder %v821_v52, 0.0  ;;  %v889_v55 = vmul.f32 %v20249_v34, %v821_v52  ;;  %vm856_vm14 = vcmp.ge.f32.partialorder %v824_v1, 0.0  ;;  %v892_v28 = vmul.f32 %v20249_v34, %v824_v1 }
 0x177   : > { %v793_v51 = vmul.f32 %v20224_v50, %v695_v37  ;;  %vm859_vm2 = vcmp.ge.f32.partialorder %v827_v49, 0.0  ;;  %v796_v13 = vmul.f32 %v16702_v63, %v20224_v50  ;;  %v794_v44 = vmul.f32 %v20224_v50, %v698_v24 }
 0x178   : > { %16976 = vmatmul.mubr.msk.bf16.gmra.mrb[16].mxu1 %vm560_vm1, %v14689_v45  ;;  %v20337_v45 = vsel %vm19038_vm6, %v14677_v57, %v3870_v0  ;;  %v20423_v57 = vsel %vm849_vm10, %v817_v62, %v885_v38  ;;  %vm857_vm3 = vcmp.ge.f32.partialorder %v825_v18, 0.0  ;;  %v828_v5 = vadd.f32 %v20229_v7, %v792_v53 }
 0x179   : > { %16979 = vmatprep.mubr.msk.bf16.mxu1 %vm560_vm1, %v14690_v58  ;;  %v20349_v58 = vsel %vm19038_vm6, %v14678_v3, %v3877_v8  ;;  %v14694_v0 = vcombine.low %v20337_v45, %v20341_v33  ;;  %v16705_v45 = vpop.f32.mrb[16].mxu0  ;;  %v891_v33 = vmul.f32 %v20249_v34, %v823_v15  ;;  %v893_v3 = vmul.f32 %v20249_v34, %v825_v18 }
 0x17a   : > { %v14695_v4 = vcombine.low %v20349_v58, %v20353_v48  ;;  %v711_v22 = vpop.f32.mrb[17].mxu0  ;;  %24039 = vst [vmem:[#allocation4_spill] sm:$0xff] %v20423_v57  ;;  %v20433_v37 = vsel %vm853_vm13, %v821_v52, %v889_v55  ;;  %v20436_v8 = vsel %vm856_vm14, %v824_v1, %v892_v28  ;;  %v20441_v62 = vsel %vm854_vm15, %v822_v12, %v890_v56 }
 0x17b   : > { %v20430_v20 = vsel %vm855_vm12, %v823_v15, %v891_v33  ;;  %24042 = vst [vmem:[#allocation23_spill] sm:$0xff] %v20433_v37  ;;  %24043 = vst [vmem:[#allocation24_spill] sm:$0xff] %v20436_v8  ;;  %v831_v38 = vadd.f32 %v20229_v7, %v795_v59  ;;  %v829_v15 = vadd.f32 %v20229_v7, %v793_v51  ;;  %vm860_vm5 = vcmp.ge.f32.partialorder %v828_v5, 0.0  ;;  %v9680_v8 = vld [vmem:[%s18945_s8 + $0xa0] sm:$0x8] }
 0x17c   : > { %24041 = vst [vmem:[#allocation22_spill] sm:$0xff] %v20430_v20  ;;  %24044 = vst [vmem:[#allocation25_spill] sm:$0xff] %v20441_v62  ;;  %v20448_v52 = vsel %vm857_vm3, %v825_v18, %v893_v3  ;;  %v832_v1 = vadd.f32 %v20229_v7, %v796_v13  ;;  %v896_v12 = vmul.f32 %v20249_v34, %v828_v5  ;;  %v20817_v20 = vld [vmem:[%s18945_s8 + $0xa4] sm:$0xf]  ;;  %v9681_v37 = vld [vmem:[%s18945_s8 + $0xa8] sm:$0x7] }
 0x17d   : > { %24046 = vst [vmem:[#allocation27_spill] sm:$0xff] %v20448_v52  ;;  %vm863_vm9 = vcmp.ge.f32.partialorder %v831_v38, 0.0  ;;  %vm861_vm10 = vcmp.ge.f32.partialorder %v829_v15, 0.0  ;;  %v9815_v57 = vrot.slane %v9681_v37, 7 }
 0x17e   : > { %v20468_v51 = vsel %vm860_vm5, %v828_v5, %v896_v12 }
 0x17f   : > { %24047 = vst [vmem:[#allocation28_spill] sm:$0xff] %v20468_v51 }
 0x180   : > { %16980 = vmatmul.mubr.msk.bf16.gmra.mrb[20].mxu1 %vm560_vm1, %v14691_v21  ;;  %v790_v21 = vmul.f32 %v20224_v50, %v682_v16  ;;  %v20426_v16 = vsel %vm850_vm11, %v818_v47, %v886_v39  ;;  %v20443_v47 = vsel %vm859_vm2, %v827_v49, %v895_v23  ;;  %v830_v39 = vadd.f32 %v20229_v7, %v794_v44 }
 0x181   : > { %16983 = vmatprep.mubr.msk.bf16.mxu1 %vm560_vm1, %v14692_v6  ;;  %v16706_v6 = vpop.f32.mrb[18].mxu0  ;;  %24040 = vst [vmem:[#allocation5_spill] sm:$0xff] %v20426_v16  ;;  %24045 = vst [vmem:[#allocation26_spill] sm:$0xff] %v20443_v47  ;;  %v797_v49 = vmul.f32 %v20224_v50, %v711_v22  ;;  %v899_v44 = vmul.f32 %v20249_v34, %v831_v38  ;;  %v900_v22 = vmul.f32 %v20249_v34, %v832_v1  ;;  %v9677_v47 = vld [vmem:[%s18945_s8 + $0x88] sm:$0x7] }
 0x182   : > { %v826_v63 = vadd.f32 %v20229_v7, %v790_v21  ;;  %v714_v24 = vpop.f32.mrb[19].mxu0  ;;  %v800_v55 = vmul.f32 %v16706_v6, %v20224_v50  ;;  %v898_v6 = vmul.f32 %v20249_v34, %v830_v39  ;;  %vm864_vm11 = vcmp.ge.f32.partialorder %v832_v1, 0.0  ;;  %v20847_v16 = vld [vmem:[%s18945_s8 + $0xc4] sm:$0xf] }
 0x183   : > { %v16709_v33 = vpop.f32.mrb[20].mxu0  ;;  %v798_v3 = vmul.f32 %v20224_v50, %v714_v24  ;;  %vm862_vm12 = vcmp.ge.f32.partialorder %v830_v39, 0.0  ;;  %v833_v23 = vadd.f32 %v20229_v7, %v797_v49 }
 0x184   : > { %v727_v53 = vpop.f32.mrb[21].mxu0  ;;  %vm858_vm8 = vcmp.ge.f32.partialorder %v826_v63, 0.0  ;;  %v803_v18 = vmul.f32 %v16709_v33, %v20224_v50  ;;  %v836_v59 = vadd.f32 %v20229_v7, %v800_v55  ;;  %v24051_v55 = vcombine.low %v19933_v54, %v20356_v41 }
 0x185   : > { %v16710_v28 = vpop.f32.mrb[22].mxu0  ;;  %v801_v21 = vmul.f32 %v20224_v50, %v727_v53  ;;  %v834_v24 = vadd.f32 %v20229_v7, %v798_v3  ;;  %v20490_v53 = vsel %vm864_vm11, %v832_v1, %v900_v22  ;;  %v20492_v58 = vsel %vm862_vm12, %v830_v39, %v898_v6 }
 0x186   : > { %v839_v33 = vadd.f32 %v20229_v7, %v803_v18  ;;  %v804_v12 = vmul.f32 %v16710_v28, %v20224_v50  ;;  %24052 = vst [vmem:[#allocation32_spill] sm:$0xff] %v20490_v53  ;;  %24053 = vst [vmem:[#allocation33_spill] sm:$0xff] %v20492_v58  ;;  %vm865_vm14 = vcmp.ge.f32.partialorder %v833_v23, 0.0  ;;  %vm868_vm15 = vcmp.ge.f32.partialorder %v836_v59, 0.0  ;;  %v9676_v58 = vld [vmem:[%s18945_s8 + $0x80] sm:$0x8] }
 0x187   : > { %v837_v5 = vadd.f32 %v20229_v7, %v801_v21  ;;  %vm866_vm2 = vcmp.ge.f32.partialorder %v834_v24, 0.0  ;;  %v902_v54 = vmul.f32 %v20249_v34, %v834_v24 }
 0x188   : > { %16984 = vmatmul.mubr.msk.bf16.gmra.mrb[24].mxu1 %vm560_vm1, %v14693_v32  ;;  %v799_v32 = vmul.f32 %v16705_v45, %v20224_v50  ;;  %v897_v45 = vmul.f32 %v20249_v34, %v829_v15  ;;  %v907_v41 = vmul.f32 %v20249_v34, %v839_v33  ;;  %v840_v18 = vadd.f32 %v20229_v7, %v804_v12 }
 0x189   : > { %16987 = vmatprep.mubr.msk.bf16.mxu1 %vm560_vm1, %v14694_v0  ;;  %v894_v0 = vmul.f32 %v20249_v34, %v826_v63  ;;  %v905_v3 = vmul.f32 %v20249_v34, %v837_v5  ;;  %vm871_vm3 = vcmp.ge.f32.partialorder %v839_v33, 0.0  ;;  %vm869_vm5 = vcmp.ge.f32.partialorder %v837_v5, 0.0 }
 0x18a   : > { %v835_v56 = vadd.f32 %v20229_v7, %v799_v32  ;;  %v20480_v32 = vsel %vm863_vm9, %v831_v38, %v899_v44  ;;  %v20482_v49 = vsel %vm861_vm10, %v829_v15, %v897_v45  ;;  %v901_v38 = vmul.f32 %v20249_v34, %v833_v23 }
 0x18b   : > { %v20471_v13 = vsel %vm858_vm8, %v826_v63, %v894_v0  ;;  %24049 = vst [vmem:[#allocation30_spill] sm:$0xff] %v20480_v32  ;;  %24050 = vst [vmem:[#allocation31_spill] sm:$0xff] %v20482_v49  ;;  %v730_v63 = vpop.f32.mrb[23].mxu0  ;;  %v904_v15 = vmul.f32 %v20249_v34, %v836_v59  ;;  %vm872_vm8 = vcmp.ge.f32.partialorder %v840_v18, 0.0  ;;  %v20782_v32 = vld [vmem:[%s18945_s8 + $0x74] sm:$0xf] }
 0x18c   : > { %24048 = vst [vmem:[#allocation29_spill] sm:$0xff] %v20471_v13  ;;  %vm867_vm13 = vcmp.ge.f32.partialorder %v835_v56, 0.0  ;;  %v903_v48 = vmul.f32 %v20249_v34, %v835_v56  ;;  %v802_v1 = vmul.f32 %v20224_v50, %v730_v63  ;;  %v20510_v6 = vsel %vm865_vm14, %v833_v23, %v901_v38  ;;  %v9665_v23 = vld [vmem:[%s18945_s8 + $0x28] sm:$0x7]  ;;  %v20787_v49 = vld [vmem:[%s18945_s8 + $0x84] sm:$0xf] }
 0x18d   : > { %24055 = vst [vmem:[#allocation35_spill] sm:$0xff] %v20510_v6  ;;  %v20534_v38 = vsel %vm869_vm5, %v837_v5, %v905_v3  ;;  %v9801_v13 = vrot.slane %v9677_v47, 7  ;;  %vm4695_vm5 = vcmask 31744  }
 0x18e   : > { %v838_v45 = vadd.f32 %v20229_v7, %v802_v1  ;;  %v20507_v22 = vsel %vm867_vm13, %v835_v56, %v903_v48  ;;  %v24058_v48 = vcombine.low %v19961_v35, %v20361_v36  ;;  %24060 = vst [vmem:[#allocation39_spill] sm:$0xff] %v20534_v38 }
 0x18f   : > { %24054 = vst [vmem:[#allocation34_spill] sm:$0xff] %v20507_v22 }
 0x190   : > { %16988 = vmatmul.mubr.msk.bf16.gmra.mrb[28].mxu1 %vm560_vm1, %v14695_v4  ;;  %v16713_v4 = vpop.f32.mrb[24].mxu0  ;;  %vm870_vm9 = vcmp.ge.f32.partialorder %v838_v45, 0.0  ;;  %v906_v35 = vmul.f32 %v20249_v34, %v838_v45 }
 0x191   : > { %16993 = vmatprep.mubr.msk.bf16.mxu1 %vm560_vm1, %v24051_v55  ;;  %v743_v0 = vpop.f32.mrb[25].mxu0  ;;  %v807_v28 = vmul.f32 %v16713_v4, %v20224_v50  ;;  %v20515_v55 = vsel %vm868_vm15, %v836_v59, %v904_v15  ;;  %v20518_v4 = vsel %vm866_vm2, %v834_v24, %v902_v54  ;;  %v20532_v59 = vsel %vm871_vm3, %v839_v33, %v907_v41 }
 0x192   : > { %v16714_v39 = vpop.f32.mrb[26].mxu0  ;;  %v805_v44 = vmul.f32 %v20224_v50, %v743_v0  ;;  %24056 = vst [vmem:[#allocation36_spill] sm:$0xff] %v20515_v55  ;;  %24057 = vst [vmem:[#allocation37_spill] sm:$0xff] %v20518_v4  ;;  %v20523_v0 = vld [vmem:[%s23899_s2 + $0x48] sm:$0xf]  ;;  %v908_v24 = vmul.f32 %v20249_v34, %v840_v18  ;;  %v24061_v54 = vcombine.low %v19966_v29, %v20364_v19 }
 0x193   : > { %v808_v21 = vmul.f32 %v16714_v39, %v20224_v50  ;;  %v843_v63 = vadd.f32 %v20229_v7, %v807_v28  ;;  %24059 = vst [vmem:[#allocation38_spill] sm:$0xff] %v20532_v59  ;;  %v746_v15 = vpop.f32.mrb[27].mxu0  ;;  %v9669_v59 = vld [vmem:[%s18945_s8 + $0x48] sm:$0x7] }
 0x194   : > { %v841_v12 = vadd.f32 %v20229_v7, %v805_v44  ;;  %v806_v36 = vmul.f32 %v20224_v50, %v746_v15  ;;  %v16717_v33 = vpop.f32.mrb[28].mxu0  ;;  %v9773_v55 = vrot.slane %v9669_v59, 7 }
 0x195   : > { %v844_v56 = vadd.f32 %v20229_v7, %v808_v21  ;;  %vm875_vm10 = vcmp.ge.f32.partialorder %v843_v63, 0.0  ;;  %v911_v5 = vmul.f32 %v20249_v34, %v843_v63  ;;  %v811_v29 = vmul.f32 %v16717_v33, %v20224_v50  ;;  %v759_v19 = vpop.f32.mrb[29].mxu0 }
 0x196   : > { %vm873_vm11 = vcmp.ge.f32.partialorder %v841_v12, 0.0  ;;  %v909_v41 = vmul.f32 %v20249_v34, %v841_v12  ;;  %v842_v1 = vadd.f32 %v20229_v7, %v806_v36  ;;  %v809_v39 = vmul.f32 %v20224_v50, %v759_v19  ;;  %v16718_v3 = vpop.f32.mrb[30].mxu0 }
 0x197   : > { %vm876_vm12 = vcmp.ge.f32.partialorder %v844_v56, 0.0  ;;  %v847_v28 = vadd.f32 %v20229_v7, %v811_v29  ;;  %v812_v44 = vmul.f32 %v16718_v3, %v20224_v50  ;;  %v20563_v33 = vsel %vm872_vm8, %v840_v18, %v908_v24  ;;  %v9663_v3 = vld [vmem:[%s18945_s8 + $0x18] sm:$0x7] }
 0x198   : > { %16994 = vmatmul.mubr.msk.bf16.vlgmr.msra.gmra.mrb[0].mxu1 %vm560_vm1, %v24058_v48  ;;  %vm874_vm13 = vcmp.ge.f32.partialorder %v842_v1, 0.0  ;;  %v910_v15 = vmul.f32 %v20249_v34, %v842_v1  ;;  %24062 = vst [vmem:[#allocation40_spill] sm:$0xff] %v20563_v33  ;;  %v20566_v29 = vsel %vm870_vm9, %v838_v45, %v906_v35  ;;  %v20572_v48 = vsel %vm875_vm10, %v843_v63, %v911_v5  ;;  %v762_v35 = vpop.f32.mrb[31].mxu0  ;;  %v14717_v5 = vld [vmem:[%s18945_s8 + $0xd8] sm:$0xf] }
 0x199   : > { %16997 = vmatprep.mubr.msk.bf16.mxu1 %vm560_vm1, %v24061_v54  ;;  %17434 = vmatpush3.bf16.msra.mxu1 %v20402_v43  ;;  %v912_v43 = vmul.f32 %v20249_v34, %v844_v56  ;;  %v845_v54 = vadd.f32 %v20229_v7, %v809_v39  ;;  %24063 = vst [vmem:[#allocation41_spill] sm:$0xff] %v20566_v29  ;;  %24064 = vst [vmem:[#allocation42_spill] sm:$0xff] %v20572_v48  ;;  %vm879_vm14 = vcmp.ge.f32.partialorder %v847_v28, 0.0 }
 0x19a   : > { %18660 = vmatprep.subr.msk.bf16.mxu1 %vm609_vm0, %v20523_v0  ;;  %v848_v19 = vadd.f32 %v20229_v7, %v812_v44  ;;  %v20575_v39 = vsel %vm873_vm11, %v841_v12, %v909_v41  ;;  %v24067_v45 = vcombine.low %v19996_v25, %v20374_v2  ;;  %v20586_v24 = vsel %vm874_vm13, %v842_v1, %v910_v15  ;;  %v18820_v41 = vld [vmem:[%s18945_s8 + $0xe4] sm:$0xf] }
 0x19b   : > { %24065 = vst [vmem:[#allocation43_spill] sm:$0xff] %v20575_v39  ;;  %v20578_v36 = vsel %vm876_vm12, %v844_v56, %v912_v43  ;;  %24068 = vst [vmem:[#allocation45_spill] sm:$0xff] %v20586_v24  ;;  %v915_v63 = vmul.f32 %v20249_v34, %v847_v28  ;;  %v24069_v56 = vcombine.low %v19999_v17, %v20377_v31  ;;  %vm877_vm15 = vcmp.ge.f32.partialorder %v845_v54, 0.0  ;;  %v14718_v43 = vld [vmem:[%s18945_s8 + $0xe8] sm:$0xf] }
 0x19c   : > { %24066 = vst [vmem:[#allocation44_spill] sm:$0xff] %v20578_v36  ;;  %v913_v25 = vmul.f32 %v20249_v34, %v845_v54  ;;  %v810_v2 = vmul.f32 %v20224_v50, %v762_v35  ;;  %vm880_vm2 = vcmp.ge.f32.partialorder %v848_v19, 0.0  ;;  %v916_v1 = vmul.f32 %v20249_v34, %v848_v19  ;;  %v18819_v35 = vld [vmem:[%s18945_s8 + $0xd4] sm:$0xf]  ;;  %v20690_v12 = vld [vmem:[%s18945_s8 + $0x24] sm:$0xf] }
 0x19d   : > { %v14735_v17 = vcombine.low %v18820_v41, %v14718_v43  ;;  %v14722_v41 = vld [vmem:[%s18945_s8 + $0x128] sm:$0xf]  ;;  %v9756_v21 = vrot.slane %v20690_v12, 7  ;;  %v20718_v39 = vld [vmem:[%s18945_s8 + $0x44] sm:$0xf] }
 0x19e   : > { %v846_v44 = vadd.f32 %v20229_v7, %v810_v2  ;;  %v20617_v7 = vsel %vm879_vm14, %v847_v28, %v915_v63  ;;  %v20620_v2 = vsel %vm877_vm15, %v845_v54, %v913_v25  ;;  %v20623_v50 = vsel %vm880_vm2, %v848_v19, %v916_v1  ;;  %v14720_v63 = vld [vmem:[%s18945_s8 + $0x108] sm:$0xf]  ;;  %v14721_v25 = vld [vmem:[%s18945_s8 + $0x118] sm:$0xf]  ;;  %v9668_v24 = vld [vmem:[%s18945_s8 + $0x40] sm:$0x8] }
 0x19f   : > { %24070 = vst [vmem:[#allocation46_spill] sm:$0xff] %v20617_v7  ;;  %24071 = vst [vmem:[#allocation47_spill] sm:$0xff] %v20620_v2  ;;  %v14737_v19 = vcombine.low %v20059_v42, %v14720_v63  ;;  %v14738_v43 = vcombine.low %v20078_v14, %v14721_v25  ;;  %v14739_v1 = vcombine.low %v20081_v60, %v14722_v41  ;;  %v14764_v42 = vld [vmem:[%s23901_s4 + $0x2] sm:$0x3]  ;;  %v14723_v14 = vld [vmem:[%s18945_s8 + $0x138] sm:$0xf] }
 0x1a0   : > { %16998 = vmatmul.mubr.msk.bf16.gmra.mrb[4].mxu1 %vm560_vm1, %v24067_v45  ;;  %vm878_vm3 = vcmp.ge.f32.partialorder %v846_v44, 0.0  ;;  %v914_v31 = vmul.f32 %v20249_v34, %v846_v44  ;;  %24072 = vst [vmem:[#allocation48_spill] sm:$0xff] %v20623_v50  ;;  %18647 = vmatprep.subr.msk.bf16.mxu0 %vm1066_vm4, %v14764_v42  ;;  %v4746_v60 = vsel %vm1066_vm4, %v14764_v42, 0  ;;  %v9661_v42 = vld [vmem:[%s18945_s8 + $0x8] sm:$0x7]  ;;  %v15567_v38 = vrot.slane %v9668_v24, 11 }
 0x1a1   : > { %17001 = vmatprep.mubr.msk.bf16.mxu1 %vm560_vm1, %v24069_v56  ;;  %v14734_v56 = vcombine.low %v18819_v35, %v14717_v5  ;;  %v14719_v5 = vld [vmem:[%s18945_s8 + $0xf8] sm:$0xf]  ;;  %v14724_v35 = vld [vmem:[%s18945_s8 + $0x148] sm:$0xf]  ;;  %17026 = vmatpush3.bf16.msra.mxu0 %v4746_v60  ;;  %v9745_v34 = vrot.slane %v9661_v42, 7 }
 0x1a2   : > { %v20625_v45 = vsel %vm878_vm3, %v846_v44, %v914_v31  ;;  %v14736_v54 = vcombine.low %v20056_v46, %v14719_v5  ;;  %v14741_v5 = vcombine.low %v20103_v30, %v14724_v35  ;;  %v9662_v42 = vld [vmem:[%s18945_s8 + $0x10] sm:$0x8] }
 0x1a3   : > { %24073 = vst [vmem:[#allocation49_spill] sm:$0xff] %v20625_v45  ;;  %v15564_v50 = vrot.slane %v9662_v42, 11  ;;  %v9752_v45 = vrot.slane %v9663_v3, 7  ;;  %v20757_v24 = vld [vmem:[%s23899_s2 + $0x50] sm:$0xf] }
 0x1a8   : > { %17002 = vmatmul.mubr.msk.bf16.gmra.mrb[8].mxu1 %vm560_vm1, %v14734_v56  ;;  %v14740_v56 = vcombine.low %v20100_v10, %v14723_v14  ;;  %v14726_v10 = vld [vmem:[%s18945_s8 + $0x168] sm:$0xf] }
 0x1a9   : > { %17005 = vmatprep.mubr.msk.bf16.mxu1 %vm560_vm1, %v14735_v17  ;;  %v14743_v60 = vcombine.low %v20125_v11, %v14726_v10  ;;  %v14727_v11 = vld [vmem:[%s18945_s8 + $0x178] sm:$0xf] }
 0x1aa   : > { %v14744_v7 = vcombine.low %v20144_v40, %v14727_v11 }
 0x1b0   : > { %17006 = vmatmul.mubr.msk.bf16.gmra.mrb[12].mxu1 %vm560_vm1, %v14736_v54 }
 0x1b1   : > { %17009 = vmatprep.mubr.msk.bf16.mxu1 %vm560_vm1, %v14737_v19  ;;  %v20643_v17 = vpop.f32.mrb[32].mxu0  ;;  %v20667_v19 = vld [vmem:[%s18945_s8 + $0x4] sm:$0xf] }
 0x1b2   : > { %v20645_v31 = vpop.f32.mrb[33].mxu0  ;;  %v9742_v30 = vrot.slane %v20667_v19, 7 }
 0x1b3   : > { %v20647_v44 = vpop.f32.mrb[34].mxu0 }
 0x1b4   : > { %v20650_v46 = vpop.f32.mrb[35].mxu0  ;;  %v9744_v28 = vrot.slane %v9742_v30, 4 }
 0x1b8   : > { %17010 = vmatmul.mubr.msk.bf16.gmra.mrb[16].mxu1 %vm560_vm1, %v14738_v43  ;;  %v14725_v43 = vld [vmem:[%s18945_s8 + $0x158] sm:$0xf] }
 0x1b9   : > { %17013 = vmatprep.mubr.msk.bf16.mxu1 %vm560_vm1, %v14739_v1  ;;  %v20662_v63 = vpop.f32.mrb[36].mxu0  ;;  %v9660_v1 = vld [vmem:[%s18945_s8] sm:$0x8]  ;;  %v14742_v14 = vcombine.low %v20122_v26, %v14725_v43 }
 0x1ba   : > { %v20664_v54 = vpop.f32.mrb[37].mxu0 }
 0x1bb   : > { %v20669_v25 = vpop.f32.mrb[38].mxu0 }
 0x1bc   : > { %v20672_v41 = vpop.f32.mrb[39].mxu0 }
 0x1c0   : > { %17014 = vmatmul.mubr.msk.bf16.gmra.mrb[20].mxu1 %vm560_vm1, %v14740_v56  ;;  %v15563_v56 = vrot.slane %v9660_v1, 11  ;;  %v9746_v1 = vsel %vm19038_vm6, %v9744_v28, %v9745_v34  ;;  %v9759_v34 = vrot.slane %v9665_v23, 7  ;;  %v20713_v28 = vld [vmem:[%s18945_s8 + $0x34] sm:$0xf] }
 0x1c1   : > { %17017 = vmatprep.mubr.msk.bf16.mxu1 %vm560_vm1, %v14741_v5  ;;  %v20682_v35 = vpop.f32.mrb[40].mxu0  ;;  %v20685_v5 = vld [vmem:[%s18945_s8 + $0x14] sm:$0xf] }
 0x1c2   : > { %v20687_v15 = vpop.f32.mrb[41].mxu0  ;;  %v9749_v43 = vrot.slane %v20685_v5, 7  ;;  %v9743_v10 = vsel %vm19038_vm6, %v15563_v56, %v9742_v30  ;;  %v9758_v56 = vrot.slane %v9756_v21, 4 }
 0x1c3   : > { %v20692_v18 = vpop.f32.mrb[42].mxu0 }
 0x1c4   : > { %v20695_v26 = vpop.f32.mrb[43].mxu0  ;;  %v9751_v2 = vrot.slane %v9749_v43, 4  ;;  %v9750_v3 = vsel %vm19038_vm6, %v15564_v50, %v9749_v43 }
 0x1c6   : > { %v9753_v23 = vsel %vm19038_vm6, %v9751_v2, %v9752_v45 }
 0x1c7   : > { %v15581_v50 = vcombine.low %v9750_v3, %v9753_v23 }
 0x1c8   : > { %17018 = vmatmul.mubr.msk.bf16.gmra.mrb[24].mxu1 %vm560_vm1, %v14742_v14  ;;  %v9664_v14 = vld [vmem:[%s18945_s8 + $0x20] sm:$0x8] }
 0x1c9   : > { %17021 = vmatprep.mubr.msk.bf16.mxu1 %vm560_vm1, %v14743_v60  ;;  %v15580_v60 = vcombine.low %v9743_v10, %v9746_v1  ;;  %v20710_v48 = vpop.f32.mrb[44].mxu0  ;;  %v15565_v30 = vrot.slane %v9664_v14, 11  ;;  %v9666_v10 = vld [vmem:[%s18945_s8 + $0x30] sm:$0x8]  ;;  %v9763_v1 = vrot.slane %v20713_v28, 7 }
 0x1ca   : > { %v20715_v36 = vpop.f32.mrb[45].mxu0  ;;  %v9667_v14 = vld [vmem:[%s18945_s8 + $0x38] sm:$0x7]  ;;  %v15566_v43 = vrot.slane %v9666_v10, 11 }
 0x1cb   : > { %v20720_v40 = vpop.f32.mrb[46].mxu0  ;;  %v9757_v42 = vsel %vm19038_vm6, %v15565_v30, %v9756_v21  ;;  %v9765_v45 = vrot.slane %v9763_v1, 4  ;;  %v9766_v2 = vrot.slane %v9667_v14, 7  ;;  %v20743_v21 = vld [vmem:[%s18945_s8 + $0x54] sm:$0xf]  ;;  %v10227_v30 = vsel %vm609_vm0, %v20523_v0, 0 }
 0x1cc   : > { %v20723_v11 = vpop.f32.mrb[47].mxu0  ;;  %v9764_v0 = vsel %vm19038_vm6, %v15566_v43, %v9763_v1  ;;  %v9777_v10 = vrot.slane %v20743_v21, 7  ;;  %v9670_v14 = vld [vmem:[%s18945_s8 + $0x50] sm:$0x8]  ;;  %v9672_v1 = vld [vmem:[%s18945_s8 + $0x60] sm:$0x8] }
 0x1cd   : > { %v9767_v23 = vsel %vm19038_vm6, %v9765_v45, %v9766_v2  ;;  %v9673_v43 = vld [vmem:[%s18945_s8 + $0x68] sm:$0x7] }
 0x1ce   : > { %v15583_v45 = vcombine.low %v9764_v0, %v9767_v23  ;;  %v9779_v6 = vrot.slane %v9777_v10, 4 }
 0x1d0   : > { %17022 = vmatmul.mubr.msk.bf16.gmra.mrb[28].mxu1 %vm560_vm1, %v14744_v7  ;;  %v9760_v7 = vsel %vm19038_vm6, %v9758_v56, %v9759_v34  ;;  %v20750_v34 = vld [vmem:[%s18945_s8 + $0x64] sm:$0xf] }
 0x1d1   : > { %17435 = vmatprep.mubr.msk.bf16.mxu1 %vm560_vm1, %v15580_v60  ;;  %v9770_v60 = vrot.slane %v20718_v39, 7  ;;  %v15582_v33 = vcombine.low %v9757_v42, %v9760_v7  ;;  %v20740_v29 = vpop.f32.mrb[48].mxu0 }
 0x1d2   : > { %v20747_v56 = vpop.f32.mrb[49].mxu0 }
 0x1d3   : > { %v9772_v22 = vrot.slane %v9770_v60, 4  ;;  %v20752_v3 = vpop.f32.mrb[50].mxu0  ;;  %v9771_v42 = vsel %vm19038_vm6, %v15567_v38, %v9770_v60  ;;  %v9787_v60 = vrot.slane %v9673_v43, 7  ;;  %v9674_v43 = vld [vmem:[%s18945_s8 + $0x70] sm:$0x8] }
 0x1d4   : > { %v20760_v59 = vpop.f32.mrb[51].mxu0  ;;  %v15570_v51 = vrot.slane %v9674_v43, 11 }
 0x1d5   : > { %v9774_v7 = vsel %vm19038_vm6, %v9772_v22, %v9773_v55  ;;  %v15569_v22 = vrot.slane %v9672_v1, 11 }
 0x1d6   : > { %v15584_v2 = vcombine.low %v9771_v42, %v9774_v7 }
 0x1d8   : > { %17436 = vmatmul.mubr.msk.bf16.vlgmr.msra.gmra.mrb[32].mxu1 %vm560_vm1, %v15581_v50  ;;  %v9671_v50 = vld [vmem:[%s18945_s8 + $0x58] sm:$0x7] }
 0x1d9   : > { %17439 = vmatprep.mubr.msk.bf16.mxu1 %vm560_vm1, %v15582_v33  ;;  %17468 = vmatpush3.bf16.msra.mxu1 %v10227_v30  ;;  %v9784_v33 = vrot.slane %v20750_v34, 7  ;;  %v15568_v30 = vrot.slane %v9670_v14, 11  ;;  %v9780_v4 = vrot.slane %v9671_v50, 7  ;;  %v20779_v38 = vpop.f32.mrb[52].mxu0  ;;  %v9791_v14 = vrot.slane %v20782_v32, 7 }
 0x1da   : > { %18661 = vmatprep.subr.msk.bf16.mxu1 %vm609_vm0, %v20757_v24  ;;  %v20784_v53 = vpop.f32.mrb[53].mxu0 }
 0x1db   : > { %v9786_v55 = vrot.slane %v9784_v33, 4  ;;  %v20789_v0 = vpop.f32.mrb[54].mxu0  ;;  %v9778_v42 = vsel %vm19038_vm6, %v15568_v30, %v9777_v10  ;;  %v9781_v7 = vsel %vm19038_vm6, %v9779_v6, %v9780_v4  ;;  %v9785_v50 = vsel %vm19038_vm6, %v15569_v22, %v9784_v33 }
 0x1dc   : > { %v20792_v23 = vpop.f32.mrb[55].mxu0  ;;  %v15585_v10 = vcombine.low %v9778_v42, %v9781_v7  ;;  %v9793_v6 = vrot.slane %v9791_v14, 4  ;;  %v15571_v33 = vrot.slane %v9676_v58, 11  ;;  %v9792_v58 = vsel %vm19038_vm6, %v15570_v51, %v9791_v14 }
 0x1dd   : > { %v9788_v1 = vsel %vm19038_vm6, %v9786_v55, %v9787_v60  ;;  %v20812_v55 = vld [vmem:[%s18945_s8 + $0x94] sm:$0xf] }
 0x1de   : > { %v15586_v30 = vcombine.low %v9785_v50, %v9788_v1  ;;  %v9805_v50 = vrot.slane %v20812_v55, 7 }
 0x1e0   : > { %17440 = vmatmul.mubr.msk.bf16.gmra.mrb[36].mxu1 %vm560_vm1, %v15583_v45  ;;  %v9675_v45 = vld [vmem:[%s18945_s8 + $0x78] sm:$0x7] }
 0x1e1   : > { %17443 = vmatprep.mubr.msk.bf16.mxu1 %vm560_vm1, %v15584_v2  ;;  %v9798_v2 = vrot.slane %v20787_v49, 7  ;;  %v9794_v4 = vrot.slane %v9675_v45, 7  ;;  %v20809_v52 = vpop.f32.mrb[56].mxu0  ;;  %v9678_v45 = vld [vmem:[%s18945_s8 + $0x90] sm:$0x8] }
 0x1e2   : > { %v20814_v60 = vpop.f32.mrb[57].mxu0  ;;  %v15572_v62 = vrot.slane %v9678_v45, 11 }
 0x1e3   : > { %v9800_v22 = vrot.slane %v9798_v2, 4  ;;  %v20819_v42 = vpop.f32.mrb[58].mxu0  ;;  %v9795_v47 = vsel %vm19038_vm6, %v9793_v6, %v9794_v4  ;;  %v9799_v1 = vsel %vm19038_vm6, %v15571_v33, %v9798_v2  ;;  %v9807_v6 = vrot.slane %v9805_v50, 4 }
 0x1e4   : > { %24074 = vst [vmem:[#allocation50_spill] sm:$0xff] %v20819_v42  ;;  %v20822_v7 = vpop.f32.mrb[59].mxu0  ;;  %v15587_v51 = vcombine.low %v9792_v58, %v9795_v47  ;;  %v15573_v2 = vrot.slane %v9680_v8, 11  ;;  %v9806_v8 = vsel %vm19038_vm6, %v15572_v62, %v9805_v50  ;;  %v20897_v42 = vld [vmem:[%s18945_s8 + $0xf4] sm:$0xf] }
 0x1e5   : > { %24075 = vst [vmem:[#allocation51_spill] sm:$0xff] %v20822_v7  ;;  %v9802_v43 = vsel %vm19038_vm6, %v9800_v22, %v9801_v13  ;;  %v20842_v13 = vld [vmem:[%s18945_s8 + $0xb4] sm:$0xf] }
 0x1e6   : > { %v15588_v14 = vcombine.low %v9799_v1, %v9802_v43  ;;  %v9819_v1 = vrot.slane %v20842_v13, 7  ;;  %v20870_v7 = vld [vmem:[%s18945_s8 + $0xd4] sm:$0xf] }
 0x1e8   : > { %17444 = vmatmul.mubr.msk.bf16.gmra.mrb[40].mxu1 %vm560_vm1, %v15585_v10  ;;  %v9679_v10 = vld [vmem:[%s18945_s8 + $0x98] sm:$0x7] }
 0x1e9   : > { %17447 = vmatprep.mubr.msk.bf16.mxu1 %vm560_vm1, %v15586_v30  ;;  %v9812_v30 = vrot.slane %v20817_v20, 7  ;;  %v9808_v4 = vrot.slane %v9679_v10, 7  ;;  %v20839_v9 = vpop.f32.mrb[60].mxu0  ;;  %v9682_v10 = vld [vmem:[%s18945_s8 + $0xb0] sm:$0x8] }
 0x1ea   : > { %24076 = vst [vmem:[#allocation52_spill] sm:$0xff] %v20839_v9  ;;  %v20844_v22 = vpop.f32.mrb[61].mxu0 }
 0x1eb   : > { %v9814_v33 = vrot.slane %v9812_v30, 4  ;;  %24077 = vst [vmem:[#allocation53_spill] sm:$0xff] %v20844_v22  ;;  %v20849_v58 = vpop.f32.mrb[62].mxu0  ;;  %v9809_v37 = vsel %vm19038_vm6, %v9807_v6, %v9808_v4  ;;  %v9813_v43 = vsel %vm19038_vm6, %v15573_v2, %v9812_v30  ;;  %v15574_v6 = vrot.slane %v9682_v10, 11 }
 0x1ec   : > { %24078 = vst [vmem:[#allocation54_spill] sm:$0xff] %v20849_v58  ;;  %v20852_v47 = vpop.f32.mrb[63].mxu0  ;;  %v9685_v58 = vld [vmem:[%s18945_s8 + $0xc8] sm:$0x7]  ;;  %v15589_v62 = vcombine.low %v9806_v8, %v9809_v37  ;;  %v9821_v4 = vrot.slane %v9819_v1, 4  ;;  %v9833_v37 = vrot.slane %v20870_v7, 7 }
 0x1ed   : > { %24079 = vst [vmem:[#allocation55_spill] sm:$0xff] %v20852_v47  ;;  %v9816_v45 = vsel %vm19038_vm6, %v9814_v33, %v9815_v57  ;;  %v9684_v47 = vld [vmem:[%s18945_s8 + $0xc0] sm:$0x8]  ;;  %v9829_v2 = vrot.slane %v9685_v58, 7  ;;  %v20873_v57 = vld [vmem:[%s18945_s8 + $0xe4] sm:$0xf]  ;;  %v9820_v33 = vsel %vm19038_vm6, %v15574_v6, %v9819_v1 }
 0x1ee   : > { %v15590_v50 = vcombine.low %v9813_v43, %v9816_v45  ;;  %v15575_v9 = vrot.slane %v9684_v47, 11  ;;  %v9686_v43 = vld [vmem:[%s18945_s8 + $0xd0] sm:$0x8]  ;;  %v9687_v45 = vld [vmem:[%s18945_s8 + $0xd8] sm:$0x7]  ;;  %v9840_v10 = vrot.slane %v20873_v57, 7 }
 0x1ef   : > { %v15576_v6 = vrot.slane %v9686_v43, 11 }
 0x1f0   : > { %17448 = vmatmul.mubr.msk.bf16.gmra.mrb[44].mxu1 %vm560_vm1, %v15587_v51  ;;  %v9683_v51 = vld [vmem:[%s18945_s8 + $0xb8] sm:$0x7] }
 0x1f1   : > { %17451 = vmatprep.mubr.msk.bf16.mxu1 %vm560_vm1, %v15588_v14  ;;  %v9826_v14 = vrot.slane %v20847_v16, 7  ;;  %v9822_v22 = vrot.slane %v9683_v51, 7  ;;  %v9688_v51 = vld [vmem:[%s18945_s8 + $0xe0] sm:$0x8] }
 0x1f3   : > { %v9828_v30 = vrot.slane %v9826_v14, 4  ;;  %v9823_v8 = vsel %vm19038_vm6, %v9821_v4, %v9822_v22  ;;  %v9827_v47 = vsel %vm19038_vm6, %v15575_v9, %v9826_v14  ;;  %v9835_v22 = vrot.slane %v9833_v37, 4  ;;  %v20894_v9 = vld [vmem:[%s23901_s4] sm:$0x3] }
 0x1f4   : > { %v9836_v4 = vrot.slane %v9687_v45, 7  ;;  %v15577_v14 = vrot.slane %v9688_v51, 11  ;;  %18648 = vmatprep.subr.msk.bf16.mxu0 %vm1066_vm4, %v20894_v9  ;;  %v9690_v45 = vld [vmem:[%s18945_s8 + $0xf0] sm:$0x8]  ;;  %v9691_v51 = vld [vmem:[%s18945_s8 + $0xf8] sm:$0x7] }
 0x1f5   : > { %v9830_v58 = vsel %vm19038_vm6, %v9828_v30, %v9829_v2  ;;  %v9842_v30 = vrot.slane %v9840_v10, 4 }
 0x1f6   : > { %v15592_v1 = vcombine.low %v9827_v47, %v9830_v58  ;;  %v9847_v47 = vrot.slane %v20897_v42, 7  ;;  %v9841_v58 = vsel %vm19038_vm6, %v15577_v14, %v9840_v10 }
 0x1f8   : > { %17452 = vmatmul.mubr.msk.bf16.gmra.mrb[48].mxu1 %vm560_vm1, %v15589_v62  ;;  %v9689_v62 = vld [vmem:[%s18945_s8 + $0xe8] sm:$0x7] }
 0x1f9   : > { %17455 = vmatprep.mubr.msk.bf16.mxu1 %vm560_vm1, %v15590_v50  ;;  %v15591_v50 = vcombine.low %v9820_v33, %v9823_v8  ;;  %v9843_v2 = vrot.slane %v9689_v62, 7  ;;  %v9834_v33 = vsel %vm19038_vm6, %v15576_v6, %v9833_v37  ;;  %v9837_v8 = vsel %vm19038_vm6, %v9835_v22, %v9836_v4  ;;  %v9626_v4 = vld [vmem:[%s18945_s8] sm:$0xf] }
 0x1fa   : > { %v15593_v62 = vcombine.low %v9834_v33, %v9837_v8  ;;  %v9849_v37 = vrot.slane %v9847_v47, 4  ;;  %v9850_v6 = vrot.slane %v9691_v51, 7  ;;  %v9630_v33 = vld [vmem:[%s18945_s8 + $0x20] sm:$0xf] }
 0x1fb   : > { %v9844_v43 = vsel %vm19038_vm6, %v9842_v30, %v9843_v2  ;;  %v15612_v30 = vcombine.low %v9626_v4, %v20667_v19  ;;  %v9628_v2 = vld [vmem:[%s18945_s8 + $0x10] sm:$0xf]  ;;  %v9638_v51 = vld [vmem:[%s18945_s8 + $0x60] sm:$0xf] }
 0x1fc   : > { %v9851_v22 = vsel %vm19038_vm6, %v9849_v37, %v9850_v6  ;;  %v15613_v8 = vcombine.low %v9628_v2, %v20685_v5  ;;  %v9632_v19 = vld [vmem:[%s18945_s8 + $0x30] sm:$0xf]  ;;  %v10390_v2 = vld [vmem:[%s18945_s8 + $0x4] sm:$0xc] }
 0x200   : > { %17456 = vmatmul.mubr.msk.bf16.gmra.mrb[52].mxu1 %vm560_vm1, %v15591_v50  ;;  %v15594_v50 = vcombine.low %v9841_v58, %v9844_v43  ;;  %v10697_v58 = vsel %vm609_vm0, %v20757_v24, 0  ;;  %v20933_v43 = vld [vmem:[%s23899_s2 + $0x54] sm:$0xf]  ;;  %v9636_v24 = vld [vmem:[%s18945_s8 + $0x50] sm:$0xf] }
 0x201   : > { %17459 = vmatprep.mubr.msk.bf16.mxu1 %vm560_vm1, %v15592_v1  ;;  %v15578_v1 = vrot.slane %v9690_v45, 11  ;;  %v9634_v45 = vld [vmem:[%s18945_s8 + $0x40] sm:$0xf] }
 0x202   : > { %v15616_v5 = vcombine.low %v9634_v45, %v20718_v39  ;;  %v9642_v39 = vld [vmem:[%s18945_s8 + $0x80] sm:$0xf]  ;;  %v10397_v45 = vld [vmem:[%s18945_s8 + $0x28] sm:$0xf] }
 0x203   : > { %v9848_v10 = vsel %vm19038_vm6, %v15578_v1, %v9847_v47  ;;  %v15614_v47 = vcombine.low %v9630_v33, %v20690_v12  ;;  %v15615_v12 = vcombine.low %v9632_v19, %v20713_v28  ;;  %v9640_v28 = vld [vmem:[%s18945_s8 + $0x70] sm:$0xf]  ;;  %v15620_v37 = vcombine.low %v9642_v39, %v20787_v49  ;;  %v9650_v49 = vld [vmem:[%s18945_s8 + $0xc0] sm:$0xf]  ;;  %v10392_v33 = vld [vmem:[%s18945_s8 + $0xc] sm:$0x3] }
 0x204   : > { %v15595_v14 = vcombine.low %v9848_v10, %v9851_v22  ;;  %v15619_v1 = vcombine.low %v9640_v28, %v20782_v32  ;;  %v9648_v32 = vld [vmem:[%s18945_s8 + $0xb0] sm:$0xf]  ;;  %v15624_v4 = vcombine.low %v9650_v49, %v20847_v16  ;;  %v15644_v16 = vrot.slane %v10390_v2, 10  ;;  %v10394_v19 = vld [vmem:[%s18945_s8 + $0x18] sm:$0xf] }
 0x205   : > { %v15623_v22 = vcombine.low %v9648_v32, %v20842_v13  ;;  %v10398_v28 = vld [vmem:[%s18945_s8 + $0x2c] sm:$0x3]  ;;  %v10400_v49 = vld [vmem:[%s18945_s8 + $0x38] sm:$0xf]  ;;  %v10401_v2 = vld [vmem:[%s18945_s8 + $0x3c] sm:$0x3] }
 0x206   : > { %v10505_v32 = vrot.slane %v10398_v28, 6 }
 0x208   : > { %17460 = vmatmul.mubr.msk.bf16.gmra.mrb[56].mxu1 %vm560_vm1, %v15593_v62  ;;  %v15617_v62 = vcombine.low %v9636_v24, %v20743_v21  ;;  %v9644_v21 = vld [vmem:[%s18945_s8 + $0x90] sm:$0xf] }
 0x209   : > { %17463 = vmatprep.mubr.msk.bf16.mxu1 %vm560_vm1, %v15594_v50  ;;  %v15618_v50 = vcombine.low %v9638_v51, %v20750_v34  ;;  %v9646_v34 = vld [vmem:[%s18945_s8 + $0xa0] sm:$0xf]  ;;  %v15621_v6 = vcombine.low %v9644_v21, %v20812_v55  ;;  %v9652_v55 = vld [vmem:[%s18945_s8 + $0xd0] sm:$0xf]  ;;  %v10395_v51 = vld [vmem:[%s18945_s8 + $0x1c] sm:$0x3] }
 0x20a   : > { %v15622_v10 = vcombine.low %v9646_v34, %v20817_v20  ;;  %v9654_v20 = vld [vmem:[%s18945_s8 + $0xe0] sm:$0xf]  ;;  %v10498_v34 = vrot.slane %v10395_v51, 6  ;;  %v10409_v51 = vld [vmem:[%s18945_s8 + $0x68] sm:$0xf] }
 0x20b   : > { %v15626_v13 = vcombine.low %v9654_v20, %v20873_v57  ;;  %v10393_v57 = vld [vmem:[%s18945_s8 + $0x14] sm:$0xc] }
 0x210   : > { %17464 = vmatmul.mubr.msk.bf16.gmra.mrb[60].mxu1 %vm560_vm1, %v15595_v14  ;;  %v10391_v14 = vld [vmem:[%s18945_s8 + $0x8] sm:$0xf] }
 0x211   : > { %17469 = vmatprep.mubr.msk.bf16.mxu1 %vm560_vm1, %v15612_v30  ;;  %v10488_v30 = vrot.slane %v10391_v14, 6  ;;  %v10509_v14 = vrot.slane %v10400_v49, 6 }
 0x213   : > { %v10489_v24 = vsel %vm19079_vm7, %v15644_v16, %v10488_v30 }
 0x218   : > { %17470 = vmatmul.mubr.msk.bf16.vlgmr.msra.gmra.mrb[32].mxu1 %vm560_vm1, %v15613_v8  ;;  %v15625_v8 = vcombine.low %v9652_v55, %v20870_v7 }
 0x219   : > { %17473 = vmatprep.mubr.msk.bf16.mxu1 %vm560_vm1, %v15614_v47  ;;  %17502 = vmatpush3.bf16.msra.mxu1 %v10697_v58  ;;  %v10490_v47 = vrot.slane %v10488_v30, 4  ;;  %v10491_v58 = vrot.slane %v10392_v33, 6  ;;  %v10399_v30 = vld [vmem:[%s18945_s8 + $0x34] sm:$0xc] }
 0x21a   : > { %18662 = vmatprep.subr.msk.bf16.mxu1 %vm609_vm0, %v20933_v43 }
 0x21b   : > { %v10492_v7 = vsel %vm19079_vm7, %v10490_v47, %v10491_v58  ;;  %v15647_v58 = vrot.slane %v10399_v30, 10 }
 0x220   : > { %17474 = vmatmul.mubr.msk.bf16.gmra.mrb[36].mxu1 %vm560_vm1, %v15615_v12  ;;  %v9656_v12 = vld [vmem:[%s18945_s8 + $0xf0] sm:$0xf] }
 0x221   : > { %17477 = vmatprep.mubr.msk.bf16.mxu1 %vm560_vm1, %v15616_v5  ;;  %v10495_v5 = vrot.slane %v10394_v19, 6  ;;  %v15627_v39 = vcombine.low %v9656_v12, %v20897_v42  ;;  %v10511_v19 = vrot.slane %v10509_v14, 4 }
 0x223   : > { %v10497_v21 = vrot.slane %v10495_v5, 4 }
 0x228   : > { %17478 = vmatmul.mubr.msk.bf16.gmra.mrb[40].mxu1 %vm560_vm1, %v15617_v62  ;;  %v10502_v62 = vrot.slane %v10397_v45, 6  ;;  %v10512_v45 = vrot.slane %v10401_v2, 6 }
 0x229   : > { %17481 = vmatprep.mubr.msk.bf16.mxu1 %vm560_vm1, %v15618_v50  ;;  %v10396_v50 = vld [vmem:[%s18945_s8 + $0x24] sm:$0xc] }
 0x22a   : > { %v10513_v28 = vsel %vm19079_vm7, %v10511_v19, %v10512_v45  ;;  %v10416_v19 = vld [vmem:[%s18945_s8 + $0x8c] sm:$0x3]  ;;  %v10421_v45 = vld [vmem:[%s18945_s8 + $0xa8] sm:$0xf] }
 0x230   : > { %17482 = vmatmul.mubr.msk.bf16.gmra.mrb[44].mxu1 %vm560_vm1, %v15619_v1  ;;  %v15661_v1 = vcombine.low %v10489_v24, %v10492_v7  ;;  %v10406_v7 = vld [vmem:[%s18945_s8 + $0x58] sm:$0xf] }
 0x231   : > { %17485 = vmatprep.mubr.msk.bf16.mxu1 %vm560_vm1, %v15620_v37  ;;  %v15645_v37 = vrot.slane %v10393_v57, 10  ;;  %v11055_v57 = vsel %vm609_vm0, %v20933_v43, 0  ;;  %v10407_v43 = vld [vmem:[%s18945_s8 + $0x5c] sm:$0x3] }
 0x233   : > { %v10496_v42 = vsel %vm19079_vm7, %v15645_v37, %v10495_v5 }
 0x238   : > { %17486 = vmatmul.mubr.msk.bf16.gmra.mrb[48].mxu1 %vm560_vm1, %v15621_v6  ;;  %v15646_v6 = vrot.slane %v10396_v50, 10  ;;  %v10510_v50 = vsel %vm19079_vm7, %v15647_v58, %v10509_v14  ;;  %v10414_v58 = vld [vmem:[%s18945_s8 + $0x84] sm:$0xc] }
 0x239   : > { %17489 = vmatprep.mubr.msk.bf16.mxu1 %vm560_vm1, %v15622_v10  ;;  %v10504_v10 = vrot.slane %v10502_v62, 4  ;;  %v15664_v49 = vcombine.low %v10510_v50, %v10513_v28 }
 0x23a   : > { %v10503_v55 = vsel %vm19079_vm7, %v15646_v6, %v10502_v62  ;;  %v21013_v62 = vld [vmem:[%s23899_s2 + $0x58] sm:$0xf]  ;;  %v10530_v6 = vrot.slane %v10409_v51, 6 }
 0x23b   : > { %v10506_v20 = vsel %vm19079_vm7, %v10504_v10, %v10505_v32  ;;  %v10412_v10 = vld [vmem:[%s18945_s8 + $0x78] sm:$0xf]  ;;  %v10410_v32 = vld [vmem:[%s18945_s8 + $0x6c] sm:$0x3] }
 0x23c   : > { %v15663_v47 = vcombine.low %v10503_v55, %v10506_v20  ;;  %v10537_v30 = vrot.slane %v10412_v10, 6  ;;  %v10532_v2 = vrot.slane %v10530_v6, 4  ;;  %v10424_v51 = vld [vmem:[%s18945_s8 + $0xb8] sm:$0xf]  ;;  %v10558_v10 = vrot.slane %v10421_v45, 6 }
 0x240   : > { %17490 = vmatmul.mubr.msk.bf16.gmra.mrb[52].mxu1 %vm560_vm1, %v15623_v22  ;;  %v10403_v22 = vld [vmem:[%s18945_s8 + $0x48] sm:$0xf] }
 0x241   : > { %17493 = vmatprep.mubr.msk.bf16.mxu1 %vm560_vm1, %v15624_v4  ;;  %v10499_v4 = vsel %vm19079_vm7, %v10497_v21, %v10498_v34  ;;  %v10516_v33 = vrot.slane %v10403_v22, 6  ;;  %v10408_v34 = vld [vmem:[%s18945_s8 + $0x64] sm:$0xc] }
 0x242   : > { %v15662_v16 = vcombine.low %v10496_v42, %v10499_v4  ;;  %v10526_v42 = vrot.slane %v10407_v43, 6  ;;  %v10415_v4 = vld [vmem:[%s18945_s8 + $0x88] sm:$0xf]  ;;  %v15650_v20 = vrot.slane %v10408_v34, 10  ;;  %v10547_v34 = vrot.slane %v10416_v19, 6 }
 0x243   : > { %v10518_v5 = vrot.slane %v10516_v33, 4  ;;  %v10560_v19 = vrot.slane %v10558_v10, 4 }
 0x244   : > { %v10531_v50 = vsel %vm19079_vm7, %v15650_v20, %v10530_v6  ;;  %v10423_v20 = vld [vmem:[%s18945_s8 + $0xb4] sm:$0xc] }
 0x248   : > { %17494 = vmatmul.mubr.msk.bf16.gmra.mrb[56].mxu1 %vm560_vm1, %v15625_v8  ;;  %v10402_v8 = vld [vmem:[%s18945_s8 + $0x44] sm:$0xc] }
 0x249   : > { %17497 = vmatprep.mubr.msk.bf16.mxu1 %vm560_vm1, %v15626_v13  ;;  %v10404_v13 = vld [vmem:[%s18945_s8 + $0x4c] sm:$0x3]  ;;  %v15648_v12 = vrot.slane %v10402_v8, 10  ;;  %v10411_v8 = vld [vmem:[%s18945_s8 + $0x74] sm:$0xc] }
 0x24a   : > { %v10519_v24 = vrot.slane %v10404_v13, 6  ;;  %v10418_v13 = vld [vmem:[%s18945_s8 + $0x98] sm:$0xf] }
 0x24b   : > { %v10517_v37 = vsel %vm19079_vm7, %v15648_v12, %v10516_v33  ;;  %v10533_v33 = vrot.slane %v10410_v32, 6 }
 0x24c   : > { %v10520_v21 = vsel %vm19079_vm7, %v10518_v5, %v10519_v24  ;;  %v15651_v24 = vrot.slane %v10411_v8, 10 }
 0x24d   : > { %v15665_v14 = vcombine.low %v10517_v37, %v10520_v21  ;;  %v10534_v28 = vsel %vm19079_vm7, %v10532_v2, %v10533_v33  ;;  %v15652_v37 = vrot.slane %v10414_v58, 10  ;;  %v10425_v2 = vld [vmem:[%s18945_s8 + $0xbc] sm:$0x3] }
 0x24e   : > { %v10538_v33 = vsel %vm19079_vm7, %v15651_v24, %v10537_v30  ;;  %v10568_v24 = vrot.slane %v10425_v2, 6 }
 0x250   : > { %17498 = vmatmul.mubr.msk.bf16.gmra.mrb[60].mxu1 %vm560_vm1, %v15627_v39  ;;  %v10405_v39 = vld [vmem:[%s18945_s8 + $0x54] sm:$0xc] }
 0x251   : > { %17503 = vmatprep.mubr.msk.bf16.mxu1 %vm560_vm1, %v15661_v1  ;;  %v10523_v1 = vrot.slane %v10406_v7, 6  ;;  %v15649_v22 = vrot.slane %v10405_v39, 10  ;;  %v10417_v7 = vld [vmem:[%s18945_s8 + $0x94] sm:$0xc]  ;;  %v10539_v39 = vrot.slane %v10537_v30, 4 }
 0x253   : > { %v10525_v55 = vrot.slane %v10523_v1, 4  ;;  %v10524_v12 = vsel %vm19079_vm7, %v15649_v22, %v10523_v1  ;;  %v10419_v1 = vld [vmem:[%s18945_s8 + $0x9c] sm:$0x3]  ;;  %v10420_v22 = vld [vmem:[%s18945_s8 + $0xa4] sm:$0xc] }
 0x254   : > { %v15654_v58 = vrot.slane %v10420_v22, 10 }
 0x255   : > { %v10527_v5 = vsel %vm19079_vm7, %v10525_v55, %v10526_v42  ;;  %v10422_v42 = vld [vmem:[%s18945_s8 + $0xac] sm:$0x3]  ;;  %v10554_v55 = vrot.slane %v10419_v1, 6 }
 0x256   : > { %v15666_v32 = vcombine.low %v10524_v12, %v10527_v5  ;;  %v10561_v45 = vrot.slane %v10422_v42, 6  ;;  %v15655_v5 = vrot.slane %v10423_v20, 10  ;;  %v21107_v20 = vld [vmem:[%s23900_s3 + $0x4] ss:$0 sm:$0xff] }
 0x258   : > { %17504 = vmatmul.mubr.msk.bf16.vlgmr.msra.gmra.mrb[32].mxu1 %vm560_vm1, %v15662_v16  ;;  %v10413_v16 = vld [vmem:[%s18945_s8 + $0x7c] sm:$0x3] }
 0x259   : > { %17507 = vmatprep.mubr.msk.bf16.mxu1 %vm560_vm1, %v15663_v47  ;;  %17536 = vmatpush3.bf16.msra.mxu1 %v11055_v57  ;;  %v10544_v47 = vrot.slane %v10415_v4, 6  ;;  %v10551_v57 = vrot.slane %v10418_v13, 6  ;;  %v10540_v43 = vrot.slane %v10413_v16, 6  ;;  %v10565_v4 = vrot.slane %v10424_v51, 6  ;;  %v10427_v13 = vld [vmem:[%s18945_s8 + $0xc8] sm:$0xf] }
 0x25a   : > { %18663 = vmatprep.subr.msk.bf16.mxu1 %vm609_vm0, %v21013_v62 }
 0x25b   : > { %v10546_v21 = vrot.slane %v10544_v47, 4  ;;  %v10553_v6 = vrot.slane %v10551_v57, 4  ;;  %v10541_v8 = vsel %vm19079_vm7, %v10539_v39, %v10540_v43  ;;  %v10545_v16 = vsel %vm19079_vm7, %v15652_v37, %v10544_v47  ;;  %v10426_v39 = vld [vmem:[%s18945_s8 + $0xc4] sm:$0xc]  ;;  %v10428_v43 = vld [vmem:[%s18945_s8 + $0xcc] sm:$0x3] }
 0x25c   : > { %v10567_v30 = vrot.slane %v10565_v4, 4  ;;  %v21081_v37 = vld [vmem:[%s23900_s3 + $0x3] ss:$0 sm:$0xff] }
 0x25d   : > { %v10548_v12 = vsel %vm19079_vm7, %v10546_v21, %v10547_v34  ;;  %v21074_v47 = vsel %vm19079_vm7, %v10553_v6, %v10554_v55  ;;  %v21089_v34 = vsel %vm19079_vm7, %v10560_v19, %v10561_v45  ;;  %v21097_v6 = vsel %vm19079_vm7, %v15655_v5, %v10565_v4  ;;  %v10431_v55 = vld [vmem:[%s18945_s8 + $0xdc] sm:$0x3] }
 0x25e   : > { %v15669_v21 = vcombine.low %v10545_v16, %v10548_v12  ;;  %v21117_v12 = vld [vmem:[%s23900_s3 + $0x5] ss:$0 sm:$0xff] }
 0x260   : > { %17508 = vmatmul.mubr.msk.bf16.gmra.mrb[36].mxu1 %vm560_vm1, %v15664_v49  ;;  %v15653_v49 = vrot.slane %v10417_v7, 10  ;;  %v10430_v7 = vld [vmem:[%s18945_s8 + $0xd8] sm:$0xf] }
 0x261   : > { %17511 = vmatprep.mubr.msk.bf16.mxu1 %vm560_vm1, %v15665_v14  ;;  %v15667_v14 = vcombine.low %v10531_v50, %v10534_v28  ;;  %v10572_v50 = vrot.slane %v10427_v13, 6  ;;  %v15668_v28 = vcombine.low %v10538_v33, %v10541_v8  ;;  %v15656_v33 = vrot.slane %v10426_v39, 10 }
 0x262   : > { %v21070_v51 = vsel %vm19079_vm7, %v15653_v49, %v10551_v57  ;;  %v21085_v57 = vsel %vm19079_vm7, %v15654_v58, %v10558_v10  ;;  %v10579_v49 = vrot.slane %v10430_v7, 6  ;;  %v21101_v10 = vsel %vm19079_vm7, %v10567_v30, %v10568_v24 }
 0x263   : > { %v10574_v8 = vrot.slane %v10572_v50, 4  ;;  %v10575_v13 = vrot.slane %v10428_v43, 6  ;;  %v15671_v19 = vcombine.low %v21085_v57, %v21089_v34  ;;  %v10582_v24 = vrot.slane %v10431_v55, 6  ;;  %v21142_v34 = vld [vmem:[%s18945_s8 + $0xe8] sm:$0xf] }
 0x264   : > { %v10581_v30 = vrot.slane %v10579_v49, 4  ;;  %v21126_v39 = vsel %vm1066_vm4, %v20894_v9, 0  ;;  %v15672_v43 = vcombine.low %v21097_v6, %v21101_v10  ;;  %v21135_v57 = vsel %vm19079_vm7, %v15656_v33, %v10572_v50 }
 0x266   : > { %v21154_v55 = vsel %vm19079_vm7, %v10581_v30, %v10582_v24 }
 0x268   : > { %17512 = vmatmul.mubr.msk.bf16.gmra.mrb[40].mxu1 %vm560_vm1, %v15666_v32  ;;  %v10429_v32 = vld [vmem:[%s18945_s8 + $0xd4] sm:$0xc] }
 0x269   : > { %17515 = vmatprep.mubr.msk.bf16.mxu1 %vm560_vm1, %v15667_v14  ;;  %v15670_v14 = vcombine.low %v21070_v51, %v21074_v47  ;;  %v15657_v45 = vrot.slane %v10429_v32, 10 }
 0x26b   : > { %v16995_v1 = vpop.f32.mrb[0].mxu1 }
 0x26c   : > { %v17773_v22 = vadd.f32 %v16995_v1, %v20643_v17  ;;  %v4343_v42 = vpop.f32.mrb[1].mxu1 }
 0x26d   : > { %v17774_v17 = vadd.f32 %v4343_v42, %v20645_v31  ;;  %v16996_v2 = vpop.f32.mrb[2].mxu1 }
 0x26e   : > { %v4511_v16 = vmul.f32 %v17773_v22, %v21081_v37  ;;  %v17775_v4 = vadd.f32 %v16996_v2, %v20647_v44  ;;  %v4346_v58 = vpop.f32.mrb[3].mxu1  ;;  %v21148_v22 = vsel %vm19079_vm7, %v15657_v45, %v10579_v49  ;;  %v10586_v49 = vrot.slane %v21142_v34, 6 }
 0x26f   : > { %v4509_v31 = vmul.f32 %v17774_v17, %v21081_v37  ;;  %v17776_v5 = vadd.f32 %v4346_v58, %v20650_v46 }
 0x270   : > { %v4547_v44 = vadd.f32 %v21107_v20, %v4511_v16  ;;  %v4512_v7 = vmul.f32 %v17775_v4, %v21081_v37  ;;  %17516 = vmatmul.mubr.msk.bf16.gmra.mrb[44].mxu1 %vm560_vm1, %v15668_v28  ;;  %v21139_v28 = vsel %vm19079_vm7, %v10574_v8, %v10575_v13 }
 0x271   : > { %v4545_v1 = vadd.f32 %v21107_v20, %v4509_v31  ;;  %v4510_v46 = vmul.f32 %v17776_v5, %v21081_v37  ;;  %17519 = vmatprep.mubr.msk.bf16.mxu1 %vm560_vm1, %v15669_v21 }
 0x272   : > { %vm4579_vm8 = vcmp.ge.f32.partialorder %v4547_v44, 0.0  ;;  %v4615_v9 = vmul.f32 %v21117_v12, %v4547_v44  ;;  %v4548_v32 = vadd.f32 %v21107_v20, %v4512_v7 }
 0x273   : > { %vm4577_vm9 = vcmp.ge.f32.partialorder %v4545_v1, 0.0  ;;  %v4613_v21 = vmul.f32 %v21117_v12, %v4545_v1  ;;  %v4546_v50 = vadd.f32 %v21107_v20, %v4510_v46  ;;  %v16999_v42 = vpop.f32.mrb[4].mxu1 }
 0x274   : > { %vm4580_vm10 = vcmp.ge.f32.partialorder %v4548_v32, 0.0  ;;  %v4616_v17 = vmul.f32 %v21117_v12, %v4548_v32  ;;  %v17777_v2 = vadd.f32 %v16999_v42, %v20662_v63  ;;  %v4359_v33 = vpop.f32.mrb[5].mxu1  ;;  %v4647_v8 = vsel %vm4579_vm8, %v4547_v44, %v4615_v9  ;;  %v21165_v63 = vld [vmem:[%s18945_s8 + $0xf8] sm:$0xf]  ;;  %v10432_v9 = vld [vmem:[%s18945_s8 + $0xe4] sm:$0xc] }
 0x275   : > { %vm4578_vm11 = vcmp.ge.f32.partialorder %v4546_v50, 0.0  ;;  %v4614_v13 = vmul.f32 %v21117_v12, %v4546_v50  ;;  %v17778_v16 = vadd.f32 %v4359_v33, %v20664_v54  ;;  %v17000_v4 = vpop.f32.mrb[6].mxu1  ;;  %v4645_v30 = vsel %vm4577_vm9, %v4545_v1, %v4613_v21 }
 0x276   : > { %v4648_v58 = vsel %vm4580_vm10, %v4548_v32, %v4616_v17  ;;  %v4515_v45 = vmul.f32 %v17777_v2, %v21081_v37  ;;  %v17779_v31 = vadd.f32 %v17000_v4, %v20669_v25  ;;  %v4362_v5 = vpop.f32.mrb[7].mxu1  ;;  %v15673_v1 = vcombine.low %v21135_v57, %v21139_v28  ;;  %v21191_v57 = vld [vmem:[%s23899_s2 + $0x28] sm:$0xf] }
 0x277   : > { %v4678_v24 = vpack.c.bf16 %v4648_v58, %v4647_v8  ;;  %v4513_v44 = vmul.f32 %v17778_v16, %v21081_v37  ;;  %v17780_v7 = vadd.f32 %v4362_v5, %v20672_v41  ;;  %v4646_v46 = vsel %vm4578_vm11, %v4546_v50, %v4614_v13  ;;  %v10434_v50 = vld [vmem:[%s18945_s8 + $0xec] sm:$0x3] }
 0x278   : > { %v4551_v54 = vadd.f32 %v21107_v20, %v4515_v45  ;;  %v4516_v32 = vmul.f32 %v17779_v31, %v21081_v37  ;;  %17520 = vmatmul.mubr.msk.bf16.gmra.mrb[48].mxu1 %vm560_vm1, %v15670_v14  ;;  %v4677_v25 = vpack.c.bf16 %v4646_v46, %v4645_v30  ;;  %v15674_v41 = vcombine.low %v21148_v22, %v21154_v55  ;;  %v10435_v30 = vld [vmem:[%s18945_s8 + $0xf4] sm:$0xc] }
 0x279   : > { %v4549_v21 = vadd.f32 %v21107_v20, %v4513_v44  ;;  %v4514_v42 = vmul.f32 %v17780_v7, %v21081_v37  ;;  %17523 = vmatprep.mubr.msk.bf16.mxu1 %vm560_vm1, %v15671_v19  ;;  %v10593_v17 = vrot.slane %v21165_v63, 6  ;;  %v15658_v14 = vrot.slane %v10432_v9, 10 }
 0x27a   : > { %vm4583_vm12 = vcmp.ge.f32.partialorder %v4551_v54, 0.0  ;;  %v4619_v51 = vmul.f32 %v21117_v12, %v4551_v54  ;;  %v4552_v47 = vadd.f32 %v21107_v20, %v4516_v32  ;;  %17027 = vmatprep.mubr.msk.bf16.mxu0 %vm4695_vm5, %v4677_v25  ;;  %v10588_v33 = vrot.slane %v10586_v49, 4 }
 0x27b   : > { %vm4581_vm13 = vcmp.ge.f32.partialorder %v4549_v21, 0.0  ;;  %v4617_v19 = vmul.f32 %v21117_v12, %v4549_v21  ;;  %v4550_v28 = vadd.f32 %v21107_v20, %v4514_v42  ;;  %v17003_v2 = vpop.f32.mrb[8].mxu1  ;;  %17028 = vmatmul.mubr.msk.bf16.vlgmr.msra.gmra.mrb[64].mxu0 %vm4695_vm5, %v4678_v24  ;;  %v10589_v4 = vrot.slane %v10434_v50, 6  ;;  %v10437_v42 = vld [vmem:[%s18945_s8 + $0xfc] sm:$0x3] }
 0x27c   : > { %vm4584_vm14 = vcmp.ge.f32.partialorder %v4552_v47, 0.0  ;;  %v4620_v8 = vmul.f32 %v21117_v12, %v4552_v47  ;;  %v17781_v13 = vadd.f32 %v17003_v2, %v20682_v35  ;;  %17060 = vmatpush3.bf16.msra.mxu0 %v21126_v39  ;;  %v4375_v16 = vpop.f32.mrb[9].mxu1  ;;  %v4651_v5 = vsel %vm4583_vm12, %v4551_v54, %v4619_v51 }
 0x27d   : > { %vm4582_vm15 = vcmp.ge.f32.partialorder %v4550_v28, 0.0  ;;  %v4618_v58 = vmul.f32 %v21117_v12, %v4550_v28  ;;  %v17782_v45 = vadd.f32 %v4375_v16, %v20687_v15  ;;  %v17004_v31 = vpop.f32.mrb[10].mxu1  ;;  %18649 = vmatprep.subr.msk.bf16.mxu0 %vm609_vm0, %v21191_v57  ;;  %v4649_v44 = vsel %vm4581_vm13, %v4549_v21, %v4617_v19 }
 0x27e   : > { %v4519_v24 = vmul.f32 %v17781_v13, %v21081_v37  ;;  %v17783_v35 = vadd.f32 %v17004_v31, %v20692_v18  ;;  %v4378_v39 = vpop.f32.mrb[11].mxu1  ;;  %v4652_v7 = vsel %vm4584_vm14, %v4552_v47, %v4620_v8  ;;  %v15659_v21 = vrot.slane %v10435_v30, 10 }
 0x27f   : > { %v4517_v46 = vmul.f32 %v17782_v45, %v21081_v37  ;;  %v17784_v15 = vadd.f32 %v4378_v39, %v20695_v26  ;;  %v4650_v9 = vsel %vm4582_vm15, %v4550_v28, %v4618_v58  ;;  %v4680_v54 = vpack.c.bf16 %v4652_v7, %v4651_v5 }
 0x280   : > { %v4555_v32 = vadd.f32 %v21107_v20, %v4519_v24  ;;  %v4520_v25 = vmul.f32 %v17783_v35, %v21081_v37  ;;  %17524 = vmatmul.mubr.msk.bf16.gmra.mrb[52].mxu1 %vm560_vm1, %v15672_v43  ;;  %v4679_v18 = vpack.c.bf16 %v4650_v9, %v4649_v44  ;;  %v10587_v26 = vsel %vm19079_vm7, %v15658_v14, %v10586_v49 }
 0x281   : > { %v4553_v50 = vadd.f32 %v21107_v20, %v4517_v46  ;;  %v4518_v51 = vmul.f32 %v17784_v15, %v21081_v37  ;;  %17527 = vmatprep.mubr.msk.bf16.mxu1 %vm560_vm1, %v15673_v1  ;;  %v10590_v47 = vsel %vm19079_vm7, %v10588_v33, %v10589_v4  ;;  %v10595_v43 = vrot.slane %v10593_v17, 4 }
 0x282   : > { %vm4587_vm2 = vcmp.ge.f32.partialorder %v4555_v32, 0.0  ;;  %v4623_v6 = vmul.f32 %v21117_v12, %v4555_v32  ;;  %v4556_v10 = vadd.f32 %v21107_v20, %v4520_v25  ;;  %17031 = vmatprep.mubr.msk.bf16.mxu0 %vm4695_vm5, %v4679_v18  ;;  %v10596_v49 = vrot.slane %v10437_v42, 6 }
 0x283   : > { %vm4585_vm3 = vcmp.ge.f32.partialorder %v4553_v50, 0.0  ;;  %v4621_v1 = vmul.f32 %v21117_v12, %v4553_v50  ;;  %v4554_v34 = vadd.f32 %v21107_v20, %v4518_v51  ;;  %v17007_v19 = vpop.f32.mrb[12].mxu1  ;;  %17032 = vmatmul.mubr.msk.bf16.gmra.mrb[68].mxu0 %vm4695_vm5, %v4680_v54  ;;  %v15675_v33 = vcombine.low %v10587_v26, %v10590_v47  ;;  %v18758_v51 = vld [vmem:[%s18945_s8 + $0x60] sm:$0xff]  }
 0x284   : > { %vm4588_vm8 = vcmp.ge.f32.partialorder %v4556_v10, 0.0  ;;  %v4624_v14 = vmul.f32 %v21117_v12, %v4556_v10  ;;  %v17785_v28 = vadd.f32 %v17007_v19, %v20710_v48  ;;  %v4391_v2 = vpop.f32.mrb[13].mxu1  ;;  %v4655_v4 = vsel %vm4587_vm2, %v4555_v32, %v4623_v6 }
 0x285   : > { %vm4586_vm9 = vcmp.ge.f32.partialorder %v4554_v34, 0.0  ;;  %v4622_v8 = vmul.f32 %v21117_v12, %v4554_v34  ;;  %v17786_v13 = vadd.f32 %v4391_v2, %v20715_v36  ;;  %v17008_v16 = vpop.f32.mrb[14].mxu1  ;;  %v4653_v5 = vsel %vm4585_vm3, %v4553_v50, %v4621_v1 }
 0x286   : > { %v4523_v58 = vmul.f32 %v17785_v28, %v21081_v37  ;;  %v17787_v45 = vadd.f32 %v17008_v16, %v20720_v40  ;;  %v4394_v31 = vpop.f32.mrb[15].mxu1  ;;  %v4656_v30 = vsel %vm4588_vm8, %v4556_v10, %v4624_v14  ;;  %v10597_v15 = vsel %vm19079_vm7, %v10595_v43, %v10596_v49 }
 0x287   : > { %v4521_v48 = vmul.f32 %v17786_v13, %v21081_v37  ;;  %v17788_v24 = vadd.f32 %v4394_v31, %v20723_v11  ;;  %v4654_v35 = vsel %vm4586_vm9, %v4554_v34, %v4622_v8  ;;  %v4682_v39 = vpack.c.bf16 %v4656_v30, %v4655_v4 }
 0x288   : > { %v4559_v44 = vadd.f32 %v21107_v20, %v4523_v58  ;;  %v4524_v36 = vmul.f32 %v17787_v45, %v21081_v37  ;;  %17528 = vmatmul.mubr.msk.bf16.gmra.mrb[56].mxu1 %vm560_vm1, %v15674_v41  ;;  %v4681_v40 = vpack.c.bf16 %v4654_v35, %v4653_v5  ;;  %v10594_v11 = vsel %vm19079_vm7, %v15659_v21, %v10593_v17  ;;  %v18759_v45 = vld [vmem:[%s18945_s8 + $0x70] sm:$0xff]   ;;  %v18760_v35 = vld [vmem:[%s18945_s8 + $0x80] sm:$0xff]  }
 0x289   : > { %v4557_v7 = vadd.f32 %v21107_v20, %v4521_v48  ;;  %v4522_v46 = vmul.f32 %v17788_v24, %v21081_v37  ;;  %17531 = vmatprep.mubr.msk.bf16.mxu1 %vm560_vm1, %v15675_v33  ;;  %v15676_v25 = vcombine.low %v10594_v11, %v10597_v15  ;;  %v11253_v31 = vsel %vm609_vm0, %v21013_v62, 0 }
 0x28a   : > { %vm4591_vm10 = vcmp.ge.f32.partialorder %v4559_v44, 0.0  ;;  %v4627_v22 = vmul.f32 %v21117_v12, %v4559_v44  ;;  %v4560_v55 = vadd.f32 %v21107_v20, %v4524_v36  ;;  %17035 = vmatprep.mubr.msk.bf16.mxu0 %vm4695_vm5, %v4681_v40 }
 0x28b   : > { %vm4589_vm11 = vcmp.ge.f32.partialorder %v4557_v7, 0.0  ;;  %v4625_v41 = vmul.f32 %v21117_v12, %v4557_v7  ;;  %v4558_v9 = vadd.f32 %v21107_v20, %v4522_v46  ;;  %v17011_v63 = vpop.f32.mrb[16].mxu1  ;;  %17036 = vmatmul.mubr.msk.bf16.gmra.mrb[72].mxu0 %vm4695_vm5, %v4682_v39 }
 0x28c   : > { %vm4592_vm12 = vcmp.ge.f32.partialorder %v4560_v55, 0.0  ;;  %v4628_v17 = vmul.f32 %v21117_v12, %v4560_v55  ;;  %v17789_v54 = vadd.f32 %v17011_v63, %v20740_v29  ;;  %v4407_v32 = vpop.f32.mrb[17].mxu1  ;;  %v4659_v50 = vsel %vm4591_vm10, %v4559_v44, %v4627_v22 }
 0x28d   : > { %vm4590_vm13 = vcmp.ge.f32.partialorder %v4558_v9, 0.0  ;;  %v4626_v18 = vmul.f32 %v21117_v12, %v4558_v9  ;;  %v17790_v42 = vadd.f32 %v4407_v32, %v20747_v56  ;;  %v17012_v21 = vpop.f32.mrb[18].mxu1  ;;  %v4657_v10 = vsel %vm4589_vm11, %v4557_v7, %v4625_v41 }
 0x28e   : > { %v4527_v26 = vmul.f32 %v17789_v54, %v21081_v37  ;;  %v17791_v47 = vadd.f32 %v17012_v21, %v20752_v3  ;;  %v4410_v6 = vpop.f32.mrb[19].mxu1  ;;  %v4660_v43 = vsel %vm4592_vm12, %v4560_v55, %v4628_v17 }
 0x28f   : > { %v4525_v29 = vmul.f32 %v17790_v42, %v21081_v37  ;;  %v17792_v1 = vadd.f32 %v4410_v6, %v20760_v59  ;;  %v4658_v34 = vsel %vm4590_vm13, %v4558_v9, %v4626_v18  ;;  %v4684_v19 = vpack.c.bf16 %v4660_v43, %v4659_v50  ;;  %v18761_v42 = vld [vmem:[%s18945_s8 + $0x90] sm:$0xff]  }
 0x290   : > { %v4563_v56 = vadd.f32 %v21107_v20, %v4527_v26  ;;  %v4528_v49 = vmul.f32 %v17791_v47, %v21081_v37  ;;  %17532 = vmatmul.mubr.msk.bf16.gmra.mrb[60].mxu1 %vm560_vm1, %v15676_v25  ;;  %v4683_v14 = vpack.c.bf16 %v4658_v34, %v4657_v10  ;;  %v18762_v47 = vld [vmem:[%s18945_s8 + $0xa0] sm:$0xff]  }
 0x291   : > { %v4561_v28 = vadd.f32 %v21107_v20, %v4525_v29  ;;  %v4526_v3 = vmul.f32 %v17792_v1, %v21081_v37  ;;  %17537 = vmatprep.mubr.msk.bf16.mxu1 %vm560_vm1, %v18758_v51  ;;  %v24080_v10 = vld [vmem:[#allocation50_spill] sm:$0xff] }
 0x292   : > { %vm4595_vm14 = vcmp.ge.f32.partialorder %v4563_v56, 0.0  ;;  %v4631_v2 = vmul.f32 %v21117_v12, %v4563_v56  ;;  %v4564_v59 = vadd.f32 %v21107_v20, %v4528_v49  ;;  %17039 = vmatprep.mubr.msk.bf16.mxu0 %vm4695_vm5, %v4683_v14 }
 0x293   : > { %vm4593_vm15 = vcmp.ge.f32.partialorder %v4561_v28, 0.0  ;;  %v4629_v33 = vmul.f32 %v21117_v12, %v4561_v28  ;;  %v4562_v8 = vadd.f32 %v21107_v20, %v4526_v3  ;;  %v17015_v13 = vpop.f32.mrb[20].mxu1  ;;  %17040 = vmatmul.mubr.msk.bf16.gmra.mrb[76].mxu0 %vm4695_vm5, %v4684_v19  ;;  %v24081_v19 = vld [vmem:[#allocation51_spill] sm:$0xff] }
 0x294   : > { %vm4596_vm2 = vcmp.ge.f32.partialorder %v4564_v59, 0.0  ;;  %v4632_v16 = vmul.f32 %v21117_v12, %v4564_v59  ;;  %v17793_v4 = vadd.f32 %v17015_v13, %v20779_v38  ;;  %v4423_v58 = vpop.f32.mrb[21].mxu1  ;;  %v4663_v24 = vsel %vm4595_vm14, %v4563_v56, %v4631_v2 }
 0x295   : > { %vm4594_vm3 = vcmp.ge.f32.partialorder %v4562_v8, 0.0  ;;  %v4630_v5 = vmul.f32 %v21117_v12, %v4562_v8  ;;  %v17794_v30 = vadd.f32 %v4423_v58, %v20784_v53  ;;  %v17016_v48 = vpop.f32.mrb[22].mxu1  ;;  %v4661_v38 = vsel %vm4593_vm15, %v4561_v28, %v4629_v33  ;;  %v21309_v53 = vld [vmem:[%s23899_s2 + $0x5c] sm:$0xf] }
 0x296   : > { %v4531_v39 = vmul.f32 %v17793_v4, %v21081_v37  ;;  %v17795_v44 = vadd.f32 %v17016_v48, %v20789_v0  ;;  %v4426_v36 = vpop.f32.mrb[23].mxu1  ;;  %v4664_v40 = vsel %vm4596_vm2, %v4564_v59, %v4632_v16 }
 0x297   : > { %v4529_v62 = vmul.f32 %v17794_v30, %v21081_v37  ;;  %v17796_v7 = vadd.f32 %v4426_v36, %v20792_v23  ;;  %v4662_v46 = vsel %vm4594_vm3, %v4562_v8, %v4630_v5  ;;  %v4686_v11 = vpack.c.bf16 %v4664_v40, %v4663_v24  ;;  %v18763_v30 = vld [vmem:[%s18945_s8 + $0xb0] sm:$0xff]   ;;  %v24083_v24 = vld [vmem:[#allocation53_spill] sm:$0xff]  ;;  %v18764_v36 = vld [vmem:[%s18945_s8 + $0xc0] sm:$0xff]  }
 0x298   : > { %v4567_v15 = vadd.f32 %v21107_v20, %v4531_v39  ;;  %v4532_v0 = vmul.f32 %v17795_v44, %v21081_v37  ;;  %17538 = vmatmul.mubr.msk.bf16.vlgmr.msra.gmra.mrb[32].mxu1 %vm560_vm1, %v18759_v45  ;;  %v4685_v22 = vpack.c.bf16 %v4662_v46, %v4661_v38  ;;  %v24082_v45 = vld [vmem:[#allocation52_spill] sm:$0xff]  ;;  %v24084_v40 = vld [vmem:[#allocation54_spill] sm:$0xff] }
 0x299   : > { %v4565_v55 = vadd.f32 %v21107_v20, %v4529_v62  ;;  %v4530_v41 = vmul.f32 %v17796_v7, %v21081_v37  ;;  %17541 = vmatprep.mubr.msk.bf16.mxu1 %vm560_vm1, %v18760_v35  ;;  %17570 = vmatpush3.bf16.msra.mxu1 %v11253_v31 }
 0x29a   : > { %vm4599_vm8 = vcmp.ge.f32.partialorder %v4567_v15, 0.0  ;;  %v4635_v23 = vmul.f32 %v21117_v12, %v4567_v15  ;;  %v4568_v9 = vadd.f32 %v21107_v20, %v4532_v0  ;;  %17043 = vmatprep.mubr.msk.bf16.mxu0 %vm4695_vm5, %v4685_v22  ;;  %18664 = vmatprep.subr.msk.bf16.mxu1 %vm609_vm0, %v21309_v53  ;;  %v24085_v0 = vld [vmem:[#allocation55_spill] sm:$0xff] }
 0x29b   : > { %vm4597_vm9 = vcmp.ge.f32.partialorder %v4565_v55, 0.0  ;;  %v4633_v63 = vmul.f32 %v21117_v12, %v4565_v55  ;;  %v4566_v17 = vadd.f32 %v21107_v20, %v4530_v41  ;;  %v17019_v54 = vpop.f32.mrb[24].mxu1  ;;  %17044 = vmatmul.mubr.msk.bf16.gmra.mrb[80].mxu0 %vm4695_vm5, %v4686_v11 }
 0x29c   : > { %vm4600_vm10 = vcmp.ge.f32.partialorder %v4568_v9, 0.0  ;;  %v4636_v32 = vmul.f32 %v21117_v12, %v4568_v9  ;;  %v17797_v25 = vadd.f32 %v17019_v54, %v20809_v52  ;;  %v4439_v18 = vpop.f32.mrb[25].mxu1  ;;  %v4667_v26 = vsel %vm4599_vm8, %v4567_v15, %v4635_v23 }
 0x29d   : > { %vm4598_vm11 = vcmp.ge.f32.partialorder %v4566_v17, 0.0  ;;  %v4634_v21 = vmul.f32 %v21117_v12, %v4566_v17  ;;  %v17798_v50 = vadd.f32 %v4439_v18, %v20814_v60  ;;  %v17020_v51 = vpop.f32.mrb[26].mxu1  ;;  %v4665_v1 = vsel %vm4597_vm9, %v4565_v55, %v4633_v63 }
 0x29e   : > { %v4535_v6 = vmul.f32 %v17797_v25, %v21081_v37  ;;  %v17799_v43 = vadd.f32 %v17020_v51, %v24080_v10  ;;  %v4442_v29 = vpop.f32.mrb[27].mxu1  ;;  %v4668_v34 = vsel %vm4600_vm10, %v4568_v9, %v4636_v32  ;;  %v18766_v51 = vld [vmem:[%s18945_s8 + $0xe0] sm:$0xff]   ;;  %vm5221_vm10 = vcmask 1042432  }
 0x29f   : > { %v4533_v52 = vmul.f32 %v17798_v50, %v21081_v37  ;;  %v17800_v56 = vadd.f32 %v4442_v29, %v24081_v19  ;;  %v4666_v49 = vsel %vm4598_vm11, %v4566_v17, %v4634_v21  ;;  %v4688_v14 = vpack.c.bf16 %v4668_v34, %v4667_v26  ;;  %v24086_v29 = vld [vmem:[#allocation5_spill] sm:$0xff]  ;;  %v18767_v34 = vld [vmem:[%s18945_s8 + $0xf0] sm:$0xff]  }
 0x2a0   : > { %v4571_v60 = vadd.f32 %v21107_v20, %v4535_v6  ;;  %v4536_v28 = vmul.f32 %v17799_v43, %v21081_v37  ;;  %17542 = vmatmul.mubr.msk.bf16.gmra.mrb[36].mxu1 %vm560_vm1, %v18761_v42  ;;  %v4687_v3 = vpack.c.bf16 %v4666_v49, %v4665_v1  ;;  %v24087_v1 = vld [vmem:[#allocation4_spill] sm:$0xff]  ;;  %v5613_v19 = vsel %vm609_vm0, %v21191_v57, 0  ;;  %v24089_v49 = vld [vmem:[#allocation7_spill] sm:$0xff] }
 0x2a1   : > { %v4569_v2 = vadd.f32 %v21107_v20, %v4533_v52  ;;  %v4534_v59 = vmul.f32 %v17800_v56, %v21081_v37  ;;  %17545 = vmatprep.mubr.msk.bf16.mxu1 %vm560_vm1, %v18762_v47  ;;  %v18768_v52 = vld [vmem:[%s18945_s8 + $0x100] sm:$0xff]   ;;  %v18769_v57 = vld [vmem:[%s18945_s8 + $0x110] sm:$0xff]   ;;  %vm5222_vm11 = vcmask 1046532  }
 0x2a2   : > { %vm4603_vm12 = vcmp.ge.f32.partialorder %v4571_v60, 0.0  ;;  %v4639_v33 = vmul.f32 %v21117_v12, %v4571_v60  ;;  %v4572_v8 = vadd.f32 %v21107_v20, %v4536_v28  ;;  %17047 = vmatprep.mubr.msk.bf16.mxu0 %vm4695_vm5, %v4687_v3  ;;  %v21394_v56 = vld [vmem:[%s23899_s2 + $0x24] sm:$0xf]  ;;  %v24092_v28 = vld [vmem:[#allocation25_spill] sm:$0xff]  ;;  %v24093_v3 = vld [vmem:[#allocation23_spill] sm:$0xff] }
 0x2a3   : > { %vm4601_vm13 = vcmp.ge.f32.partialorder %v4569_v2, 0.0  ;;  %v4637_v13 = vmul.f32 %v21117_v12, %v4569_v2  ;;  %v4570_v16 = vadd.f32 %v21107_v20, %v4534_v59  ;;  %v17023_v4 = vpop.f32.mrb[28].mxu1  ;;  %17048 = vmatmul.mubr.msk.bf16.gmra.mrb[84].mxu0 %vm4695_vm5, %v4688_v14  ;;  %v24090_v14 = vld [vmem:[#allocation3_spill] sm:$0xff]  ;;  %v18770_v59 = vld [vmem:[%s18945_s8 + $0x120] sm:$0xff]  }
 0x2a4   : > { %vm4604_vm14 = vcmp.ge.f32.partialorder %v4572_v8, 0.0  ;;  %v4640_v58 = vmul.f32 %v21117_v12, %v4572_v8  ;;  %v17801_v31 = vadd.f32 %v17023_v4, %v24082_v45  ;;  %v4455_v5 = vpop.f32.mrb[29].mxu1  ;;  %v4671_v44 = vsel %vm4603_vm12, %v4571_v60, %v4639_v33  ;;  %v24095_v33 = vld [vmem:[#allocation24_spill] sm:$0xff]  ;;  %v24099_v4 = vld [vmem:[#allocation27_spill] sm:$0xff]  ;;  %vm21775_vm12 = vmor %vm5221_vm10, %vm5222_vm11 }
 0x2a5   : > { %vm4602_vm15 = vcmp.ge.f32.partialorder %v4570_v16, 0.0  ;;  %v4638_v48 = vmul.f32 %v21117_v12, %v4570_v16  ;;  %v17802_v35 = vadd.f32 %v4455_v5, %v24083_v24  ;;  %v17024_v39 = vpop.f32.mrb[30].mxu1  ;;  %v4669_v46 = vsel %vm4601_vm13, %v4569_v2, %v4637_v13  ;;  %v18771_v45 = vld [vmem:[%s18945_s8 + $0x130] sm:$0xff]   ;;  %v24104_v24 = vld [vmem:[#allocation33_spill] sm:$0xff] }
 0x2a6   : > { %v4539_v38 = vmul.f32 %v17801_v31, %v21081_v37  ;;  %v17803_v62 = vadd.f32 %v17024_v39, %v24084_v40  ;;  %v4458_v7 = vpop.f32.mrb[31].mxu1  ;;  %v4672_v11 = vsel %vm4604_vm14, %v4572_v8, %v4640_v58  ;;  %v24091_v60 = vpack.c.bf16 %v24089_v49, %v24090_v14  ;;  %v24096_v8 = vld [vmem:[#allocation22_spill] sm:$0xff]  ;;  %v24101_v5 = vld [vmem:[#allocation28_spill] sm:$0xff]  ;;  %v24135_v14 = vld [vmem:[#allocation49_spill] sm:$0xff] }
 0x2a7   : > { %v4537_v15 = vmul.f32 %v17802_v35, %v21081_v37  ;;  %v17804_v22 = vadd.f32 %v4458_v7, %v24085_v0  ;;  %v4670_v55 = vsel %vm4602_vm15, %v4570_v16, %v4638_v48  ;;  %v4690_v41 = vpack.c.bf16 %v4672_v11, %v4671_v44  ;;  %v24098_v16 = vld [vmem:[#allocation29_spill] sm:$0xff]  ;;  %v18772_v31 = vld [vmem:[%s18945_s8 + $0x140] sm:$0xff]   ;;  %v24105_v35 = vld [vmem:[#allocation31_spill] sm:$0xff] }
 0x2a8   : > { %v4575_v23 = vadd.f32 %v21107_v20, %v4539_v38  ;;  %v4540_v9 = vmul.f32 %v17803_v62, %v21081_v37  ;;  %17546 = vmatmul.mubr.msk.bf16.gmra.mrb[40].mxu1 %vm560_vm1, %v18763_v30  ;;  %v4689_v63 = vpack.c.bf16 %v4670_v55, %v4669_v46  ;;  %v24094_v2 = vpack.c.bf16 %v24092_v28, %v24093_v3  ;;  %v24102_v30 = vld [vmem:[#allocation26_spill] sm:$0xff]  ;;  %v18773_v44 = vld [vmem:[%s18945_s8 + $0x150] sm:$0xff]   ;;  %v24111_v7 = vld [vmem:[#allocation37_spill] sm:$0xff] }
 0x2a9   : > { %v4573_v17 = vadd.f32 %v21107_v20, %v4537_v15  ;;  %v4538_v54 = vmul.f32 %v17804_v22, %v21081_v37  ;;  %17549 = vmatprep.mubr.msk.bf16.mxu1 %vm560_vm1, %v18764_v36  ;;  %v18765_v37 = vld [vmem:[%s18945_s8 + $0xd0] sm:$0xff]   ;;  %v24097_v13 = vpack.c.bf16 %v24095_v33, %v24096_v8  ;;  %v24100_v58 = vpack.c.bf16 %v24098_v16, %v24099_v4  ;;  %v24107_v36 = vld [vmem:[#allocation6_spill] sm:$0xff]  ;;  %v24112_v46 = vld [vmem:[#allocation35_spill] sm:$0xff] }
 0x2aa   : > { %v4643_v32 = vmul.f32 %v21117_v12, %v4575_v23  ;;  %v4576_v25 = vadd.f32 %v21107_v20, %v4540_v9  ;;  %17051 = vmatprep.mubr.msk.bf16.mxu0 %vm4695_vm5, %v4689_v63  ;;  %vm4607_vm2 = vcmp.ge.f32.partialorder %v4575_v23, 0.0  ;;  %v24103_v48 = vpack.c.bf16 %v24101_v5, %v24102_v30  ;;  %v24108_v38 = vld [vmem:[#allocation32_spill] sm:$0xff]  ;;  %v24109_v40 = vld [vmem:[#allocation30_spill] sm:$0xff]  ;;  %v24115_v55 = vld [vmem:[#allocation9_spill] sm:$0xff] }
 0x2ab   : > { %v4641_v18 = vmul.f32 %v21117_v12, %v4573_v17  ;;  %v4574_v42 = vadd.f32 %v21107_v20, %v4538_v54  ;;  %17052 = vmatmul.mubr.msk.bf16.gmra.mrb[88].mxu0 %vm4695_vm5, %v4690_v41  ;;  %vm4605_vm3 = vcmp.ge.f32.partialorder %v4573_v17, 0.0  ;;  %v24106_v39 = vpack.c.bf16 %v24104_v24, %v24105_v35  ;;  %v21447_v0 = vld [vmem:[%s23899_s2 + $0x60] sm:$0xf]  ;;  %v24114_v22 = vld [vmem:[#allocation8_spill] sm:$0xff]  ;;  %v24120_v63 = vld [vmem:[#allocation39_spill] sm:$0xff] }
 0x2ac   : > { %vm4608_vm8 = vcmp.ge.f32.partialorder %v4576_v25, 0.0  ;;  %v4644_v21 = vmul.f32 %v21117_v12, %v4576_v25  ;;  %v4675_v26 = vsel %vm4607_vm2, %v4575_v23, %v4643_v32  ;;  %v24110_v62 = vpack.c.bf16 %v24108_v38, %v24109_v40  ;;  %v24116_v41 = vld [vmem:[#allocation36_spill] sm:$0xff]  ;;  %v24117_v23 = vld [vmem:[#allocation34_spill] sm:$0xff]  ;;  %v24123_v32 = vld [vmem:[#allocation11_spill] sm:$0xff] }
 0x2ad   : > { %vm4606_vm9 = vcmp.ge.f32.partialorder %v4574_v42, 0.0  ;;  %v4642_v50 = vmul.f32 %v21117_v12, %v4574_v42  ;;  %v4673_v6 = vsel %vm4605_vm3, %v4573_v17, %v4641_v18  ;;  %v24088_v12 = vpack.c.bf16 %v24086_v29, %v24087_v1  ;;  %v24122_v54 = vld [vmem:[#allocation10_spill] sm:$0xff]  ;;  %v24124_v18 = vld [vmem:[#allocation40_spill] sm:$0xff]  ;;  %v14865_v33 = vld [vmem:[%s18945_s8 + $0x38] sm:$0x7] }
 0x2ae   : > { %v4676_v47 = vsel %vm4608_vm8, %v4576_v25, %v4644_v21  ;;  %v24113_v11 = vpack.c.bf16 %v24111_v7, %v24112_v46  ;;  %v11723_v15 = vsel %vm609_vm0, %v21309_v53, 0  ;;  %v24118_v9 = vpack.c.bf16 %v24116_v41, %v24117_v23  ;;  %v24119_v53 = vld [vmem:[#allocation41_spill] sm:$0xff]  ;;  %v21468_v25 = vld [vmem:[%s18945_s8 + $0x24] sm:$0xf]  ;;  %v14867_v16 = vld [vmem:[%s18945_s8 + $0x48] sm:$0x7] }
 0x2af   : > { %v4674_v10 = vsel %vm4606_vm9, %v4574_v42, %v4642_v50  ;;  %v4692_v43 = vpack.c.bf16 %v4676_v47, %v4675_v26  ;;  %v24121_v17 = vpack.c.bf16 %v24119_v53, %v24120_v63  ;;  %v24125_v42 = vld [vmem:[#allocation38_spill] sm:$0xff]  ;;  %v24128_v50 = vld [vmem:[#allocation43_spill] sm:$0xff]  ;;  %v5404_v26 = vrot.slane %v21468_v25, 7  ;;  %v24140_v38 = vld [vmem:[#allocation48_spill] sm:$0xff] }
 0x2b0   : > { %17550 = vmatmul.mubr.msk.bf16.gmra.mrb[44].mxu1 %vm560_vm1, %v18765_v37  ;;  %v4691_v20 = vpack.c.bf16 %v4674_v10, %v4673_v6  ;;  %v24126_v21 = vpack.c.bf16 %v24124_v18, %v24125_v42  ;;  %v24127_v37 = vld [vmem:[#allocation45_spill] sm:$0xff]  ;;  %v14862_v47 = vld [vmem:[%s18945_s8 + $0x20] sm:$0x8]  ;;  %v14863_v6 = vld [vmem:[%s18945_s8 + $0x28] sm:$0x7]  ;;  %v5414_v5 = vrot.slane %v14865_v33, 7 }
 0x2b1   : > { %17553 = vmatprep.mubr.msk.bf16.mxu1 %vm560_vm1, %v18766_v51  ;;  %v24129_v51 = vpack.c.bf16 %v24127_v37, %v24128_v50  ;;  %v24130_v10 = vld [vmem:[#allocation12_spill] sm:$0xff]  ;;  %v5406_v29 = vrot.slane %v5404_v26, 4  ;;  %v5407_v1 = vrot.slane %v14863_v6, 7  ;;  %v24138_v4 = vld [vmem:[#allocation14_spill] sm:$0xff]  ;;  %v24139_v30 = vld [vmem:[#allocation15_spill] sm:$0xff]  ;;  %v5421_v35 = vrot.slane %v14867_v16, 7 }
 0x2b2   : > { %17055 = vmatprep.mubr.msk.bf16.mxu0 %vm4695_vm5, %v4691_v20  ;;  %v14894_v20 = vrot.slane %v14862_v47, 11  ;;  %v24141_v40 = vld [vmem:[#allocation46_spill] sm:$0xff]  ;;  %v14868_v23 = vld [vmem:[%s18945_s8 + $0x50] sm:$0x8]  ;;  %v24144_v47 = vld [vmem:[#allocation17_spill] sm:$0xff] }
 0x2b3   : > { %17056 = vmatmul.mubr.msk.bf16.gmra.mrb[92].mxu0 %vm4695_vm5, %v4692_v43  ;;  %v24131_v43 = vld [vmem:[#allocation13_spill] sm:$0xff]  ;;  %v14870_v63 = vld [vmem:[%s18945_s8 + $0x60] sm:$0x8]  ;;  %v24143_v42 = vld [vmem:[#allocation16_spill] sm:$0xff]  ;;  %v14897_v37 = vrot.slane %v14868_v23, 11 }
 0x2b4   : > { %17061 = vmatprep.mubr.msk.bf16.mxu0 %vm4695_vm5, %v24088_v12  ;;  %v21486_v12 = vld [vmem:[%s18945_s8 + $0x34] sm:$0xf]  ;;  %v14898_v6 = vrot.slane %v14870_v63, 11  ;;  %v14875_v33 = vld [vmem:[%s18945_s8 + $0x88] sm:$0x7] }
 0x2b5   : > { %v5411_v3 = vrot.slane %v21486_v12, 7  ;;  %v14877_v63 = vld [vmem:[%s18945_s8 + $0x98] sm:$0x7] }
 0x2b8   : > { %17554 = vmatmul.mubr.msk.bf16.gmra.mrb[48].mxu1 %vm560_vm1, %v18767_v34  ;;  %v21489_v34 = vld [vmem:[%s18945_s8 + $0x44] sm:$0xf] }
 0x2b9   : > { %17557 = vmatprep.mubr.msk.bf16.mxu1 %vm560_vm1, %v18768_v52  ;;  %v24132_v52 = vld [vmem:[#allocation44_spill] sm:$0xff]  ;;  %v5418_v8 = vrot.slane %v21489_v34, 7 }
 0x2bb   : > { %17062 = vmatmul.mubr.msk.bf16.vlgmr.msra.gmra.mrb[64].mxu0 %vm4695_vm5, %v24091_v60  ;;  %v24136_v60 = vld [vmem:[#allocation47_spill] sm:$0xff]  ;;  %v5420_v24 = vrot.slane %v5418_v8, 4 }
 0x2bc   : > { %17094 = vmatpush3.bf16.msra.mxu0 %v5613_v19  ;;  %17065 = vmatprep.mubr.msk.bf16.mxu0 %vm4695_vm5, %v24094_v2  ;;  %v24133_v19 = vld [vmem:[#allocation42_spill] sm:$0xff]  ;;  %v24137_v28 = vpack.c.bf16 %v24135_v14, %v24136_v60  ;;  %v5405_v2 = vsel %vm19038_vm6, %v14894_v20, %v5404_v26  ;;  %v5873_v26 = vsel %vm609_vm0, %v21394_v56, 0  ;;  %v14872_v14 = vld [vmem:[%s18945_s8 + $0x70] sm:$0x8] }
 0x2bd   : > { %18650 = vmatprep.subr.msk.bf16.mxu0 %vm609_vm0, %v21394_v56  ;;  %v24134_v49 = vpack.c.bf16 %v24132_v52, %v24133_v19  ;;  %v5422_v41 = vsel %vm19038_vm6, %v5420_v24, %v5421_v35  ;;  %v21548_v52 = vld [vmem:[%s18945_s8 + $0x84] sm:$0xf]  ;;  %v21553_v19 = vld [vmem:[%s23899_s2 + $0x2c] sm:$0xf]  ;;  %v14899_v16 = vrot.slane %v14872_v14, 11  ;;  %v5456_v14 = vrot.slane %v14877_v63, 7 }
 0x2be   : > { %v21577_v24 = vld [vmem:[%s18945_s8 + $0x94] sm:$0xf]  ;;  %v24146_v35 = vld [vmem:[#allocation19_spill] sm:$0xff] }
 0x2c0   : > { %17558 = vmatmul.mubr.msk.bf16.gmra.mrb[52].mxu1 %vm560_vm1, %v18769_v57  ;;  %v5408_v57 = vsel %vm19038_vm6, %v5406_v29, %v5407_v1  ;;  %v21545_v1 = vld [vmem:[%s18945_s8 + $0x74] sm:$0xf] }
 0x2c1   : > { %17561 = vmatprep.mubr.msk.bf16.mxu1 %vm560_vm1, %v18770_v59  ;;  %v14864_v59 = vld [vmem:[%s18945_s8 + $0x30] sm:$0x8]  ;;  %v5439_v60 = vrot.slane %v21545_v1, 7 }
 0x2c3   : > { %17066 = vmatmul.mubr.msk.bf16.gmra.mrb[68].mxu0 %vm4695_vm5, %v24097_v13  ;;  %v14866_v13 = vld [vmem:[%s18945_s8 + $0x40] sm:$0x8]  ;;  %v5440_v23 = vsel %vm19038_vm6, %v14899_v16, %v5439_v60 }
 0x2c4   : > { %17069 = vmatprep.mubr.msk.bf16.mxu0 %vm4695_vm5, %v24100_v58  ;;  %v14911_v58 = vcombine.low %v5405_v2, %v5408_v57  ;;  %v14873_v2 = vld [vmem:[%s18945_s8 + $0x78] sm:$0x7]  ;;  %v14874_v57 = vld [vmem:[%s18945_s8 + $0x80] sm:$0x8] }
 0x2c8   : > { %17562 = vmatmul.mubr.msk.bf16.gmra.mrb[56].mxu1 %vm560_vm1, %v18771_v45  ;;  %v14895_v45 = vrot.slane %v14864_v59, 11  ;;  %v5446_v59 = vrot.slane %v21548_v52, 7 }
 0x2c9   : > { %17565 = vmatprep.mubr.msk.bf16.mxu1 %vm560_vm1, %v18772_v31  ;;  %v5413_v31 = vrot.slane %v5411_v3, 4 }
 0x2ca   : > { %v5412_v7 = vsel %vm19038_vm6, %v14895_v45, %v5411_v3 }
 0x2cb   : > { %17070 = vmatmul.mubr.msk.bf16.gmra.mrb[72].mxu0 %vm4695_vm5, %v24103_v48  ;;  %v14896_v48 = vrot.slane %v14866_v13, 11  ;;  %v5415_v46 = vsel %vm19038_vm6, %v5413_v31, %v5414_v5  ;;  %v5441_v31 = vrot.slane %v5439_v60, 4  ;;  %v5442_v5 = vrot.slane %v14873_v2, 7  ;;  %v21605_v60 = vld [vmem:[%s18945_s8 + $0xb4] sm:$0xf] }
 0x2cc   : > { %17073 = vmatprep.mubr.msk.bf16.mxu0 %vm4695_vm5, %v24106_v39  ;;  %v21514_v39 = vld [vmem:[%s18945_s8 + $0x54] sm:$0xf]  ;;  %v14912_v18 = vcombine.low %v5412_v7, %v5415_v46  ;;  %v15776_v46 = vld [vmem:[%s18945_s8 + $0x6c] sm:$0x3] }
 0x2d0   : > { %17566 = vmatmul.mubr.msk.bf16.gmra.mrb[60].mxu1 %vm560_vm1, %v18773_v44  ;;  %v21517_v44 = vld [vmem:[%s18945_s8 + $0x64] sm:$0xf] }
 0x2d1   : > { %17571 = vmatprep.mubr.msk.bf16.mxu1 %vm560_vm1, %v24107_v36  ;;  %v5432_v53 = vrot.slane %v21517_v44, 7 }
 0x2d3   : > { %17074 = vmatmul.mubr.msk.bf16.gmra.mrb[76].mxu0 %vm4695_vm5, %v24110_v62  ;;  %v24142_v62 = vpack.c.bf16 %v24140_v38, %v24141_v40  ;;  %v5434_v20 = vrot.slane %v5432_v53, 4  ;;  %v5448_v38 = vrot.slane %v5446_v59, 4  ;;  %v5449_v40 = vrot.slane %v14875_v33, 7 }
 0x2d4   : > { %17077 = vmatprep.mubr.msk.bf16.mxu0 %vm4695_vm5, %v24113_v11  ;;  %v5425_v11 = vrot.slane %v21514_v39, 7 }
 0x2d6   : > { %v5427_v50 = vrot.slane %v5425_v11, 4  ;;  %v5426_v56 = vsel %vm19038_vm6, %v14897_v37, %v5425_v11  ;;  %v21584_v11 = vld [vmem:[%s18945_s8 + $0xa4] sm:$0xf] }
 0x2d8   : > { %17572 = vmatmul.mubr.msk.bf16.vlgmr.msra.gmra.mrb[32].mxu1 %vm560_vm1, %v24114_v22 }
 0x2d9   : > { %17575 = vmatprep.mubr.msk.bf16.mxu1 %vm560_vm1, %v24115_v55  ;;  %17604 = vmatpush3.bf16.msra.mxu1 %v11723_v15  ;;  %v5419_v15 = vsel %vm19038_vm6, %v14896_v48, %v5418_v8  ;;  %v15171_v8 = vld [vmem:[%s18945_s8 + $0x68] sm:$0xf]  ;;  %v14900_v48 = vrot.slane %v14874_v57, 11  ;;  %v15777_v57 = vld [vmem:[%s18945_s8 + $0x74] sm:$0xc] }
 0x2da   : > { %18665 = vmatprep.subr.msk.bf16.mxu1 %vm609_vm0, %v21447_v0  ;;  %v11514_v7 = vrot.slane %v15171_v8, 6 }
 0x2db   : > { %17078 = vmatmul.mubr.msk.bf16.gmra.mrb[80].mxu0 %vm4695_vm5, %v24118_v9  ;;  %v14869_v9 = vld [vmem:[%s18945_s8 + $0x58] sm:$0x7] }
 0x2dc   : > { %17081 = vmatprep.mubr.msk.bf16.mxu0 %vm4695_vm5, %v24121_v17  ;;  %v14871_v17 = vld [vmem:[%s18945_s8 + $0x68] sm:$0x7]  ;;  %v11516_v37 = vrot.slane %v11514_v7, 4 }
 0x2dd   : > { %v5435_v29 = vrot.slane %v14871_v17, 7 }
 0x2df   : > { %v5436_v3 = vsel %vm19038_vm6, %v5434_v20, %v5435_v29  ;;  %v15177_v20 = vld [vmem:[%s18945_s8 + $0x88] sm:$0xf] }
 0x2e0   : > { %17576 = vmatmul.mubr.msk.bf16.gmra.mrb[36].mxu1 %vm560_vm1, %v24122_v54 }
 0x2e1   : > { %17579 = vmatprep.mubr.msk.bf16.mxu1 %vm560_vm1, %v24123_v32 }
 0x2e3   : > { %17082 = vmatmul.mubr.msk.bf16.gmra.mrb[84].mxu0 %vm4695_vm5, %v24126_v21  ;;  %v14913_v21 = vcombine.low %v5419_v15, %v5422_v41  ;;  %v14876_v15 = vld [vmem:[%s18945_s8 + $0x90] sm:$0x8]  ;;  %v5453_v41 = vrot.slane %v21577_v24, 7 }
 0x2e4   : > { %17085 = vmatprep.mubr.msk.bf16.mxu0 %vm4695_vm5, %v24129_v51  ;;  %v5428_v51 = vrot.slane %v14869_v9, 7  ;;  %v5443_v9 = vsel %vm19038_vm6, %v5441_v31, %v5442_v5  ;;  %v15779_v5 = vld [vmem:[%s18945_s8 + $0x84] sm:$0xc] }
 0x2e5   : > { %v14916_v29 = vcombine.low %v5440_v23, %v5443_v9  ;;  %v14880_v9 = vld [vmem:[%s18945_s8 + $0xb0] sm:$0x8] }
 0x2e8   : > { %17580 = vmatmul.mubr.msk.bf16.gmra.mrb[40].mxu1 %vm560_vm1, %v24130_v10 }
 0x2e9   : > { %17583 = vmatprep.mubr.msk.bf16.mxu1 %vm560_vm1, %v24131_v43 }
 0x2eb   : > { %17086 = vmatmul.mubr.msk.bf16.gmra.mrb[88].mxu0 %vm4695_vm5, %v24134_v49  ;;  %v5429_v49 = vsel %vm19038_vm6, %v5427_v50, %v5428_v51  ;;  %v11517_v50 = vrot.slane %v15776_v46, 6  ;;  %v14878_v51 = vld [vmem:[%s18945_s8 + $0xa0] sm:$0x8] }
 0x2ec   : > { %17089 = vmatprep.mubr.msk.bf16.mxu0 %vm4695_vm5, %v24137_v28  ;;  %v5433_v28 = vsel %vm19038_vm6, %v14898_v6, %v5432_v53  ;;  %v14914_v13 = vcombine.low %v5426_v56, %v5429_v49  ;;  %v5447_v53 = vsel %vm19038_vm6, %v14900_v48, %v5446_v59  ;;  %v14879_v6 = vld [vmem:[%s18945_s8 + $0xa8] sm:$0x7]  ;;  %v14901_v56 = vrot.slane %v14876_v15, 11  ;;  %v15778_v59 = vld [vmem:[%s18945_s8 + $0x7c] sm:$0x3] }
 0x2ed   : > { %v14915_v45 = vcombine.low %v5433_v28, %v5436_v3  ;;  %v5455_v49 = vrot.slane %v5453_v41, 4  ;;  %v24147_v28 = vld [vmem:[#allocation20_spill] sm:$0xff]  ;;  %v14902_v8 = vrot.slane %v14878_v51, 11  ;;  %v11518_v16 = vsel %vm19079_vm7, %v11516_v37, %v11517_v50  ;;  %v15180_v37 = vld [vmem:[%s18945_s8 + $0x98] sm:$0xf] }
 0x2ee   : > { %v5463_v31 = vrot.slane %v14879_v6, 7  ;;  %v11528_v48 = vrot.slane %v15177_v20, 6  ;;  %v15808_v15 = vrot.slane %v15777_v57, 10  ;;  %v11524_v23 = vrot.slane %v15778_v59, 6  ;;  %v14883_v20 = vld [vmem:[%s18945_s8 + $0xc8] sm:$0x7] }
 0x2ef   : > { %v5457_v46 = vsel %vm19038_vm6, %v5455_v49, %v5456_v14  ;;  %v15781_v57 = vld [vmem:[%s18945_s8 + $0x94] sm:$0xc]  ;;  %v11535_v59 = vrot.slane %v15180_v37, 6 }
 0x2f0   : > { %17584 = vmatmul.mubr.msk.bf16.gmra.mrb[44].mxu1 %vm560_vm1, %v24138_v4  ;;  %v11530_v51 = vrot.slane %v11528_v48, 4 }
 0x2f1   : > { %17587 = vmatprep.mubr.msk.bf16.mxu1 %vm560_vm1, %v24139_v30 }
 0x2f3   : > { %17090 = vmatmul.mubr.msk.bf16.gmra.mrb[92].mxu0 %vm4695_vm5, %v24142_v62  ;;  %v15775_v62 = vld [vmem:[%s18945_s8 + $0x64] sm:$0xc] }
 0x2f4   : > { %17095 = vmatprep.mubr.msk.bf16.mxu0 %vm560_vm1, %v14911_v58  ;;  %v24145_v58 = vld [vmem:[#allocation18_spill] sm:$0xff]  ;;  %v15807_v17 = vrot.slane %v15775_v62, 10 }
 0x2f5   : > { %v21621_v62 = vld [vmem:[%s18945_s8 + $0xc4] sm:$0xf] }
 0x2f6   : > { %v11515_v2 = vsel %vm19079_vm7, %v15807_v17, %v11514_v7  ;;  %v5454_v7 = vsel %vm19038_vm6, %v14901_v56, %v5453_v41  ;;  %v14882_v41 = vld [vmem:[%s18945_s8 + $0xc0] sm:$0x8]  ;;  %v14903_v56 = vrot.slane %v14880_v9, 11  ;;  %v15783_v9 = vld [vmem:[%s18945_s8 + $0xa4] sm:$0xc] }
 0x2f7   : > { %v15824_v63 = vcombine.low %v11515_v2, %v11518_v16  ;;  %v14918_v2 = vcombine.low %v5454_v7, %v5457_v46  ;;  %v21651_v7 = vld [vmem:[%s18945_s8 + $0xd4] sm:$0xf] }
 0x2f8   : > { %17588 = vmatmul.mubr.msk.bf16.gmra.mrb[48].mxu1 %vm560_vm1, %v24143_v42 }
 0x2f9   : > { %17591 = vmatprep.mubr.msk.bf16.mxu1 %vm560_vm1, %v24144_v47 }
 0x2fb   : > { %17096 = vmatmul.mubr.msk.bf16.vlgmr.msra.gmra.mrb[96].mxu0 %vm560_vm1, %v14912_v18  ;;  %v15174_v18 = vld [vmem:[%s18945_s8 + $0x78] sm:$0xf] }
 0x2fc   : > { %17128 = vmatpush3.bf16.msra.mxu0 %v5873_v26  ;;  %17099 = vmatprep.mubr.msk.bf16.mxu0 %vm560_vm1, %v14913_v21  ;;  %v5450_v21 = vsel %vm19038_vm6, %v5448_v38, %v5449_v40  ;;  %v5460_v26 = vrot.slane %v21584_v11, 7  ;;  %v11521_v33 = vrot.slane %v15174_v18, 6  ;;  %v5467_v38 = vrot.slane %v21605_v60, 7  ;;  %v15780_v40 = vld [vmem:[%s18945_s8 + $0x8c] sm:$0x3] }
 0x2fd   : > { %18651 = vmatprep.subr.msk.bf16.mxu0 %vm609_vm0, %v21553_v19  ;;  %v14917_v3 = vcombine.low %v5447_v53, %v5450_v21  ;;  %v14881_v53 = vld [vmem:[%s18945_s8 + $0xb8] sm:$0x7]  ;;  %v15809_v21 = vrot.slane %v15779_v5, 10  ;;  %v11531_v6 = vrot.slane %v15780_v40, 6  ;;  %v15782_v5 = vld [vmem:[%s18945_s8 + $0x9c] sm:$0x3] }
 0x2fe   : > { %v11523_v17 = vrot.slane %v11521_v33, 4  ;;  %v5461_v18 = vsel %vm19038_vm6, %v14902_v8, %v5460_v26  ;;  %v5469_v49 = vrot.slane %v5467_v38, 4  ;;  %v5470_v14 = vrot.slane %v14881_v53, 7  ;;  %v24149_v8 = vld [vmem:[#allocation2_spill] sm:$0xff] }
 0x2ff   : > { %v14904_v40 = vrot.slane %v14882_v41, 11  ;;  %v11538_v37 = vrot.slane %v15782_v5, 6  ;;  %v14884_v41 = vld [vmem:[%s18945_s8 + $0xd0] sm:$0x8] }
 0x300   : > { %17592 = vmatmul.mubr.msk.bf16.gmra.mrb[52].mxu1 %vm560_vm1, %v24145_v58  ;;  %v11525_v16 = vsel %vm19079_vm7, %v11523_v17, %v11524_v23  ;;  %v5468_v23 = vsel %vm19038_vm6, %v14903_v56, %v5467_v38  ;;  %v15784_v17 = vld [vmem:[%s18945_s8 + $0xac] sm:$0x3]  ;;  %v15811_v56 = vrot.slane %v15783_v9, 10  ;;  %v15785_v9 = vld [vmem:[%s18945_s8 + $0xb4] sm:$0xc] }
 0x301   : > { %17595 = vmatprep.mubr.msk.bf16.mxu1 %vm560_vm1, %v24146_v35 }
 0x303   : > { %17100 = vmatmul.mubr.msk.bf16.gmra.mrb[100].mxu0 %vm560_vm1, %v14914_v13  ;;  %v24148_v13 = vld [vmem:[#allocation21_spill] sm:$0xff] }
 0x304   : > { %17103 = vmatprep.mubr.msk.bf16.mxu0 %vm560_vm1, %v14915_v45  ;;  %v5462_v45 = vrot.slane %v5460_v26, 4  ;;  %v11522_v26 = vsel %vm19079_vm7, %v15808_v15, %v11521_v33  ;;  %v11532_v33 = vsel %vm19079_vm7, %v11530_v51, %v11531_v6  ;;  %v5477_v15 = vrot.slane %v14883_v20, 7  ;;  %v14885_v20 = vld [vmem:[%s18945_s8 + $0xd8] sm:$0x7] }
 0x305   : > { %v15825_v51 = vcombine.low %v11522_v26, %v11525_v16  ;;  %v14905_v16 = vrot.slane %v14884_v41, 11 }
 0x306   : > { %v5464_v50 = vsel %vm19038_vm6, %v5462_v45, %v5463_v31  ;;  %v11529_v31 = vsel %vm19079_vm7, %v15809_v21, %v11528_v48  ;;  %v5471_v48 = vsel %vm19038_vm6, %v5469_v49, %v5470_v14  ;;  %v11537_v21 = vrot.slane %v11535_v59, 4  ;;  %v15186_v49 = vld [vmem:[%s18945_s8 + $0xb8] sm:$0xf] }
 0x307   : > { %v14919_v45 = vcombine.low %v5461_v18, %v5464_v50  ;;  %v21663_v18 = vld [vmem:[%s18945_s8 + $0xe4] sm:$0xf]  ;;  %v5481_v50 = vrot.slane %v21651_v7, 7  ;;  %v15826_v38 = vcombine.low %v11529_v31, %v11532_v33  ;;  %v14920_v26 = vcombine.low %v5468_v23, %v5471_v48  ;;  %v15189_v31 = vld [vmem:[%s18945_s8 + $0xc8] sm:$0xf] }
 0x308   : > { %17596 = vmatmul.mubr.msk.bf16.gmra.mrb[56].mxu1 %vm560_vm1, %v24147_v28  ;;  %v5488_v5 = vrot.slane %v21663_v18, 7  ;;  %v11539_v33 = vsel %vm19079_vm7, %v11537_v21, %v11538_v37  ;;  %v21689_v23 = vld [vmem:[%s23899_s2 + $0x64] sm:$0xf]  ;;  %v21696_v21 = vld [vmem:[%s18945_s8 + $0xf4] sm:$0xf] }
 0x309   : > { %17599 = vmatprep.mubr.msk.bf16.mxu1 %vm560_vm1, %v24148_v13 }
 0x30a   : > { %v5490_v41 = vrot.slane %v5488_v5, 4 }
 0x30b   : > { %17104 = vmatmul.mubr.msk.bf16.gmra.mrb[104].mxu0 %vm560_vm1, %v14916_v29  ;;  %v5474_v29 = vrot.slane %v21621_v62, 7 }
 0x30c   : > { %17107 = vmatprep.mubr.msk.bf16.mxu0 %vm560_vm1, %v14917_v3  ;;  %v15183_v3 = vld [vmem:[%s18945_s8 + $0xa8] sm:$0xf] }
 0x30d   : > { %v5476_v46 = vrot.slane %v5474_v29, 4  ;;  %v11542_v53 = vrot.slane %v15183_v3, 6  ;;  %v5475_v6 = vsel %vm19038_vm6, %v14904_v40, %v5474_v29  ;;  %v12085_v29 = vsel %vm609_vm0, %v21447_v0, 0 }
 0x30f   : > { %v5478_v14 = vsel %vm19038_vm6, %v5476_v46, %v5477_v15  ;;  %v11544_v3 = vrot.slane %v11542_v53, 4  ;;  %v5483_v46 = vrot.slane %v5481_v50, 4  ;;  %v5484_v15 = vrot.slane %v14885_v20, 7 }
 0x310   : > { %17600 = vmatmul.mubr.msk.bf16.gmra.mrb[60].mxu1 %vm560_vm1, %v24149_v8  ;;  %v14921_v48 = vcombine.low %v5475_v6, %v5478_v14  ;;  %v11543_v0 = vsel %vm19079_vm7, %v15811_v56, %v11542_v53  ;;  %v15787_v8 = vld [vmem:[%s18945_s8 + $0xc4] sm:$0xc]  ;;  %v5482_v53 = vsel %vm19038_vm6, %v14905_v16, %v5481_v50  ;;  %v15788_v56 = vld [vmem:[%s18945_s8 + $0xcc] sm:$0x3]  ;;  %v15812_v14 = vrot.slane %v15785_v9, 10 }
 0x311   : > { %17605 = vmatprep.mubr.msk.bf16.mxu1 %vm560_vm1, %v15824_v63  ;;  %v15810_v63 = vrot.slane %v15781_v57, 10  ;;  %v14886_v57 = vld [vmem:[%s18945_s8 + $0xe0] sm:$0x8] }
 0x313   : > { %17108 = vmatmul.mubr.msk.bf16.gmra.mrb[108].mxu0 %vm560_vm1, %v14918_v2  ;;  %v11545_v2 = vrot.slane %v15784_v17, 6  ;;  %v11536_v40 = vsel %vm19079_vm7, %v15810_v63, %v11535_v59  ;;  %v15786_v59 = vld [vmem:[%s18945_s8 + $0xbc] sm:$0x3]  ;;  %v11549_v17 = vrot.slane %v15186_v49, 6  ;;  %v14906_v63 = vrot.slane %v14886_v57, 11 }
 0x314   : > { %17111 = vmatprep.mubr.msk.bf16.mxu0 %vm560_vm1, %v14919_v45  ;;  %v14887_v45 = vld [vmem:[%s18945_s8 + $0xe8] sm:$0x7]  ;;  %v15827_v6 = vcombine.low %v11536_v40, %v11539_v33  ;;  %v21706_v49 = vld [vmem:[%s18945_s8 + $0x104] sm:$0xf]  ;;  %v11559_v33 = vrot.slane %v15788_v56, 6 }
 0x315   : > { %v11546_v37 = vsel %vm19079_vm7, %v11544_v3, %v11545_v2  ;;  %v5491_v20 = vrot.slane %v14887_v45, 7  ;;  %v11552_v3 = vrot.slane %v15786_v59, 6  ;;  %v5495_v2 = vrot.slane %v21696_v21, 7  ;;  %v14888_v45 = vld [vmem:[%s18945_s8 + $0xf0] sm:$0x8] }
 0x316   : > { %v15828_v50 = vcombine.low %v11543_v0, %v11546_v37  ;;  %v11551_v57 = vrot.slane %v11549_v17, 4  ;;  %v5489_v16 = vsel %vm19038_vm6, %v14906_v63, %v5488_v5  ;;  %v14891_v0 = vld [vmem:[%s18945_s8 + $0x108] sm:$0x7]  ;;  %v11550_v5 = vsel %vm19079_vm7, %v15812_v14, %v11549_v17  ;;  %v15789_v56 = vld [vmem:[%s18945_s8 + $0xd4] sm:$0xc] }
 0x317   : > { %v14907_v59 = vrot.slane %v14888_v45, 11  ;;  %v5497_v63 = vrot.slane %v5495_v2, 4  ;;  %v15195_v37 = vld [vmem:[%s18945_s8 + $0xe8] sm:$0xf]  ;;  %v5505_v45 = vrot.slane %v14891_v0, 7 }
 0x318   : > { %17606 = vmatmul.mubr.msk.bf16.vlgmr.msra.gmra.mrb[32].mxu1 %vm560_vm1, %v15825_v51  ;;  %v11556_v51 = vrot.slane %v15189_v31, 6  ;;  %v14889_v31 = vld [vmem:[%s18945_s8 + $0xf8] sm:$0x7] }
 0x319   : > { %17609 = vmatprep.mubr.msk.bf16.mxu1 %vm560_vm1, %v15826_v38  ;;  %17638 = vmatpush3.bf16.msra.mxu1 %v12085_v29  ;;  %v5485_v38 = vsel %vm19038_vm6, %v5483_v46, %v5484_v15  ;;  %v5492_v29 = vsel %vm19038_vm6, %v5490_v41, %v5491_v20  ;;  %v15192_v46 = vld [vmem:[%s18945_s8 + $0xd8] sm:$0xf]  ;;  %v5502_v15 = vrot.slane %v21706_v49, 7  ;;  %v11553_v41 = vsel %vm19079_vm7, %v11551_v57, %v11552_v3  ;;  %v21739_v3 = vld [vmem:[%s18945_s8 + $0x114] sm:$0xf] }
 0x31a   : > { %18666 = vmatprep.subr.msk.bf16.mxu1 %vm609_vm0, %v21689_v23  ;;  %v11558_v40 = vrot.slane %v11556_v51, 4  ;;  %v14922_v9 = vcombine.low %v5482_v53, %v5485_v38  ;;  %v14923_v20 = vcombine.low %v5489_v16, %v5492_v29  ;;  %v15790_v38 = vld [vmem:[%s18945_s8 + $0xdc] sm:$0x3]  ;;  %v11563_v13 = vrot.slane %v15192_v46, 6  ;;  %v14892_v46 = vld [vmem:[%s18945_s8 + $0x110] sm:$0x8] }
 0x31b   : > { %17112 = vmatmul.mubr.msk.bf16.gmra.mrb[112].mxu0 %vm560_vm1, %v14920_v26  ;;  %v15813_v26 = vrot.slane %v15787_v8, 10  ;;  %v5498_v8 = vrot.slane %v14889_v31, 7  ;;  %v11570_v57 = vrot.slane %v15195_v37, 6  ;;  %v15814_v16 = vrot.slane %v15789_v56, 10  ;;  %v15791_v31 = vld [vmem:[%s18945_s8 + $0xe4] sm:$0xc] }
 0x31c   : > { %17115 = vmatprep.mubr.msk.bf16.mxu0 %vm560_vm1, %v14921_v48  ;;  %v14890_v48 = vld [vmem:[%s18945_s8 + $0x100] sm:$0x8]  ;;  %v11560_v17 = vsel %vm19079_vm7, %v11558_v40, %v11559_v33  ;;  %v15829_v29 = vcombine.low %v11550_v5, %v11553_v41  ;;  %v11566_v33 = vrot.slane %v15790_v38, 6  ;;  %v11565_v0 = vrot.slane %v11563_v13, 4  ;;  %v15793_v56 = vld [vmem:[%s18945_s8 + $0xf4] sm:$0xc] }
 0x31d   : > { %v11557_v53 = vsel %vm19079_vm7, %v15813_v26, %v11556_v51  ;;  %v14908_v14 = vrot.slane %v14890_v48, 11  ;;  %v5496_v51 = vsel %vm19038_vm6, %v14907_v59, %v5495_v2  ;;  %v15792_v26 = vld [vmem:[%s18945_s8 + $0xec] sm:$0x3]  ;;  %v15198_v48 = vld [vmem:[%s18945_s8 + $0xf8] sm:$0xf]  ;;  %v15815_v41 = vrot.slane %v15791_v31, 10 }
 0x31e   : > { %v15830_v40 = vcombine.low %v11557_v53, %v11560_v17  ;;  %v14797_v5 = vld [vmem:[%s18945_s8 + $0x20] sm:$0xe]  ;;  %v11573_v53 = vrot.slane %v15792_v26, 6  ;;  %v14799_v38 = vld [vmem:[%s18945_s8 + $0x28] sm:$0x1]  ;;  %v11564_v17 = vsel %vm19079_vm7, %v15814_v16, %v11563_v13  ;;  %v11577_v28 = vrot.slane %v15198_v48, 6 }
 0x31f   : > { %v5503_v2 = vsel %vm19038_vm6, %v14908_v14, %v5502_v15  ;;  %v14845_v31 = vrot.slane %v14797_v5, 9  ;;  %v5229_v16 = vrot.slane %v14799_v38, 5  ;;  %v11571_v26 = vsel %vm19079_vm7, %v15815_v41, %v11570_v57  ;;  %v14800_v41 = vld [vmem:[%s18945_s8 + $0x30] sm:$0xe] }
 0x320   : > { %17610 = vmatmul.mubr.msk.bf16.gmra.mrb[36].mxu1 %vm560_vm1, %v15827_v6  ;;  %v5504_v6 = vrot.slane %v5502_v15, 4  ;;  %v15201_v15 = vld [vmem:[%s18945_s8 + $0x108] sm:$0xf] }
 0x321   : > { %17613 = vmatprep.mubr.msk.bf16.mxu1 %vm560_vm1, %v15828_v50  ;;  %v5499_v50 = vsel %vm19038_vm6, %v5497_v63, %v5498_v8  ;;  %v14893_v63 = vld [vmem:[%s18945_s8 + $0x118] sm:$0x7]  ;;  %v5226_v8 = vrot.slane %v21468_v25, 5  ;;  %v11584_v48 = vrot.slane %v15201_v15, 6  ;;  %v14803_v15 = vld [vmem:[%s18945_s8 + $0x40] sm:$0xe] }
 0x322   : > { %v5506_v59 = vsel %vm19038_vm6, %v5504_v6, %v5505_v45  ;;  %v14924_v37 = vcombine.low %v5496_v51, %v5499_v50  ;;  %v14909_v6 = vrot.slane %v14892_v46, 11  ;;  %v5512_v45 = vrot.slane %v14893_v63, 7  ;;  %v15794_v51 = vld [vmem:[%s18945_s8 + $0xfc] sm:$0x3]  ;;  %v23528_v46 = vld [vmem:[%s23900_s3 + $0x7] ss:$0 sm:$0xff] }
 0x323   : > { %17116 = vmatmul.mubr.msk.bf16.gmra.mrb[116].mxu0 %vm560_vm1, %v14922_v9  ;;  %v5509_v9 = vrot.slane %v21739_v3, 7  ;;  %v14925_v14 = vcombine.low %v5503_v2, %v5506_v59  ;;  %v11567_v50 = vsel %vm19079_vm7, %v11565_v0, %v11566_v33  ;;  %v5228_v13 = vrot.slane %v5226_v8, 4  ;;  %v15796_v59 = vld [vmem:[%s18945_s8 + $0x10c] sm:$0x3] }
 0x324   : > { %17119 = vmatprep.mubr.msk.bf16.mxu0 %vm560_vm1, %v14923_v20  ;;  %v11572_v20 = vrot.slane %v11570_v57, 4  ;;  %v15816_v33 = vrot.slane %v15793_v56, 10  ;;  %v11579_v0 = vrot.slane %v11577_v28, 4  ;;  %v11580_v2 = vrot.slane %v15794_v51, 6 }
 0x325   : > { %v5511_v25 = vrot.slane %v5509_v9, 4  ;;  %v15831_v57 = vcombine.low %v11564_v17, %v11567_v50  ;;  %v5510_v63 = vsel %vm19038_vm6, %v14909_v6, %v5509_v9  ;;  %v5227_v56 = vsel %vm21775_vm12, %v14845_v31, %v5226_v8  ;;  %v15204_v17 = vld [vmem:[%s18945_s8 + $0x118] sm:$0xf]  ;;  %v15207_v31 = vld [vmem:[%s18945_s8 + $0x128] sm:$0xf] }
 0x326   : > { %v5230_v38 = vsel %vm21775_vm12, %v5228_v13, %v5229_v16  ;;  %v5240_v9 = vrot.slane %v21489_v34, 5  ;;  %v11586_v6 = vrot.slane %v11584_v48, 4  ;;  %v11581_v8 = vsel %vm19079_vm7, %v11579_v0, %v11580_v2 }
 0x327   : > { %v5513_v5 = vsel %vm19038_vm6, %v5511_v25, %v5512_v45  ;;  %v11587_v25 = vrot.slane %v15796_v59, 6  ;;  %v14805_v45 = vld [vmem:[%s18945_s8 + $0x48] sm:$0x1]  ;;  %v14846_v50 = vrot.slane %v14800_v41, 9  ;;  %v14943_v13 = vcombine.low %v5227_v56, %v5230_v38  ;;  %v15800_v56 = vld [vmem:[%s18945_s8 + $0x12c] sm:$0x3] }
 0x328   : > { %17614 = vmatmul.mubr.msk.bf16.gmra.mrb[40].mxu1 %vm560_vm1, %v15829_v29  ;;  %v11574_v29 = vsel %vm19079_vm7, %v11572_v20, %v11573_v53  ;;  %v14802_v20 = vld [vmem:[%s18945_s8 + $0x38] sm:$0x1]  ;;  %v14926_v51 = vcombine.low %v5510_v63, %v5513_v5  ;;  %v14847_v59 = vrot.slane %v14803_v15, 9  ;;  %v5247_v15 = vrot.slane %v21514_v39, 5 }
 0x329   : > { %17617 = vmatprep.mubr.msk.bf16.mxu1 %vm560_vm1, %v15830_v40  ;;  %v15795_v40 = vld [vmem:[%s18945_s8 + $0x104] sm:$0xc]  ;;  %v15832_v53 = vcombine.low %v11571_v26, %v11574_v29  ;;  %v5236_v34 = vrot.slane %v14802_v20, 5  ;;  %v15797_v26 = vld [vmem:[%s18945_s8 + $0x114] sm:$0xc]  ;;  %v11591_v29 = vrot.slane %v15204_v17, 6  ;;  %v11588_v2 = vsel %vm19079_vm7, %v11586_v6, %v11587_v25 }
 0x32a   : > { %v15818_v41 = vrot.slane %v15797_v26, 10  ;;  %v14806_v20 = vld [vmem:[%s18945_s8 + $0x50] sm:$0xe]  ;;  %v6343_v39 = vsel %vm609_vm0, %v21553_v19, 0 }
 0x32b   : > { %17120 = vmatmul.mubr.msk.bf16.gmra.mrb[120].mxu0 %vm560_vm1, %v14924_v37  ;;  %v5233_v37 = vrot.slane %v21486_v12, 5  ;;  %v11578_v12 = vsel %vm19079_vm7, %v15816_v33, %v11577_v28  ;;  %v5242_v28 = vrot.slane %v5240_v9, 4  ;;  %v5243_v33 = vrot.slane %v14805_v45, 5  ;;  %v14808_v45 = vld [vmem:[%s18945_s8 + $0x58] sm:$0x1] }
 0x32c   : > { %17123 = vmatprep.mubr.msk.bf16.mxu0 %vm560_vm1, %v14925_v14  ;;  %v15817_v14 = vrot.slane %v15795_v40, 10  ;;  %v15798_v40 = vld [vmem:[%s18945_s8 + $0x11c] sm:$0x3]  ;;  %v15833_v63 = vcombine.low %v11578_v12, %v11581_v8  ;;  %v11593_v38 = vrot.slane %v11591_v29, 4  ;;  %v5254_v12 = vrot.slane %v21517_v44, 5 }
 0x32d   : > { %v5235_v16 = vrot.slane %v5233_v37, 4  ;;  %v5234_v5 = vsel %vm21775_vm12, %v14846_v50, %v5233_v37  ;;  %v11594_v17 = vrot.slane %v15798_v40, 6  ;;  %v5241_v37 = vsel %vm21775_vm12, %v14847_v59, %v5240_v9  ;;  %v15801_v9 = vld [vmem:[%s18945_s8 + $0x134] sm:$0xc]  ;;  %v15213_v40 = vld [vmem:[%s18945_s8 + $0x148] sm:$0xf] }
 0x32e   : > { %v11585_v0 = vsel %vm19079_vm7, %v15817_v14, %v11584_v48  ;;  %v15210_v14 = vld [vmem:[%s18945_s8 + $0x138] sm:$0xf]  ;;  %v5244_v25 = vsel %vm21775_vm12, %v5242_v28, %v5243_v33  ;;  %v14848_v44 = vrot.slane %v14806_v20, 9  ;;  %v5249_v28 = vrot.slane %v5247_v15, 4  ;;  %v15803_v20 = vld [vmem:[%s18945_s8 + $0x144] sm:$0xc] }
 0x32f   : > { %v5237_v48 = vsel %vm21775_vm12, %v5235_v16, %v5236_v34  ;;  %v15834_v6 = vcombine.low %v11585_v0, %v11588_v2  ;;  %v11592_v34 = vsel %vm19079_vm7, %v15818_v41, %v11591_v29  ;;  %v11605_v26 = vrot.slane %v15210_v14, 6  ;;  %v15802_v0 = vld [vmem:[%s18945_s8 + $0x13c] sm:$0x3]  ;;  %v15804_v14 = vld [vmem:[%s18945_s8 + $0x14c] sm:$0x3] }
 0x330   : > { %17618 = vmatmul.mubr.msk.bf16.gmra.mrb[44].mxu1 %vm560_vm1, %v15831_v57  ;;  %v11598_v57 = vrot.slane %v15207_v31, 6  ;;  %v11601_v31 = vrot.slane %v15800_v56, 6  ;;  %v14944_v16 = vcombine.low %v5234_v5, %v5237_v48  ;;  %v14945_v59 = vcombine.low %v5241_v37, %v5244_v25  ;;  %v21849_v56 = vld [vmem:[%s23899_s2 + $0x30] sm:$0xf] }
 0x331   : > { %17621 = vmatprep.mubr.msk.bf16.mxu1 %vm560_vm1, %v15832_v53  ;;  %v15799_v53 = vld [vmem:[%s18945_s8 + $0x124] sm:$0xc]  ;;  %v5250_v33 = vrot.slane %v14808_v45, 5  ;;  %v11595_v19 = vsel %vm19079_vm7, %v11593_v38, %v11594_v17  ;;  %v5256_v5 = vrot.slane %v5254_v12, 4  ;;  %v15820_v48 = vrot.slane %v15801_v9, 10 }
 0x332   : > { %v15819_v8 = vrot.slane %v15799_v53, 10  ;;  %v11600_v50 = vrot.slane %v11598_v57, 4  ;;  %v11612_v53 = vrot.slane %v15213_v40, 6  ;;  %v11607_v38 = vrot.slane %v11605_v26, 4  ;;  %v14812_v25 = vld [vmem:[%s18945_s8 + $0x70] sm:$0xe] }
 0x333   : > { %17124 = vmatmul.mubr.msk.bf16.gmra.mrb[124].mxu0 %vm560_vm1, %v14926_v51  ;;  %v14809_v51 = vld [vmem:[%s18945_s8 + $0x60] sm:$0xe]  ;;  %v11608_v17 = vrot.slane %v15802_v0, 6  ;;  %v5251_v37 = vsel %vm21775_vm12, %v5249_v28, %v5250_v33  ;;  %v14814_v45 = vld [vmem:[%s18945_s8 + $0x78] sm:$0x1]  ;;  %v11615_v9 = vrot.slane %v15804_v14, 6 }
 0x334   : > { %17129 = vmatprep.mubr.msk.bf16.mxu0 %vm560_vm1, %v14943_v13  ;;  %v14811_v13 = vld [vmem:[%s18945_s8 + $0x68] sm:$0x1]  ;;  %v14849_v2 = vrot.slane %v14809_v51, 9  ;;  %v11599_v41 = vsel %vm19079_vm7, %v15819_v8, %v11598_v57  ;;  %v15835_v57 = vcombine.low %v11592_v34, %v11595_v19  ;;  %v5261_v51 = vrot.slane %v21545_v1, 5  ;;  %v15805_v0 = vld [vmem:[%s18945_s8 + $0x154] sm:$0xc] }
 0x335   : > { %v5257_v29 = vrot.slane %v14811_v13, 5  ;;  %v15216_v13 = vld [vmem:[%s18945_s8 + $0x158] sm:$0xf]  ;;  %v11614_v34 = vrot.slane %v11612_v53, 4  ;;  %v14817_v1 = vld [vmem:[%s18945_s8 + $0x88] sm:$0x1] }
 0x336   : > { %v5264_v33 = vrot.slane %v14814_v45, 5  ;;  %v11619_v19 = vrot.slane %v15216_v13, 6  ;;  %v14818_v45 = vld [vmem:[%s18945_s8 + $0x90] sm:$0xe] }
 0x338   : > { %17622 = vmatmul.mubr.msk.bf16.gmra.mrb[48].mxu1 %vm560_vm1, %v15833_v63  ;;  %v11602_v63 = vsel %vm19079_vm7, %v11600_v50, %v11601_v31  ;;  %v5255_v50 = vsel %vm21775_vm12, %v14849_v2, %v5254_v12  ;;  %v5258_v31 = vsel %vm21775_vm12, %v5256_v5, %v5257_v29  ;;  %v11606_v12 = vsel %vm19079_vm7, %v15820_v48, %v11605_v26  ;;  %v15806_v2 = vld [vmem:[%s18945_s8 + $0x15c] sm:$0x3] }
 0x339   : > { %17625 = vmatprep.mubr.msk.bf16.mxu1 %vm560_vm1, %v15834_v6  ;;  %v5248_v6 = vsel %vm21775_vm12, %v14848_v44, %v5247_v15  ;;  %v15836_v8 = vcombine.low %v11599_v41, %v11602_v63  ;;  %v15821_v15 = vrot.slane %v15803_v20, 10  ;;  %v14850_v44 = vrot.slane %v14812_v25, 9 }
 0x33a   : > { %v14946_v40 = vcombine.low %v5248_v6, %v5251_v37  ;;  %v14947_v28 = vcombine.low %v5255_v50, %v5258_v31  ;;  %v5271_v41 = vrot.slane %v14817_v1, 5  ;;  %v11616_v63 = vsel %vm19079_vm7, %v11614_v34, %v11615_v9  ;;  %v14821_v50 = vld [vmem:[%s18945_s8 + $0xa0] sm:$0xe]  ;;  %v14823_v31 = vld [vmem:[%s18945_s8 + $0xa8] sm:$0x1] }
 0x33b   : > { %17130 = vmatmul.mubr.msk.bf16.vlgmr.msra.gmra.mrb[96].mxu0 %vm560_vm1, %v14944_v16  ;;  %v14815_v16 = vld [vmem:[%s18945_s8 + $0x80] sm:$0xe]  ;;  %v11613_v26 = vsel %vm19079_vm7, %v15821_v15, %v11612_v53  ;;  %v5262_v48 = vsel %vm21775_vm12, %v14850_v44, %v5261_v51  ;;  %v11621_v14 = vrot.slane %v11619_v19, 4  ;;  %v5275_v53 = vrot.slane %v21577_v24, 5 }
 0x33c   : > { %17162 = vmatpush3.bf16.msra.mxu0 %v6343_v39  ;;  %17133 = vmatprep.mubr.msk.bf16.mxu0 %vm560_vm1, %v14945_v59  ;;  %v5268_v39 = vrot.slane %v21548_v52, 5  ;;  %v11609_v59 = vsel %vm19079_vm7, %v11607_v38, %v11608_v17  ;;  %v5263_v52 = vrot.slane %v5261_v51, 4  ;;  %v14851_v5 = vrot.slane %v14815_v16, 9 }
 0x33d   : > { %18652 = vmatprep.subr.msk.bf16.mxu0 %vm609_vm0, %v21849_v56  ;;  %v15837_v20 = vcombine.low %v11606_v12, %v11609_v59  ;;  %v15822_v38 = vrot.slane %v15805_v0, 10  ;;  %v15838_v6 = vcombine.low %v11613_v26, %v11616_v63  ;;  %v5282_v51 = vrot.slane %v21584_v11, 5 }
 0x33e   : > { %v5270_v29 = vrot.slane %v5268_v39, 4  ;;  %v5265_v17 = vsel %vm21775_vm12, %v5263_v52, %v5264_v33  ;;  %v5269_v37 = vsel %vm21775_vm12, %v14851_v5, %v5268_v39  ;;  %v14852_v15 = vrot.slane %v14818_v45, 9  ;;  %v18774_v52 = vld [vmem:[%s18945_s8 + $0xc0] sm:$0xff]  }
 0x33f   : > { %v14948_v13 = vcombine.low %v5262_v48, %v5265_v17  ;;  %v11620_v16 = vsel %vm19079_vm7, %v15822_v38, %v11619_v19  ;;  %v5277_v34 = vrot.slane %v5275_v53, 4  ;;  %v14853_v9 = vrot.slane %v14821_v50, 9  ;;  %v14824_v19 = vld [vmem:[%s18945_s8 + $0xb0] sm:$0xe] }
 0x340   : > { %17626 = vmatmul.mubr.msk.bf16.gmra.mrb[52].mxu1 %vm560_vm1, %v15835_v57  ;;  %v11622_v57 = vrot.slane %v15806_v2, 6  ;;  %v5272_v25 = vsel %vm21775_vm12, %v5270_v29, %v5271_v41  ;;  %v5284_v1 = vrot.slane %v5282_v51, 4  ;;  %v5276_v59 = vsel %vm21775_vm12, %v14852_v15, %v5275_v53  ;;  %v14826_v2 = vld [vmem:[%s18945_s8 + $0xb8] sm:$0x1]  ;;  %v14827_v29 = vld [vmem:[%s18945_s8 + $0xc0] sm:$0xe] }
 0x341   : > { %17629 = vmatprep.mubr.msk.bf16.mxu1 %vm560_vm1, %v15836_v8  ;;  %v14820_v8 = vld [vmem:[%s18945_s8 + $0x98] sm:$0x1]  ;;  %v14949_v24 = vcombine.low %v5269_v37, %v5272_v25  ;;  %v5283_v33 = vsel %vm21775_vm12, %v14853_v9, %v5282_v51  ;;  %v5296_v5 = vrot.slane %v21621_v62, 5  ;;  %v14829_v41 = vld [vmem:[%s18945_s8 + $0xc8] sm:$0x1]  ;;  %v5292_v48 = vrot.slane %v14826_v2, 5 }
 0x342   : > { %v5278_v39 = vrot.slane %v14820_v8, 5  ;;  %v11623_v11 = vsel %vm19079_vm7, %v11621_v14, %v11622_v57  ;;  %v14855_v38 = vrot.slane %v14827_v29, 9  ;;  %v5299_v14 = vrot.slane %v14829_v41, 5  ;;  %v18775_v62 = vld [vmem:[%s18945_s8 + $0xd0] sm:$0xff]   ;;  %v18776_v37 = vld [vmem:[%s18945_s8 + $0xe0] sm:$0xff]  }
 0x343   : > { %17134 = vmatmul.mubr.msk.bf16.gmra.mrb[100].mxu0 %vm560_vm1, %v14946_v40  ;;  %v5285_v40 = vrot.slane %v14823_v31, 5  ;;  %v15839_v12 = vcombine.low %v11620_v16, %v11623_v11  ;;  %v5298_v17 = vrot.slane %v5296_v5, 4  ;;  %v14830_v8 = vld [vmem:[%s18945_s8 + $0xd0] sm:$0xe]  ;;  %v14832_v51 = vld [vmem:[%s18945_s8 + $0xd8] sm:$0x1] }
 0x344   : > { %17137 = vmatprep.mubr.msk.bf16.mxu0 %vm560_vm1, %v14947_v28  ;;  %v5279_v44 = vsel %vm21775_vm12, %v5277_v34, %v5278_v39  ;;  %v5289_v28 = vrot.slane %v21605_v60, 5  ;;  %v14854_v60 = vrot.slane %v14824_v19, 9  ;;  %v5297_v25 = vsel %vm21775_vm12, %v14855_v38, %v5296_v5  ;;  %v14833_v31 = vld [vmem:[%s18945_s8 + $0xe0] sm:$0xe]  ;;  %v14841_v5 = vld [vmem:[%s18945_s8 + $0x108] sm:$0x1] }
 0x345   : > { %v5286_v0 = vsel %vm21775_vm12, %v5284_v1, %v5285_v40  ;;  %v14950_v26 = vcombine.low %v5276_v59, %v5279_v44  ;;  %v5300_v45 = vsel %vm21775_vm12, %v5298_v17, %v5299_v14  ;;  %v5310_v50 = vrot.slane %v21663_v18, 5  ;;  %v18777_v1 = vld [vmem:[%s18945_s8 + $0xf0] sm:$0xff]   ;;  %v18778_v44 = vld [vmem:[%s18945_s8 + $0x100] sm:$0xff]  }
 0x346   : > { %v14951_v63 = vcombine.low %v5283_v33, %v5286_v0  ;;  %v5290_v57 = vsel %vm21775_vm12, %v14854_v60, %v5289_v28  ;;  %v12587_v16 = vsel %vm609_vm0, %v21689_v23, 0  ;;  %v14953_v15 = vcombine.low %v5297_v25, %v5300_v45  ;;  %v14836_v33 = vld [vmem:[%s18945_s8 + $0xf0] sm:$0xe]  ;;  %v14838_v0 = vld [vmem:[%s18945_s8 + $0xf8] sm:$0x1] }
 0x347   : > { %v14856_v34 = vrot.slane %v14830_v8, 9  ;;  %v5306_v11 = vrot.slane %v14832_v51, 5  ;;  %v14857_v18 = vrot.slane %v14833_v31, 9  ;;  %v5312_v9 = vrot.slane %v5310_v50, 4  ;;  %v14839_v2 = vld [vmem:[%s18945_s8 + $0x100] sm:$0xe] }
 0x348   : > { %17630 = vmatmul.mubr.msk.bf16.gmra.mrb[56].mxu1 %vm560_vm1, %v15837_v20  ;;  %v5291_v20 = vrot.slane %v5289_v28, 4  ;;  %v5317_v59 = vrot.slane %v21696_v21, 5  ;;  %v5324_v19 = vrot.slane %v21706_v49, 5  ;;  %v14858_v41 = vrot.slane %v14836_v33, 9  ;;  %v14976_v49 = vld [vmem:[%s18945_s8 + $0x28] sm:$0xf] }
 0x349   : > { %17633 = vmatprep.mubr.msk.bf16.mxu1 %vm560_vm1, %v15838_v6  ;;  %v5303_v6 = vrot.slane %v21651_v7, 5  ;;  %v21947_v7 = vld [vmem:[%s23899_s2 + $0x68] sm:$0xf]  ;;  %v5311_v28 = vsel %vm21775_vm12, %v14857_v18, %v5310_v50  ;;  %v14859_v60 = vrot.slane %v14839_v2, 9  ;;  %v18779_v38 = vld [vmem:[%s18945_s8 + $0x110] sm:$0xff]   ;;  %v6134_v45 = vrot.slane %v14976_v49, 5 }
 0x34a   : > { %v5293_v53 = vsel %vm21775_vm12, %v5291_v20, %v5292_v48  ;;  %v5326_v20 = vrot.slane %v5324_v19, 4  ;;  %v5327_v48 = vrot.slane %v14841_v5, 5  ;;  %v5318_v17 = vsel %vm21775_vm12, %v14858_v41, %v5317_v59  ;;  %v14844_v25 = vld [vmem:[%s18945_s8 + $0x118] sm:$0x1]  ;;  %v14975_v8 = vld [vmem:[%s18945_s8 + $0x24] sm:$0xe] }
 0x34b   : > { %17138 = vmatmul.mubr.msk.bf16.gmra.mrb[104].mxu0 %vm560_vm1, %v14948_v13  ;;  %v14835_v13 = vld [vmem:[%s18945_s8 + $0xe8] sm:$0x1]  ;;  %v5305_v39 = vrot.slane %v5303_v6, 4  ;;  %v5304_v40 = vsel %vm21775_vm12, %v14856_v34, %v5303_v6  ;;  %v14977_v51 = vld [vmem:[%s18945_s8 + $0x2c] sm:$0x1]  ;;  %v18781_v18 = vld [vmem:[%s18945_s8 + $0x130] sm:$0xff]  }
 0x34c   : > { %17141 = vmatprep.mubr.msk.bf16.mxu0 %vm560_vm1, %v14949_v24  ;;  %v14952_v24 = vcombine.low %v5290_v57, %v5293_v53  ;;  %v5313_v23 = vrot.slane %v14835_v13, 5  ;;  %v18780_v57 = vld [vmem:[%s18945_s8 + $0x120] sm:$0xff]   ;;  %v5325_v53 = vsel %vm21775_vm12, %v14859_v60, %v5324_v19  ;;  %v5328_v6 = vsel %vm21775_vm12, %v5326_v20, %v5327_v48  ;;  %v14985_v60 = vld [vmem:[%s18945_s8 + $0x58] sm:$0xf]  ;;  %v14988_v20 = vld [vmem:[%s18945_s8 + $0x68] sm:$0xf] }
 0x34d   : > { %v14957_v31 = vcombine.low %v5325_v53, %v5328_v6  ;;  %v6137_v34 = vrot.slane %v14977_v51, 5  ;;  %v14981_v33 = vld [vmem:[%s18945_s8 + $0x44] sm:$0xe]  ;;  %v18783_v48 = vld [vmem:[%s18945_s8 + $0x150] sm:$0xff]   ;;  %v14986_v6 = vld [vmem:[%s18945_s8 + $0x5c] sm:$0x1] }
 0x34e   : > { %v15025_v41 = vrot.slane %v14981_v33, 9  ;;  %v14984_v53 = vld [vmem:[%s18945_s8 + $0x54] sm:$0xe]  ;;  %v14995_v33 = vld [vmem:[%s18945_s8 + $0x8c] sm:$0x1] }
 0x350   : > { %17634 = vmatmul.mubr.msk.bf16.gmra.mrb[60].mxu1 %vm560_vm1, %v15839_v12  ;;  %v5307_v12 = vsel %vm21775_vm12, %v5305_v39, %v5306_v11  ;;  %v14979_v39 = vld [vmem:[%s18945_s8 + $0x38] sm:$0xf]  ;;  %v14982_v11 = vld [vmem:[%s18945_s8 + $0x48] sm:$0xf] }
 0x351   : > { %17639 = vmatprep.mubr.msk.bf16.mxu1 %vm560_vm1, %v18774_v52  ;;  %v5314_v52 = vsel %vm21775_vm12, %v5312_v9, %v5313_v23  ;;  %v14954_v29 = vcombine.low %v5304_v40, %v5307_v12  ;;  %v18782_v40 = vld [vmem:[%s18945_s8 + $0x140] sm:$0xff]  }
 0x352   : > { %v14955_v21 = vcombine.low %v5311_v28, %v5314_v52  ;;  %v14980_v28 = vld [vmem:[%s18945_s8 + $0x3c] sm:$0x1]  ;;  %v6148_v52 = vrot.slane %v14982_v11, 5  ;;  %v22040_v11 = vld [vmem:[%s23899_s2 + $0x34] sm:$0xf] }
 0x353   : > { %17142 = vmatmul.mubr.msk.bf16.gmra.mrb[108].mxu0 %vm560_vm1, %v14950_v26  ;;  %v5319_v26 = vrot.slane %v5317_v59, 4 }
 0x354   : > { %17145 = vmatprep.mubr.msk.bf16.mxu0 %vm560_vm1, %v14951_v63  ;;  %v5320_v63 = vrot.slane %v14838_v0, 5  ;;  %v14983_v0 = vld [vmem:[%s18945_s8 + $0x4c] sm:$0x1] }
 0x356   : > { %v5321_v14 = vsel %vm21775_vm12, %v5319_v26, %v5320_v63  ;;  %v6150_v26 = vrot.slane %v6148_v52, 4  ;;  %v6151_v63 = vrot.slane %v14983_v0, 5  ;;  %v15922_v0 = vld [vmem:[%s18945_s8 + $0xc4] sm:$0xf] }
 0x357   : > { %v14956_v50 = vcombine.low %v5318_v17, %v5321_v14  ;;  %v6155_v17 = vrot.slane %v14985_v60, 5  ;;  %v18784_v14 = vld [vmem:[%s18945_s8 + $0x160] sm:$0xff]   ;;  %v6179_v60 = vrot.slane %v14995_v33, 5 }
 0x358   : > { %17640 = vmatmul.mubr.msk.bf16.vlgmr.msra.gmra.mrb[32].mxu1 %vm560_vm1, %v18775_v62  ;;  %v5331_v62 = vrot.slane %v21739_v3, 5  ;;  %v15927_v33 = vld [vmem:[%s18945_s8 + $0xe0] sm:$0x8] }
 0x359   : > { %17643 = vmatprep.mubr.msk.bf16.mxu1 %vm560_vm1, %v18776_v37  ;;  %17672 = vmatpush3.bf16.msra.mxu1 %v12587_v16  ;;  %v14842_v37 = vld [vmem:[%s18945_s8 + $0x110] sm:$0xe]  ;;  %v5334_v16 = vrot.slane %v14844_v25, 5  ;;  %v14987_v25 = vld [vmem:[%s18945_s8 + $0x64] sm:$0xe] }
 0x35a   : > { %18667 = vmatprep.subr.msk.bf16.mxu1 %vm609_vm0, %v21947_v7  ;;  %v14860_v3 = vrot.slane %v14842_v37, 9  ;;  %v5333_v13 = vrot.slane %v5331_v62, 4  ;;  %v6162_v37 = vrot.slane %v14988_v20, 5  ;;  %v15921_v20 = vld [vmem:[%s18945_s8 + $0xc0] sm:$0x8] }
 0x35b   : > { %17146 = vmatmul.mubr.msk.bf16.gmra.mrb[112].mxu0 %vm560_vm1, %v14952_v24  ;;  %v15023_v24 = vrot.slane %v14975_v8, 9 }
 0x35c   : > { %17149 = vmatprep.mubr.msk.bf16.mxu0 %vm560_vm1, %v14953_v15  ;;  %v6136_v15 = vrot.slane %v6134_v45, 4  ;;  %v5332_v9 = vsel %vm21775_vm12, %v14860_v3, %v5331_v62  ;;  %v5335_v23 = vsel %vm21775_vm12, %v5333_v13, %v5334_v16  ;;  %v6149_v62 = vsel %vm21775_vm12, %v15025_v41, %v6148_v52 }
 0x35d   : > { %v6135_v12 = vsel %vm21775_vm12, %v15023_v24, %v6134_v45  ;;  %v14958_v19 = vcombine.low %v5332_v9, %v5335_v23  ;;  %v14989_v45 = vld [vmem:[%s18945_s8 + $0x6c] sm:$0x1]  ;;  %v6158_v3 = vrot.slane %v14986_v6, 5  ;;  %v6813_v13 = vsel %vm609_vm0, %v21849_v56, 0  ;;  %v18785_v56 = vld [vmem:[%s18945_s8 + $0x170] sm:$0xff]  }
 0x35e   : > { %v6138_v59 = vsel %vm21775_vm12, %v6136_v15, %v6137_v34  ;;  %v15027_v16 = vrot.slane %v14987_v25, 9  ;;  %v6164_v24 = vrot.slane %v6162_v37, 4  ;;  %v6165_v15 = vrot.slane %v14989_v45, 5  ;;  %v14991_v34 = vld [vmem:[%s18945_s8 + $0x78] sm:$0xf] }
 0x35f   : > { %v15040_v2 = vcombine.low %v6135_v12, %v6138_v59  ;;  %v14990_v23 = vld [vmem:[%s18945_s8 + $0x74] sm:$0xe]  ;;  %v15969_v25 = vrot.slane %v15921_v20, 11 }
 0x360   : > { %17644 = vmatmul.mubr.msk.bf16.gmra.mrb[36].mxu1 %vm560_vm1, %v18777_v1  ;;  %v6141_v1 = vrot.slane %v14979_v39, 5  ;;  %v14994_v39 = vld [vmem:[%s18945_s8 + $0x88] sm:$0xf]  ;;  %v6163_v12 = vsel %vm21775_vm12, %v15027_v16, %v6162_v37  ;;  %v6166_v59 = vsel %vm21775_vm12, %v6164_v24, %v6165_v15  ;;  %v14998_v37 = vld [vmem:[%s18945_s8 + $0x9c] sm:$0x1]  ;;  %v18789_v20 = vld [vmem:[%s18945_s8 + $0x1b0] sm:$0xff]  }
 0x361   : > { %17647 = vmatprep.mubr.msk.bf16.mxu1 %vm560_vm1, %v18778_v44  ;;  %v14978_v44 = vld [vmem:[%s18945_s8 + $0x34] sm:$0xe]  ;;  %v6176_v52 = vrot.slane %v14994_v39, 5  ;;  %v15001_v24 = vld [vmem:[%s18945_s8 + $0xac] sm:$0x1] }
 0x362   : > { %v15024_v5 = vrot.slane %v14978_v44, 9  ;;  %v14992_v44 = vld [vmem:[%s18945_s8 + $0x7c] sm:$0x1]  ;;  %v15925_v45 = vld [vmem:[%s18945_s8 + $0xd4] sm:$0xf] }
 0x363   : > { %17150 = vmatmul.mubr.msk.bf16.gmra.mrb[116].mxu0 %vm560_vm1, %v14954_v29  ;;  %v6143_v29 = vrot.slane %v6141_v1, 4  ;;  %v15928_v15 = vld [vmem:[%s18945_s8 + $0xe4] sm:$0xf] }
 0x364   : > { %17153 = vmatprep.mubr.msk.bf16.mxu0 %vm560_vm1, %v14955_v21  ;;  %v6144_v21 = vrot.slane %v14980_v28, 5  ;;  %v6142_v49 = vsel %vm21775_vm12, %v15024_v5, %v6141_v1  ;;  %v6169_v1 = vrot.slane %v14991_v34, 5  ;;  %v14993_v28 = vld [vmem:[%s18945_s8 + $0x84] sm:$0xe]  ;;  %v15044_v5 = vcombine.low %v6163_v12, %v6166_v59  ;;  %v15003_v59 = vld [vmem:[%s18945_s8 + $0xb8] sm:$0xf] }
 0x365   : > { %v15029_v41 = vrot.slane %v14993_v28, 9 }
 0x367   : > { %v6177_v6 = vsel %vm21775_vm12, %v15029_v41, %v6176_v52 }
 0x368   : > { %17648 = vmatmul.mubr.msk.bf16.gmra.mrb[40].mxu1 %vm560_vm1, %v18779_v38  ;;  %v6145_v38 = vsel %vm21775_vm12, %v6143_v29, %v6144_v21  ;;  %v6171_v29 = vrot.slane %v6169_v1, 4  ;;  %v6172_v21 = vrot.slane %v14992_v44, 5 }
 0x369   : > { %17651 = vmatprep.mubr.msk.bf16.mxu1 %vm560_vm1, %v18780_v57  ;;  %v6152_v57 = vsel %vm21775_vm12, %v6150_v26, %v6151_v63  ;;  %v15041_v8 = vcombine.low %v6142_v49, %v6145_v38  ;;  %v14997_v26 = vld [vmem:[%s18945_s8 + $0x98] sm:$0xf]  ;;  %v6178_v63 = vrot.slane %v6176_v52, 4  ;;  %v15923_v49 = vld [vmem:[%s18945_s8 + $0xc8] sm:$0x7]  ;;  %v6193_v52 = vrot.slane %v15001_v24, 5 }
 0x36a   : > { %v15042_v51 = vcombine.low %v6149_v62, %v6152_v57  ;;  %v15000_v38 = vld [vmem:[%s18945_s8 + $0xa8] sm:$0xf]  ;;  %v18787_v62 = vld [vmem:[%s18945_s8 + $0x190] sm:$0xff]  }
 0x36b   : > { %17154 = vmatmul.mubr.msk.bf16.gmra.mrb[120].mxu0 %vm560_vm1, %v14956_v50  ;;  %v15026_v50 = vrot.slane %v14984_v53, 9  ;;  %v6173_v53 = vsel %vm21775_vm12, %v6171_v29, %v6172_v21  ;;  %v15006_v29 = vld [vmem:[%s18945_s8 + $0xc8] sm:$0xf] }
 0x36c   : > { %17157 = vmatprep.mubr.msk.bf16.mxu0 %vm560_vm1, %v14957_v31  ;;  %v6157_v31 = vrot.slane %v6155_v17, 4 }
 0x36e   : > { %v6159_v9 = vsel %vm21775_vm12, %v6157_v31, %v6158_v3  ;;  %v12381_v31 = vrot.slane %v15923_v49, 7  ;;  %v14999_v3 = vld [vmem:[%s18945_s8 + $0xa4] sm:$0xe] }
 0x36f   : > { %v15031_v12 = vrot.slane %v14999_v3, 9 }
 0x370   : > { %17652 = vmatmul.mubr.msk.bf16.gmra.mrb[44].mxu1 %vm560_vm1, %v18781_v18  ;;  %v6156_v18 = vsel %vm21775_vm12, %v15026_v50, %v6155_v17  ;;  %v14996_v17 = vld [vmem:[%s18945_s8 + $0x94] sm:$0xe] }
 0x371   : > { %17655 = vmatprep.mubr.msk.bf16.mxu1 %vm560_vm1, %v18782_v40  ;;  %v18786_v40 = vld [vmem:[%s18945_s8 + $0x180] sm:$0xff]   ;;  %v15030_v16 = vrot.slane %v14996_v17, 9  ;;  %v15971_v17 = vrot.slane %v15927_v33, 11 }
 0x373   : > { %17158 = vmatmul.mubr.msk.bf16.gmra.mrb[124].mxu0 %vm560_vm1, %v14958_v19  ;;  %v15043_v19 = vcombine.low %v6156_v18, %v6159_v9  ;;  %v15924_v18 = vld [vmem:[%s18945_s8 + $0xd0] sm:$0x8]  ;;  %v12385_v9 = vrot.slane %v15925_v45, 7 }
 0x374   : > { %17163 = vmatprep.mubr.msk.bf16.mxu0 %vm560_vm1, %v15040_v2  ;;  %v15028_v2 = vrot.slane %v14990_v23, 9 }
 0x375   : > { %v12387_v41 = vrot.slane %v12385_v9, 4 }
 0x376   : > { %v6170_v57 = vsel %vm21775_vm12, %v15028_v2, %v6169_v1  ;;  %v15970_v2 = vrot.slane %v15924_v18, 11  ;;  %v15009_v18 = vld [vmem:[%s18945_s8 + $0xd8] sm:$0xf] }
 0x377   : > { %v15045_v34 = vcombine.low %v6170_v57, %v6173_v53 }
 0x378   : > { %17656 = vmatmul.mubr.msk.bf16.gmra.mrb[48].mxu1 %vm560_vm1, %v18783_v48  ;;  %v12378_v48 = vrot.slane %v15922_v0, 7  ;;  %v12392_v0 = vrot.slane %v15928_v15, 7  ;;  %v12386_v45 = vsel %vm19038_vm6, %v15970_v2, %v12385_v9  ;;  %v15008_v2 = vld [vmem:[%s18945_s8 + $0xd4] sm:$0xe] }
 0x379   : > { %17659 = vmatprep.mubr.msk.bf16.mxu1 %vm560_vm1, %v18784_v14  ;;  %v6183_v14 = vrot.slane %v14997_v26, 5 }
 0x37a   : > { %v12380_v50 = vrot.slane %v12378_v48, 4  ;;  %v12379_v1 = vsel %vm19038_vm6, %v15969_v25, %v12378_v48  ;;  %v12394_v57 = vrot.slane %v12392_v0, 4 }
 0x37b   : > { %17164 = vmatmul.mubr.msk.bf16.vlgmr.msra.gmra.mrb[96].mxu0 %vm560_vm1, %v15041_v8  ;;  %v18788_v8 = vld [vmem:[%s18945_s8 + $0x1a0] sm:$0xff]   ;;  %v6185_v39 = vrot.slane %v6183_v14, 4 }
 0x37c   : > { %17196 = vmatpush3.bf16.msra.mxu0 %v6813_v13  ;;  %17167 = vmatprep.mubr.msk.bf16.mxu0 %vm560_vm1, %v15042_v51  ;;  %v6180_v51 = vsel %vm21775_vm12, %v6178_v63, %v6179_v60  ;;  %v6190_v13 = vrot.slane %v15000_v38, 5  ;;  %v12382_v44 = vsel %vm19038_vm6, %v12380_v50, %v12381_v31  ;;  %v15002_v63 = vld [vmem:[%s18945_s8 + $0xb4] sm:$0xe]  ;;  %v6197_v60 = vrot.slane %v15003_v59, 5  ;;  %v15004_v38 = vld [vmem:[%s18945_s8 + $0xbc] sm:$0x1] }
 0x37d   : > { %18653 = vmatprep.subr.msk.bf16.mxu0 %vm609_vm0, %v22040_v11  ;;  %v15046_v23 = vcombine.low %v6177_v6, %v6180_v51  ;;  %v15986_v48 = vcombine.low %v12379_v1, %v12382_v44  ;;  %v15005_v6 = vld [vmem:[%s18945_s8 + $0xc4] sm:$0xe]  ;;  %v15007_v51 = vld [vmem:[%s18945_s8 + $0xcc] sm:$0x1] }
 0x37e   : > { %v6192_v28 = vrot.slane %v6190_v13, 4  ;;  %v6191_v49 = vsel %vm21775_vm12, %v15031_v12, %v6190_v13  ;;  %v15934_v50 = vld [vmem:[%s18945_s8 + $0x104] sm:$0xf]  ;;  %v6199_v3 = vrot.slane %v6197_v60, 4  ;;  %v6200_v13 = vrot.slane %v15004_v38, 5 }
 0x37f   : > { %v6207_v1 = vrot.slane %v15007_v51, 5  ;;  %v12406_v12 = vrot.slane %v15934_v50, 7  ;;  %v15011_v38 = vld [vmem:[%s18945_s8 + $0xe4] sm:$0xe] }
 0x380   : > { %17660 = vmatmul.mubr.msk.bf16.gmra.mrb[52].mxu1 %vm560_vm1, %v18785_v56  ;;  %v6186_v56 = vrot.slane %v14998_v37, 5  ;;  %v6204_v37 = vrot.slane %v15006_v29, 5  ;;  %v6201_v33 = vsel %vm21775_vm12, %v6199_v3, %v6200_v13  ;;  %v15035_v13 = vrot.slane %v15011_v38, 9  ;;  %v15946_v38 = vld [vmem:[%s18945_s8 + $0x144] sm:$0xf] }
 0x381   : > { %17663 = vmatprep.mubr.msk.bf16.mxu1 %vm560_vm1, %v18786_v40  ;;  %v15926_v40 = vld [vmem:[%s18945_s8 + $0xd8] sm:$0x7] }
 0x382   : > { %v6187_v21 = vsel %vm21775_vm12, %v6185_v39, %v6186_v56  ;;  %v12388_v26 = vrot.slane %v15926_v40, 7  ;;  %v15932_v39 = vld [vmem:[%s18945_s8 + $0xf8] sm:$0x7]  ;;  %v15033_v56 = vrot.slane %v15005_v6, 9  ;;  %v15933_v40 = vld [vmem:[%s18945_s8 + $0x100] sm:$0x8] }
 0x383   : > { %17168 = vmatmul.mubr.msk.bf16.gmra.mrb[100].mxu0 %vm560_vm1, %v15043_v19  ;;  %v6184_v19 = vsel %vm21775_vm12, %v15030_v16, %v6183_v14  ;;  %v15931_v14 = vld [vmem:[%s18945_s8 + $0xf4] sm:$0xf]  ;;  %v15930_v16 = vld [vmem:[%s18945_s8 + $0xf0] sm:$0x8]  ;;  %v13089_v6 = vsel %vm609_vm0, %v21947_v7, 0 }
 0x384   : > { %17171 = vmatprep.mubr.msk.bf16.mxu0 %vm560_vm1, %v15044_v5  ;;  %v15929_v5 = vld [vmem:[%s18945_s8 + $0xe8] sm:$0x7]  ;;  %v15047_v25 = vcombine.low %v6184_v19, %v6187_v21  ;;  %v12389_v31 = vsel %vm19038_vm6, %v12387_v41, %v12388_v26  ;;  %v12399_v24 = vrot.slane %v15931_v14, 7  ;;  %v12402_v21 = vrot.slane %v15932_v39, 7  ;;  %v15010_v26 = vld [vmem:[%s18945_s8 + $0xdc] sm:$0x1] }
 0x385   : > { %v12395_v53 = vrot.slane %v15929_v5, 7  ;;  %v15987_v59 = vcombine.low %v12386_v45, %v12389_v31  ;;  %v6211_v5 = vrot.slane %v15009_v18, 5  ;;  %v6205_v41 = vsel %vm21775_vm12, %v15033_v56, %v6204_v37  ;;  %v15938_v7 = vld [vmem:[%s18945_s8 + $0x118] sm:$0x7]  ;;  %v15939_v39 = vld [vmem:[%s18945_s8 + $0x120] sm:$0x8] }
 0x386   : > { %v12401_v19 = vrot.slane %v12399_v24, 4  ;;  %v6214_v45 = vrot.slane %v15010_v26, 5  ;;  %v15017_v26 = vld [vmem:[%s18945_s8 + $0x104] sm:$0xe] }
 0x387   : > { %v12396_v9 = vsel %vm19038_vm6, %v12394_v57, %v12395_v53  ;;  %v15013_v57 = vld [vmem:[%s18945_s8 + $0xec] sm:$0x1]  ;;  %v15940_v53 = vld [vmem:[%s18945_s8 + $0x124] sm:$0xf] }
 0x388   : > { %17664 = vmatmul.mubr.msk.bf16.gmra.mrb[56].mxu1 %vm560_vm1, %v18787_v62  ;;  %v6194_v62 = vsel %vm21775_vm12, %v6192_v28, %v6193_v52  ;;  %v15935_v28 = vld [vmem:[%s18945_s8 + $0x108] sm:$0x7]  ;;  %v12403_v50 = vsel %vm19038_vm6, %v12401_v19, %v12402_v21  ;;  %v12420_v56 = vrot.slane %v15940_v53, 7  ;;  %v15016_v19 = vld [vmem:[%s18945_s8 + $0xfc] sm:$0x1] }
 0x389   : > { %17667 = vmatprep.mubr.msk.bf16.mxu1 %vm560_vm1, %v18788_v8  ;;  %v15032_v8 = vrot.slane %v15002_v63, 9  ;;  %v15048_v15 = vcombine.low %v6191_v49, %v6194_v62  ;;  %v15012_v52 = vld [vmem:[%s18945_s8 + $0xe8] sm:$0xf]  ;;  %v15973_v63 = vrot.slane %v15933_v40, 11  ;;  %v12409_v49 = vrot.slane %v15935_v28, 7 }
 0x38a   : > { %v15034_v62 = vrot.slane %v15008_v2, 9  ;;  %v15975_v2 = vrot.slane %v15939_v39, 11  ;;  %v12422_v21 = vrot.slane %v12420_v56, 4 }
 0x38b   : > { %17172 = vmatmul.mubr.msk.bf16.gmra.mrb[104].mxu0 %vm560_vm1, %v15045_v34  ;;  %v12393_v34 = vsel %vm19038_vm6, %v15971_v17, %v12392_v0  ;;  %v6198_v44 = vsel %vm21775_vm12, %v15032_v8, %v6197_v60  ;;  %v15972_v0 = vrot.slane %v15930_v16, 11  ;;  %v15937_v60 = vld [vmem:[%s18945_s8 + $0x114] sm:$0xf]  ;;  %v6218_v17 = vrot.slane %v15012_v52, 5  ;;  %v15936_v8 = vld [vmem:[%s18945_s8 + $0x110] sm:$0x8] }
 0x38c   : > { %17175 = vmatprep.mubr.msk.bf16.mxu0 %vm560_vm1, %v15046_v23  ;;  %v6206_v23 = vrot.slane %v6204_v37, 4  ;;  %v15988_v29 = vcombine.low %v12393_v34, %v12396_v9  ;;  %v15049_v14 = vcombine.low %v6198_v44, %v6201_v33  ;;  %v12413_v51 = vrot.slane %v15937_v60, 7  ;;  %v15015_v16 = vld [vmem:[%s18945_s8 + $0xf8] sm:$0xf]  ;;  %v15014_v44 = vld [vmem:[%s18945_s8 + $0xf4] sm:$0xe] }
 0x38d   : > { %v12400_v37 = vsel %vm19038_vm6, %v15972_v0, %v12399_v24  ;;  %v12407_v3 = vsel %vm19038_vm6, %v15973_v63, %v12406_v12  ;;  %v6221_v34 = vrot.slane %v15013_v57, 5  ;;  %v6212_v18 = vsel %vm21775_vm12, %v15034_v62, %v6211_v5  ;;  %v15942_v57 = vld [vmem:[%s18945_s8 + $0x130] sm:$0x8] }
 0x38e   : > { %v15974_v9 = vrot.slane %v15936_v8, 11  ;;  %v6225_v28 = vrot.slane %v15015_v16, 5  ;;  %v15989_v52 = vcombine.low %v12400_v37, %v12403_v50  ;;  %v6219_v0 = vsel %vm21775_vm12, %v15035_v13, %v6218_v17  ;;  %v15021_v8 = vld [vmem:[%s18945_s8 + $0x118] sm:$0xf] }
 0x38f   : > { %v6228_v62 = vrot.slane %v15016_v19, 5  ;;  %v12421_v37 = vsel %vm19038_vm6, %v15975_v2, %v12420_v56  ;;  %v15020_v56 = vld [vmem:[%s18945_s8 + $0x114] sm:$0xe] }
 0x390   : > { %17668 = vmatmul.mubr.msk.bf16.gmra.mrb[60].mxu1 %vm560_vm1, %v18789_v20  ;;  %v6208_v20 = vsel %vm21775_vm12, %v6206_v23, %v6207_v1  ;;  %v15941_v23 = vld [vmem:[%s18945_s8 + $0x128] sm:$0x7] }
 0x391   : > { %17673 = vmatprep.mubr.msk.bf16.mxu1 %vm560_vm1, %v15986_v48  ;;  %v12408_v48 = vrot.slane %v12406_v12, 4  ;;  %v15050_v31 = vcombine.low %v6205_v41, %v6208_v20  ;;  %v15018_v1 = vld [vmem:[%s18945_s8 + $0x108] sm:$0xf]  ;;  %v12415_v12 = vrot.slane %v12413_v51, 4  ;;  %v12423_v41 = vrot.slane %v15941_v23, 7 }
 0x392   : > { %v6232_v63 = vrot.slane %v15018_v1, 5  ;;  %v12414_v20 = vsel %vm19038_vm6, %v15974_v9, %v12413_v51 }
 0x393   : > { %17176 = vmatmul.mubr.msk.bf16.gmra.mrb[108].mxu0 %vm560_vm1, %v15047_v25  ;;  %v6213_v25 = vrot.slane %v6211_v5, 4  ;;  %v12410_v24 = vsel %vm19038_vm6, %v12408_v48, %v12409_v49  ;;  %v15943_v5 = vld [vmem:[%s18945_s8 + $0x134] sm:$0xf]  ;;  %v15036_v48 = vrot.slane %v15014_v44, 9  ;;  %v15019_v49 = vld [vmem:[%s18945_s8 + $0x10c] sm:$0x1]  ;;  %v12424_v51 = vsel %vm19038_vm6, %v12422_v21, %v12423_v41 }
 0x394   : > { %17179 = vmatprep.mubr.msk.bf16.mxu0 %vm560_vm1, %v15048_v15  ;;  %v6220_v15 = vrot.slane %v6218_v17, 4  ;;  %v15990_v33 = vcombine.low %v12407_v3, %v12410_v24  ;;  %v12427_v53 = vrot.slane %v15943_v5, 7  ;;  %v6234_v50 = vrot.slane %v6232_v63, 4  ;;  %v15945_v3 = vld [vmem:[%s18945_s8 + $0x140] sm:$0x8] }
 0x395   : > { %v6215_v40 = vsel %vm21775_vm12, %v6213_v25, %v6214_v45  ;;  %v15944_v25 = vld [vmem:[%s18945_s8 + $0x138] sm:$0x7]  ;;  %v15037_v45 = vrot.slane %v15017_v26, 9  ;;  %v6226_v16 = vsel %vm21775_vm12, %v15036_v48, %v6225_v28  ;;  %v15947_v24 = vld [vmem:[%s18945_s8 + $0x148] sm:$0x7]  ;;  %v15992_v9 = vcombine.low %v12421_v37, %v12424_v51 }
 0x396   : > { %v15051_v60 = vcombine.low %v6212_v18, %v6215_v40  ;;  %v12429_v39 = vrot.slane %v12427_v53, 4  ;;  %v6239_v18 = vrot.slane %v15021_v8, 5  ;;  %v12430_v23 = vrot.slane %v15944_v25, 7  ;;  %v15022_v40 = vld [vmem:[%s18945_s8 + $0x11c] sm:$0x1] }
 0x397   : > { %v6233_v1 = vsel %vm21775_vm12, %v15037_v45, %v6232_v63  ;;  %v15038_v5 = vrot.slane %v15020_v56, 9  ;;  %v15952_v21 = vld [vmem:[%s18945_s8 + $0x164] sm:$0xf]  ;;  %v6242_v63 = vrot.slane %v15022_v40, 5  ;;  %v15953_v8 = vld [vmem:[%s18945_s8 + $0x168] sm:$0x7] }
 0x398   : > { %17674 = vmatmul.mubr.msk.bf16.vlgmr.msra.gmra.mrb[32].mxu1 %vm560_vm1, %v15987_v59  ;;  %v12416_v59 = vrot.slane %v15938_v7, 7  ;;  %v12434_v7 = vrot.slane %v15946_v38, 7  ;;  %v6241_v26 = vrot.slane %v6239_v18, 4  ;;  %v12431_v48 = vsel %vm19038_vm6, %v12429_v39, %v12430_v23  ;;  %v15955_v56 = vld [vmem:[%s18945_s8 + $0x174] sm:$0xf] }
 0x399   : > { %17677 = vmatprep.mubr.msk.bf16.mxu1 %vm560_vm1, %v15988_v29  ;;  %17706 = vmatpush3.bf16.msra.mxu1 %v13089_v6  ;;  %v6222_v29 = vsel %vm21775_vm12, %v6220_v15, %v6221_v34  ;;  %v15976_v34 = vrot.slane %v15942_v57, 11  ;;  %v12448_v37 = vrot.slane %v15952_v21, 7  ;;  %v6240_v25 = vsel %vm21775_vm12, %v15038_v5, %v6239_v18  ;;  %v18823_v40 = vld [vmem:[%s18945_s8 + $0x84] sm:$0xf] }
 0x39a   : > { %v12417_v17 = vsel %vm19038_vm6, %v12415_v12, %v12416_v59  ;;  %v15052_v6 = vcombine.low %v6219_v0, %v6222_v29  ;;  %v15977_v12 = vrot.slane %v15945_v3, 11  ;;  %v15949_v59 = vld [vmem:[%s18945_s8 + $0x154] sm:$0xf]  ;;  %v18821_v0 = vld [vmem:[%s18945_s8 + $0x64] sm:$0xf]  ;;  %v6243_v51 = vsel %vm21775_vm12, %v6241_v26, %v6242_v63 }
 0x39b   : > { %17180 = vmatmul.mubr.msk.bf16.gmra.mrb[112].mxu0 %vm560_vm1, %v15049_v14  ;;  %v6227_v14 = vrot.slane %v6225_v28, 4  ;;  %v15991_v13 = vcombine.low %v12414_v20, %v12417_v17  ;;  %v12436_v28 = vrot.slane %v12434_v7, 4  ;;  %v6604_v19 = vrot.slane %v18821_v0, 5  ;;  %v15073_v29 = vld [vmem:[%s18945_s8 + $0x68] sm:$0x1] }
 0x39c   : > { %17183 = vmatprep.mubr.msk.bf16.mxu0 %vm560_vm1, %v15050_v31  ;;  %v6235_v31 = vrot.slane %v15019_v49, 5  ;;  %v12428_v41 = vsel %vm19038_vm6, %v15976_v34, %v12427_v53  ;;  %v12441_v20 = vrot.slane %v15949_v59, 7  ;;  %v12435_v38 = vsel %vm19038_vm6, %v15977_v12, %v12434_v7  ;;  %v15950_v17 = vld [vmem:[%s18945_s8 + $0x158] sm:$0x7]  ;;  %v15074_v3 = vld [vmem:[%s18945_s8 + $0x70] sm:$0xe] }
 0x39d   : > { %v6229_v15 = vsel %vm21775_vm12, %v6227_v14, %v6228_v62  ;;  %v6606_v57 = vrot.slane %v6604_v19, 4  ;;  %v6607_v53 = vrot.slane %v15073_v29, 5  ;;  %v18822_v7 = vld [vmem:[%s18945_s8 + $0x74] sm:$0xf]  ;;  %v15075_v34 = vld [vmem:[%s18945_s8 + $0x78] sm:$0x1]  ;;  %v15055_v59 = vcombine.low %v6240_v25, %v6243_v51 }
 0x39e   : > { %v6236_v44 = vsel %vm21775_vm12, %v6234_v50, %v6235_v31  ;;  %v15053_v2 = vcombine.low %v6226_v16, %v6229_v15  ;;  %v12443_v50 = vrot.slane %v12441_v20, 4  ;;  %v12444_v31 = vrot.slane %v15950_v17, 7  ;;  %v15956_v26 = vld [vmem:[%s18945_s8 + $0x178] sm:$0x7]  ;;  %v18824_v25 = vld [vmem:[%s18945_s8 + $0x94] sm:$0xf] }
 0x39f   : > { %v15054_v49 = vcombine.low %v6233_v1, %v6236_v44  ;;  %v15993_v16 = vcombine.low %v12428_v41, %v12431_v48  ;;  %v6608_v18 = vsel %vm21775_vm12, %v6606_v57, %v6607_v53  ;;  %v12451_v23 = vrot.slane %v15953_v8, 7  ;;  %v15076_v1 = vld [vmem:[%s18945_s8 + $0x80] sm:$0xe]  ;;  %v15954_v41 = vld [vmem:[%s18945_s8 + $0x170] sm:$0x8] }
 0x3a0   : > { %17678 = vmatmul.mubr.msk.bf16.gmra.mrb[36].mxu1 %vm560_vm1, %v15989_v52  ;;  %v12437_v52 = vrot.slane %v15947_v24, 7  ;;  %v6618_v12 = vrot.slane %v18823_v40, 5  ;;  %v12445_v0 = vsel %vm19038_vm6, %v12443_v50, %v12444_v31  ;;  %v12455_v5 = vrot.slane %v15955_v56, 7  ;;  %v15079_v31 = vld [vmem:[%s18945_s8 + $0x98] sm:$0x1] }
 0x3a1   : > { %17681 = vmatprep.mubr.msk.bf16.mxu1 %vm560_vm1, %v15990_v33  ;;  %v15072_v33 = vld [vmem:[%s18945_s8 + $0x60] sm:$0xe]  ;;  %v15106_v63 = vrot.slane %v15076_v1, 9  ;;  %v15980_v53 = vrot.slane %v15954_v41, 11  ;;  %v12458_v51 = vrot.slane %v15956_v26, 7 }
 0x3a2   : > { %v15104_v14 = vrot.slane %v15072_v33, 9  ;;  %v12438_v62 = vsel %vm19038_vm6, %v12436_v28, %v12437_v52  ;;  %v15105_v28 = vrot.slane %v15074_v3, 9  ;;  %v15077_v52 = vld [vmem:[%s18945_s8 + $0x88] sm:$0x1]  ;;  %v15958_v33 = vld [vmem:[%s18945_s8 + $0x184] sm:$0xf] }
 0x3a3   : > { %17184 = vmatmul.mubr.msk.bf16.gmra.mrb[116].mxu0 %vm560_vm1, %v15051_v60  ;;  %v15948_v60 = vld [vmem:[%s18945_s8 + $0x150] sm:$0x8]  ;;  %v15994_v24 = vcombine.low %v12435_v38, %v12438_v62  ;;  %v6621_v48 = vrot.slane %v15077_v52, 5  ;;  %v12462_v38 = vrot.slane %v15958_v33, 7  ;;  %v15959_v62 = vld [vmem:[%s18945_s8 + $0x188] sm:$0x7]  ;;  %v6619_v50 = vsel %vm21775_vm12, %v15106_v63, %v6618_v12 }
 0x3a4   : > { %17187 = vmatprep.mubr.msk.bf16.mxu0 %vm560_vm1, %v15052_v6  ;;  %v15951_v6 = vld [vmem:[%s18945_s8 + $0x160] sm:$0x8]  ;;  %v15978_v45 = vrot.slane %v15948_v60, 11  ;;  %v6605_v15 = vsel %vm21775_vm12, %v15104_v14, %v6604_v19  ;;  %v15964_v1 = vld [vmem:[%s18945_s8 + $0x1a4] sm:$0xf]  ;;  %v12456_v40 = vsel %vm19038_vm6, %v15980_v53, %v12455_v5 }
 0x3a5   : > { %v15979_v39 = vrot.slane %v15951_v6, 11  ;;  %v15121_v29 = vcombine.low %v6605_v15, %v6608_v18  ;;  %v12457_v6 = vrot.slane %v12455_v5, 4  ;;  %v15080_v15 = vld [vmem:[%s18945_s8 + $0xa0] sm:$0xe]  ;;  %v7011_v18 = vsel %vm609_vm0, %v22040_v11, 0 }
 0x3a6   : > { %v12442_v44 = vsel %vm19038_vm6, %v15978_v45, %v12441_v20  ;;  %v6620_v20 = vrot.slane %v6618_v12, 4  ;;  %v6625_v45 = vrot.slane %v18824_v25, 5  ;;  %v12476_v41 = vrot.slane %v15964_v1, 7 }
 0x3a7   : > { %v12449_v21 = vsel %vm19038_vm6, %v15979_v39, %v12448_v37  ;;  %v15995_v17 = vcombine.low %v12442_v44, %v12445_v0  ;;  %v15960_v44 = vld [vmem:[%s18945_s8 + $0x190] sm:$0x8]  ;;  %v12459_v52 = vsel %vm19038_vm6, %v12457_v6, %v12458_v51  ;;  %v15962_v0 = vld [vmem:[%s18945_s8 + $0x198] sm:$0x7] }
 0x3a8   : > { %17682 = vmatmul.mubr.msk.bf16.gmra.mrb[40].mxu1 %vm560_vm1, %v15991_v13  ;;  %v6611_v13 = vrot.slane %v18822_v7, 5  ;;  %v15961_v7 = vld [vmem:[%s18945_s8 + $0x194] sm:$0xf]  ;;  %v6627_v12 = vrot.slane %v6625_v45, 4  ;;  %v15982_v63 = vrot.slane %v15960_v44, 11  ;;  %v12478_v51 = vrot.slane %v12476_v41, 4 }
 0x3a9   : > { %17685 = vmatprep.mubr.msk.bf16.mxu1 %vm560_vm1, %v15992_v9  ;;  %v12450_v9 = vrot.slane %v12448_v37, 4  ;;  %v15078_v37 = vld [vmem:[%s18945_s8 + $0x90] sm:$0xe] }
 0x3aa   : > { %v6613_v19 = vrot.slane %v6611_v13, 4  ;;  %v6612_v14 = vsel %vm21775_vm12, %v15105_v28, %v6611_v13  ;;  %v6622_v13 = vsel %vm21775_vm12, %v6620_v20, %v6621_v48  ;;  %v12469_v28 = vrot.slane %v15961_v7, 7  ;;  %v22297_v20 = vld [vmem:[%s23899_s2 + $0x38] sm:$0xf] }
 0x3ab   : > { %17188 = vmatmul.mubr.msk.bf16.gmra.mrb[120].mxu0 %vm560_vm1, %v15053_v2  ;;  %v6614_v2 = vrot.slane %v15075_v34, 5  ;;  %v12452_v60 = vsel %vm19038_vm6, %v12450_v9, %v12451_v23  ;;  %v18825_v34 = vld [vmem:[%s18945_s8 + $0xa4] sm:$0xf]  ;;  %v15107_v9 = vrot.slane %v15078_v37, 9  ;;  %v15081_v23 = vld [vmem:[%s18945_s8 + $0xa8] sm:$0x1]  ;;  %v15123_v33 = vcombine.low %v6619_v50, %v6622_v13 }
 0x3ac   : > { %17191 = vmatprep.mubr.msk.bf16.mxu0 %vm560_vm1, %v15054_v49  ;;  %v15957_v49 = vld [vmem:[%s18945_s8 + $0x180] sm:$0x8]  ;;  %v15996_v8 = vcombine.low %v12449_v21, %v12452_v60  ;;  %v6632_v39 = vrot.slane %v18825_v34, 5  ;;  %v15965_v60 = vld [vmem:[%s18945_s8 + $0x1a8] sm:$0x7] }
 0x3ad   : > { %v6615_v57 = vsel %vm21775_vm12, %v6613_v19, %v6614_v2  ;;  %v15981_v3 = vrot.slane %v15957_v49, 11  ;;  %v15108_v19 = vrot.slane %v15080_v15, 9  ;;  %v15963_v21 = vld [vmem:[%s18945_s8 + $0x1a0] sm:$0x8]  ;;  %v6626_v26 = vsel %vm21775_vm12, %v15107_v9, %v6625_v45  ;;  %v15083_v37 = vld [vmem:[%s18945_s8 + $0xb8] sm:$0x1] }
 0x3ae   : > { %v15122_v56 = vcombine.low %v6612_v14, %v6615_v57  ;;  %v6634_v5 = vrot.slane %v6632_v39, 4  ;;  %v12471_v49 = vrot.slane %v12469_v28, 4  ;;  %v18826_v14 = vld [vmem:[%s18945_s8 + $0xb4] sm:$0xf]  ;;  %v15997_v57 = vcombine.low %v12456_v40, %v12459_v52  ;;  %v15085_v15 = vld [vmem:[%s18945_s8 + $0xc8] sm:$0x1] }
 0x3af   : > { %v12463_v11 = vsel %vm19038_vm6, %v15981_v3, %v12462_v38  ;;  %v6633_v6 = vsel %vm21775_vm12, %v15108_v19, %v6632_v39  ;;  %v15983_v25 = vrot.slane %v15963_v21, 11  ;;  %v15967_v45 = vld [vmem:[%s18945_s8 + $0x1b4] sm:$0xf]  ;;  %v12479_v50 = vrot.slane %v15965_v60, 7  ;;  %v18827_v3 = vld [vmem:[%s18945_s8 + $0xc4] sm:$0xf] }
 0x3b0   : > { %17686 = vmatmul.mubr.msk.bf16.gmra.mrb[44].mxu1 %vm560_vm1, %v15993_v16  ;;  %v12464_v16 = vrot.slane %v12462_v38, 4  ;;  %v12472_v38 = vrot.slane %v15962_v0, 7  ;;  %v6646_v7 = vrot.slane %v18827_v3, 5  ;;  %v16019_v34 = vld [vmem:[%s18945_s8 + $0xc8] sm:$0xf]  ;;  %v12483_v9 = vrot.slane %v15967_v45, 7 }
 0x3b1   : > { %17689 = vmatprep.mubr.msk.bf16.mxu1 %vm560_vm1, %v15994_v24  ;;  %v12465_v24 = vrot.slane %v15959_v62, 7  ;;  %v6639_v62 = vrot.slane %v18826_v14, 5  ;;  %v12477_v1 = vsel %vm19038_vm6, %v15983_v25, %v12476_v41  ;;  %v15966_v40 = vld [vmem:[%s18945_s8 + $0x1b0] sm:$0x8]  ;;  %v12480_v44 = vsel %vm19038_vm6, %v12478_v51, %v12479_v50  ;;  %v16022_v14 = vld [vmem:[%s18945_s8 + $0xd8] sm:$0xf] }
 0x3b2   : > { %v12473_v39 = vsel %vm19038_vm6, %v12471_v49, %v12472_v38  ;;  %v6649_v52 = vrot.slane %v15085_v15, 5  ;;  %v12485_v21 = vrot.slane %v12483_v9, 4  ;;  %v15086_v41 = vld [vmem:[%s18945_s8 + $0xd0] sm:$0xe]  ;;  %v16000_v60 = vcombine.low %v12477_v1, %v12480_v44  ;;  %v15087_v38 = vld [vmem:[%s18945_s8 + $0xd8] sm:$0x1] }
 0x3b3   : > { %17192 = vmatmul.mubr.msk.bf16.gmra.mrb[124].mxu0 %vm560_vm1, %v15055_v59  ;;  %v6628_v59 = vrot.slane %v15079_v31, 5  ;;  %v12466_v2 = vsel %vm19038_vm6, %v12464_v16, %v12465_v24  ;;  %v15084_v31 = vld [vmem:[%s18945_s8 + $0xc0] sm:$0xe]  ;;  %v12470_v16 = vsel %vm19038_vm6, %v15982_v63, %v12469_v28  ;;  %v6648_v28 = vrot.slane %v6646_v7, 4  ;;  %v15089_v51 = vld [vmem:[%s18945_s8 + $0xe8] sm:$0x1] }
 0x3b4   : > { %17197 = vmatprep.mubr.msk.bf16.mxu0 %vm560_vm1, %v15121_v29  ;;  %v6635_v29 = vrot.slane %v15081_v23, 5  ;;  %v15998_v53 = vcombine.low %v12463_v11, %v12466_v2  ;;  %v12880_v11 = vrot.slane %v16019_v34, 6  ;;  %v15999_v0 = vcombine.low %v12470_v16, %v12473_v39  ;;  %v16020_v2 = vld [vmem:[%s18945_s8 + $0xcc] sm:$0x3]  ;;  %v16025_v50 = vld [vmem:[%s18945_s8 + $0xe8] sm:$0xf] }
 0x3b5   : > { %v6629_v48 = vsel %vm21775_vm12, %v6627_v12, %v6628_v59  ;;  %v15968_v12 = vld [vmem:[%s18945_s8 + $0x1b8] sm:$0x7]  ;;  %v15110_v59 = vrot.slane %v15084_v31, 9  ;;  %v12887_v16 = vrot.slane %v16022_v14, 6  ;;  %v16023_v39 = vld [vmem:[%s18945_s8 + $0xdc] sm:$0x3] }
 0x3b6   : > { %v15124_v13 = vcombine.low %v6626_v26, %v6629_v48  ;;  %v18828_v26 = vld [vmem:[%s18945_s8 + $0xd4] sm:$0xf]  ;;  %v12486_v48 = vrot.slane %v15968_v12, 7  ;;  %v16024_v1 = vld [vmem:[%s18945_s8 + $0xe4] sm:$0xc] }
 0x3b7   : > { %v6653_v63 = vrot.slane %v18828_v26, 5  ;;  %v6647_v49 = vsel %vm21775_vm12, %v15110_v59, %v6646_v7  ;;  %v6656_v7 = vrot.slane %v15087_v38, 5  ;;  %v16026_v44 = vld [vmem:[%s18945_s8 + $0xec] sm:$0x3]  ;;  %v16028_v26 = vld [vmem:[%s18945_s8 + $0xf8] sm:$0xf] }
 0x3b8   : > { %17690 = vmatmul.mubr.msk.bf16.gmra.mrb[48].mxu1 %vm560_vm1, %v15995_v17  ;;  %v15082_v17 = vld [vmem:[%s18945_s8 + $0xb0] sm:$0xe]  ;;  %v18831_v38 = vld [vmem:[%s18945_s8 + $0x104] sm:$0xf] }
 0x3b9   : > { %17693 = vmatprep.mubr.msk.bf16.mxu1 %vm560_vm1, %v15996_v8  ;;  %v6636_v8 = vsel %vm21775_vm12, %v6634_v5, %v6635_v29  ;;  %v15109_v24 = vrot.slane %v15082_v17, 9  ;;  %v15984_v29 = vrot.slane %v15966_v40, 11  ;;  %v6655_v3 = vrot.slane %v6653_v63, 4 }
 0x3ba   : > { %v15125_v23 = vcombine.low %v6633_v6, %v6636_v8  ;;  %v15088_v6 = vld [vmem:[%s18945_s8 + $0xe0] sm:$0xe]  ;;  %v15111_v8 = vrot.slane %v15086_v41, 9  ;;  %v12894_v40 = vrot.slane %v16025_v50, 6  ;;  %v16068_v41 = vrot.slane %v16024_v1, 10 }
 0x3bb   : > { %17198 = vmatmul.mubr.msk.bf16.vlgmr.msra.gmra.mrb[96].mxu0 %vm560_vm1, %v15122_v56  ;;  %v6641_v56 = vrot.slane %v6639_v62, 4  ;;  %v6640_v19 = vsel %vm21775_vm12, %v15109_v24, %v6639_v62  ;;  %v6650_v62 = vsel %vm21775_vm12, %v6648_v28, %v6649_v52  ;;  %v12484_v31 = vsel %vm19038_vm6, %v15984_v29, %v12483_v9 }
 0x3bc   : > { %17230 = vmatpush3.bf16.msra.mxu0 %v7011_v18  ;;  %17201 = vmatprep.mubr.msk.bf16.mxu0 %vm560_vm1, %v15123_v33  ;;  %v6642_v18 = vrot.slane %v15083_v37, 5  ;;  %v16018_v33 = vld [vmem:[%s18945_s8 + $0xc4] sm:$0xc]  ;;  %v12487_v24 = vsel %vm19038_vm6, %v12485_v21, %v12486_v48  ;;  %v15127_v15 = vcombine.low %v6647_v49, %v6650_v62  ;;  %v6654_v12 = vsel %vm21775_vm12, %v15111_v8, %v6653_v63  ;;  %v15091_v21 = vld [vmem:[%s18945_s8 + $0xf8] sm:$0x1] }
 0x3bd   : > { %18654 = vmatprep.subr.msk.bf16.mxu0 %vm609_vm0, %v22297_v20  ;;  %v16066_v17 = vrot.slane %v16018_v33, 10  ;;  %v18829_v37 = vld [vmem:[%s18945_s8 + $0xe4] sm:$0xf]  ;;  %v6657_v28 = vsel %vm21775_vm12, %v6655_v3, %v6656_v7  ;;  %v12889_v52 = vrot.slane %v12887_v16, 4  ;;  %v12890_v33 = vrot.slane %v16023_v39, 6 }
 0x3be   : > { %v6643_v5 = vsel %vm21775_vm12, %v6641_v56, %v6642_v18  ;;  %v6660_v25 = vrot.slane %v18829_v37, 5  ;;  %v15112_v56 = vrot.slane %v15088_v6, 9  ;;  %v12897_v48 = vrot.slane %v16026_v44, 6  ;;  %v15092_v49 = vld [vmem:[%s18945_s8 + $0x100] sm:$0xe] }
 0x3bf   : > { %v15126_v45 = vcombine.low %v6640_v19, %v6643_v5  ;;  %v12881_v34 = vsel %vm19079_vm7, %v16066_v17, %v12880_v11  ;;  %v6674_v17 = vrot.slane %v18831_v38, 5  ;;  %v15128_v14 = vcombine.low %v6654_v12, %v6657_v28  ;;  %v16031_v6 = vld [vmem:[%s18945_s8 + $0x108] sm:$0xf]  ;;  %v16029_v3 = vld [vmem:[%s18945_s8 + $0xfc] sm:$0x3] }
 0x3c0   : > { %17694 = vmatmul.mubr.msk.bf16.gmra.mrb[52].mxu1 %vm560_vm1, %v15997_v57  ;;  %v12882_v57 = vrot.slane %v12880_v11, 4  ;;  %v6662_v9 = vrot.slane %v6660_v25, 4  ;;  %v15090_v11 = vld [vmem:[%s18945_s8 + $0xf0] sm:$0xe]  ;;  %v6661_v29 = vsel %vm21775_vm12, %v15112_v56, %v6660_v25  ;;  %v12891_v37 = vsel %vm19079_vm7, %v12889_v52, %v12890_v33  ;;  %v18832_v28 = vld [vmem:[%s18945_s8 + $0x114] sm:$0xf] }
 0x3c1   : > { %17697 = vmatprep.mubr.msk.bf16.mxu1 %vm560_vm1, %v15998_v53  ;;  %v12883_v53 = vrot.slane %v16020_v2, 6  ;;  %v16001_v2 = vcombine.low %v12484_v31, %v12487_v24  ;;  %v12901_v8 = vrot.slane %v16028_v26, 6  ;;  %v12895_v50 = vsel %vm19079_vm7, %v16068_v41, %v12894_v40  ;;  %v16027_v31 = vld [vmem:[%s18945_s8 + $0xf4] sm:$0xc]  ;;  %v15094_v44 = vld [vmem:[%s18945_s8 + $0x110] sm:$0xe] }
 0x3c2   : > { %v15114_v7 = vrot.slane %v15092_v49, 9  ;;  %v6681_v52 = vrot.slane %v18832_v28, 5  ;;  %v15096_v26 = vld [vmem:[%s18945_s8 + $0x120] sm:$0xe]  ;;  %v15115_v49 = vrot.slane %v15094_v44, 9 }
 0x3c3   : > { %17202 = vmatmul.mubr.msk.bf16.gmra.mrb[100].mxu0 %vm560_vm1, %v15124_v13  ;;  %v16021_v13 = vld [vmem:[%s18945_s8 + $0xd4] sm:$0xc]  ;;  %v12884_v18 = vsel %vm19079_vm7, %v12882_v57, %v12883_v53  ;;  %v15113_v57 = vrot.slane %v15090_v11, 9  ;;  %v15093_v53 = vld [vmem:[%s18945_s8 + $0x108] sm:$0x1]  ;;  %v12903_v1 = vrot.slane %v12901_v8, 4 }
 0x3c4   : > { %17205 = vmatprep.mubr.msk.bf16.mxu0 %vm560_vm1, %v15125_v23  ;;  %v6663_v23 = vrot.slane %v15089_v51, 5  ;;  %v16067_v59 = vrot.slane %v16021_v13, 10  ;;  %v16083_v5 = vcombine.low %v12881_v34, %v12884_v18  ;;  %v6677_v24 = vrot.slane %v15093_v53, 5  ;;  %v16032_v18 = vld [vmem:[%s18945_s8 + $0x10c] sm:$0x3] }
 0x3c5   : > { %v12908_v34 = vrot.slane %v16031_v6, 6  ;;  %v16034_v11 = vld [vmem:[%s18945_s8 + $0x118] sm:$0xf]  ;;  %v16033_v6 = vld [vmem:[%s18945_s8 + $0x114] sm:$0xc] }
 0x3c6   : > { %v6664_v63 = vsel %vm21775_vm12, %v6662_v9, %v6663_v23  ;;  %v12888_v62 = vsel %vm19079_vm7, %v16067_v59, %v12887_v16  ;;  %v6676_v16 = vrot.slane %v6674_v17, 4  ;;  %v16069_v23 = vrot.slane %v16027_v31, 10  ;;  %v18835_v44 = vld [vmem:[%s18945_s8 + $0x144] sm:$0xf] }
 0x3c7   : > { %v15129_v51 = vcombine.low %v6661_v29, %v6664_v63  ;;  %v16084_v39 = vcombine.low %v12888_v62, %v12891_v37  ;;  %v6675_v59 = vsel %vm21775_vm12, %v15114_v7, %v6674_v17  ;;  %v18833_v29 = vld [vmem:[%s18945_s8 + $0x124] sm:$0xf]  ;;  %v15097_v63 = vld [vmem:[%s18945_s8 + $0x128] sm:$0x1]  ;;  %v12915_v38 = vrot.slane %v16034_v11, 6 }
 0x3c8   : > { %17698 = vmatmul.mubr.msk.bf16.gmra.mrb[56].mxu1 %vm560_vm1, %v15999_v0  ;;  %v18830_v0 = vld [vmem:[%s18945_s8 + $0xf4] sm:$0xf]  ;;  %v16037_v17 = vld [vmem:[%s18945_s8 + $0x128] sm:$0xf]  ;;  %v6683_v62 = vrot.slane %v6681_v52, 4  ;;  %v16071_v7 = vrot.slane %v16033_v6, 10 }
 0x3c9   : > { %17701 = vmatprep.mubr.msk.bf16.mxu1 %vm560_vm1, %v16000_v60  ;;  %v6667_v19 = vrot.slane %v18830_v0, 5  ;;  %v12896_v60 = vrot.slane %v12894_v40, 4  ;;  %v12904_v40 = vrot.slane %v16029_v3, 6  ;;  %v6678_v0 = vsel %vm21775_vm12, %v6676_v16, %v6677_v24  ;;  %v16035_v37 = vld [vmem:[%s18945_s8 + $0x11c] sm:$0x3] }
 0x3ca   : > { %v12922_v31 = vrot.slane %v16037_v17, 6  ;;  %v12918_v16 = vrot.slane %v16035_v37, 6  ;;  %v16038_v24 = vld [vmem:[%s18945_s8 + $0x12c] sm:$0x3]  ;;  %v6702_v28 = vrot.slane %v18835_v44, 5 }
 0x3cb   : > { %17206 = vmatmul.mubr.msk.bf16.gmra.mrb[104].mxu0 %vm560_vm1, %v15126_v45  ;;  %v6669_v25 = vrot.slane %v6667_v19, 4  ;;  %v6670_v45 = vrot.slane %v15091_v21, 5  ;;  %v12898_v13 = vsel %vm19079_vm7, %v12896_v60, %v12897_v48  ;;  %v6668_v56 = vsel %vm21775_vm12, %v15113_v57, %v6667_v19  ;;  %v15095_v19 = vld [vmem:[%s18945_s8 + $0x118] sm:$0x1]  ;;  %v15100_v11 = vld [vmem:[%s18945_s8 + $0x140] sm:$0xe] }
 0x3cc   : > { %17209 = vmatprep.mubr.msk.bf16.mxu0 %vm560_vm1, %v15127_v15  ;;  %v16030_v15 = vld [vmem:[%s18945_s8 + $0x104] sm:$0xc]  ;;  %v16085_v12 = vcombine.low %v12895_v50, %v12898_v13  ;;  %v6688_v21 = vrot.slane %v18833_v29, 5  ;;  %v12902_v60 = vsel %vm19079_vm7, %v16069_v23, %v12901_v8  ;;  %v12905_v48 = vsel %vm19079_vm7, %v12903_v1, %v12904_v40  ;;  %v15099_v40 = vld [vmem:[%s18945_s8 + $0x138] sm:$0x1] }
 0x3cd   : > { %v6671_v9 = vsel %vm21775_vm12, %v6669_v25, %v6670_v45  ;;  %v16070_v33 = vrot.slane %v16030_v15, 10  ;;  %v6684_v57 = vrot.slane %v15095_v19, 5  ;;  %v15116_v45 = vrot.slane %v15096_v26, 9  ;;  %v16036_v50 = vld [vmem:[%s18945_s8 + $0x124] sm:$0xc] }
 0x3ce   : > { %v15130_v41 = vcombine.low %v6668_v56, %v6671_v9  ;;  %v6690_v8 = vrot.slane %v6688_v21, 4  ;;  %v16086_v3 = vcombine.low %v12902_v60, %v12905_v48  ;;  %v12917_v13 = vrot.slane %v12915_v38, 4  ;;  %v15098_v56 = vld [vmem:[%s18945_s8 + $0x130] sm:$0xe]  ;;  %v16039_v48 = vld [vmem:[%s18945_s8 + $0x134] sm:$0xc] }
 0x3cf   : > { %v12909_v53 = vsel %vm19079_vm7, %v16070_v33, %v12908_v34  ;;  %v6682_v15 = vsel %vm21775_vm12, %v15115_v49, %v6681_v52  ;;  %v6689_v23 = vsel %vm21775_vm12, %v15116_v45, %v6688_v21  ;;  %v12924_v52 = vrot.slane %v12922_v31, 4  ;;  %v16043_v21 = vld [vmem:[%s18945_s8 + $0x148] sm:$0xf]  ;;  %v16044_v45 = vld [vmem:[%s18945_s8 + $0x14c] sm:$0x3] }
 0x3d0   : > { %17702 = vmatmul.mubr.msk.bf16.gmra.mrb[60].mxu1 %vm560_vm1, %v16001_v2  ;;  %v12910_v2 = vrot.slane %v12908_v34, 4  ;;  %v6685_v34 = vsel %vm21775_vm12, %v6683_v62, %v6684_v57  ;;  %v12925_v33 = vrot.slane %v16038_v24, 6  ;;  %v15117_v29 = vrot.slane %v15098_v56, 9  ;;  %v16041_v57 = vld [vmem:[%s18945_s8 + $0x13c] sm:$0x3] }
 0x3d1   : > { %17707 = vmatprep.mubr.msk.bf16.mxu1 %vm560_vm1, %v16083_v5  ;;  %v12911_v5 = vrot.slane %v16032_v18, 6  ;;  %v18834_v18 = vld [vmem:[%s18945_s8 + $0x134] sm:$0xf]  ;;  %v15132_v19 = vcombine.low %v6682_v15, %v6685_v34  ;;  %v15118_v49 = vrot.slane %v15100_v11, 9  ;;  %v15102_v15 = vld [vmem:[%s18945_s8 + $0x150] sm:$0xe] }
 0x3d2   : > { %v6695_v9 = vrot.slane %v18834_v18, 5  ;;  %v12926_v62 = vsel %vm19079_vm7, %v12924_v52, %v12925_v33  ;;  %v15103_v34 = vld [vmem:[%s18945_s8 + $0x158] sm:$0x1]  ;;  %v12939_v18 = vrot.slane %v16044_v45, 6 }
 0x3d3   : > { %17210 = vmatmul.mubr.msk.bf16.gmra.mrb[108].mxu0 %vm560_vm1, %v15128_v14  ;;  %v15131_v14 = vcombine.low %v6675_v59, %v6678_v0  ;;  %v12912_v25 = vsel %vm19079_vm7, %v12910_v2, %v12911_v5  ;;  %v16040_v59 = vld [vmem:[%s18945_s8 + $0x138] sm:$0xf]  ;;  %v15101_v0 = vld [vmem:[%s18945_s8 + $0x148] sm:$0x1]  ;;  %v12916_v2 = vsel %vm19079_vm7, %v16071_v7, %v12915_v38  ;;  %v12919_v5 = vsel %vm19079_vm7, %v12917_v13, %v12918_v16 }
 0x3d4   : > { %17213 = vmatprep.mubr.msk.bf16.mxu0 %vm560_vm1, %v15129_v51  ;;  %v6691_v51 = vrot.slane %v15097_v63, 5  ;;  %v6697_v26 = vrot.slane %v6695_v9, 4  ;;  %v6698_v63 = vrot.slane %v15099_v40, 5  ;;  %v12929_v60 = vrot.slane %v16040_v59, 6 }
 0x3d5   : > { %v6704_v38 = vrot.slane %v6702_v28, 4  ;;  %v6705_v17 = vrot.slane %v15101_v0, 5  ;;  %v16088_v6 = vcombine.low %v12916_v2, %v12919_v5  ;;  %v6696_v37 = vsel %vm21775_vm12, %v15117_v29, %v6695_v9  ;;  %v16046_v9 = vld [vmem:[%s18945_s8 + $0x158] sm:$0xf]  ;;  %v16047_v2 = vld [vmem:[%s18945_s8 + $0x15c] sm:$0x3] }
 0x3d6   : > { %v6692_v1 = vsel %vm21775_vm12, %v6690_v8, %v6691_v51  ;;  %v6699_v8 = vsel %vm21775_vm12, %v6697_v26, %v6698_v63  ;;  %v16073_v51 = vrot.slane %v16039_v48, 10  ;;  %v12932_v13 = vrot.slane %v16041_v57, 6  ;;  %v16048_v29 = vld [vmem:[%s18945_s8 + $0x164] sm:$0xc]  ;;  %v16052_v57 = vld [vmem:[%s18945_s8 + $0x178] sm:$0xf] }
 0x3d7   : > { %v6703_v16 = vsel %vm21775_vm12, %v15118_v49, %v6702_v28  ;;  %v6706_v24 = vsel %vm21775_vm12, %v6704_v38, %v6705_v17  ;;  %v6712_v44 = vrot.slane %v15103_v34, 5  ;;  %v12943_v33 = vrot.slane %v16046_v9, 6 }
 0x3d8   : > { %17708 = vmatmul.mubr.msk.bf16.vlgmr.msra.gmra.mrb[32].mxu1 %vm560_vm1, %v16084_v39  ;;  %v16087_v39 = vcombine.low %v12909_v53, %v12912_v25  ;;  %v12936_v53 = vrot.slane %v16043_v21, 6  ;;  %v16042_v25 = vld [vmem:[%s18945_s8 + $0x144] sm:$0xc]  ;;  %v15135_v40 = vcombine.low %v6703_v16, %v6706_v24  ;;  %v12930_v28 = vsel %vm19079_vm7, %v16073_v51, %v12929_v60  ;;  %v16050_v21 = vld [vmem:[%s18945_s8 + $0x16c] sm:$0x3] }
 0x3d9   : > { %17711 = vmatprep.mubr.msk.bf16.mxu1 %vm560_vm1, %v16085_v12  ;;  %v16072_v12 = vrot.slane %v16036_v50, 10  ;;  %v12931_v50 = vrot.slane %v12929_v60, 4  ;;  %v12945_v49 = vrot.slane %v12943_v33, 4  ;;  %v12946_v38 = vrot.slane %v16047_v2, 6 }
 0x3da   : > { %v12938_v56 = vrot.slane %v12936_v53, 4  ;;  %v16076_v17 = vrot.slane %v16048_v29, 10  ;;  %v12957_v45 = vrot.slane %v16052_v57, 6 }
 0x3db   : > { %17214 = vmatmul.mubr.msk.bf16.gmra.mrb[112].mxu0 %vm560_vm1, %v15130_v41  ;;  %v15133_v41 = vcombine.low %v6689_v23, %v6692_v1  ;;  %v15134_v23 = vcombine.low %v6696_v37, %v6699_v8  ;;  %v16049_v1 = vld [vmem:[%s18945_s8 + $0x168] sm:$0xf]  ;;  %v12933_v52 = vsel %vm19079_vm7, %v12931_v50, %v12932_v13  ;;  %v16051_v50 = vld [vmem:[%s18945_s8 + $0x174] sm:$0xc]  ;;  %v16056_v13 = vld [vmem:[%s18945_s8 + $0x18c] sm:$0x3] }
 0x3dc   : > { %17217 = vmatprep.mubr.msk.bf16.mxu0 %vm560_vm1, %v15131_v14  ;;  %v12923_v14 = vsel %vm19079_vm7, %v16072_v12, %v12922_v31  ;;  %v18836_v31 = vld [vmem:[%s18945_s8 + $0x154] sm:$0xf]  ;;  %v15119_v12 = vrot.slane %v15102_v15, 9  ;;  %v12940_v0 = vsel %vm19079_vm7, %v12938_v56, %v12939_v18  ;;  %v12950_v5 = vrot.slane %v16049_v1, 6  ;;  %v16061_v1 = vld [vmem:[%s18945_s8 + $0x1a8] sm:$0xf] }
 0x3dd   : > { %v16089_v7 = vcombine.low %v12923_v14, %v12926_v62  ;;  %v12953_v62 = vrot.slane %v16050_v21, 6  ;;  %v16077_v15 = vrot.slane %v16051_v50, 10  ;;  %v12959_v34 = vrot.slane %v12957_v45, 4 }
 0x3de   : > { %v12952_v14 = vrot.slane %v12950_v5, 4  ;;  %v12951_v8 = vsel %vm19079_vm7, %v16076_v17, %v12950_v5  ;;  %v12967_v9 = vrot.slane %v16056_v13, 6  ;;  %v18839_v13 = vld [vmem:[%s18945_s8 + $0x88] sm:$0xf] }
 0x3e0   : > { %17712 = vmatmul.mubr.msk.bf16.gmra.mrb[36].mxu1 %vm560_vm1, %v16086_v3  ;;  %v6709_v3 = vrot.slane %v18836_v31, 5  ;;  %v12954_v51 = vsel %vm19079_vm7, %v12952_v14, %v12953_v62  ;;  %v16053_v31 = vld [vmem:[%s18945_s8 + $0x17c] sm:$0x3]  ;;  %v16063_v14 = vld [vmem:[%s18945_s8 + $0x1b4] sm:$0xc] }
 0x3e1   : > { %17715 = vmatprep.mubr.msk.bf16.mxu1 %vm560_vm1, %v16087_v39  ;;  %v16074_v39 = vrot.slane %v16042_v25, 10  ;;  %v12947_v25 = vsel %vm19079_vm7, %v12945_v49, %v12946_v38  ;;  %v16093_v24 = vcombine.low %v12951_v8, %v12954_v51  ;;  %v16065_v62 = vld [vmem:[%s18945_s8 + $0x1bc] sm:$0x3]  ;;  %v24152_v51 = vld [vmem:[#allocation20_spill] sm:$0xff] }
 0x3e2   : > { %v6711_v59 = vrot.slane %v6709_v3, 4  ;;  %v6710_v26 = vsel %vm21775_vm12, %v15119_v12, %v6709_v3 }
 0x3e3   : > { %17218 = vmatmul.mubr.msk.bf16.gmra.mrb[116].mxu0 %vm560_vm1, %v15132_v19  ;;  %v12937_v11 = vsel %vm19079_vm7, %v16074_v39, %v12936_v53  ;;  %v16045_v19 = vld [vmem:[%s18945_s8 + $0x154] sm:$0xc]  ;;  %v12960_v39 = vrot.slane %v16053_v31, 6 }
 0x3e4   : > { %17221 = vmatprep.mubr.msk.bf16.mxu0 %vm560_vm1, %v15133_v41  ;;  %v16090_v41 = vcombine.low %v12930_v28, %v12933_v52  ;;  %v6713_v63 = vsel %vm21775_vm12, %v6711_v59, %v6712_v44  ;;  %v16091_v60 = vcombine.low %v12937_v11, %v12940_v0  ;;  %v16075_v48 = vrot.slane %v16045_v19, 10  ;;  %v16057_v59 = vld [vmem:[%s18945_s8 + $0x194] sm:$0xc]  ;;  %v16060_v0 = vld [vmem:[%s18945_s8 + $0x1a4] sm:$0xc] }
 0x3e5   : > { %v15136_v53 = vcombine.low %v6710_v26, %v6713_v63  ;;  %v12961_v12 = vsel %vm19079_vm7, %v12959_v34, %v12960_v39  ;;  %v12978_v11 = vrot.slane %v16061_v1, 6  ;;  %v16062_v19 = vld [vmem:[%s18945_s8 + $0x1ac] sm:$0x3]  ;;  %v16079_v29 = vrot.slane %v16057_v59, 10  ;;  %v18840_v59 = vld [vmem:[%s18945_s8 + $0x98] sm:$0xf] }
 0x3e6   : > { %v12944_v37 = vsel %vm19079_vm7, %v16075_v48, %v12943_v33  ;;  %v16059_v33 = vld [vmem:[%s18945_s8 + $0x19c] sm:$0x3]  ;;  %v16080_v26 = vrot.slane %v16060_v0, 10  ;;  %v18841_v0 = vld [vmem:[%s18945_s8 + $0xa8] sm:$0xf] }
 0x3e7   : > { %v16092_v16 = vcombine.low %v12944_v37, %v12947_v25  ;;  %v12980_v63 = vrot.slane %v12978_v11, 4  ;;  %v12988_v25 = vrot.slane %v16065_v62, 6 }
 0x3e8   : > { %17716 = vmatmul.mubr.msk.bf16.gmra.mrb[40].mxu1 %vm560_vm1, %v16088_v6  ;;  %v16055_v6 = vld [vmem:[%s18945_s8 + $0x188] sm:$0xf]  ;;  %v12979_v38 = vsel %vm19079_vm7, %v16080_v26, %v12978_v11  ;;  %v15181_v11 = vld [vmem:[%s18945_s8 + $0x9c] sm:$0x1] }
 0x3e9   : > { %17719 = vmatprep.mubr.msk.bf16.mxu1 %vm560_vm1, %v16089_v7  ;;  %v12964_v3 = vrot.slane %v16055_v6, 6  ;;  %v16054_v7 = vld [vmem:[%s18945_s8 + $0x184] sm:$0xc]  ;;  %v16081_v6 = vrot.slane %v16063_v14, 10 }
 0x3ea   : > { %v16078_v56 = vrot.slane %v16054_v7, 10  ;;  %v15175_v7 = vld [vmem:[%s18945_s8 + $0x7c] sm:$0x1] }
 0x3eb   : > { %17222 = vmatmul.mubr.msk.bf16.gmra.mrb[120].mxu0 %vm560_vm1, %v15134_v23  ;;  %v12966_v18 = vrot.slane %v12964_v3, 4  ;;  %v16058_v23 = vld [vmem:[%s18945_s8 + $0x198] sm:$0xf] }
 0x3ec   : > { %17225 = vmatprep.mubr.msk.bf16.mxu0 %vm560_vm1, %v15135_v40  ;;  %v7513_v40 = vsel %vm609_vm0, %v22297_v20, 0  ;;  %v12971_v44 = vrot.slane %v16058_v23, 6  ;;  %v12965_v28 = vsel %vm19079_vm7, %v16078_v56, %v12964_v3  ;;  %v22532_v20 = vld [vmem:[%s23899_s2 + $0x3c] sm:$0xf]  ;;  %v15173_v3 = vld [vmem:[%s18945_s8 + $0x74] sm:$0xe] }
 0x3ed   : > { %v12968_v52 = vsel %vm19079_vm7, %v12966_v18, %v12967_v9  ;;  %v15219_v39 = vrot.slane %v15173_v3, 9  ;;  %v7314_v18 = vrot.slane %v15175_v7, 5  ;;  %v15191_v3 = vld [vmem:[%s18945_s8 + $0xd4] sm:$0xe]  ;;  %v15193_v7 = vld [vmem:[%s18945_s8 + $0xdc] sm:$0x1] }
 0x3ee   : > { %v16095_v5 = vcombine.low %v12965_v28, %v12968_v52  ;;  %v12973_v21 = vrot.slane %v12971_v44, 4 }
 0x3f0   : > { %17720 = vmatmul.mubr.msk.bf16.gmra.mrb[44].mxu1 %vm560_vm1, %v16090_v41  ;;  %v12974_v41 = vrot.slane %v16059_v33, 6  ;;  %v15179_v33 = vld [vmem:[%s18945_s8 + $0x94] sm:$0xe] }
 0x3f1   : > { %17723 = vmatprep.mubr.msk.bf16.mxu1 %vm560_vm1, %v16091_v60  ;;  %v12981_v60 = vrot.slane %v16062_v19, 6  ;;  %v7332_v19 = vrot.slane %v18841_v0, 5  ;;  %v18847_v0 = vld [vmem:[%s18945_s8 + $0x108] sm:$0xf] }
 0x3f2   : > { %v12975_v48 = vsel %vm19079_vm7, %v12973_v21, %v12974_v41  ;;  %v15221_v41 = vrot.slane %v15179_v33, 9  ;;  %v15197_v33 = vld [vmem:[%s18945_s8 + $0xf4] sm:$0xe] }
 0x3f3   : > { %17226 = vmatmul.mubr.msk.bf16.gmra.mrb[124].mxu0 %vm560_vm1, %v15136_v53  ;;  %v12982_v17 = vsel %vm19079_vm7, %v12980_v63, %v12981_v60  ;;  %v7328_v63 = vrot.slane %v15181_v11, 5  ;;  %v8019_v60 = vsel %vm609_vm0, %v22532_v20, 0  ;;  %v15199_v11 = vld [vmem:[%s18945_s8 + $0xfc] sm:$0x1] }
 0x3f4   : > { %17231 = vmatprep.mubr.msk.bf16.mxu0 %vm560_vm1, %v24107_v36  ;;  %v12958_v36 = vsel %vm19079_vm7, %v16077_v15, %v12957_v45  ;;  %v16097_v53 = vcombine.low %v12979_v38, %v12982_v17  ;;  %v15178_v15 = vld [vmem:[%s18945_s8 + $0x8c] sm:$0x1]  ;;  %v18842_v17 = vld [vmem:[%s18945_s8 + $0xb8] sm:$0xf] }
 0x3f5   : > { %v16094_v2 = vcombine.low %v12958_v36, %v12961_v12  ;;  %v7321_v1 = vrot.slane %v15178_v15, 5  ;;  %v7339_v14 = vrot.slane %v18842_v17, 5  ;;  %v15196_v15 = vld [vmem:[%s18945_s8 + $0xec] sm:$0x1] }
 0x3f8   : > { %17724 = vmatmul.mubr.msk.bf16.gmra.mrb[48].mxu1 %vm560_vm1, %v16092_v16  ;;  %v7318_v16 = vrot.slane %v18839_v13, 5  ;;  %v18845_v13 = vld [vmem:[%s18945_s8 + $0xe8] sm:$0xf] }
 0x3f9   : > { %17727 = vmatprep.mubr.msk.bf16.mxu1 %vm560_vm1, %v16093_v24  ;;  %v15176_v24 = vld [vmem:[%s18945_s8 + $0x84] sm:$0xe] }
 0x3fa   : > { %v15220_v9 = vrot.slane %v15176_v24, 9  ;;  %v7320_v23 = vrot.slane %v7318_v16, 4  ;;  %v15194_v24 = vld [vmem:[%s18945_s8 + $0xe4] sm:$0xe] }
 0x3fb   : > { %17232 = vmatmul.mubr.msk.bf16.vlgmr.msra.gmra.mrb[96].mxu0 %vm560_vm1, %v24114_v22  ;;  %v16064_v22 = vld [vmem:[%s18945_s8 + $0x1b8] sm:$0xf] }
 0x3fc   : > { %17264 = vmatpush3.bf16.msra.mxu0 %v7513_v40  ;;  %17235 = vmatprep.mubr.msk.bf16.mxu0 %vm560_vm1, %v24115_v55  ;;  %v12972_v55 = vsel %vm19079_vm7, %v16079_v29, %v12971_v44  ;;  %v12985_v49 = vrot.slane %v16064_v22, 6  ;;  %v24154_v40 = vld [vmem:[#allocation2_spill] sm:$0xff]  ;;  %v7325_v44 = vrot.slane %v18840_v59, 5  ;;  %v7319_v28 = vsel %vm21775_vm12, %v15220_v9, %v7318_v16  ;;  %v18846_v59 = vld [vmem:[%s18945_s8 + $0xf8] sm:$0xf] }
 0x3fd   : > { %18655 = vmatprep.subr.msk.bf16.mxu0 %vm609_vm0, %v22532_v20  ;;  %v16096_v57 = vcombine.low %v12972_v55, %v12975_v48  ;;  %v7322_v52 = vsel %vm21775_vm12, %v7320_v23, %v7321_v1  ;;  %v7334_v55 = vrot.slane %v7332_v19, 4  ;;  %v7360_v16 = vrot.slane %v18845_v13, 5 }
 0x3fe   : > { %v12987_v37 = vrot.slane %v12985_v49, 4  ;;  %v12986_v45 = vsel %vm19079_vm7, %v16081_v6, %v12985_v49  ;;  %v15237_v21 = vcombine.low %v7319_v28, %v7322_v52  ;;  %v7327_v26 = vrot.slane %v7325_v44, 4  ;;  %v22621_v49 = vld [vmem:[%s23899_s2 + $0x40] sm:$0xf]  ;;  %v15187_v6 = vld [vmem:[%s18945_s8 + $0xbc] sm:$0x1] }
 0x3ff   : > { %v7326_v38 = vsel %vm21775_vm12, %v15221_v41, %v7325_v44  ;;  %v7356_v9 = vrot.slane %v15193_v7, 5  ;;  %v15226_v23 = vrot.slane %v15194_v24, 9  ;;  %v7362_v1 = vrot.slane %v7360_v16, 4  ;;  %v18851_v7 = vld [vmem:[%s18945_s8 + $0x148] sm:$0xf] }
 0x400   : > { %17728 = vmatmul.mubr.msk.bf16.gmra.mrb[52].mxu1 %vm560_vm1, %v16094_v2  ;;  %v15182_v2 = vld [vmem:[%s18945_s8 + $0xa4] sm:$0xe]  ;;  %v7329_v20 = vsel %vm21775_vm12, %v7327_v26, %v7328_v63  ;;  %v7367_v44 = vrot.slane %v18846_v59, 5  ;;  %v15227_v41 = vrot.slane %v15197_v33, 9  ;;  %v7370_v63 = vrot.slane %v15199_v11, 5 }
 0x401   : > { %17731 = vmatprep.mubr.msk.bf16.mxu1 %vm560_vm1, %v16095_v5  ;;  %v15184_v5 = vld [vmem:[%s18945_s8 + $0xac] sm:$0x1]  ;;  %v15222_v22 = vrot.slane %v15182_v2, 9  ;;  %v7361_v28 = vsel %vm21775_vm12, %v15226_v23, %v7360_v16  ;;  %v15200_v2 = vld [vmem:[%s18945_s8 + $0x104] sm:$0xe]  ;;  %v7402_v13 = vrot.slane %v18851_v7, 5 }
 0x402   : > { %v7335_v48 = vrot.slane %v15184_v5, 5  ;;  %v15202_v5 = vld [vmem:[%s18945_s8 + $0x10c] sm:$0x1]  ;;  %v7369_v26 = vrot.slane %v7367_v44, 4  ;;  %v15212_v16 = vld [vmem:[%s18945_s8 + $0x144] sm:$0xe] }
 0x403   : > { %17236 = vmatmul.mubr.msk.bf16.gmra.mrb[100].mxu0 %vm560_vm1, %v24122_v54  ;;  %v12989_v54 = vsel %vm19079_vm7, %v12987_v37, %v12988_v25  ;;  %v7333_v62 = vsel %vm21775_vm12, %v15222_v22, %v7332_v19  ;;  %v18843_v37 = vld [vmem:[%s18945_s8 + $0xc8] sm:$0xf]  ;;  %v7374_v19 = vrot.slane %v18847_v0, 5  ;;  %v15214_v24 = vld [vmem:[%s18945_s8 + $0x14c] sm:$0x1]  ;;  %v7404_v23 = vrot.slane %v7402_v13, 4 }
 0x404   : > { %17239 = vmatprep.mubr.msk.bf16.mxu0 %vm560_vm1, %v24123_v32  ;;  %v16098_v32 = vcombine.low %v12986_v45, %v12989_v54  ;;  %v7346_v25 = vrot.slane %v18843_v37, 5  ;;  %v15188_v45 = vld [vmem:[%s18945_s8 + $0xc4] sm:$0xe]  ;;  %v15190_v54 = vld [vmem:[%s18945_s8 + $0xcc] sm:$0x1] }
 0x405   : > { %v7376_v22 = vrot.slane %v7374_v19, 4  ;;  %v18852_v59 = vld [vmem:[%s18945_s8 + $0x158] sm:$0xf]  ;;  %v15215_v33 = vld [vmem:[%s18945_s8 + $0x154] sm:$0xe] }
 0x406   : > { %v15217_v11 = vld [vmem:[%s18945_s8 + $0x15c] sm:$0x1] }
 0x408   : > { %17732 = vmatmul.mubr.msk.bf16.gmra.mrb[56].mxu1 %vm560_vm1, %v16096_v57  ;;  %v7336_v57 = vsel %vm21775_vm12, %v7334_v55, %v7335_v48  ;;  %v7377_v55 = vrot.slane %v15202_v5, 5  ;;  %v7368_v48 = vsel %vm21775_vm12, %v15227_v41, %v7367_v44  ;;  %v7409_v44 = vrot.slane %v18852_v59, 5  ;;  %v22779_v59 = vld [vmem:[%s23899_s2 + $0x44] sm:$0xf] }
 0x409   : > { %17735 = vmatprep.mubr.msk.bf16.mxu1 %vm560_vm1, %v16097_v53  ;;  %v15185_v53 = vld [vmem:[%s18945_s8 + $0xb4] sm:$0xe] }
 0x40a   : > { %v7411_v41 = vrot.slane %v7409_v44, 4 }
 0x40b   : > { %17240 = vmatmul.mubr.msk.bf16.gmra.mrb[104].mxu0 %vm560_vm1, %v24130_v10  ;;  %v7304_v10 = vrot.slane %v18837_v27, 5  ;;  %v15239_v27 = vcombine.low %v7333_v62, %v7336_v57  ;;  %v7378_v62 = vsel %vm21775_vm12, %v7376_v22, %v7377_v55  ;;  %v15203_v57 = vld [vmem:[%s18945_s8 + $0x114] sm:$0xe] }
 0x40c   : > { %17243 = vmatprep.mubr.msk.bf16.mxu0 %vm560_vm1, %v24131_v43  ;;  %v15170_v43 = vld [vmem:[%s18945_s8 + $0x64] sm:$0xe]  ;;  %v22725_v55 = vld [vmem:[%s18945_s8 + $0xb4] sm:$0xf] }
 0x410   : > { %17736 = vmatmul.mubr.msk.bf16.gmra.mrb[60].mxu1 %vm560_vm1, %v16098_v32  ;;  %v15238_v32 = vcombine.low %v7326_v38, %v7329_v20  ;;  %v7371_v38 = vsel %vm21775_vm12, %v7369_v26, %v7370_v63  ;;  %v18848_v20 = vld [vmem:[%s18945_s8 + $0x118] sm:$0xf]  ;;  %v7412_v26 = vrot.slane %v15217_v11, 5  ;;  %v15282_v11 = vld [vmem:[%s18945_s8 + $0xf0] sm:$0xe] }
 0x411   : > { %v7381_v17 = vrot.slane %v18848_v20, 5 }
 0x412   : > { %v7413_v20 = vsel %vm21775_vm12, %v7411_v41, %v7412_v26  ;;  %v15320_v41 = vrot.slane %v15282_v11, 9  ;;  %v22847_v11 = vld [vmem:[%s18945_s8 + $0x164] sm:$0xf] }
 0x413   : > { %17244 = vmatmul.mubr.msk.bf16.gmra.mrb[108].mxu0 %vm560_vm1, %v24138_v4  ;;  %v15172_v4 = vld [vmem:[%s18945_s8 + $0x6c] sm:$0x1] }
 0x414   : > { %17247 = vmatprep.mubr.msk.bf16.mxu0 %vm560_vm1, %v24139_v30  ;;  %v15218_v30 = vrot.slane %v15170_v43, 9  ;;  %v7307_v8 = vrot.slane %v15172_v4, 5  ;;  %v7341_v43 = vrot.slane %v7339_v14, 4  ;;  %v7342_v4 = vrot.slane %v15187_v6, 5  ;;  %v18849_v6 = vld [vmem:[%s18945_s8 + $0x128] sm:$0xf] }
 0x415   : > { %v7388_v37 = vrot.slane %v18849_v6, 5 }
 0x41b   : > { %17248 = vmatmul.mubr.msk.bf16.gmra.mrb[112].mxu0 %vm560_vm1, %v24143_v42  ;;  %v7306_v42 = vrot.slane %v7304_v10, 4 }
 0x41c   : > { %17251 = vmatprep.mubr.msk.bf16.mxu0 %vm560_vm1, %v24144_v47  ;;  %v24153_v47 = vld [vmem:[#allocation21_spill] sm:$0xff] }
 0x41d   : > { %v7308_v31 = vsel %vm21775_vm12, %v7306_v42, %v7307_v8  ;;  %v7348_v42 = vrot.slane %v7346_v25, 4  ;;  %v7349_v8 = vrot.slane %v15190_v54, 5  ;;  %v15244_v54 = vcombine.low %v7368_v48, %v7371_v38  ;;  %v22728_v48 = vld [vmem:[%s18945_s8 + $0xc4] sm:$0xf] }
 0x41e   : > { %v7824_v6 = vrot.slane %v22728_v48, 5 }
 0x423   : > { %17252 = vmatmul.mubr.msk.bf16.gmra.mrb[116].mxu0 %vm560_vm1, %v24145_v58  ;;  %v18838_v58 = vld [vmem:[%s18945_s8 + $0x78] sm:$0xf] }
 0x424   : > { %17255 = vmatprep.mubr.msk.bf16.mxu0 %vm560_vm1, %v24146_v35  ;;  %v7311_v50 = vrot.slane %v18838_v58, 5  ;;  %v7305_v35 = vsel %vm21775_vm12, %v15218_v30, %v7304_v10  ;;  %v15223_v10 = vrot.slane %v15185_v53, 9  ;;  %v15224_v30 = vrot.slane %v15188_v45, 9  ;;  %v18844_v58 = vld [vmem:[%s18945_s8 + $0xd8] sm:$0xf] }
 0x425   : > { %v15235_v34 = vcombine.low %v7305_v35, %v7308_v31  ;;  %v7350_v31 = vsel %vm21775_vm12, %v7348_v42, %v7349_v8  ;;  %v15205_v53 = vld [vmem:[%s18945_s8 + $0x11c] sm:$0x1]  ;;  %v15208_v45 = vld [vmem:[%s18945_s8 + $0x12c] sm:$0x1] }
 0x426   : > { %v7313_v56 = vrot.slane %v7311_v50, 4  ;;  %v7312_v36 = vsel %vm21775_vm12, %v15219_v39, %v7311_v50  ;;  %v7353_v50 = vrot.slane %v18844_v58, 5  ;;  %v7347_v35 = vsel %vm21775_vm12, %v15224_v30, %v7346_v25  ;;  %v15206_v25 = vld [vmem:[%s18945_s8 + $0x124] sm:$0xe] }
 0x427   : > { %v15241_v39 = vcombine.low %v7347_v35, %v7350_v31  ;;  %v7390_v30 = vrot.slane %v7388_v37, 4  ;;  %v7391_v42 = vrot.slane %v15208_v45, 5  ;;  %v15209_v31 = vld [vmem:[%s18945_s8 + $0x134] sm:$0xe] }
 0x428   : > { %v7315_v12 = vsel %vm21775_vm12, %v7313_v56, %v7314_v18  ;;  %v15225_v56 = vrot.slane %v15191_v3, 9  ;;  %v7355_v18 = vrot.slane %v7353_v50, 4  ;;  %v15211_v3 = vld [vmem:[%s18945_s8 + $0x13c] sm:$0x1] }
 0x429   : > { %v15236_v29 = vcombine.low %v7312_v36, %v7315_v12  ;;  %v7392_v35 = vsel %vm21775_vm12, %v7390_v30, %v7391_v42  ;;  %v22747_v42 = vld [vmem:[%s18945_s8 + $0xd4] sm:$0xf] }
 0x42a   : > { %v7354_v36 = vsel %vm21775_vm12, %v15225_v56, %v7353_v50  ;;  %v7357_v12 = vsel %vm21775_vm12, %v7355_v18, %v7356_v9  ;;  %v7398_v18 = vrot.slane %v15211_v3, 5  ;;  %v15232_v9 = vrot.slane %v15212_v16, 9  ;;  %v15278_v3 = vld [vmem:[%s18945_s8 + $0xd8] sm:$0x1]  ;;  %v15281_v16 = vld [vmem:[%s18945_s8 + $0xe8] sm:$0x1] }
 0x42b   : > { %17256 = vmatmul.mubr.msk.bf16.gmra.mrb[120].mxu0 %vm560_vm1, %v24152_v51  ;;  %v7340_v51 = vsel %vm21775_vm12, %v15223_v10, %v7339_v14  ;;  %v7383_v10 = vrot.slane %v7381_v17, 4 }
 0x42c   : > { %17259 = vmatprep.mubr.msk.bf16.mxu0 %vm560_vm1, %v24153_v47  ;;  %v7343_v47 = vsel %vm21775_vm12, %v7341_v43, %v7342_v4  ;;  %v7384_v43 = vrot.slane %v15205_v53, 5  ;;  %v15230_v4 = vrot.slane %v15206_v25, 9  ;;  %v15272_v53 = vld [vmem:[%s18945_s8 + $0xb8] sm:$0x1]  ;;  %v15275_v25 = vld [vmem:[%s18945_s8 + $0xc8] sm:$0x1] }
 0x42d   : > { %v7827_v30 = vrot.slane %v15275_v25, 5  ;;  %v15290_v25 = vld [vmem:[%s18945_s8 + $0x118] sm:$0x1] }
 0x42e   : > { %v7389_v50 = vsel %vm21775_vm12, %v15230_v4, %v7388_v37  ;;  %v15273_v37 = vld [vmem:[%s18945_s8 + $0xc0] sm:$0xe]  ;;  %v7826_v4 = vrot.slane %v7824_v6, 4 }
 0x433   : > { %17260 = vmatmul.mubr.msk.bf16.gmra.mrb[124].mxu0 %vm560_vm1, %v24154_v40  ;;  %v7363_v40 = vrot.slane %v15196_v15, 5 }
 0x434   : > { %17265 = vmatprep.mubr.msk.bf16.mxu0 %vm560_vm1, %v15235_v34  ;;  %v15240_v34 = vcombine.low %v7340_v51, %v7343_v47  ;;  %v7385_v51 = vsel %vm21775_vm12, %v7383_v10, %v7384_v43  ;;  %v18850_v47 = vld [vmem:[%s18945_s8 + $0x138] sm:$0xf]  ;;  %v7820_v10 = vrot.slane %v15272_v53, 5  ;;  %v15317_v43 = vrot.slane %v15273_v37, 9  ;;  %v15288_v37 = vld [vmem:[%s18945_s8 + $0x110] sm:$0xe] }
 0x435   : > { %v7364_v52 = vsel %vm21775_vm12, %v7362_v1, %v7363_v40  ;;  %v7395_v58 = vrot.slane %v18850_v47, 5  ;;  %v7405_v1 = vrot.slane %v15214_v24, 5  ;;  %v22706_v40 = vld [vmem:[%s18945_s8 + $0xa4] sm:$0xf] }
 0x436   : > { %v7810_v0 = vrot.slane %v22706_v40, 5 }
 0x437   : > { %v7397_v56 = vrot.slane %v7395_v58, 4 }
 0x43b   : > { %17266 = vmatmul.mubr.msk.bf16.vlgmr.msra.gmra.mrb[96].mxu0 %vm560_vm1, %v15236_v29  ;;  %v15242_v29 = vcombine.low %v7354_v36, %v7357_v12  ;;  %v7399_v12 = vsel %vm21775_vm12, %v7397_v56, %v7398_v18  ;;  %v7834_v56 = vrot.slane %v15278_v3, 5  ;;  %v8489_v18 = vsel %vm609_vm0, %v22621_v49, 0 }
 0x43c   : > { %17298 = vmatpush3.bf16.msra.mxu0 %v8019_v60  ;;  %17269 = vmatprep.mubr.msk.bf16.mxu0 %vm560_vm1, %v15237_v21  ;;  %v15243_v21 = vcombine.low %v7361_v28, %v7364_v52  ;;  %v15228_v60 = vrot.slane %v15200_v2, 9  ;;  %v7403_v28 = vsel %vm21775_vm12, %v15232_v9, %v7402_v13  ;;  %v7406_v52 = vsel %vm21775_vm12, %v7404_v23, %v7405_v1  ;;  %v15269_v2 = vld [vmem:[%s18945_s8 + $0xa8] sm:$0x1]  ;;  %v15279_v13 = vld [vmem:[%s18945_s8 + $0xe0] sm:$0xe] }
 0x43d   : > { %18656 = vmatprep.subr.msk.bf16.mxu0 %vm609_vm0, %v22621_v49  ;;  %v7813_v22 = vrot.slane %v15269_v2, 5  ;;  %v15319_v9 = vrot.slane %v15279_v13, 9  ;;  %v7841_v1 = vrot.slane %v15281_v16, 5  ;;  %v15285_v2 = vld [vmem:[%s18945_s8 + $0x100] sm:$0xe] }
 0x43e   : > { %v7375_v14 = vsel %vm21775_vm12, %v15228_v60, %v7374_v19  ;;  %v15267_v19 = vld [vmem:[%s18945_s8 + $0xa0] sm:$0xe]  ;;  %v7812_v60 = vrot.slane %v7810_v0, 4  ;;  %v15294_v13 = vld [vmem:[%s18945_s8 + $0x130] sm:$0xe] }
 0x43f   : > { %v15315_v63 = vrot.slane %v15267_v19, 9  ;;  %v15296_v16 = vld [vmem:[%s18945_s8 + $0x138] sm:$0x1] }
 0x443   : > { %17270 = vmatmul.mubr.msk.bf16.gmra.mrb[100].mxu0 %vm560_vm1, %v15238_v32  ;;  %v15245_v32 = vcombine.low %v7375_v14, %v7378_v62  ;;  %v7811_v14 = vsel %vm21775_vm12, %v15315_v63, %v7810_v0  ;;  %v7814_v62 = vsel %vm21775_vm12, %v7812_v60, %v7813_v22  ;;  %v15284_v0 = vld [vmem:[%s18945_s8 + $0xf8] sm:$0x1]  ;;  %v15321_v60 = vrot.slane %v15285_v2, 9  ;;  %v15300_v2 = vld [vmem:[%s18945_s8 + $0x150] sm:$0xe] }
 0x444   : > { %17273 = vmatprep.mubr.msk.bf16.mxu0 %vm560_vm1, %v15239_v27  ;;  %v15229_v27 = vrot.slane %v15203_v57, 9  ;;  %v15270_v57 = vld [vmem:[%s18945_s8 + $0xb0] sm:$0xe]  ;;  %v7848_v63 = vrot.slane %v15284_v0, 5 }
 0x446   : > { %v7382_v8 = vsel %vm21775_vm12, %v15229_v27, %v7381_v17  ;;  %v7817_v17 = vrot.slane %v22725_v55, 5 }
 0x447   : > { %v15246_v15 = vcombine.low %v7382_v8, %v7385_v51  ;;  %v22750_v8 = vld [vmem:[%s18945_s8 + $0xe4] sm:$0xf] }
 0x448   : > { %v7819_v27 = vrot.slane %v7817_v17, 4  ;;  %v7838_v7 = vrot.slane %v22750_v8, 5 }
 0x44a   : > { %v7821_v47 = vsel %vm21775_vm12, %v7819_v27, %v7820_v10  ;;  %v7840_v23 = vrot.slane %v7838_v7, 4 }
 0x44b   : > { %17274 = vmatmul.mubr.msk.bf16.gmra.mrb[104].mxu0 %vm560_vm1, %v15240_v34  ;;  %v15247_v34 = vcombine.low %v7389_v50, %v7392_v35  ;;  %v7825_v50 = vsel %vm21775_vm12, %v15317_v43, %v7824_v6  ;;  %v7828_v35 = vsel %vm21775_vm12, %v7826_v4, %v7827_v30  ;;  %v15322_v43 = vrot.slane %v15288_v37, 9 }
 0x44c   : > { %17277 = vmatprep.mubr.msk.bf16.mxu0 %vm560_vm1, %v15241_v39  ;;  %v15231_v39 = vrot.slane %v15209_v31, 9  ;;  %v15276_v31 = vld [vmem:[%s18945_s8 + $0xd0] sm:$0xe]  ;;  %v7862_v30 = vrot.slane %v15290_v25, 5 }
 0x44e   : > { %v7396_v36 = vsel %vm21775_vm12, %v15231_v39, %v7395_v58  ;;  %v7831_v58 = vrot.slane %v22747_v42, 5 }
 0x44f   : > { %v15248_v5 = vcombine.low %v7396_v36, %v7399_v12  ;;  %v22771_v36 = vld [vmem:[%s18945_s8 + $0xf4] sm:$0xf]  ;;  %v22774_v12 = vld [vmem:[%s18945_s8 + $0x104] sm:$0xf] }
 0x450   : > { %v7833_v39 = vrot.slane %v7831_v58, 4  ;;  %v7852_v19 = vrot.slane %v22774_v12, 5 }
 0x452   : > { %v7854_v22 = vrot.slane %v7852_v19, 4  ;;  %v7853_v53 = vsel %vm21775_vm12, %v15321_v60, %v7852_v19  ;;  %v15303_v60 = vld [vmem:[%s18945_s8 + $0x160] sm:$0xe] }
 0x453   : > { %17278 = vmatmul.mubr.msk.bf16.gmra.mrb[108].mxu0 %vm560_vm1, %v15242_v29  ;;  %v15249_v29 = vcombine.low %v7403_v28, %v7406_v52  ;;  %v7845_v28 = vrot.slane %v22771_v36, 5  ;;  %v7839_v52 = vsel %vm21775_vm12, %v15319_v9, %v7838_v7  ;;  %v15324_v9 = vrot.slane %v15294_v13, 9 }
 0x454   : > { %17281 = vmatprep.mubr.msk.bf16.mxu0 %vm560_vm1, %v15243_v21  ;;  %v15233_v21 = vrot.slane %v15215_v33, 9  ;;  %v7842_v33 = vsel %vm21775_vm12, %v7840_v23, %v7841_v1  ;;  %v7876_v1 = vrot.slane %v15296_v16, 5  ;;  %v15327_v25 = vrot.slane %v15303_v60, 9 }
 0x455   : > { %v7847_v26 = vrot.slane %v7845_v28, 4 }
 0x456   : > { %v7410_v38 = vsel %vm21775_vm12, %v15233_v21, %v7409_v44  ;;  %v7835_v44 = vsel %vm21775_vm12, %v7833_v39, %v7834_v56  ;;  %v15336_v21 = vcombine.low %v7839_v52, %v7842_v33  ;;  %v15297_v39 = vld [vmem:[%s18945_s8 + $0x140] sm:$0xe]  ;;  %v15299_v56 = vld [vmem:[%s18945_s8 + $0x148] sm:$0x1] }
 0x457   : > { %v15250_v45 = vcombine.low %v7410_v38, %v7413_v20  ;;  %v22800_v20 = vld [vmem:[%s18945_s8 + $0x114] sm:$0xf]  ;;  %v7883_v33 = vrot.slane %v15299_v56, 5 }
 0x45b   : > { %17282 = vmatmul.mubr.msk.bf16.gmra.mrb[112].mxu0 %vm560_vm1, %v15244_v54  ;;  %v15332_v54 = vcombine.low %v7811_v14, %v7814_v62  ;;  %v7846_v14 = vsel %vm21775_vm12, %v15320_v41, %v7845_v28  ;;  %v7849_v62 = vsel %vm21775_vm12, %v7847_v26, %v7848_v63  ;;  %v15325_v28 = vrot.slane %v15297_v39, 9  ;;  %v22860_v41 = vld [vmem:[%s18945_s8 + $0x174] sm:$0xf] }
 0x45c   : > { %17285 = vmatprep.mubr.msk.bf16.mxu0 %vm560_vm1, %v15245_v32  ;;  %v15316_v32 = vrot.slane %v15270_v57, 9  ;;  %v7859_v57 = vrot.slane %v22800_v20, 5  ;;  %v15337_v27 = vcombine.low %v7846_v14, %v7849_v62  ;;  %v15326_v14 = vrot.slane %v15300_v2, 9 }
 0x45e   : > { %v7818_v51 = vsel %vm21775_vm12, %v15316_v32, %v7817_v17  ;;  %v22803_v17 = vld [vmem:[%s18945_s8 + $0x124] sm:$0xf]  ;;  %v15293_v32 = vld [vmem:[%s18945_s8 + $0x128] sm:$0x1]  ;;  %v7861_v4 = vrot.slane %v7859_v57, 4  ;;  %v7860_v3 = vsel %vm21775_vm12, %v15322_v43, %v7859_v57 }
 0x45f   : > { %v15333_v24 = vcombine.low %v7818_v51, %v7821_v47  ;;  %v22822_v51 = vld [vmem:[%s18945_s8 + $0x134] sm:$0xf] }
 0x460   : > { %v7863_v7 = vsel %vm21775_vm12, %v7861_v4, %v7862_v30 }
 0x463   : > { %17286 = vmatmul.mubr.msk.bf16.gmra.mrb[116].mxu0 %vm560_vm1, %v15246_v15  ;;  %v15334_v15 = vcombine.low %v7825_v50, %v7828_v35  ;;  %v7869_v50 = vrot.slane %v15293_v32, 5  ;;  %v22825_v35 = vld [vmem:[%s18945_s8 + $0x144] sm:$0xf]  ;;  %v15308_v32 = vld [vmem:[%s18945_s8 + $0x178] sm:$0x1] }
 0x464   : > { %17289 = vmatprep.mubr.msk.bf16.mxu0 %vm560_vm1, %v15247_v34  ;;  %v15318_v34 = vrot.slane %v15276_v31, 9  ;;  %v7873_v31 = vrot.slane %v22822_v51, 5 }
 0x466   : > { %v7832_v49 = vsel %vm21775_vm12, %v15318_v34, %v7831_v58  ;;  %v7880_v34 = vrot.slane %v22825_v35, 5  ;;  %v7875_v23 = vrot.slane %v7873_v31, 4  ;;  %v7874_v0 = vsel %vm21775_vm12, %v15324_v9, %v7873_v31  ;;  %v15365_v9 = vld [vmem:[%s18945_s8 + $0xa8] sm:$0x7] }
 0x468   : > { %v7882_v52 = vrot.slane %v7880_v34, 4  ;;  %v7877_v19 = vsel %vm21775_vm12, %v7875_v23, %v7876_v1  ;;  %v7881_v26 = vsel %vm21775_vm12, %v15325_v28, %v7880_v34  ;;  %v8280_v34 = vrot.slane %v22706_v40, 7 }
 0x46a   : > { %v7884_v63 = vsel %vm21775_vm12, %v7882_v52, %v7883_v33  ;;  %v8282_v2 = vrot.slane %v8280_v34, 4 }
 0x46b   : > { %17290 = vmatmul.mubr.msk.bf16.gmra.mrb[120].mxu0 %vm560_vm1, %v15248_v5  ;;  %v15287_v5 = vld [vmem:[%s18945_s8 + $0x108] sm:$0x1]  ;;  %v15342_v37 = vcombine.low %v7881_v26, %v7884_v63  ;;  %v15367_v26 = vld [vmem:[%s18945_s8 + $0xb8] sm:$0x7]  ;;  %v8294_v63 = vrot.slane %v22728_v48, 7 }
 0x46c   : > { %17293 = vmatprep.mubr.msk.bf16.mxu0 %vm560_vm1, %v15249_v29  ;;  %v15335_v29 = vcombine.low %v7832_v49, %v7835_v44  ;;  %v7855_v38 = vrot.slane %v15287_v5, 5  ;;  %v22844_v44 = vld [vmem:[%s18945_s8 + $0x154] sm:$0xf] }
 0x46d   : > { %v7887_v5 = vrot.slane %v22844_v44, 5 }
 0x46e   : > { %v7856_v6 = vsel %vm21775_vm12, %v7854_v22, %v7855_v38  ;;  %v15305_v22 = vld [vmem:[%s18945_s8 + $0x168] sm:$0x1]  ;;  %v15341_v38 = vcombine.low %v7874_v0, %v7877_v19 }
 0x46f   : > { %v15338_v10 = vcombine.low %v7853_v53, %v7856_v6  ;;  %v7889_v62 = vrot.slane %v7887_v5, 4  ;;  %v15306_v53 = vld [vmem:[%s18945_s8 + $0x170] sm:$0xe]  ;;  %v7901_v6 = vrot.slane %v22860_v41, 5  ;;  %v7888_v4 = vsel %vm21775_vm12, %v15326_v14, %v7887_v5  ;;  %v15369_v14 = vld [vmem:[%s18945_s8 + $0xc8] sm:$0x7] }
 0x470   : > { %v15328_v43 = vrot.slane %v15306_v53, 9  ;;  %v8283_v5 = vrot.slane %v15365_v9, 7  ;;  %v15370_v53 = vld [vmem:[%s18945_s8 + $0xd0] sm:$0x8] }
 0x472   : > { %v7902_v56 = vsel %vm21775_vm12, %v15328_v43, %v7901_v6  ;;  %v15373_v43 = vld [vmem:[%s18945_s8 + $0xe8] sm:$0x7] }
 0x473   : > { %17294 = vmatmul.mubr.msk.bf16.gmra.mrb[124].mxu0 %vm560_vm1, %v15250_v45  ;;  %v7866_v45 = vrot.slane %v22803_v17, 5 }
 0x474   : > { %17299 = vmatprep.mubr.msk.bf16.mxu0 %vm560_vm1, %v15332_v54  ;;  %v15291_v54 = vld [vmem:[%s18945_s8 + $0x120] sm:$0xe] }
 0x475   : > { %v15323_v47 = vrot.slane %v15291_v54, 9  ;;  %v7868_v58 = vrot.slane %v7866_v45, 4  ;;  %v7897_v54 = vrot.slane %v15305_v22, 5 }
 0x47b   : > { %17300 = vmatmul.mubr.msk.bf16.vlgmr.msra.gmra.mrb[96].mxu0 %vm560_vm1, %v15333_v24  ;;  %v7867_v24 = vsel %vm21775_vm12, %v15323_v47, %v7866_v45  ;;  %v7903_v47 = vrot.slane %v7901_v6, 4  ;;  %v15371_v6 = vld [vmem:[%s18945_s8 + $0xd8] sm:$0x7] }
 0x47c   : > { %17332 = vmatpush3.bf16.msra.mxu0 %v8489_v18  ;;  %17303 = vmatprep.mubr.msk.bf16.mxu0 %vm560_vm1, %v15334_v15  ;;  %v7870_v15 = vsel %vm21775_vm12, %v7868_v58, %v7869_v50  ;;  %v15339_v18 = vcombine.low %v7860_v3, %v7863_v7  ;;  %v7904_v58 = vrot.slane %v15308_v32, 5  ;;  %v15309_v3 = vld [vmem:[%s18945_s8 + $0x180] sm:$0xe]  ;;  %v15311_v7 = vld [vmem:[%s18945_s8 + $0x188] sm:$0x1] }
 0x47d   : > { %18657 = vmatprep.subr.msk.bf16.mxu0 %vm609_vm0, %v22779_v59  ;;  %v15340_v49 = vcombine.low %v7867_v24, %v7870_v15  ;;  %v15312_v24 = vld [vmem:[%s18945_s8 + $0x190] sm:$0xe]  ;;  %v15314_v15 = vld [vmem:[%s18945_s8 + $0x198] sm:$0x1]  ;;  %v7911_v28 = vrot.slane %v15311_v7, 5 }
 0x47e   : > { %v7905_v1 = vsel %vm21775_vm12, %v7903_v47, %v7904_v58  ;;  %v15330_v33 = vrot.slane %v15312_v24, 9  ;;  %v7918_v40 = vrot.slane %v15314_v15, 5  ;;  %v15372_v32 = vld [vmem:[%s18945_s8 + $0xe0] sm:$0x8]  ;;  %v8296_v47 = vrot.slane %v8294_v63, 4 }
 0x47f   : > { %v15345_v60 = vcombine.low %v7902_v56, %v7905_v1  ;;  %v8297_v58 = vrot.slane %v15369_v14, 7  ;;  %v8311_v24 = vrot.slane %v15373_v43, 7  ;;  %v15374_v15 = vld [vmem:[%s18945_s8 + $0xf0] sm:$0x8] }
 0x480   : > { %v15378_v43 = vld [vmem:[%s18945_s8 + $0x110] sm:$0x8] }
 0x481   : > { %v22960_v1 = vsel %vm19038_vm6, %v8296_v47, %v8297_v58 }
 0x483   : > { %17304 = vmatmul.mubr.msk.bf16.gmra.mrb[100].mxu0 %vm560_vm1, %v15335_v29  ;;  %v15302_v29 = vld [vmem:[%s18945_s8 + $0x158] sm:$0x1] }
 0x484   : > { %17307 = vmatprep.mubr.msk.bf16.mxu0 %vm560_vm1, %v15336_v21  ;;  %v7894_v21 = vrot.slane %v22847_v11, 5  ;;  %v7890_v57 = vrot.slane %v15302_v29, 5  ;;  %v8287_v29 = vrot.slane %v22725_v55, 7 }
 0x486   : > { %v7896_v45 = vrot.slane %v7894_v21, 4  ;;  %v7891_v30 = vsel %vm21775_vm12, %v7889_v62, %v7890_v57  ;;  %v7895_v50 = vsel %vm21775_vm12, %v15327_v25, %v7894_v21  ;;  %v15366_v21 = vld [vmem:[%s18945_s8 + $0xb0] sm:$0x8]  ;;  %v8301_v62 = vrot.slane %v22747_v42, 7 }
 0x487   : > { %v15343_v39 = vcombine.low %v7888_v4, %v7891_v30  ;;  %v22930_v25 = vsel %vm19038_vm6, %v8282_v2, %v8283_v5  ;;  %v8290_v4 = vrot.slane %v15367_v26, 7  ;;  %v22989_v26 = vld [vmem:[%s23900_s3 + $0xb] ss:$0 sm:$0xff] }
 0x488   : > { %v7898_v31 = vsel %vm21775_vm12, %v7896_v45, %v7897_v54  ;;  %v15397_v45 = vrot.slane %v15366_v21, 11  ;;  %v8289_v54 = vrot.slane %v8287_v29, 4 }
 0x489   : > { %v15344_v23 = vcombine.low %v7895_v50, %v7898_v31  ;;  %v15399_v50 = vrot.slane %v15370_v53, 11  ;;  %v8304_v31 = vrot.slane %v15371_v6, 7  ;;  %v15376_v53 = vld [vmem:[%s18945_s8 + $0x100] sm:$0x8]  ;;  %v8322_v6 = vrot.slane %v22774_v12, 7 }
 0x48a   : > { %v22952_v9 = vsel %vm19038_vm6, %v8289_v54, %v8290_v4  ;;  %v15377_v12 = vld [vmem:[%s18945_s8 + $0x108] sm:$0x7]  ;;  %v8329_v4 = vrot.slane %v22800_v20, 7  ;;  %v15402_v58 = vrot.slane %v15376_v53, 11  ;;  %v15403_v20 = vrot.slane %v15378_v43, 11 }
 0x48b   : > { %17308 = vmatmul.mubr.msk.bf16.gmra.mrb[104].mxu0 %vm560_vm1, %v15337_v27  ;;  %v22872_v27 = vld [vmem:[%s18945_s8 + $0x184] sm:$0xf]  ;;  %v8336_v43 = vrot.slane %v22803_v17, 7 }
 0x48c   : > { %17311 = vmatprep.mubr.msk.bf16.mxu0 %vm560_vm1, %v15338_v10  ;;  %v22875_v10 = vld [vmem:[%s18945_s8 + $0x194] sm:$0xf]  ;;  %v7908_v13 = vrot.slane %v22872_v27, 5  ;;  %v23077_v17 = vld [vmem:[%s23901_s4 + $0x4] sm:$0x3] }
 0x48d   : > { %v7915_v16 = vrot.slane %v22875_v10, 5 }
 0x48e   : > { %v7910_v52 = vrot.slane %v7908_v13, 4 }
 0x48f   : > { %v7917_v0 = vrot.slane %v7915_v16, 4  ;;  %v22915_v48 = vsel %vm21775_vm12, %v15330_v33, %v7915_v16 }
 0x490   : > { %v7912_v55 = vsel %vm21775_vm12, %v7910_v52, %v7911_v28  ;;  %v22966_v28 = vld [vmem:[%s23900_s3 + $0xa] ss:$0 sm:$0xff]  ;;  %v22970_v52 = vsel %vm19038_vm6, %v15399_v50, %v8301_v62 }
 0x491   : > { %v22919_v57 = vsel %vm21775_vm12, %v7917_v0, %v7918_v40  ;;  %v15401_v0 = vrot.slane %v15374_v15, 11 }
 0x493   : > { %17312 = vmatmul.mubr.msk.bf16.gmra.mrb[108].mxu0 %vm560_vm1, %v15339_v18  ;;  %v15364_v18 = vld [vmem:[%s18945_s8 + $0xa0] sm:$0x8] }
 0x494   : > { %17315 = vmatprep.mubr.msk.bf16.mxu0 %vm560_vm1, %v15340_v49  ;;  %v15329_v49 = vrot.slane %v15309_v3, 9  ;;  %v15396_v19 = vrot.slane %v15364_v18, 11  ;;  %v8315_v3 = vrot.slane %v22771_v36, 7  ;;  %v15375_v18 = vld [vmem:[%s18945_s8 + $0xf8] sm:$0x7]  ;;  %v22948_v36 = vsel %vm19038_vm6, %v15397_v45, %v8287_v29 }
 0x495   : > { %v8318_v21 = vrot.slane %v15375_v18, 7 }
 0x496   : > { %v7909_v22 = vsel %vm21775_vm12, %v15329_v49, %v7908_v13  ;;  %v22926_v42 = vsel %vm19038_vm6, %v15396_v19, %v8280_v34  ;;  %v15400_v13 = vrot.slane %v15372_v32, 11  ;;  %v22939_v34 = vld [vmem:[%s23900_s3 + $0x9] ss:$0 sm:$0xff]  ;;  %v8317_v40 = vrot.slane %v8315_v3, 4 }
 0x497   : > { %v15346_v7 = vcombine.low %v7909_v22, %v7912_v55  ;;  %v15413_v56 = vcombine.low %v22926_v42, %v22930_v25  ;;  %v15414_v22 = vcombine.low %v22948_v36, %v22952_v9  ;;  %v23012_v25 = vsel %vm19038_vm6, %v15401_v0, %v8315_v3 }
 0x498   : > { %v23018_v32 = vsel %vm19038_vm6, %v8317_v40, %v8318_v21  ;;  %v8338_v36 = vrot.slane %v8336_v43, 4 }
 0x499   : > { %v15418_v53 = vcombine.low %v23012_v25, %v23018_v32 }
 0x49b   : > { %17316 = vmatmul.mubr.msk.bf16.gmra.mrb[112].mxu0 %vm560_vm1, %v15341_v38  ;;  %v15368_v38 = vld [vmem:[%s18945_s8 + $0xc0] sm:$0x8] }
 0x49c   : > { %17319 = vmatprep.mubr.msk.bf16.mxu0 %vm560_vm1, %v15342_v37  ;;  %v8308_v37 = vrot.slane %v22750_v8, 7  ;;  %v15398_v30 = vrot.slane %v15368_v38, 11  ;;  %v8303_v8 = vrot.slane %v8301_v62, 4  ;;  %v22996_v38 = vsel %vm609_vm0, %v22779_v59, 0 }
 0x49e   : > { %v8310_v16 = vrot.slane %v8308_v37, 4  ;;  %v22974_v33 = vsel %vm19038_vm6, %v8303_v8, %v8304_v31  ;;  %v22980_v5 = vsel %vm19038_vm6, %v15400_v13, %v8308_v37  ;;  %v8324_v8 = vrot.slane %v8322_v6, 4  ;;  %v15379_v13 = vld [vmem:[%s18945_s8 + $0x118] sm:$0x7] }
 0x4a0   : > { %v22984_v29 = vsel %vm19038_vm6, %v8310_v16, %v8311_v24 }
 0x4a1   : > { %v15417_v42 = vcombine.low %v22980_v5, %v22984_v29 }
 0x4a3   : > { %17320 = vmatmul.mubr.msk.bf16.gmra.mrb[116].mxu0 %vm560_vm1, %v15343_v39  ;;  %v15347_v39 = vcombine.low %v22915_v48, %v22919_v57  ;;  %v15416_v57 = vcombine.low %v22970_v52, %v22974_v33  ;;  %v15385_v52 = vld [vmem:[%s18945_s8 + $0x148] sm:$0x7]  ;;  %v8357_v33 = vrot.slane %v22844_v44, 7 }
 0x4a4   : > { %17323 = vmatprep.mubr.msk.bf16.mxu0 %vm560_vm1, %v15344_v23  ;;  %v22956_v23 = vsel %vm19038_vm6, %v15398_v30, %v8294_v63 }
 0x4a5   : > { %v15415_v14 = vcombine.low %v22956_v23, %v22960_v1 }
 0x4ab   : > { %17324 = vmatmul.mubr.msk.bf16.gmra.mrb[120].mxu0 %vm560_vm1, %v15345_v60  ;;  %v17709_v49 = vpop.f32.mrb[32].mxu1 }
 0x4ac   : > { %v13293_v19 = vmul.f32 %v17709_v49, %v22939_v34  ;;  %v13125_v2 = vpop.f32.mrb[33].mxu1  ;;  %17327 = vmatprep.mubr.msk.bf16.mxu0 %vm560_vm1, %v15346_v7  ;;  %v8325_v7 = vrot.slane %v15377_v12, 7  ;;  %v8331_v49 = vrot.slane %v8329_v4, 4  ;;  %v15380_v12 = vld [vmem:[%s18945_s8 + $0x120] sm:$0x8] }
 0x4ad   : > { %v13291_v63 = vmul.f32 %v22939_v34, %v13125_v2  ;;  %v17710_v60 = vpop.f32.mrb[34].mxu1 }
 0x4ae   : > { %v13329_v62 = vadd.f32 %v22966_v28, %v13293_v19  ;;  %v13294_v55 = vmul.f32 %v17710_v60, %v22939_v34  ;;  %v13128_v48 = vpop.f32.mrb[35].mxu1 }
 0x4af   : > { %v13327_v37 = vadd.f32 %v22966_v28, %v13291_v63  ;;  %v13292_v59 = vmul.f32 %v22939_v34, %v13128_v48 }
 0x4b0   : > { %v13397_v45 = vmul.f32 %v22989_v26, %v13329_v62  ;;  %v13330_v54 = vadd.f32 %v22966_v28, %v13294_v55  ;;  %vm13361_vm0 = vcmp.ge.f32.partialorder %v13329_v62, 0.0 }
 0x4b1   : > { %v13395_v30 = vmul.f32 %v22989_v26, %v13327_v37  ;;  %v13328_v47 = vadd.f32 %v22966_v28, %v13292_v59  ;;  %vm13359_vm7 = vcmp.ge.f32.partialorder %v13327_v37, 0.0 }
 0x4b2   : > { %vm13362_vm13 = vcmp.ge.f32.partialorder %v13330_v54, 0.0  ;;  %v13398_v50 = vmul.f32 %v22989_v26, %v13330_v54  ;;  %v23029_v16 = vsel %vm13361_vm0, %v13329_v62, %v13397_v45  ;;  %v8332_v62 = vrot.slane %v15379_v13, 7 }
 0x4b3   : > { %vm13360_vm14 = vcmp.ge.f32.partialorder %v13328_v47, 0.0  ;;  %v13396_v31 = vmul.f32 %v22989_v26, %v13328_v47  ;;  %17328 = vmatmul.mubr.msk.bf16.gmra.mrb[124].mxu0 %vm560_vm1, %v15347_v39  ;;  %v17713_v3 = vpop.f32.mrb[36].mxu1  ;;  %v23036_v0 = vsel %vm13359_vm7, %v13327_v37, %v13395_v30  ;;  %v23053_v37 = vsel %vm19038_vm6, %v15402_v58, %v8322_v6 }
 0x4b4   : > { %v23031_v24 = vsel %vm13362_vm13, %v13330_v54, %v13398_v50  ;;  %v13297_v15 = vmul.f32 %v17713_v3, %v22939_v34  ;;  %v13141_v18 = vpop.f32.mrb[37].mxu1  ;;  %17333 = vmatprep.mubr.msk.bf16.mxu0 %vm560_vm1, %v15413_v56  ;;  %v23059_v54 = vsel %vm19038_vm6, %v8324_v8, %v8325_v7  ;;  %v23067_v6 = vsel %vm19038_vm6, %v15403_v20, %v8329_v4 }
 0x4b5   : > { %v13460_v39 = vpack.c.bf16 %v23031_v24, %v23029_v16  ;;  %v23040_v40 = vsel %vm13360_vm14, %v13328_v47, %v13396_v31  ;;  %v13295_v19 = vmul.f32 %v22939_v34, %v13141_v18  ;;  %v17714_v2 = vpop.f32.mrb[38].mxu1  ;;  %v23072_v50 = vsel %vm19038_vm6, %v8331_v49, %v8332_v62  ;;  %v15381_v31 = vld [vmem:[%s18945_s8 + $0x128] sm:$0x7] }
 0x4b6   : > { %v13333_v21 = vadd.f32 %v22966_v28, %v13297_v15  ;;  %v13298_v63 = vmul.f32 %v17714_v2, %v22939_v34  ;;  %v13144_v60 = vpop.f32.mrb[39].mxu1  ;;  %v13459_v56 = vpack.c.bf16 %v23040_v40, %v23036_v0  ;;  %v15404_v3 = vrot.slane %v15380_v12, 11  ;;  %v15382_v2 = vld [vmem:[%s18945_s8 + $0x130] sm:$0x8]  ;;  %v15383_v12 = vld [vmem:[%s18945_s8 + $0x138] sm:$0x7] }
 0x4b7   : > { %v13331_v55 = vadd.f32 %v22966_v28, %v13295_v19  ;;  %v13296_v48 = vmul.f32 %v22939_v34, %v13144_v60  ;;  %v8343_v7 = vrot.slane %v22822_v51, 7  ;;  %v8359_v51 = vrot.slane %v8357_v33, 4 }
 0x4b8   : > { %v13401_v59 = vmul.f32 %v22989_v26, %v13333_v21  ;;  %v13334_v45 = vadd.f32 %v22966_v28, %v13298_v63  ;;  %vm13365_vm15 = vcmp.ge.f32.partialorder %v13333_v21, 0.0 }
 0x4b9   : > { %v13399_v30 = vmul.f32 %v22989_v26, %v13331_v55  ;;  %v13332_v47 = vadd.f32 %v22966_v28, %v13296_v48  ;;  %vm13363_vm2 = vcmp.ge.f32.partialorder %v13331_v55, 0.0  ;;  %v15420_v48 = vcombine.low %v23067_v6, %v23072_v50 }
 0x4ba   : > { %vm13366_vm3 = vcmp.ge.f32.partialorder %v13334_v45, 0.0  ;;  %v13402_v58 = vmul.f32 %v22989_v26, %v13334_v45  ;;  %v23087_v13 = vsel %vm13365_vm15, %v13333_v21, %v13401_v59  ;;  %v8339_v21 = vrot.slane %v15381_v31, 7 }
 0x4bb   : > { %vm13364_vm8 = vcmp.ge.f32.partialorder %v13332_v47, 0.0  ;;  %v13400_v8 = vmul.f32 %v22989_v26, %v13332_v47  ;;  %17334 = vmatmul.mubr.msk.bf16.vlgmr.msra.gmra.mrb[96].mxu0 %vm560_vm1, %v15414_v22  ;;  %v17717_v4 = vpop.f32.mrb[40].mxu1  ;;  %v23098_v9 = vsel %vm13363_vm2, %v13331_v55, %v13399_v30  ;;  %v15419_v55 = vcombine.low %v23053_v37, %v23059_v54 }
 0x4bc   : > { %v23089_v20 = vsel %vm13366_vm3, %v13334_v45, %v13402_v58  ;;  %17366 = vmatpush3.bf16.msra.mxu0 %v22996_v38  ;;  %v13301_v15 = vmul.f32 %v17717_v4, %v22939_v34  ;;  %v13157_v18 = vpop.f32.mrb[41].mxu1  ;;  %17337 = vmatprep.mubr.msk.bf16.mxu0 %vm560_vm1, %v15415_v14  ;;  %v15405_v30 = vrot.slane %v15382_v2, 11  ;;  %v23127_v4 = vsel %vm19038_vm6, %v15404_v3, %v8336_v43  ;;  %v15384_v3 = vld [vmem:[%s18945_s8 + $0x140] sm:$0x8]  ;;  %v15449_v38 = vld [vmem:[%s18945_s8 + $0xb8] sm:$0xf] }
 0x4bd   : > { %v23100_v22 = vsel %vm13364_vm8, %v13332_v47, %v13400_v8  ;;  %v13299_v49 = vmul.f32 %v22939_v34, %v13157_v18  ;;  %v17718_v19 = vpop.f32.mrb[42].mxu1  ;;  %18658 = vmatprep.subr.msk.bf16.mxu0 %vm1066_vm4, %v23077_v17  ;;  %v8345_v47 = vrot.slane %v8343_v7, 4  ;;  %v8346_v43 = vrot.slane %v15383_v12, 7 }
 0x4be   : > { %v13337_v23 = vadd.f32 %v22966_v28, %v13301_v15  ;;  %v13302_v1 = vmul.f32 %v17718_v19, %v22939_v34  ;;  %v13160_v14 = vpop.f32.mrb[43].mxu1  ;;  %v13461_v63 = vpack.c.bf16 %v23100_v22, %v23098_v9  ;;  %v23132_v15 = vsel %vm19038_vm6, %v8338_v36, %v8339_v21 }
 0x4bf   : > { %v13335_v60 = vadd.f32 %v22966_v28, %v13299_v49  ;;  %v13300_v62 = vmul.f32 %v22939_v34, %v13160_v14  ;;  %v8350_v19 = vrot.slane %v22825_v35, 7  ;;  %v15421_v54 = vcombine.low %v23127_v4, %v23132_v15  ;;  %v15388_v15 = vld [vmem:[%s18945_s8 + $0x160] sm:$0x8] }
 0x4c0   : > { %v13405_v59 = vmul.f32 %v22989_v26, %v13337_v23  ;;  %v13338_v45 = vadd.f32 %v22966_v28, %v13302_v1  ;;  %vm13369_vm9 = vcmp.ge.f32.partialorder %v13337_v23, 0.0 }
 0x4c1   : > { %v13403_v58 = vmul.f32 %v22989_v26, %v13335_v60  ;;  %v13336_v8 = vadd.f32 %v22966_v28, %v13300_v62  ;;  %vm13367_vm10 = vcmp.ge.f32.partialorder %v13335_v60, 0.0 }
 0x4c2   : > { %vm13370_vm11 = vcmp.ge.f32.partialorder %v13338_v45, 0.0  ;;  %v13406_v31 = vmul.f32 %v22989_v26, %v13338_v45  ;;  %v23141_v2 = vsel %vm13369_vm9, %v13337_v23, %v13405_v59 }
 0x4c3   : > { %vm13368_vm0 = vcmp.ge.f32.partialorder %v13336_v8, 0.0  ;;  %v13404_v18 = vmul.f32 %v22989_v26, %v13336_v8  ;;  %17338 = vmatmul.mubr.msk.bf16.gmra.mrb[100].mxu0 %vm560_vm1, %v15416_v57  ;;  %v17721_v49 = vpop.f32.mrb[44].mxu1  ;;  %v23153_v57 = vsel %vm13367_vm10, %v13335_v60, %v13403_v58  ;;  %v8352_v58 = vrot.slane %v8350_v19, 4 }
 0x4c4   : > { %v23143_v1 = vsel %vm13370_vm11, %v13338_v45, %v13406_v31  ;;  %v13305_v36 = vmul.f32 %v17721_v49, %v22939_v34  ;;  %v13173_v14 = vpop.f32.mrb[45].mxu1  ;;  %17341 = vmatprep.mubr.msk.bf16.mxu0 %vm560_vm1, %v15417_v42  ;;  %v15406_v42 = vrot.slane %v15384_v3, 11  ;;  %v15386_v45 = vld [vmem:[%s18945_s8 + $0x150] sm:$0x8]  ;;  %v23173_v49 = vsel %vm19038_vm6, %v15405_v30, %v8343_v7 }
 0x4c5   : > { %v23155_v35 = vsel %vm13368_vm0, %v13336_v8, %v13404_v18  ;;  %v13303_v23 = vmul.f32 %v22939_v34, %v13173_v14  ;;  %v17722_v21 = vpop.f32.mrb[46].mxu1  ;;  %v8353_v8 = vrot.slane %v15385_v52, 7  ;;  %v23177_v3 = vsel %vm19038_vm6, %v8345_v47, %v8346_v43  ;;  %v15387_v52 = vld [vmem:[%s18945_s8 + $0x158] sm:$0x7] }
 0x4c6   : > { %v13341_v59 = vadd.f32 %v22966_v28, %v13305_v36  ;;  %v13306_v5 = vmul.f32 %v17722_v21, %v22939_v34  ;;  %v13176_v29 = vpop.f32.mrb[47].mxu1  ;;  %v23190_v47 = vsel %vm19038_vm6, %v15406_v42, %v8350_v19  ;;  %v8360_v25 = vrot.slane %v15387_v52, 7 }
 0x4c7   : > { %v13339_v60 = vadd.f32 %v22966_v28, %v13303_v23  ;;  %v13304_v12 = vmul.f32 %v22939_v34, %v13176_v29  ;;  %v15407_v23 = vrot.slane %v15386_v45, 11  ;;  %v23194_v43 = vsel %vm19038_vm6, %v8352_v58, %v8353_v8 }
 0x4c8   : > { %v13409_v31 = vmul.f32 %v22989_v26, %v13341_v59  ;;  %v13342_v18 = vadd.f32 %v22966_v28, %v13306_v5  ;;  %vm13373_vm7 = vcmp.ge.f32.partialorder %v13341_v59, 0.0  ;;  %v24156_v0 = vpack.c.bf16 %v23155_v35, %v23153_v57 }
 0x4c9   : > { %v13407_v36 = vmul.f32 %v22989_v26, %v13339_v60  ;;  %v13340_v14 = vadd.f32 %v22966_v28, %v13304_v12  ;;  %vm13371_vm13 = vcmp.ge.f32.partialorder %v13339_v60, 0.0  ;;  %v23230_v4 = vsel %vm19038_vm6, %v15407_v23, %v8357_v33 }
 0x4ca   : > { %vm13374_vm14 = vcmp.ge.f32.partialorder %v13342_v18, 0.0  ;;  %v13410_v21 = vmul.f32 %v22989_v26, %v13342_v18  ;;  %v23196_v5 = vsel %vm13373_vm7, %v13341_v59, %v13409_v31  ;;  %v8371_v33 = vrot.slane %v22860_v41, 7 }
 0x4cb   : > { %vm13372_vm15 = vcmp.ge.f32.partialorder %v13340_v14, 0.0  ;;  %v13408_v7 = vmul.f32 %v22989_v26, %v13340_v14  ;;  %17342 = vmatmul.mubr.msk.bf16.gmra.mrb[104].mxu0 %vm560_vm1, %v15418_v53  ;;  %v17725_v30 = vpop.f32.mrb[48].mxu1  ;;  %v23206_v32 = vsel %vm13371_vm13, %v13339_v60, %v13407_v36  ;;  %v8364_v36 = vrot.slane %v22847_v11, 7 }
 0x4cc   : > { %v23198_v29 = vsel %vm13374_vm14, %v13342_v18, %v13410_v21  ;;  %v13309_v45 = vmul.f32 %v17725_v30, %v22939_v34  ;;  %v13189_v12 = vpop.f32.mrb[49].mxu1  ;;  %17345 = vmatprep.mubr.msk.bf16.mxu0 %vm560_vm1, %v15419_v55  ;;  %v15422_v18 = vcombine.low %v23173_v49, %v23177_v3  ;;  %v15423_v21 = vcombine.low %v23190_v47, %v23194_v43  ;;  %v15389_v3 = vld [vmem:[%s18945_s8 + $0x168] sm:$0x7] }
 0x4cd   : > { %v23208_v53 = vsel %vm13372_vm15, %v13340_v14, %v13408_v7  ;;  %v13307_v19 = vmul.f32 %v22939_v34, %v13189_v12  ;;  %v17726_v59 = vpop.f32.mrb[50].mxu1  ;;  %v23237_v11 = vsel %vm19038_vm6, %v8359_v51, %v8360_v25  ;;  %v15408_v12 = vrot.slane %v15388_v15, 11  ;;  %v15390_v25 = vld [vmem:[%s18945_s8 + $0x170] sm:$0x8] }
 0x4ce   : > { %v13345_v58 = vadd.f32 %v22966_v28, %v13309_v45  ;;  %v13310_v8 = vmul.f32 %v17726_v59, %v22939_v34  ;;  %v13192_v37 = vpop.f32.mrb[51].mxu1  ;;  %v8366_v51 = vrot.slane %v8364_v36, 4  ;;  %v24157_v16 = vpack.c.bf16 %v23143_v1, %v23141_v2  ;;  %v23718_v1 = vld [vmem:[%s282_s19 + $0x1] ss:$0 sm:$0xff] }
 0x4cf   : > { %v13343_v60 = vadd.f32 %v22966_v28, %v13307_v19  ;;  %v13308_v31 = vmul.f32 %v22939_v34, %v13192_v37  ;;  %v8367_v37 = vrot.slane %v15389_v3, 7  ;;  %v24158_v24 = vpack.c.bf16 %v23208_v53, %v23206_v32 }
 0x4d0   : > { %v13413_v14 = vmul.f32 %v22989_v26, %v13345_v58  ;;  %v13346_v52 = vadd.f32 %v22966_v28, %v13310_v8  ;;  %vm13377_vm2 = vcmp.ge.f32.partialorder %v13345_v58, 0.0 }
 0x4d1   : > { %v13411_v7 = vmul.f32 %v22989_v26, %v13343_v60  ;;  %v13344_v49 = vadd.f32 %v22966_v28, %v13308_v31  ;;  %vm13375_vm3 = vcmp.ge.f32.partialorder %v13343_v60, 0.0  ;;  %v15391_v31 = vld [vmem:[%s18945_s8 + $0x178] sm:$0x7] }
 0x4d2   : > { %vm13378_vm8 = vcmp.ge.f32.partialorder %v13346_v52, 0.0  ;;  %v13414_v30 = vmul.f32 %v22989_v26, %v13346_v52  ;;  %v23249_v19 = vsel %vm13377_vm2, %v13345_v58, %v13413_v14  ;;  %v8374_v3 = vrot.slane %v15391_v31, 7 }
 0x4d3   : > { %vm13376_vm9 = vcmp.ge.f32.partialorder %v13344_v49, 0.0  ;;  %v13412_v23 = vmul.f32 %v22989_v26, %v13344_v49  ;;  %17346 = vmatmul.mubr.msk.bf16.gmra.mrb[108].mxu0 %vm560_vm1, %v15420_v48  ;;  %v17729_v45 = vpop.f32.mrb[52].mxu1  ;;  %v23257_v6 = vsel %vm13375_vm3, %v13343_v60, %v13411_v7  ;;  %v8368_v31 = vsel %vm19038_vm6, %v8366_v51, %v8367_v37  ;;  %v15392_v51 = vld [vmem:[%s18945_s8 + $0x180] sm:$0x8] }
 0x4d4   : > { %v23251_v59 = vsel %vm13378_vm8, %v13346_v52, %v13414_v30  ;;  %v13313_v8 = vmul.f32 %v17729_v45, %v22939_v34  ;;  %v13205_v41 = vpop.f32.mrb[53].mxu1  ;;  %17349 = vmatprep.mubr.msk.bf16.mxu0 %vm560_vm1, %v15421_v54  ;;  %v15409_v45 = vrot.slane %v15390_v25, 11  ;;  %v23276_v25 = vsel %vm19038_vm6, %v15408_v12, %v8364_v36  ;;  %v15446_v54 = vld [vmem:[%s18945_s8 + $0xa8] sm:$0xf] }
 0x4d5   : > { %v23259_v50 = vsel %vm13376_vm9, %v13344_v49, %v13412_v23  ;;  %v13311_v48 = vmul.f32 %v22939_v34, %v13205_v41  ;;  %v17730_v15 = vpop.f32.mrb[54].mxu1  ;;  %v8373_v49 = vrot.slane %v8371_v33, 4  ;;  %v8378_v37 = vrot.slane %v22872_v27, 7 }
 0x4d6   : > { %v13349_v14 = vadd.f32 %v22966_v28, %v13313_v8  ;;  %v13314_v52 = vmul.f32 %v17730_v15, %v22939_v34  ;;  %v13208_v30 = vpop.f32.mrb[55].mxu1  ;;  %v15424_v8 = vcombine.low %v23230_v4, %v23237_v11  ;;  %v23285_v4 = vsel %vm19038_vm6, %v15409_v45, %v8371_v33 }
 0x4d7   : > { %v13347_v60 = vadd.f32 %v22966_v28, %v13311_v48  ;;  %v13312_v7 = vmul.f32 %v22939_v34, %v13208_v30  ;;  %v23291_v12 = vsel %vm19038_vm6, %v8373_v49, %v8374_v3  ;;  %v8385_v49 = vrot.slane %v22875_v10, 7 }
 0x4d8   : > { %v13417_v23 = vmul.f32 %v22989_v26, %v13349_v14  ;;  %v13350_v41 = vadd.f32 %v22966_v28, %v13314_v52  ;;  %vm13381_vm10 = vcmp.ge.f32.partialorder %v13349_v14, 0.0  ;;  %v8782_v62 = vrot.slane %v15446_v54, 5 }
 0x4d9   : > { %v13415_v15 = vmul.f32 %v22989_v26, %v13347_v60  ;;  %v13348_v48 = vadd.f32 %v22966_v28, %v13312_v7  ;;  %vm13379_vm11 = vcmp.ge.f32.partialorder %v13347_v60, 0.0  ;;  %v24160_v40 = vpack.c.bf16 %v23259_v50, %v23257_v6 }
 0x4da   : > { %vm13382_vm0 = vcmp.ge.f32.partialorder %v13350_v41, 0.0  ;;  %v13418_v52 = vmul.f32 %v22989_v26, %v13350_v41  ;;  %v23295_v30 = vsel %vm13381_vm10, %v13349_v14, %v13417_v23 }
 0x4db   : > { %vm13380_vm7 = vcmp.ge.f32.partialorder %v13348_v48, 0.0  ;;  %v13416_v36 = vmul.f32 %v22989_v26, %v13348_v48  ;;  %17350 = vmatmul.mubr.msk.bf16.gmra.mrb[112].mxu0 %vm560_vm1, %v15422_v18  ;;  %v17733_v11 = vpop.f32.mrb[56].mxu1  ;;  %v15393_v18 = vld [vmem:[%s18945_s8 + $0x188] sm:$0x7]  ;;  %v23307_v3 = vsel %vm13379_vm11, %v13347_v60, %v13415_v15 }
 0x4dc   : > { %v23297_v7 = vsel %vm13382_vm0, %v13350_v41, %v13418_v52  ;;  %v13317_v33 = vmul.f32 %v17733_v11, %v22939_v34  ;;  %v13221_v45 = vpop.f32.mrb[57].mxu1  ;;  %17353 = vmatprep.mubr.msk.bf16.mxu0 %vm560_vm1, %v15423_v21  ;;  %v15410_v21 = vrot.slane %v15392_v51, 11  ;;  %v15394_v11 = vld [vmem:[%s18945_s8 + $0x190] sm:$0x8] }
 0x4dd   : > { %v23309_v27 = vsel %vm13380_vm7, %v13348_v48, %v13416_v36  ;;  %v13315_v14 = vmul.f32 %v22939_v34, %v13221_v45  ;;  %v17734_v23 = vpop.f32.mrb[58].mxu1  ;;  %v8380_v36 = vrot.slane %v8378_v37, 4  ;;  %v8381_v45 = vrot.slane %v15393_v18, 7 }
 0x4de   : > { %v13353_v52 = vadd.f32 %v22966_v28, %v13317_v33  ;;  %v13318_v47 = vmul.f32 %v17734_v23, %v22939_v34  ;;  %v13224_v43 = vpop.f32.mrb[59].mxu1  ;;  %v15425_v33 = vcombine.low %v23276_v25, %v8368_v31  ;;  %v15426_v23 = vcombine.low %v23285_v4, %v23291_v12 }
 0x4df   : > { %v13351_v15 = vadd.f32 %v22966_v28, %v13315_v14  ;;  %v13316_v48 = vmul.f32 %v22939_v34, %v13224_v43  ;;  %v15411_v14 = vrot.slane %v15394_v11, 11  ;;  %v8379_v4 = vsel %vm19038_vm6, %v15410_v21, %v8378_v37  ;;  %v15395_v43 = vld [vmem:[%s18945_s8 + $0x198] sm:$0x7] }
 0x4e0   : > { %v13421_v58 = vmul.f32 %v22989_v26, %v13353_v52  ;;  %v13354_v41 = vadd.f32 %v22966_v28, %v13318_v47  ;;  %vm13385_vm13 = vcmp.ge.f32.partialorder %v13353_v52, 0.0  ;;  %v8387_v47 = vrot.slane %v8385_v49, 4 }
 0x4e1   : > { %v13419_v51 = vmul.f32 %v22989_v26, %v13351_v15  ;;  %v13352_v60 = vadd.f32 %v22966_v28, %v13316_v48  ;;  %vm13383_vm14 = vcmp.ge.f32.partialorder %v13351_v15, 0.0  ;;  %v8382_v12 = vsel %vm19038_vm6, %v8380_v36, %v8381_v45 }
 0x4e2   : > { %vm13386_vm15 = vcmp.ge.f32.partialorder %v13354_v41, 0.0  ;;  %v13422_v18 = vmul.f32 %v22989_v26, %v13354_v41  ;;  %v23340_v11 = vsel %vm13385_vm13, %v13353_v52, %v13421_v58  ;;  %v15447_v58 = vld [vmem:[%s18945_s8 + $0xac] sm:$0x1] }
 0x4e3   : > { %vm13384_vm2 = vcmp.ge.f32.partialorder %v13352_v60, 0.0  ;;  %v13420_v25 = vmul.f32 %v22989_v26, %v13352_v60  ;;  %17354 = vmatmul.mubr.msk.bf16.gmra.mrb[116].mxu0 %vm560_vm1, %v15424_v8  ;;  %v17737_v31 = vpop.f32.mrb[60].mxu1  ;;  %v15445_v8 = vld [vmem:[%s18945_s8 + $0xa4] sm:$0xe]  ;;  %v23348_v44 = vsel %vm13383_vm14, %v13351_v15, %v13419_v51  ;;  %v15427_v15 = vcombine.low %v8379_v4, %v8382_v12  ;;  %v15452_v4 = vld [vmem:[%s18945_s8 + $0xc8] sm:$0xf] }
 0x4e4   : > { %v23342_v48 = vsel %vm13386_vm15, %v13354_v41, %v13422_v18  ;;  %v13321_v42 = vmul.f32 %v17737_v31, %v22939_v34  ;;  %v13237_v55 = vpop.f32.mrb[61].mxu1  ;;  %17357 = vmatprep.mubr.msk.bf16.mxu0 %vm560_vm1, %v15425_v33  ;;  %v8388_v18 = vrot.slane %v15395_v43, 7  ;;  %v15493_v51 = vrot.slane %v15445_v8, 9 }
 0x4e5   : > { %v23350_v37 = vsel %vm13384_vm2, %v13352_v60, %v13420_v25  ;;  %v13319_v21 = vmul.f32 %v22939_v34, %v13237_v55  ;;  %v17738_v36 = vpop.f32.mrb[62].mxu1  ;;  %v8784_v41 = vrot.slane %v8782_v62, 4  ;;  %v8789_v8 = vrot.slane %v15449_v38, 5  ;;  %v15450_v38 = vld [vmem:[%s18945_s8 + $0xbc] sm:$0x1] }
 0x4e6   : > { %v13357_v52 = vadd.f32 %v22966_v28, %v13321_v42  ;;  %v13322_v45 = vmul.f32 %v17738_v36, %v22939_v34  ;;  %v13240_v33 = vpop.f32.mrb[63].mxu1  ;;  %v13471_v54 = vpack.c.bf16 %v23350_v37, %v23348_v44  ;;  %v8785_v42 = vrot.slane %v15447_v58, 5  ;;  %v23722_v44 = vld [vmem:[%s282_s19 + $0x2] ss:$0 sm:$0xff] }
 0x4e7   : > { %v13355_v60 = vadd.f32 %v22966_v28, %v13319_v21  ;;  %v13320_v55 = vmul.f32 %v22939_v34, %v13240_v33  ;;  %v8386_v34 = vsel %vm19038_vm6, %v15411_v14, %v8385_v49  ;;  %v8783_v10 = vsel %vm21775_vm12, %v15493_v51, %v8782_v62  ;;  %v15453_v33 = vld [vmem:[%s18945_s8 + $0xcc] sm:$0x1] }
 0x4e8   : > { %v13425_v25 = vmul.f32 %v22989_v26, %v13357_v52  ;;  %v13358_v31 = vadd.f32 %v22966_v28, %v13322_v45  ;;  %vm13389_vm3 = vcmp.ge.f32.partialorder %v13357_v52, 0.0  ;;  %v8786_v49 = vsel %vm21775_vm12, %v8784_v41, %v8785_v42  ;;  %v15455_v42 = vld [vmem:[%s18945_s8 + $0xd8] sm:$0xf] }
 0x4e9   : > { %v13423_v43 = vmul.f32 %v22989_v26, %v13355_v60  ;;  %v13356_v36 = vadd.f32 %v22966_v28, %v13320_v55  ;;  %vm13387_vm8 = vcmp.ge.f32.partialorder %v13355_v60, 0.0  ;;  %v8389_v28 = vsel %vm19038_vm6, %v8387_v47, %v8388_v18 }
 0x4ea   : > { %vm13390_vm9 = vcmp.ge.f32.partialorder %v13358_v31, 0.0  ;;  %v13426_v21 = vmul.f32 %v22989_v26, %v13358_v31  ;;  %v23377_v58 = vsel %vm13389_vm3, %v13357_v52, %v13425_v25  ;;  %v15451_v52 = vld [vmem:[%s18945_s8 + $0xc4] sm:$0xe]  ;;  %v15428_v18 = vcombine.low %v8386_v34, %v8389_v28  ;;  %v15454_v28 = vld [vmem:[%s18945_s8 + $0xd4] sm:$0xe] }
 0x4eb   : > { %vm13388_vm10 = vcmp.ge.f32.partialorder %v13356_v36, 0.0  ;;  %v13424_v12 = vmul.f32 %v22989_v26, %v13356_v36  ;;  %17358 = vmatmul.mubr.msk.bf16.gmra.mrb[120].mxu0 %vm560_vm1, %v15426_v23  ;;  %v23386_v26 = vsel %vm13387_vm8, %v13355_v60, %v13423_v43  ;;  %v8796_v23 = vrot.slane %v15452_v4, 5  ;;  %v15458_v43 = vld [vmem:[%s18945_s8 + $0xe8] sm:$0xf] }
 0x4ec   : > { %v23379_v45 = vsel %vm13390_vm9, %v13358_v31, %v13426_v21  ;;  %17361 = vmatprep.mubr.msk.bf16.mxu0 %vm560_vm1, %v15427_v15  ;;  %v15510_v55 = vcombine.low %v8783_v10, %v8786_v49  ;;  %v15494_v41 = vrot.slane %v15448_v61, 9  ;;  %v8791_v60 = vrot.slane %v8789_v8, 4  ;;  %v15456_v10 = vld [vmem:[%s18945_s8 + $0xdc] sm:$0x1]  ;;  %v15457_v61 = vld [vmem:[%s18945_s8 + $0xe4] sm:$0xe] }
 0x4ed   : > { %v23388_v14 = vsel %vm13388_vm10, %v13356_v36, %v13424_v12  ;;  %v8792_v15 = vrot.slane %v15450_v38, 5  ;;  %v15495_v51 = vrot.slane %v15451_v52, 9  ;;  %v8798_v25 = vrot.slane %v8796_v23, 4  ;;  %v15459_v38 = vld [vmem:[%s18945_s8 + $0xec] sm:$0x1] }
 0x4ee   : > { %v13473_v62 = vpack.c.bf16 %v23388_v14, %v23386_v26  ;;  %v8799_v31 = vrot.slane %v15453_v33, 5  ;;  %v8790_v36 = vsel %vm21775_vm12, %v15494_v41, %v8789_v8  ;;  %v8803_v34 = vrot.slane %v15455_v42, 5 }
 0x4ef   : > { %v8793_v21 = vsel %vm21775_vm12, %v8791_v60, %v8792_v15  ;;  %v8797_v4 = vsel %vm21775_vm12, %v15495_v51, %v8796_v23  ;;  %v8810_v49 = vrot.slane %v15458_v43, 5  ;;  %v15496_v8 = vrot.slane %v15454_v28, 9  ;;  %v15461_v15 = vld [vmem:[%s18945_s8 + $0xf8] sm:$0xf]  ;;  %v15463_v28 = vld [vmem:[%s18945_s8 + $0x104] sm:$0xe] }
 0x4f0   : > { %v8800_v12 = vsel %vm21775_vm12, %v8798_v25, %v8799_v31  ;;  %v15511_v52 = vcombine.low %v8790_v36, %v8793_v21  ;;  %v15497_v41 = vrot.slane %v15457_v61, 9  ;;  %v8813_v23 = vrot.slane %v15459_v38, 5  ;;  %v15464_v25 = vld [vmem:[%s18945_s8 + $0x108] sm:$0xf]  ;;  %v15460_v21 = vld [vmem:[%s18945_s8 + $0xf4] sm:$0xe] }
 0x4f1   : > { %v15512_v33 = vcombine.low %v8797_v4, %v8800_v12  ;;  %v8812_v60 = vrot.slane %v8810_v49, 4  ;;  %v9428_v51 = vsel %vm1066_vm4, %v23077_v17, 0  ;;  %v8804_v31 = vsel %vm21775_vm12, %v15496_v8, %v8803_v34  ;;  %v15462_v4 = vld [vmem:[%s18945_s8 + $0xfc] sm:$0x1] }
 0x4f2   : > { %v8817_v43 = vrot.slane %v15461_v15, 5  ;;  %v8811_v36 = vsel %vm21775_vm12, %v15497_v41, %v8810_v49  ;;  %v8824_v12 = vrot.slane %v15464_v25, 5  ;;  %v15498_v38 = vrot.slane %v15460_v21, 9  ;;  %v15470_v41 = vld [vmem:[%s18945_s8 + $0x128] sm:$0xf] }
 0x4f3   : > { %17362 = vmatmul.mubr.msk.bf16.gmra.mrb[124].mxu0 %vm560_vm1, %v15428_v18  ;;  %v8805_v18 = vrot.slane %v8803_v34, 4  ;;  %v8814_v17 = vsel %vm21775_vm12, %v8812_v60, %v8813_v23  ;;  %v15499_v8 = vrot.slane %v15463_v28, 9  ;;  %v15471_v21 = vld [vmem:[%s18945_s8 + $0x12c] sm:$0x1]  ;;  %v24164_v9 = vpack.c.bf16 %v23342_v48, %v23340_v11 }
 0x4f4   : > { %17367 = vmatprep.mubr.msk.bf16.mxu0 %vm560_vm1, %v15510_v55  ;;  %v8806_v55 = vrot.slane %v15456_v10, 5  ;;  %v15465_v10 = vld [vmem:[%s18945_s8 + $0x10c] sm:$0x1]  ;;  %v15514_v34 = vcombine.low %v8811_v36, %v8814_v17  ;;  %v8826_v49 = vrot.slane %v8824_v12, 4  ;;  %v8818_v60 = vsel %vm21775_vm12, %v15498_v38, %v8817_v43  ;;  %v15469_v17 = vld [vmem:[%s18945_s8 + $0x124] sm:$0xe] }
 0x4f5   : > { %v8838_v36 = vrot.slane %v15470_v41, 5  ;;  %v8841_v38 = vrot.slane %v15471_v21, 5  ;;  %v24165_v22 = vpack.c.bf16 %v23379_v45, %v23377_v58 }
 0x4f6   : > { %v8807_v42 = vsel %vm21775_vm12, %v8805_v18, %v8806_v55  ;;  %v8827_v18 = vrot.slane %v15465_v10, 5  ;;  %v15467_v55 = vld [vmem:[%s18945_s8 + $0x118] sm:$0xf] }
 0x4f7   : > { %v15513_v61 = vcombine.low %v8804_v31, %v8807_v42  ;;  %v8831_v15 = vrot.slane %v15467_v55, 5  ;;  %v15466_v31 = vld [vmem:[%s18945_s8 + $0x114] sm:$0xe]  ;;  %v15468_v42 = vld [vmem:[%s18945_s8 + $0x11c] sm:$0x1] }
 0x4f8   : > { %v8828_v25 = vsel %vm21775_vm12, %v8826_v49, %v8827_v18 }
 0x4f9   : > { %v8833_v10 = vrot.slane %v8831_v15, 4 }
 0x4fb   : > { %17368 = vmatmul.mubr.msk.bf16.vlgmr.msra.gmra.mrb[96].mxu0 %vm560_vm1, %v15511_v52  ;;  %v8819_v52 = vrot.slane %v8817_v43, 4  ;;  %v15500_v43 = vrot.slane %v15466_v31, 9  ;;  %v15477_v31 = vld [vmem:[%s18945_s8 + $0x14c] sm:$0x1] }
 0x4fc   : > { %17371 = vmatprep.mubr.msk.bf16.mxu0 %vm560_vm1, %v15512_v33  ;;  %17400 = vmatpush3.bf16.msra.mxu0 %v9428_v51  ;;  %v8820_v33 = vrot.slane %v15462_v4, 5  ;;  %v8825_v51 = vsel %vm21775_vm12, %v15499_v8, %v8824_v12  ;;  %v8840_v12 = vrot.slane %v8838_v36, 4 }
 0x4fd   : > { %v15516_v28 = vcombine.low %v8825_v51, %v8828_v25  ;;  %v8832_v8 = vsel %vm21775_vm12, %v15500_v43, %v8831_v15  ;;  %v15475_v25 = vld [vmem:[%s18945_s8 + $0x144] sm:$0xe]  ;;  %v8855_v43 = vrot.slane %v15477_v31, 5 }
 0x4fe   : > { %v8821_v23 = vsel %vm21775_vm12, %v8819_v52, %v8820_v33  ;;  %v15473_v52 = vld [vmem:[%s18945_s8 + $0x138] sm:$0xf]  ;;  %v15476_v33 = vld [vmem:[%s18945_s8 + $0x148] sm:$0xf]  ;;  %v8842_v41 = vsel %vm21775_vm12, %v8840_v12, %v8841_v38 }
 0x4ff   : > { %v15515_v4 = vcombine.low %v8818_v60, %v8821_v23  ;;  %v8845_v18 = vrot.slane %v15473_v52, 5  ;;  %v15472_v60 = vld [vmem:[%s18945_s8 + $0x134] sm:$0xe]  ;;  %v15474_v23 = vld [vmem:[%s18945_s8 + $0x13c] sm:$0x1]  ;;  %v8852_v51 = vrot.slane %v15476_v33, 5 }
 0x500   : > { %v15502_v15 = vrot.slane %v15472_v60, 9  ;;  %v15483_v60 = vld [vmem:[%s18945_s8 + $0x16c] sm:$0x1] }
 0x501   : > { %v8847_v21 = vrot.slane %v8845_v18, 4 }
 0x503   : > { %17372 = vmatmul.mubr.msk.bf16.gmra.mrb[100].mxu0 %vm560_vm1, %v15513_v61  ;;  %v8834_v61 = vrot.slane %v15468_v42, 5 }
 0x504   : > { %17375 = vmatprep.mubr.msk.bf16.mxu0 %vm560_vm1, %v15514_v34  ;;  %v15501_v34 = vrot.slane %v15469_v17, 9 }
 0x505   : > { %v8835_v49 = vsel %vm21775_vm12, %v8833_v10, %v8834_v61  ;;  %v15479_v10 = vld [vmem:[%s18945_s8 + $0x158] sm:$0xf]  ;;  %v15482_v61 = vld [vmem:[%s18945_s8 + $0x168] sm:$0xf] }
 0x506   : > { %v8839_v55 = vsel %vm21775_vm12, %v15501_v34, %v8838_v36  ;;  %v15517_v42 = vcombine.low %v8832_v8, %v8835_v49  ;;  %v8854_v36 = vrot.slane %v8852_v51, 4  ;;  %v8846_v34 = vsel %vm21775_vm12, %v15502_v15, %v8845_v18  ;;  %v15478_v8 = vld [vmem:[%s18945_s8 + $0x154] sm:$0xe]  ;;  %v15480_v49 = vld [vmem:[%s18945_s8 + $0x15c] sm:$0x1] }
 0x507   : > { %v15518_v17 = vcombine.low %v8839_v55, %v8842_v41  ;;  %v8859_v38 = vrot.slane %v15479_v10, 5  ;;  %v8866_v55 = vrot.slane %v15482_v61, 5  ;;  %v15481_v41 = vld [vmem:[%s18945_s8 + $0x164] sm:$0xe]  ;;  %v15504_v18 = vrot.slane %v15478_v8, 9 }
 0x508   : > { %v8856_v33 = vsel %vm21775_vm12, %v8854_v36, %v8855_v43  ;;  %v8869_v15 = vrot.slane %v15483_v60, 5  ;;  %v15489_v8 = vld [vmem:[%s18945_s8 + $0x18c] sm:$0x1] }
 0x509   : > { %v8861_v31 = vrot.slane %v8859_v38, 4 }
 0x50b   : > { %17376 = vmatmul.mubr.msk.bf16.gmra.mrb[104].mxu0 %vm560_vm1, %v15515_v4  ;;  %v8848_v4 = vrot.slane %v15474_v23, 5 }
 0x50c   : > { %17379 = vmatprep.mubr.msk.bf16.mxu0 %vm560_vm1, %v15516_v28  ;;  %v15503_v28 = vrot.slane %v15475_v25, 9 }
 0x50d   : > { %v8849_v12 = vsel %vm21775_vm12, %v8847_v21, %v8848_v4  ;;  %v15485_v21 = vld [vmem:[%s18945_s8 + $0x178] sm:$0xf]  ;;  %v15488_v4 = vld [vmem:[%s18945_s8 + $0x188] sm:$0xf] }
 0x50e   : > { %v8853_v52 = vsel %vm21775_vm12, %v15503_v28, %v8852_v51  ;;  %v15519_v23 = vcombine.low %v8846_v34, %v8849_v12  ;;  %v8868_v51 = vrot.slane %v8866_v55, 4  ;;  %v8860_v28 = vsel %vm21775_vm12, %v15504_v18, %v8859_v38  ;;  %v15484_v34 = vld [vmem:[%s18945_s8 + $0x174] sm:$0xe]  ;;  %v15486_v12 = vld [vmem:[%s18945_s8 + $0x17c] sm:$0x1] }
 0x50f   : > { %v15520_v25 = vcombine.low %v8853_v52, %v8856_v33  ;;  %v8873_v43 = vrot.slane %v15485_v21, 5  ;;  %v8880_v52 = vrot.slane %v15488_v4, 5  ;;  %v15487_v33 = vld [vmem:[%s18945_s8 + $0x184] sm:$0xe]  ;;  %v15506_v38 = vrot.slane %v15484_v34, 9 }
 0x510   : > { %v8870_v61 = vsel %vm21775_vm12, %v8868_v51, %v8869_v15  ;;  %v15490_v4 = vld [vmem:[%s18945_s8 + $0x194] sm:$0xe] }
 0x511   : > { %v8875_v60 = vrot.slane %v8873_v43, 4  ;;  %v8882_v18 = vrot.slane %v8880_v52, 4 }
 0x513   : > { %17380 = vmatmul.mubr.msk.bf16.gmra.mrb[108].mxu0 %vm560_vm1, %v15517_v42  ;;  %v8862_v42 = vrot.slane %v15480_v49, 5 }
 0x514   : > { %17383 = vmatprep.mubr.msk.bf16.mxu0 %vm560_vm1, %v15518_v17  ;;  %v15505_v17 = vrot.slane %v15481_v41, 9 }
 0x515   : > { %v8863_v36 = vsel %vm21775_vm12, %v8861_v31, %v8862_v42  ;;  %v8883_v31 = vrot.slane %v15489_v8, 5  ;;  %v15491_v42 = vld [vmem:[%s18945_s8 + $0x198] sm:$0xf]  ;;  %v16118_v8 = vld [vmem:[%s23901_s4 + $0x6] sm:$0x3] }
 0x516   : > { %v8867_v10 = vsel %vm21775_vm12, %v15505_v17, %v8866_v55  ;;  %v15521_v49 = vcombine.low %v8860_v28, %v8863_v36  ;;  %v8874_v55 = vsel %vm21775_vm12, %v15506_v38, %v8873_v43  ;;  %v8887_v51 = vrot.slane %v15491_v42, 5  ;;  %v15492_v28 = vld [vmem:[%s18945_s8 + $0x19c] sm:$0x1]  ;;  %18668 = vmatprep.subr.msk.bf16.mxu0 %vm1066_vm4, %v16118_v8 }
 0x517   : > { %v15522_v41 = vcombine.low %v8867_v10, %v8870_v61  ;;  %v8884_v21 = vsel %vm21775_vm12, %v8882_v18, %v8883_v31  ;;  %v15508_v61 = vrot.slane %v15490_v4, 9 }
 0x518   : > { %v8889_v34 = vrot.slane %v8887_v51, 4 }
 0x519   : > { %v8888_v43 = vsel %vm21775_vm12, %v15508_v61, %v8887_v51 }
 0x51b   : > { %17384 = vmatmul.mubr.msk.bf16.gmra.mrb[112].mxu0 %vm560_vm1, %v15519_v23  ;;  %v8876_v23 = vrot.slane %v15486_v12, 5  ;;  %v8890_v12 = vrot.slane %v15492_v28, 5 }
 0x51c   : > { %17387 = vmatprep.mubr.msk.bf16.mxu0 %vm560_vm1, %v15520_v25  ;;  %v15507_v25 = vrot.slane %v15487_v33, 9 }
 0x51d   : > { %v8877_v17 = vsel %vm21775_vm12, %v8875_v60, %v8876_v23  ;;  %v23534_v23 = vld [vmem:[%s23900_s3 + $0x8] ss:$0 sm:$0xff] }
 0x51e   : > { %v8881_v15 = vsel %vm21775_vm12, %v15507_v25, %v8880_v52  ;;  %v15523_v36 = vcombine.low %v8874_v55, %v8877_v17  ;;  %v8891_v52 = vsel %vm21775_vm12, %v8889_v34, %v8890_v12 }
 0x51f   : > { %v15524_v10 = vcombine.low %v8881_v15, %v8884_v21  ;;  %v15525_v33 = vcombine.low %v8888_v43, %v8891_v52 }
 0x523   : > { %17388 = vmatmul.mubr.msk.bf16.gmra.mrb[116].mxu0 %vm560_vm1, %v15521_v49  ;;  %v23523_v49 = vld [vmem:[%s23900_s3 + $0x6] ss:$0 sm:$0xff] }
 0x524   : > { %17391 = vmatprep.mubr.msk.bf16.mxu0 %vm560_vm1, %v15522_v41 }
 0x52b   : > { %17392 = vmatmul.mubr.msk.bf16.gmra.mrb[120].mxu0 %vm560_vm1, %v15523_v36 }
 0x52c   : > { %17395 = vmatprep.mubr.msk.bf16.mxu0 %vm560_vm1, %v15524_v10 }
 0x533   : > { %17396 = vmatmul.mubr.msk.bf16.gmra.mrb[124].mxu0 %vm560_vm1, %v15525_v33 }
 0x5ce   : > { %v17369_v41 = vpop.f32.mrb[96].mxu0 }
 0x5cf   : > { %v9195_v38 = vmul.f32 %v17369_v41, %v23523_v49  ;;  %v9027_v60 = vpop.f32.mrb[97].mxu0 }
 0x5d0   : > { %v9193_v25 = vmul.f32 %v23523_v49, %v9027_v60  ;;  %v17370_v18 = vpop.f32.mrb[98].mxu0 }
 0x5d1   : > { %v9231_v31 = vadd.f32 %v23528_v46, %v9195_v38  ;;  %v9196_v42 = vmul.f32 %v17370_v18, %v23523_v49  ;;  %v9030_v55 = vpop.f32.mrb[99].mxu0 }
 0x5d2   : > { %v9229_v17 = vadd.f32 %v23528_v46, %v9193_v25  ;;  %v9194_v51 = vmul.f32 %v23523_v49, %v9030_v55 }
 0x5d3   : > { %v9299_v15 = vmul.f32 %v23534_v23, %v9231_v31  ;;  %v9232_v21 = vadd.f32 %v23528_v46, %v9196_v42  ;;  %vm9263_vm6 = vcmp.ge.f32.partialorder %v9231_v31, 0.0 }
 0x5d4   : > { %v9297_v4 = vmul.f32 %v23534_v23, %v9229_v17  ;;  %v9230_v28 = vadd.f32 %v23528_v46, %v9194_v51  ;;  %vm9261_vm12 = vcmp.ge.f32.partialorder %v9229_v17, 0.0 }
 0x5d5   : > { %vm9264_vm11 = vcmp.ge.f32.partialorder %v9232_v21, 0.0  ;;  %v9300_v36 = vmul.f32 %v23534_v23, %v9232_v21  ;;  %v9331_v34 = vsel %vm9263_vm6, %v9231_v31, %v9299_v15  ;;  %v13526_v15 = vsel %vm1066_vm4, %v16118_v8, 0 }
 0x5d6   : > { %vm9262_vm0 = vcmp.ge.f32.partialorder %v9230_v28, 0.0  ;;  %v9298_v10 = vmul.f32 %v23534_v23, %v9230_v28  ;;  %v17373_v61 = vpop.f32.mrb[100].mxu0  ;;  %v9329_v33 = vsel %vm9261_vm12, %v9229_v17, %v9297_v4 }
 0x5d7   : > { %v9332_v12 = vsel %vm9264_vm11, %v9232_v21, %v9300_v36  ;;  %v9199_v43 = vmul.f32 %v17373_v61, %v23523_v49  ;;  %v9043_v52 = vpop.f32.mrb[101].mxu0 }
 0x5d8   : > { %v9362_v41 = vpack.c.bf16 %v9332_v12, %v9331_v34  ;;  %v9330_v38 = vsel %vm9262_vm0, %v9230_v28, %v9298_v10  ;;  %v9197_v60 = vmul.f32 %v23523_v49, %v9043_v52  ;;  %v17374_v25 = vpop.f32.mrb[102].mxu0 }
 0x5d9   : > { %v9235_v18 = vadd.f32 %v23528_v46, %v9199_v43  ;;  %v9200_v42 = vmul.f32 %v17374_v25, %v23523_v49  ;;  %v9046_v55 = vpop.f32.mrb[103].mxu0  ;;  %v9361_v51 = vpack.c.bf16 %v9330_v38, %v9329_v33 }
 0x5da   : > { %v9233_v47 = vadd.f32 %v23528_v46, %v9197_v60  ;;  %v9198_v31 = vmul.f32 %v23523_v49, %v9046_v55 }
 0x5db   : > { %v9303_v21 = vmul.f32 %v23534_v23, %v9235_v18  ;;  %v9236_v17 = vadd.f32 %v23528_v46, %v9200_v42  ;;  %17401 = vmatprep.mubr.msk.bf16.mxu0 %vm4695_vm5, %v9361_v51  ;;  %vm9267_vm7 = vcmp.ge.f32.partialorder %v9235_v18, 0.0 }
 0x5dc   : > { %v9301_v4 = vmul.f32 %v23534_v23, %v9233_v47  ;;  %v9234_v28 = vadd.f32 %v23528_v46, %v9198_v31  ;;  %17402 = vmatmul.mubr.msk.bf16.vlgmr.msra.gmra.mrb[64].mxu0 %vm4695_vm5, %v9362_v41  ;;  %vm9265_vm13 = vcmp.ge.f32.partialorder %v9233_v47, 0.0 }
 0x5dd   : > { %vm9268_vm14 = vcmp.ge.f32.partialorder %v9236_v17, 0.0  ;;  %v9304_v36 = vmul.f32 %v23534_v23, %v9236_v17  ;;  %17740 = vmatpush3.bf16.msra.mxu0 %v13526_v15  ;;  %v9335_v61 = vsel %vm9267_vm7, %v9235_v18, %v9303_v21 }
 0x5de   : > { %vm9266_vm15 = vcmp.ge.f32.partialorder %v9234_v28, 0.0  ;;  %v9302_v8 = vmul.f32 %v23534_v23, %v9234_v28  ;;  %v17377_v10 = vpop.f32.mrb[104].mxu0  ;;  %v9333_v52 = vsel %vm9265_vm13, %v9233_v47, %v9301_v4 }
 0x5df   : > { %v9336_v34 = vsel %vm9268_vm14, %v9236_v17, %v9304_v36  ;;  %v9203_v12 = vmul.f32 %v17377_v10, %v23523_v49  ;;  %v9059_v43 = vpop.f32.mrb[105].mxu0 }
 0x5e0   : > { %v9334_v33 = vsel %vm9266_vm15, %v9234_v28, %v9302_v8  ;;  %v9201_v38 = vmul.f32 %v23523_v49, %v9059_v43  ;;  %v17378_v60 = vpop.f32.mrb[106].mxu0  ;;  %v9364_v41 = vpack.c.bf16 %v9336_v34, %v9335_v61 }
 0x5e1   : > { %v9239_v25 = vadd.f32 %v23528_v46, %v9203_v12  ;;  %v9204_v42 = vmul.f32 %v17378_v60, %v23523_v49  ;;  %v9062_v55 = vpop.f32.mrb[107].mxu0  ;;  %v9363_v51 = vpack.c.bf16 %v9334_v33, %v9333_v52 }
 0x5e2   : > { %v9237_v31 = vadd.f32 %v23528_v46, %v9201_v38  ;;  %v9202_v18 = vmul.f32 %v23523_v49, %v9062_v55 }
 0x5e3   : > { %v9307_v15 = vmul.f32 %v23534_v23, %v9239_v25  ;;  %v9240_v21 = vadd.f32 %v23528_v46, %v9204_v42  ;;  %17405 = vmatprep.mubr.msk.bf16.mxu0 %vm4695_vm5, %v9363_v51  ;;  %vm9271_vm4 = vcmp.ge.f32.partialorder %v9239_v25, 0.0 }
 0x5e4   : > { %v9305_v47 = vmul.f32 %v23534_v23, %v9237_v31  ;;  %v9238_v17 = vadd.f32 %v23528_v46, %v9202_v18  ;;  %17406 = vmatmul.mubr.msk.bf16.gmra.mrb[68].mxu0 %vm4695_vm5, %v9364_v41  ;;  %vm9269_vm2 = vcmp.ge.f32.partialorder %v9237_v31, 0.0 }
 0x5e5   : > { %vm9272_vm3 = vcmp.ge.f32.partialorder %v9240_v21, 0.0  ;;  %v9308_v4 = vmul.f32 %v23534_v23, %v9240_v21  ;;  %v9339_v8 = vsel %vm9271_vm4, %v9239_v25, %v9307_v15 }
 0x5e6   : > { %vm9270_vm8 = vcmp.ge.f32.partialorder %v9238_v17, 0.0  ;;  %v9306_v28 = vmul.f32 %v23534_v23, %v9238_v17  ;;  %v17381_v36 = vpop.f32.mrb[108].mxu0  ;;  %v9337_v12 = vsel %vm9269_vm2, %v9237_v31, %v9305_v47 }
 0x5e7   : > { %v9340_v10 = vsel %vm9272_vm3, %v9240_v21, %v9308_v4  ;;  %v9207_v61 = vmul.f32 %v17381_v36, %v23523_v49  ;;  %v9075_v34 = vpop.f32.mrb[109].mxu0 }
 0x5e8   : > { %v9338_v43 = vsel %vm9270_vm8, %v9238_v17, %v9306_v28  ;;  %v9205_v52 = vmul.f32 %v23523_v49, %v9075_v34  ;;  %v17382_v33 = vpop.f32.mrb[110].mxu0  ;;  %v9366_v38 = vpack.c.bf16 %v9340_v10, %v9339_v8 }
 0x5e9   : > { %v9243_v60 = vadd.f32 %v23528_v46, %v9207_v61  ;;  %v9208_v41 = vmul.f32 %v17382_v33, %v23523_v49  ;;  %v9078_v42 = vpop.f32.mrb[111].mxu0  ;;  %v9365_v55 = vpack.c.bf16 %v9338_v43, %v9337_v12 }
 0x5ea   : > { %v9241_v51 = vadd.f32 %v23528_v46, %v9205_v52  ;;  %v9206_v25 = vmul.f32 %v23523_v49, %v9078_v42 }
 0x5eb   : > { %v9311_v18 = vmul.f32 %v23534_v23, %v9243_v60  ;;  %v9244_v15 = vadd.f32 %v23528_v46, %v9208_v41  ;;  %17409 = vmatprep.mubr.msk.bf16.mxu0 %vm4695_vm5, %v9365_v55  ;;  %vm9275_vm9 = vcmp.ge.f32.partialorder %v9243_v60, 0.0 }
 0x5ec   : > { %v9309_v31 = vmul.f32 %v23534_v23, %v9241_v51  ;;  %v9242_v21 = vadd.f32 %v23528_v46, %v9206_v25  ;;  %17410 = vmatmul.mubr.msk.bf16.gmra.mrb[72].mxu0 %vm4695_vm5, %v9366_v38  ;;  %vm9273_vm10 = vcmp.ge.f32.partialorder %v9241_v51, 0.0 }
 0x5ed   : > { %vm9276_vm6 = vcmp.ge.f32.partialorder %v9244_v15, 0.0  ;;  %v9312_v47 = vmul.f32 %v23534_v23, %v9244_v15  ;;  %v9343_v28 = vsel %vm9275_vm9, %v9243_v60, %v9311_v18 }
 0x5ee   : > { %vm9274_vm12 = vcmp.ge.f32.partialorder %v9242_v21, 0.0  ;;  %v9310_v17 = vmul.f32 %v23534_v23, %v9242_v21  ;;  %v17385_v4 = vpop.f32.mrb[112].mxu0  ;;  %v9341_v61 = vsel %vm9273_vm10, %v9241_v51, %v9309_v31 }
 0x5ef   : > { %v9344_v36 = vsel %vm9276_vm6, %v9244_v15, %v9312_v47  ;;  %v9211_v8 = vmul.f32 %v17385_v4, %v23523_v49  ;;  %v9091_v10 = vpop.f32.mrb[113].mxu0 }
 0x5f0   : > { %v9342_v34 = vsel %vm9274_vm12, %v9242_v21, %v9310_v17  ;;  %v9209_v12 = vmul.f32 %v23523_v49, %v9091_v10  ;;  %v17386_v43 = vpop.f32.mrb[114].mxu0  ;;  %v9368_v52 = vpack.c.bf16 %v9344_v36, %v9343_v28 }
 0x5f1   : > { %v9247_v33 = vadd.f32 %v23528_v46, %v9211_v8  ;;  %v9212_v38 = vmul.f32 %v17386_v43, %v23523_v49  ;;  %v9094_v41 = vpop.f32.mrb[115].mxu0  ;;  %v9367_v42 = vpack.c.bf16 %v9342_v34, %v9341_v61 }
 0x5f2   : > { %v9245_v55 = vadd.f32 %v23528_v46, %v9209_v12  ;;  %v9210_v60 = vmul.f32 %v23523_v49, %v9094_v41 }
 0x5f3   : > { %v9315_v25 = vmul.f32 %v23534_v23, %v9247_v33  ;;  %v9248_v18 = vadd.f32 %v23528_v46, %v9212_v38  ;;  %17413 = vmatprep.mubr.msk.bf16.mxu0 %vm4695_vm5, %v9367_v42  ;;  %vm9279_vm11 = vcmp.ge.f32.partialorder %v9247_v33, 0.0 }
 0x5f4   : > { %v9313_v51 = vmul.f32 %v23534_v23, %v9245_v55  ;;  %v9246_v15 = vadd.f32 %v23528_v46, %v9210_v60  ;;  %17414 = vmatmul.mubr.msk.bf16.gmra.mrb[76].mxu0 %vm4695_vm5, %v9368_v52  ;;  %vm9277_vm0 = vcmp.ge.f32.partialorder %v9245_v55, 0.0 }
 0x5f5   : > { %vm9280_vm7 = vcmp.ge.f32.partialorder %v9248_v18, 0.0  ;;  %v9316_v31 = vmul.f32 %v23534_v23, %v9248_v18  ;;  %v9347_v17 = vsel %vm9279_vm11, %v9247_v33, %v9315_v25 }
 0x5f6   : > { %vm9278_vm13 = vcmp.ge.f32.partialorder %v9246_v15, 0.0  ;;  %v9314_v21 = vmul.f32 %v23534_v23, %v9246_v15  ;;  %v17389_v47 = vpop.f32.mrb[116].mxu0  ;;  %v9345_v8 = vsel %vm9277_vm0, %v9245_v55, %v9313_v51 }
 0x5f7   : > { %v9348_v4 = vsel %vm9280_vm7, %v9248_v18, %v9316_v31  ;;  %v9215_v28 = vmul.f32 %v17389_v47, %v23523_v49  ;;  %v9107_v36 = vpop.f32.mrb[117].mxu0 }
 0x5f8   : > { %v9346_v10 = vsel %vm9278_vm13, %v9246_v15, %v9314_v21  ;;  %v9213_v61 = vmul.f32 %v23523_v49, %v9107_v36  ;;  %v17390_v34 = vpop.f32.mrb[118].mxu0  ;;  %v9370_v12 = vpack.c.bf16 %v9348_v4, %v9347_v17 }
 0x5f9   : > { %v9251_v43 = vadd.f32 %v23528_v46, %v9215_v28  ;;  %v9216_v52 = vmul.f32 %v17390_v34, %v23523_v49  ;;  %v9110_v38 = vpop.f32.mrb[119].mxu0  ;;  %v9369_v41 = vpack.c.bf16 %v9346_v10, %v9345_v8 }
 0x5fa   : > { %v9249_v42 = vadd.f32 %v23528_v46, %v9213_v61  ;;  %v9214_v33 = vmul.f32 %v23523_v49, %v9110_v38 }
 0x5fb   : > { %v9319_v60 = vmul.f32 %v23534_v23, %v9251_v43  ;;  %v9252_v25 = vadd.f32 %v23528_v46, %v9216_v52  ;;  %17417 = vmatprep.mubr.msk.bf16.mxu0 %vm4695_vm5, %v9369_v41  ;;  %vm9283_vm14 = vcmp.ge.f32.partialorder %v9251_v43, 0.0 }
 0x5fc   : > { %v9317_v55 = vmul.f32 %v23534_v23, %v9249_v42  ;;  %v9250_v18 = vadd.f32 %v23528_v46, %v9214_v33  ;;  %17418 = vmatmul.mubr.msk.bf16.gmra.mrb[80].mxu0 %vm4695_vm5, %v9370_v12  ;;  %vm9281_vm15 = vcmp.ge.f32.partialorder %v9249_v42, 0.0 }
 0x5fd   : > { %vm9284_vm4 = vcmp.ge.f32.partialorder %v9252_v25, 0.0  ;;  %v9320_v51 = vmul.f32 %v23534_v23, %v9252_v25  ;;  %v9351_v21 = vsel %vm9283_vm14, %v9251_v43, %v9319_v60 }
 0x5fe   : > { %vm9282_vm2 = vcmp.ge.f32.partialorder %v9250_v18, 0.0  ;;  %v9318_v15 = vmul.f32 %v23534_v23, %v9250_v18  ;;  %v17393_v31 = vpop.f32.mrb[120].mxu0  ;;  %v9349_v28 = vsel %vm9281_vm15, %v9249_v42, %v9317_v55 }
 0x5ff   : > { %v9352_v47 = vsel %vm9284_vm4, %v9252_v25, %v9320_v51  ;;  %v9219_v17 = vmul.f32 %v17393_v31, %v23523_v49  ;;  %v9123_v4 = vpop.f32.mrb[121].mxu0 }
 0x600   : > { %v9350_v36 = vsel %vm9282_vm2, %v9250_v18, %v9318_v15  ;;  %v9217_v8 = vmul.f32 %v23523_v49, %v9123_v4  ;;  %v17394_v10 = vpop.f32.mrb[122].mxu0  ;;  %v9372_v61 = vpack.c.bf16 %v9352_v47, %v9351_v21 }
 0x601   : > { %v9255_v34 = vadd.f32 %v23528_v46, %v9219_v17  ;;  %v9220_v12 = vmul.f32 %v17394_v10, %v23523_v49  ;;  %v9126_v52 = vpop.f32.mrb[123].mxu0  ;;  %v9371_v38 = vpack.c.bf16 %v9350_v36, %v9349_v28 }
 0x602   : > { %v9253_v41 = vadd.f32 %v23528_v46, %v9217_v8  ;;  %v9218_v43 = vmul.f32 %v23523_v49, %v9126_v52 }
 0x603   : > { %v9323_v33 = vmul.f32 %v23534_v23, %v9255_v34  ;;  %v9256_v60 = vadd.f32 %v23528_v46, %v9220_v12  ;;  %17421 = vmatprep.mubr.msk.bf16.mxu0 %vm4695_vm5, %v9371_v38  ;;  %vm9287_vm3 = vcmp.ge.f32.partialorder %v9255_v34, 0.0 }
 0x604   : > { %v9321_v42 = vmul.f32 %v23534_v23, %v9253_v41  ;;  %v9254_v25 = vadd.f32 %v23528_v46, %v9218_v43  ;;  %17422 = vmatmul.mubr.msk.bf16.gmra.mrb[84].mxu0 %vm4695_vm5, %v9372_v61  ;;  %vm9285_vm8 = vcmp.ge.f32.partialorder %v9253_v41, 0.0 }
 0x605   : > { %vm9288_vm9 = vcmp.ge.f32.partialorder %v9256_v60, 0.0  ;;  %v9324_v55 = vmul.f32 %v23534_v23, %v9256_v60  ;;  %v9355_v15 = vsel %vm9287_vm3, %v9255_v34, %v9323_v33 }
 0x606   : > { %vm9286_vm10 = vcmp.ge.f32.partialorder %v9254_v25, 0.0  ;;  %v9322_v18 = vmul.f32 %v23534_v23, %v9254_v25  ;;  %v17397_v51 = vpop.f32.mrb[124].mxu0  ;;  %v9353_v17 = vsel %vm9285_vm8, %v9253_v41, %v9321_v42 }
 0x607   : > { %v9356_v31 = vsel %vm9288_vm9, %v9256_v60, %v9324_v55  ;;  %v9223_v21 = vmul.f32 %v17397_v51, %v23523_v49  ;;  %v9139_v47 = vpop.f32.mrb[125].mxu0 }
 0x608   : > { %v9354_v4 = vsel %vm9286_vm10, %v9254_v25, %v9322_v18  ;;  %v9221_v28 = vmul.f32 %v23523_v49, %v9139_v47  ;;  %v17398_v36 = vpop.f32.mrb[126].mxu0  ;;  %v9374_v8 = vpack.c.bf16 %v9356_v31, %v9355_v15 }
 0x609   : > { %v9259_v10 = vadd.f32 %v23528_v46, %v9223_v21  ;;  %v9224_v61 = vmul.f32 %v17398_v36, %v23523_v49  ;;  %v9142_v12 = vpop.f32.mrb[127].mxu0  ;;  %v9373_v52 = vpack.c.bf16 %v9354_v4, %v9353_v17 }
 0x60a   : > { %v9257_v38 = vadd.f32 %v23528_v46, %v9221_v28  ;;  %v9222_v34 = vmul.f32 %v23523_v49, %v9142_v12 }
 0x60b   : > { %v9327_v43 = vmul.f32 %v23534_v23, %v9259_v10  ;;  %v9260_v33 = vadd.f32 %v23528_v46, %v9224_v61  ;;  %17425 = vmatprep.mubr.msk.bf16.mxu0 %vm4695_vm5, %v9373_v52  ;;  %vm9291_vm6 = vcmp.ge.f32.partialorder %v9259_v10, 0.0 }
 0x60c   : > { %v9325_v41 = vmul.f32 %v23534_v23, %v9257_v38  ;;  %v9258_v60 = vadd.f32 %v23528_v46, %v9222_v34  ;;  %17426 = vmatmul.mubr.msk.bf16.gmra.mrb[88].mxu0 %vm4695_vm5, %v9374_v8  ;;  %vm9289_vm12 = vcmp.ge.f32.partialorder %v9257_v38, 0.0  ;;  %v24155_v46 = vpack.c.bf16 %v23089_v20, %v23087_v13 }
 0x60d   : > { %vm9292_vm11 = vcmp.ge.f32.partialorder %v9260_v33, 0.0  ;;  %v9328_v42 = vmul.f32 %v23534_v23, %v9260_v33  ;;  %v9359_v25 = vsel %vm9291_vm6, %v9259_v10, %v9327_v43  ;;  %v24162_v13 = vpack.c.bf16 %v23309_v27, %v23307_v3 }
 0x60e   : > { %vm9290_vm0 = vcmp.ge.f32.partialorder %v9258_v60, 0.0  ;;  %v9326_v49 = vmul.f32 %v23534_v23, %v9258_v60  ;;  %v9357_v18 = vsel %vm9289_vm12, %v9257_v38, %v9325_v41  ;;  %v24163_v20 = vpack.c.bf16 %v23297_v7, %v23295_v30 }
 0x60f   : > { %v9360_v55 = vsel %vm9292_vm11, %v9260_v33, %v9328_v42 }
 0x610   : > { %v9358_v51 = vsel %vm9290_vm0, %v9258_v60, %v9326_v49  ;;  %v9376_v15 = vpack.c.bf16 %v9360_v55, %v9359_v25 }
 0x611   : > { %v9375_v31 = vpack.c.bf16 %v9358_v51, %v9357_v18 }
 0x613   : > { %17429 = vmatprep.mubr.msk.bf16.mxu0 %vm4695_vm5, %v9375_v31 }
 0x614   : > { %17430 = vmatmul.mubr.msk.bf16.gmra.mrb[92].mxu0 %vm4695_vm5, %v9376_v15 }
 0x615   : > { %17741 = vmatprep.mubr.msk.bf16.mxu0 %vm4695_vm5, %v13459_v56  ;;  %v24161_v56 = vpack.c.bf16 %v23251_v59, %v23249_v19 }
 0x61c   : > { %17742 = vmatmul.mubr.msk.bf16.vlgmr.msra.gmra.mrb[64].mxu0 %vm4695_vm5, %v13460_v39  ;;  %v24159_v39 = vpack.c.bf16 %v23198_v29, %v23196_v5 }
 0x61d   : > { %17745 = vmatprep.mubr.msk.bf16.mxu0 %vm4695_vm5, %v13461_v63  ;;  %v23716_v63 = vld [vmem:[%s282_s19] ss:$0 sm:$0xff] }
 0x624   : > { %17746 = vmatmul.mubr.msk.bf16.gmra.mrb[68].mxu0 %vm4695_vm5, %v24155_v46 }
 0x625   : > { %17749 = vmatprep.mubr.msk.bf16.mxu0 %vm4695_vm5, %v24156_v0 }
 0x62c   : > { %17750 = vmatmul.mubr.msk.bf16.gmra.mrb[72].mxu0 %vm4695_vm5, %v24157_v16 }
 0x62d   : > { %17753 = vmatprep.mubr.msk.bf16.mxu0 %vm4695_vm5, %v24158_v24 }
 0x634   : > { %17754 = vmatmul.mubr.msk.bf16.gmra.mrb[76].mxu0 %vm4695_vm5, %v24159_v39 }
 0x635   : > { %17757 = vmatprep.mubr.msk.bf16.mxu0 %vm4695_vm5, %v24160_v40 }
 0x63c   : > { %17758 = vmatmul.mubr.msk.bf16.gmra.mrb[80].mxu0 %vm4695_vm5, %v24161_v56 }
 0x63d   : > { %17761 = vmatprep.mubr.msk.bf16.mxu0 %vm4695_vm5, %v24162_v13 }
 0x644   : > { %17762 = vmatmul.mubr.msk.bf16.gmra.mrb[84].mxu0 %vm4695_vm5, %v24163_v20 }
 0x645   : > { %17765 = vmatprep.mubr.msk.bf16.mxu0 %vm4695_vm5, %v13471_v54 }
 0x64c   : > { %17766 = vmatmul.mubr.msk.bf16.gmra.mrb[88].mxu0 %vm4695_vm5, %v24164_v9 }
 0x64d   : > { %17769 = vmatprep.mubr.msk.bf16.mxu0 %vm4695_vm5, %v13473_v62 }
 0x654   : > { %17770 = vmatmul.mubr.msk.bf16.gmra.mrb[92].mxu0 %vm4695_vm5, %v24165_v22 }
 0x6ef   : > { %v17743_v2 = vpop.f32.mrb[64].mxu0 }
 0x6f0   : > { %v13728_v57 = vmul.f32 %v17743_v2, %v23716_v63  ;;  %v13562_v35 = vpop.f32.mrb[65].mxu0 }
 0x6f1   : > { %v13726_v5 = vmul.f32 %v23716_v63, %v13562_v35  ;;  %v17744_v29 = vpop.f32.mrb[66].mxu0 }
 0x6f2   : > { %v13765_v32 = vadd.f32 %v23718_v1, %v13728_v57  ;;  %v13729_v53 = vmul.f32 %v17744_v29, %v23716_v63  ;;  %v13565_v19 = vpop.f32.mrb[67].mxu0 }
 0x6f3   : > { %v13763_v59 = vadd.f32 %v23718_v1, %v13726_v5  ;;  %v13727_v6 = vmul.f32 %v23716_v63, %v13565_v19 }
 0x6f4   : > { %vm13797_vm5 = vcmp.ge.f32.partialorder %v13765_v32, 0.0  ;;  %v13834_v50 = vmul.f32 %v23722_v44, %v13765_v32  ;;  %v13766_v30 = vadd.f32 %v23718_v1, %v13729_v53 }
 0x6f5   : > { %vm13795_vm7 = vcmp.ge.f32.partialorder %v13763_v59, 0.0  ;;  %v13832_v7 = vmul.f32 %v23722_v44, %v13763_v59  ;;  %v13764_v3 = vadd.f32 %v23718_v1, %v13727_v6 }
 0x6f6   : > { %v13866_v27 = vsel %vm13797_vm5, %v13765_v32, %v13834_v50  ;;  %vm13798_vm13 = vcmp.ge.f32.partialorder %v13766_v30, 0.0  ;;  %v13835_v11 = vmul.f32 %v23722_v44, %v13766_v30 }
 0x6f7   : > { %13898 = vst.msk [vmem:[%s23732_s27 + $0x10] sm:$0xff] %vm560_vm1, %v13866_v27  ;;  %v13864_v48 = vsel %vm13795_vm7, %v13763_v59, %v13832_v7  ;;  %vm13796_vm14 = vcmp.ge.f32.partialorder %v13764_v3, 0.0  ;;  %v13833_v37 = vmul.f32 %v23722_v44, %v13764_v3  ;;  %v17747_v54 = vpop.f32.mrb[68].mxu0 }
 0x6f8   : > { %13896 = vst.msk [vmem:[%s23732_s27] sm:$0xff] %vm560_vm1, %v13864_v48  ;;  %v13867_v58 = vsel %vm13798_vm13, %v13766_v30, %v13835_v11  ;;  %v13732_v45 = vmul.f32 %v17747_v54, %v23716_v63  ;;  %v13578_v26 = vpop.f32.mrb[69].mxu0 }
 0x6f9   : > { %13899 = vst.msk [vmem:[%s23732_s27 + $0x18] sm:$0xff] %vm560_vm1, %v13867_v58  ;;  %v13865_v14 = vsel %vm13796_vm14, %v13764_v3, %v13833_v37  ;;  %v13730_v62 = vmul.f32 %v23716_v63, %v13578_v26  ;;  %v17748_v23 = vpop.f32.mrb[70].mxu0 }
 0x6fa   : > { %13897 = vst.msk [vmem:[%s23732_s27 + $0x8] sm:$0xff] %vm560_vm1, %v13865_v14  ;;  %v13769_v21 = vadd.f32 %v23718_v1, %v13732_v45  ;;  %v13733_v47 = vmul.f32 %v17748_v23, %v23716_v63  ;;  %v13581_v17 = vpop.f32.mrb[71].mxu0 }
 0x6fb   : > { %v13767_v4 = vadd.f32 %v23718_v1, %v13730_v62  ;;  %v13731_v28 = vmul.f32 %v23716_v63, %v13581_v17 }
 0x6fc   : > { %vm13801_vm15 = vcmp.ge.f32.partialorder %v13769_v21, 0.0  ;;  %v13838_v36 = vmul.f32 %v23722_v44, %v13769_v21  ;;  %v13770_v8 = vadd.f32 %v23718_v1, %v13733_v47 }
 0x6fd   : > { %vm13799_vm4 = vcmp.ge.f32.partialorder %v13767_v4, 0.0  ;;  %v13836_v10 = vmul.f32 %v23722_v44, %v13767_v4  ;;  %v13768_v61 = vadd.f32 %v23718_v1, %v13731_v28 }
 0x6fe   : > { %v13870_v12 = vsel %vm13801_vm15, %v13769_v21, %v13838_v36  ;;  %vm13802_vm2 = vcmp.ge.f32.partialorder %v13770_v8, 0.0  ;;  %v13839_v52 = vmul.f32 %v23722_v44, %v13770_v8 }
 0x6ff   : > { %13902 = vst.msk [vmem:[%s23732_s27 + $0x30] sm:$0xff] %vm560_vm1, %v13870_v12  ;;  %v13868_v38 = vsel %vm13799_vm4, %v13767_v4, %v13836_v10  ;;  %vm13800_vm3 = vcmp.ge.f32.partialorder %v13768_v61, 0.0  ;;  %v13837_v34 = vmul.f32 %v23722_v44, %v13768_v61  ;;  %v17751_v43 = vpop.f32.mrb[72].mxu0 }
 0x700   : > { %13900 = vst.msk [vmem:[%s23732_s27 + $0x20] sm:$0xff] %vm560_vm1, %v13868_v38  ;;  %v13871_v33 = vsel %vm13802_vm2, %v13770_v8, %v13839_v52  ;;  %v13736_v41 = vmul.f32 %v17751_v43, %v23716_v63  ;;  %v13594_v60 = vpop.f32.mrb[73].mxu0 }
 0x701   : > { %13903 = vst.msk [vmem:[%s23732_s27 + $0x38] sm:$0xff] %vm560_vm1, %v13871_v33  ;;  %v13869_v42 = vsel %vm13800_vm3, %v13768_v61, %v13837_v34  ;;  %v13734_v49 = vmul.f32 %v23716_v63, %v13594_v60  ;;  %v17752_v25 = vpop.f32.mrb[74].mxu0 }
 0x702   : > { %13901 = vst.msk [vmem:[%s23732_s27 + $0x28] sm:$0xff] %vm560_vm1, %v13869_v42  ;;  %v13773_v55 = vadd.f32 %v23718_v1, %v13736_v41  ;;  %v13737_v18 = vmul.f32 %v17752_v25, %v23716_v63  ;;  %v13597_v51 = vpop.f32.mrb[75].mxu0 }
 0x703   : > { %v13771_v15 = vadd.f32 %v23718_v1, %v13734_v49  ;;  %v13735_v31 = vmul.f32 %v23716_v63, %v13597_v51 }
 0x704   : > { %vm13805_vm8 = vcmp.ge.f32.partialorder %v13773_v55, 0.0  ;;  %v13842_v46 = vmul.f32 %v23722_v44, %v13773_v55  ;;  %v13774_v0 = vadd.f32 %v23718_v1, %v13737_v18 }
 0x705   : > { %vm13803_vm9 = vcmp.ge.f32.partialorder %v13771_v15, 0.0  ;;  %v13840_v16 = vmul.f32 %v23722_v44, %v13771_v15  ;;  %v13772_v24 = vadd.f32 %v23718_v1, %v13735_v31 }
 0x706   : > { %v13874_v39 = vsel %vm13805_vm8, %v13773_v55, %v13842_v46  ;;  %vm13806_vm10 = vcmp.ge.f32.partialorder %v13774_v0, 0.0  ;;  %v13843_v40 = vmul.f32 %v23722_v44, %v13774_v0 }
 0x707   : > { %13906 = vst.msk [vmem:[%s23732_s27 + $0x50] sm:$0xff] %vm560_vm1, %v13874_v39  ;;  %v13872_v56 = vsel %vm13803_vm9, %v13771_v15, %v13840_v16  ;;  %vm13804_vm6 = vcmp.ge.f32.partialorder %v13772_v24, 0.0  ;;  %v13841_v13 = vmul.f32 %v23722_v44, %v13772_v24  ;;  %v17755_v20 = vpop.f32.mrb[76].mxu0 }
 0x708   : > { %13904 = vst.msk [vmem:[%s23732_s27 + $0x40] sm:$0xff] %vm560_vm1, %v13872_v56  ;;  %v13875_v9 = vsel %vm13806_vm10, %v13774_v0, %v13843_v40  ;;  %v13740_v22 = vmul.f32 %v17755_v20, %v23716_v63  ;;  %v13610_v2 = vpop.f32.mrb[77].mxu0 }
 0x709   : > { %13907 = vst.msk [vmem:[%s23732_s27 + $0x58] sm:$0xff] %vm560_vm1, %v13875_v9  ;;  %v13873_v57 = vsel %vm13804_vm6, %v13772_v24, %v13841_v13  ;;  %v13738_v35 = vmul.f32 %v23716_v63, %v13610_v2  ;;  %v17756_v5 = vpop.f32.mrb[78].mxu0 }
 0x70a   : > { %13905 = vst.msk [vmem:[%s23732_s27 + $0x48] sm:$0xff] %vm560_vm1, %v13873_v57  ;;  %v13777_v29 = vadd.f32 %v23718_v1, %v13740_v22  ;;  %v13741_v32 = vmul.f32 %v17756_v5, %v23716_v63  ;;  %v13613_v53 = vpop.f32.mrb[79].mxu0 }
 0x70b   : > { %v13775_v19 = vadd.f32 %v23718_v1, %v13738_v35  ;;  %v13739_v59 = vmul.f32 %v23716_v63, %v13613_v53 }
 0x70c   : > { %vm13809_vm12 = vcmp.ge.f32.partialorder %v13777_v29, 0.0  ;;  %v13846_v6 = vmul.f32 %v23722_v44, %v13777_v29  ;;  %v13778_v50 = vadd.f32 %v23718_v1, %v13741_v32 }
 0x70d   : > { %vm13807_vm11 = vcmp.ge.f32.partialorder %v13775_v19, 0.0  ;;  %v13844_v30 = vmul.f32 %v23722_v44, %v13775_v19  ;;  %v13776_v7 = vadd.f32 %v23718_v1, %v13739_v59 }
 0x70e   : > { %v13878_v3 = vsel %vm13809_vm12, %v13777_v29, %v13846_v6  ;;  %vm13810_vm0 = vcmp.ge.f32.partialorder %v13778_v50, 0.0  ;;  %v13847_v27 = vmul.f32 %v23722_v44, %v13778_v50 }
 0x70f   : > { %13910 = vst.msk [vmem:[%s23732_s27 + $0x70] sm:$0xff] %vm560_vm1, %v13878_v3  ;;  %v13876_v11 = vsel %vm13807_vm11, %v13775_v19, %v13844_v30  ;;  %vm13808_vm5 = vcmp.ge.f32.partialorder %v13776_v7, 0.0  ;;  %v13845_v48 = vmul.f32 %v23722_v44, %v13776_v7  ;;  %v17759_v37 = vpop.f32.mrb[80].mxu0 }
 0x710   : > { %13908 = vst.msk [vmem:[%s23732_s27 + $0x60] sm:$0xff] %vm560_vm1, %v13876_v11  ;;  %v13879_v54 = vsel %vm13810_vm0, %v13778_v50, %v13847_v27  ;;  %v13744_v58 = vmul.f32 %v17759_v37, %v23716_v63  ;;  %v13626_v45 = vpop.f32.mrb[81].mxu0 }
 0x711   : > { %13911 = vst.msk [vmem:[%s23732_s27 + $0x78] sm:$0xff] %vm560_vm1, %v13879_v54  ;;  %v13877_v26 = vsel %vm13808_vm5, %v13776_v7, %v13845_v48  ;;  %v13742_v14 = vmul.f32 %v23716_v63, %v13626_v45  ;;  %v17760_v62 = vpop.f32.mrb[82].mxu0 }
 0x712   : > { %13909 = vst.msk [vmem:[%s23732_s27 + $0x68] sm:$0xff] %vm560_vm1, %v13877_v26  ;;  %v13781_v23 = vadd.f32 %v23718_v1, %v13744_v58  ;;  %v13745_v21 = vmul.f32 %v17760_v62, %v23716_v63  ;;  %v13629_v47 = vpop.f32.mrb[83].mxu0 }
 0x713   : > { %v13779_v17 = vadd.f32 %v23718_v1, %v13742_v14  ;;  %v13743_v4 = vmul.f32 %v23716_v63, %v13629_v47 }
 0x714   : > { %vm13813_vm7 = vcmp.ge.f32.partialorder %v13781_v23, 0.0  ;;  %v13850_v28 = vmul.f32 %v23722_v44, %v13781_v23  ;;  %v13782_v36 = vadd.f32 %v23718_v1, %v13745_v21 }
 0x715   : > { %vm13811_vm13 = vcmp.ge.f32.partialorder %v13779_v17, 0.0  ;;  %v13848_v8 = vmul.f32 %v23722_v44, %v13779_v17  ;;  %v13780_v10 = vadd.f32 %v23718_v1, %v13743_v4 }
 0x716   : > { %v13882_v61 = vsel %vm13813_vm7, %v13781_v23, %v13850_v28  ;;  %vm13814_vm14 = vcmp.ge.f32.partialorder %v13782_v36, 0.0  ;;  %v13851_v12 = vmul.f32 %v23722_v44, %v13782_v36 }
 0x717   : > { %13914 = vst.msk [vmem:[%s23732_s27 + $0x90] sm:$0xff] %vm560_vm1, %v13882_v61  ;;  %v13880_v52 = vsel %vm13811_vm13, %v13779_v17, %v13848_v8  ;;  %vm13812_vm15 = vcmp.ge.f32.partialorder %v13780_v10, 0.0  ;;  %v13849_v38 = vmul.f32 %v23722_v44, %v13780_v10  ;;  %v17763_v34 = vpop.f32.mrb[84].mxu0 }
 0x718   : > { %13912 = vst.msk [vmem:[%s23732_s27 + $0x80] sm:$0xff] %vm560_vm1, %v13880_v52  ;;  %v13883_v43 = vsel %vm13814_vm14, %v13782_v36, %v13851_v12  ;;  %v13748_v33 = vmul.f32 %v17763_v34, %v23716_v63  ;;  %v13642_v41 = vpop.f32.mrb[85].mxu0 }
 0x719   : > { %13915 = vst.msk [vmem:[%s23732_s27 + $0x98] sm:$0xff] %vm560_vm1, %v13883_v43  ;;  %v13881_v60 = vsel %vm13812_vm15, %v13780_v10, %v13849_v38  ;;  %v13746_v42 = vmul.f32 %v23716_v63, %v13642_v41  ;;  %v17764_v49 = vpop.f32.mrb[86].mxu0 }
 0x71a   : > { %13913 = vst.msk [vmem:[%s23732_s27 + $0x88] sm:$0xff] %vm560_vm1, %v13881_v60  ;;  %v13785_v25 = vadd.f32 %v23718_v1, %v13748_v33  ;;  %v13749_v55 = vmul.f32 %v17764_v49, %v23716_v63  ;;  %v13645_v18 = vpop.f32.mrb[87].mxu0 }
 0x71b   : > { %v13783_v51 = vadd.f32 %v23718_v1, %v13746_v42  ;;  %v13747_v15 = vmul.f32 %v23716_v63, %v13645_v18 }
 0x71c   : > { %vm13817_vm4 = vcmp.ge.f32.partialorder %v13785_v25, 0.0  ;;  %v13854_v31 = vmul.f32 %v23722_v44, %v13785_v25  ;;  %v13786_v46 = vadd.f32 %v23718_v1, %v13749_v55 }
 0x71d   : > { %vm13815_vm2 = vcmp.ge.f32.partialorder %v13783_v51, 0.0  ;;  %v13852_v0 = vmul.f32 %v23722_v44, %v13783_v51  ;;  %v13784_v16 = vadd.f32 %v23718_v1, %v13747_v15 }
 0x71e   : > { %v13886_v24 = vsel %vm13817_vm4, %v13785_v25, %v13854_v31  ;;  %vm13818_vm3 = vcmp.ge.f32.partialorder %v13786_v46, 0.0  ;;  %v13855_v39 = vmul.f32 %v23722_v44, %v13786_v46 }
 0x71f   : > { %13918 = vst.msk [vmem:[%s23732_s27 + $0xb0] sm:$0xff] %vm560_vm1, %v13886_v24  ;;  %v13884_v40 = vsel %vm13815_vm2, %v13783_v51, %v13852_v0  ;;  %vm13816_vm8 = vcmp.ge.f32.partialorder %v13784_v16, 0.0  ;;  %v13853_v56 = vmul.f32 %v23722_v44, %v13784_v16  ;;  %v17767_v13 = vpop.f32.mrb[88].mxu0 }
 0x720   : > { %13916 = vst.msk [vmem:[%s23732_s27 + $0xa0] sm:$0xff] %vm560_vm1, %v13884_v40  ;;  %v13887_v20 = vsel %vm13818_vm3, %v13786_v46, %v13855_v39  ;;  %v13752_v9 = vmul.f32 %v17767_v13, %v23716_v63  ;;  %v13658_v22 = vpop.f32.mrb[89].mxu0 }
 0x721   : > { %13919 = vst.msk [vmem:[%s23732_s27 + $0xb8] sm:$0xff] %vm560_vm1, %v13887_v20  ;;  %v13885_v2 = vsel %vm13816_vm8, %v13784_v16, %v13853_v56  ;;  %v13750_v57 = vmul.f32 %v23716_v63, %v13658_v22  ;;  %v17768_v35 = vpop.f32.mrb[90].mxu0 }
 0x722   : > { %13917 = vst.msk [vmem:[%s23732_s27 + $0xa8] sm:$0xff] %vm560_vm1, %v13885_v2  ;;  %v13789_v5 = vadd.f32 %v23718_v1, %v13752_v9  ;;  %v13753_v29 = vmul.f32 %v17768_v35, %v23716_v63  ;;  %v13661_v32 = vpop.f32.mrb[91].mxu0 }
 0x723   : > { %v13787_v53 = vadd.f32 %v23718_v1, %v13750_v57  ;;  %v13751_v19 = vmul.f32 %v23716_v63, %v13661_v32 }
 0x724   : > { %vm13821_vm9 = vcmp.ge.f32.partialorder %v13789_v5, 0.0  ;;  %v13858_v59 = vmul.f32 %v23722_v44, %v13789_v5  ;;  %v13790_v6 = vadd.f32 %v23718_v1, %v13753_v29 }
 0x725   : > { %vm13819_vm10 = vcmp.ge.f32.partialorder %v13787_v53, 0.0  ;;  %v13856_v50 = vmul.f32 %v23722_v44, %v13787_v53  ;;  %v13788_v30 = vadd.f32 %v23718_v1, %v13751_v19 }
 0x726   : > { %v13890_v7 = vsel %vm13821_vm9, %v13789_v5, %v13858_v59  ;;  %vm13822_vm6 = vcmp.ge.f32.partialorder %v13790_v6, 0.0  ;;  %v13859_v3 = vmul.f32 %v23722_v44, %v13790_v6 }
 0x727   : > { %13922 = vst.msk [vmem:[%s23732_s27 + $0xd0] sm:$0xff] %vm560_vm1, %v13890_v7  ;;  %v13888_v27 = vsel %vm13819_vm10, %v13787_v53, %v13856_v50  ;;  %vm13820_vm12 = vcmp.ge.f32.partialorder %v13788_v30, 0.0  ;;  %v13857_v11 = vmul.f32 %v23722_v44, %v13788_v30  ;;  %v17771_v48 = vpop.f32.mrb[92].mxu0 }
 0x728   : > { %13920 = vst.msk [vmem:[%s23732_s27 + $0xc0] sm:$0xff] %vm560_vm1, %v13888_v27  ;;  %v13891_v37 = vsel %vm13822_vm6, %v13790_v6, %v13859_v3  ;;  %v13756_v54 = vmul.f32 %v17771_v48, %v23716_v63  ;;  %v13674_v58 = vpop.f32.mrb[93].mxu0 }
 0x729   : > { %13923 = vst.msk [vmem:[%s23732_s27 + $0xd8] sm:$0xff] %vm560_vm1, %v13891_v37  ;;  %v13889_v45 = vsel %vm13820_vm12, %v13788_v30, %v13857_v11  ;;  %v13754_v26 = vmul.f32 %v23716_v63, %v13674_v58  ;;  %v17772_v14 = vpop.f32.mrb[94].mxu0 }
 0x72a   : > { %13921 = vst.msk [vmem:[%s23732_s27 + $0xc8] sm:$0xff] %vm560_vm1, %v13889_v45  ;;  %v13793_v62 = vadd.f32 %v23718_v1, %v13756_v54  ;;  %v13757_v23 = vmul.f32 %v17772_v14, %v23716_v63  ;;  %v13677_v21 = vpop.f32.mrb[95].mxu0 }
 0x72b   : > { %v13791_v47 = vadd.f32 %v23718_v1, %v13754_v26  ;;  %v13755_v17 = vmul.f32 %v23716_v63, %v13677_v21 }
 0x72c   : > { %vm13825_vm11 = vcmp.ge.f32.partialorder %v13793_v62, 0.0  ;;  %v13862_v4 = vmul.f32 %v23722_v44, %v13793_v62  ;;  %v13794_v28 = vadd.f32 %v23718_v1, %v13757_v23 }
 0x72d   : > { %vm13823_vm0 = vcmp.ge.f32.partialorder %v13791_v47, 0.0  ;;  %v13860_v36 = vmul.f32 %v23722_v44, %v13791_v47  ;;  %v13792_v8 = vadd.f32 %v23718_v1, %v13755_v17 }
 0x72e   : > { %v13894_v10 = vsel %vm13825_vm11, %v13793_v62, %v13862_v4  ;;  %vm13826_vm5 = vcmp.ge.f32.partialorder %v13794_v28, 0.0  ;;  %v13863_v61 = vmul.f32 %v23722_v44, %v13794_v28 }
 0x72f   : > { %13926 = vst.msk [vmem:[%s23732_s27 + $0xf0] sm:$0xff] %vm560_vm1, %v13894_v10  ;;  %v13892_v12 = vsel %vm13823_vm0, %v13791_v47, %v13860_v36  ;;  %vm13824_vm7 = vcmp.ge.f32.partialorder %v13792_v8, 0.0  ;;  %v13861_v63 = vmul.f32 %v23722_v44, %v13792_v8 }
 0x730   : > { %13924 = vst.msk [vmem:[%s23732_s27 + $0xe0] sm:$0xff] %vm560_vm1, %v13892_v12  ;;  %v13895_v52 = vsel %vm13826_vm5, %v13794_v28, %v13863_v61 }
 0x731   : > { %13927 = vst.msk [vmem:[%s23732_s27 + $0xf8] sm:$0xff] %vm560_vm1, %v13895_v52  ;;  %v13893_v38 = vsel %vm13824_vm7, %v13792_v8, %v13861_v63 }
 0x732   : > { %13925 = vst.msk [vmem:[%s23732_s27 + $0xe8] sm:$0xff] %vm560_vm1, %v13893_v38 }
 0x733 PF: > { %s16_s23 = sadd.s32 1, %s18875_s23   ;;  %s24166_s21 = smov %s18871_s22 }
 0x734   : > { %p13_p5 = scmp.ge.s32.totalorder %s16_s23, 4   ;;  %s24167_s22 = smov %s24169_s24 }
 0x736   :  { %15 = sbr.rel (!%p13_p5) target bundleno = 2 (0x2), region = 113 }

</bundles_post_ra>
